<compile_context>
chip_gen: v5e
topology: v5e:2x2
jax: 0.10.0
libtpu: 0.0.40
codegen_flags: <defaults>
</compile_context>

<pallas_src>
import functools
import math

import jax
import jax.numpy as jnp
from jax.experimental import pallas as pl
from jax.experimental.pallas import tpu as pltpu

_BN_EPS = 1e-5
_INV_SQRT2 = 1.0 / math.sqrt(2.0)
_LANE = 128
_ROW_TILE_TARGET = 512
_VMEM_LIMIT = 48 * 1024 * 1024     # leaves headroom inside v7x's 64 MiB VMEM


def _round_up(x, m):
    return (x + m - 1) // m * m


def _pick_row_tile(m, target=_ROW_TILE_TARGET):
    """Largest multiple-of-8 divisor of m that is <= target (else m itself)."""
    if m <= target:
        return m
    t = (target // 8) * 8
    while t >= 8:
        if m % t == 0:
            return t
        t -= 8
    return m


def _gelu(x, exact):
    if exact:
        # PyTorch default F.gelu / nn.GELU(): exact erf-based GELU.
        return 0.5 * x * (1.0 + jax.lax.erf(x * _INV_SQRT2))
    # TODO(synk): erf not lowerable in this Pallas/Mosaic build; tanh-approx
    # GELU differs slightly from PyTorch's exact erf GELU.
    c = 0.7978845608028654  # sqrt(2/pi)
    return 0.5 * x * (1.0 + jnp.tanh(c * (x + 0.044715 * x * x * x)))


def _bn_scale_shift(s, ss, g, b, count):
    """Training-mode BN: per-channel batch mean / biased var -> scale & shift."""
    inv_n = 1.0 / float(count)
    mu = s * inv_n
    var = jnp.maximum(ss * inv_n - mu * mu, 0.0)
    scale = g * jax.lax.rsqrt(var + _BN_EPS)
    shift = b - mu * scale
    return scale, shift


# ----------------------------------------------------------------------------
# erf capability probe (decides exact vs. approximate GELU at runtime).
# ----------------------------------------------------------------------------
def _erf_probe_kernel(x_ref, o_ref):
    o_ref[...] = jax.lax.erf(x_ref[...])


def _erf_supported():
    try:
        x = jnp.zeros((8, 128), jnp.float32)
        out = pl.pallas_call(
            _erf_probe_kernel,
            out_shape=jax.ShapeDtypeStruct((8, 128), jnp.float32),
        )(x)
        jax.block_until_ready(out)
        return True
    except Exception:
        return False


# ----------------------------------------------------------------------------
# Kernel 1: conv1 (1x1x1) + downsample conv (1x1x1), fused over one read of x,
# plus BN1 / BNd statistics accumulated across row tiles.
# ----------------------------------------------------------------------------
def _conv1_down_stats_kernel(x_ref, w1_ref, wd_ref,
                             y1_ref, yd_ref, s1_ref, ss1_ref, sd_ref, ssd_ref):
    i = pl.program_id(0)

    @pl.when(i == 0)
    def _():
        s1_ref[...] = jnp.zeros_like(s1_ref)
        ss1_ref[...] = jnp.zeros_like(ss1_ref)
        sd_ref[...] = jnp.zeros_like(sd_ref)
        ssd_ref[...] = jnp.zeros_like(ssd_ref)

    xb = x_ref[...].astype(jnp.bfloat16)
    y1 = jnp.dot(xb, w1_ref[...], preferred_element_type=jnp.float32)
    yd = jnp.dot(xb, wd_ref[...], preferred_element_type=jnp.float32)
    y1_ref[...] = y1
    yd_ref[...] = yd
    s1_ref[...] += jnp.sum(y1, axis=0, keepdims=True)
    ss1_ref[...] += jnp.sum(y1 * y1, axis=0, keepdims=True)
    sd_ref[...] += jnp.sum(yd, axis=0, keepdims=True)
    ssd_ref[...] += jnp.sum(yd * yd, axis=0, keepdims=True)


def conv1_downsample_stats(x, w1, wd, *, tm):
    M, cin = x.shape
    c1 = w1.shape[1]
    cd = wd.shape[1]
    return pl.pallas_call(
        _conv1_down_stats_kernel,
        out_shape=(
            jax.ShapeDtypeStruct((M, c1), jnp.float32),
            jax.ShapeDtypeStruct((M, cd), jnp.float32),
            jax.ShapeDtypeStruct((1, c1), jnp.float32),
            jax.ShapeDtypeStruct((1, c1), jnp.float32),
            jax.ShapeDtypeStruct((1, cd), jnp.float32),
            jax.ShapeDtypeStruct((1, cd), jnp.float32),
        ),
        grid=(M // tm,),
        in_specs=[
            pl.BlockSpec((tm, cin), lambda i: (i, 0)),
            pl.BlockSpec((cin, c1), lambda i: (0, 0)),
            pl.BlockSpec((cin, cd), lambda i: (0, 0)),
        ],
        out_specs=(
            pl.BlockSpec((tm, c1), lambda i: (i, 0)),
            pl.BlockSpec((tm, cd), lambda i: (i, 0)),
            pl.BlockSpec((1, c1), lambda i: (0, 0)),
            pl.BlockSpec((1, c1), lambda i: (0, 0)),
            pl.BlockSpec((1, cd), lambda i: (0, 0)),
            pl.BlockSpec((1, cd), lambda i: (0, 0)),
        ),
        compiler_params=pltpu.CompilerParams(
            dimension_semantics=("arbitrary",),
            vmem_limit_bytes=_VMEM_LIMIT),
        cost_estimate=pl.CostEstimate(
            flops=2 * M * cin * (c1 + cd),
            transcendentals=0,
            bytes_accessed=4 * M * (cin + c1 + cd) + 2 * cin * (c1 + cd)),
    )(x, w1, wd)


# ----------------------------------------------------------------------------
# Kernel 2: BN apply (batch stats) + GELU, tiled over rows ("parallel").
# ----------------------------------------------------------------------------
def _bn_gelu_kernel(y_ref, s_ref, ss_ref, g_ref, b_ref, o_ref, *,
                    count, exact_gelu):
    scale, shift = _bn_scale_shift(s_ref[...], ss_ref[...],
                                   g_ref[...], b_ref[...], count)
    h = _gelu(y_ref[...] * scale + shift, exact_gelu)
    o_ref[...] = h.astype(o_ref.dtype)


def bn_gelu(y, s, ss, g, b, *, count, out_dtype, exact_gelu, tm):
    M, c = y.shape
    kernel = functools.partial(_bn_gelu_kernel, count=count,
                               exact_gelu=exact_gelu)
    vec_specs = [pl.BlockSpec((1, c), lambda i: (0, 0)) for _ in range(4)]
    return pl.pallas_call(
        kernel,
        out_shape=jax.ShapeDtypeStruct((M, c), out_dtype),
        grid=(M // tm,),
        in_specs=[pl.BlockSpec((tm, c), lambda i: (i, 0))] + vec_specs,
        out_specs=pl.BlockSpec((tm, c), lambda i: (i, 0)),
        compiler_params=pltpu.CompilerParams(
            dimension_semantics=("parallel",),
            vmem_limit_bytes=_VMEM_LIMIT),
    )(y, s, ss, g, b)


# ----------------------------------------------------------------------------
# Kernel 3: 3x3x3 conv (stride=1, pad=1) + BN2 statistics.
# Input is the spatially zero-padded h1 with (H+2, W+2) flattened into a row
# axis; per grid step (n, d) three consecutive depth slices are delivered and
# every tap is a statically shifted contiguous row window of one slice.
# ----------------------------------------------------------------------------
def _conv3x3x3_stats_kernel(h0_ref, h1_ref, h2_ref, w_ref,
                            y_ref, s_ref, ss_ref, *, W, Wp, R_o):
    first = (pl.program_id(0) + pl.program_id(1)) == 0

    @pl.when(first)
    def _():
        s_ref[...] = jnp.zeros_like(s_ref)
        ss_ref[...] = jnp.zeros_like(ss_ref)

    slabs = (h0_ref, h1_ref, h2_ref)
    c_out = y_ref.shape[-1]
    acc = jnp.zeros((R_o, c_out), jnp.float32)
    # 27 unrolled tap matmuls; weights stay VMEM-resident, accumulation in f32.
    for kd in range(3):
        for kh in range(3):
            for kw in range(3):
                tap = (kd * 3 + kh) * 3 + kw
                win = slabs[kd][pl.ds(kh * Wp + kw, R_o), :]
                acc += jnp.dot(win, w_ref[tap],
                               preferred_element_type=jnp.float32)
    # Zero the junk rows (padded w positions) so BN statistics and downstream
    # consumers see exact zeros there.
    rows = jax.lax.broadcasted_iota(jnp.int32, (R_o, 1), 0)
    mask = ((rows % Wp) < W).astype(jnp.float32)
    y = acc * mask
    y_ref[...] = y
    s_ref[...] += jnp.sum(y, axis=0, keepdims=True)
    ss_ref[...] += jnp.sum(y * y, axis=0, keepdims=True)


def conv3x3x3_stats(h1p, w2, *, N, D, H, W):
    # h1p: (N, D+2, (H+2)*(W+2), Cin) bf16, centered spatial zero padding.
    Wp, Hp = W + 2, H + 2
    S2p = Hp * Wp
    R_o = H * Wp - 2                    # output rows per depth slice
    cin = w2.shape[1]
    cout = w2.shape[2]
    kernel = functools.partial(_conv3x3x3_stats_kernel, W=W, Wp=Wp, R_o=R_o)
    in_specs = [
        pl.BlockSpec((None, None, S2p, cin),
                     (lambda n, d, kd=kd: (n, d + kd, 0, 0)))
        for kd in range(3)
    ] + [pl.BlockSpec((27, cin, cout), lambda n, d: (0, 0, 0))]
    out_specs = (
        pl.BlockSpec((None, None, R_o, cout), lambda n, d: (n, d, 0, 0)),
        pl.BlockSpec((1, cout), lambda n, d: (0, 0)),
        pl.BlockSpec((1, cout), lambda n, d: (0, 0)),
    )
    return pl.pallas_call(
        kernel,
        out_shape=(
            jax.ShapeDtypeStruct((N, D, R_o, cout), jnp.float32),
            jax.ShapeDtypeStruct((1, cout), jnp.float32),
            jax.ShapeDtypeStruct((1, cout), jnp.float32),
        ),
        grid=(N, D),
        in_specs=in_specs,
        out_specs=out_specs,
        compiler_params=pltpu.CompilerParams(
            dimension_semantics=("arbitrary", "arbitrary"),
            vmem_limit_bytes=_VMEM_LIMIT),
        cost_estimate=pl.CostEstimate(
            flops=2 * N * D * R_o * 27 * cin * cout,
            transcendentals=0,
            bytes_accessed=(2 * 3 * N * (D + 2) * S2p * cin
                            + 4 * N * D * R_o * cout + 2 * 27 * cin * cout)),
    )(h1p, h1p, h1p, w2)


# ----------------------------------------------------------------------------
# Kernel 4: BN2 apply + GELU + conv3 (1x1x1 expand) + BN3 statistics, fused so
# h2 never touches HBM.
# ----------------------------------------------------------------------------
def _bn_gelu_matmul_stats_kernel(y_ref, s_ref, ss_ref, g_ref, b_ref, w_ref,
                                 o_ref, so_ref, sso_ref, *, count, exact_gelu):
    i = pl.program_id(0)

    @pl.when(i == 0)
    def _():
        so_ref[...] = jnp.zeros_like(so_ref)
        sso_ref[...] = jnp.zeros_like(sso_ref)

    scale, shift = _bn_scale_shift(s_ref[...], ss_ref[...],
                                   g_ref[...], b_ref[...], count)
    h = _gelu(y_ref[...] * scale + shift, exact_gelu)
    y3 = jnp.dot(h.astype(jnp.bfloat16), w_ref[...],
                 preferred_element_type=jnp.float32)
    o_ref[...] = y3
    so_ref[...] += jnp.sum(y3, axis=0, keepdims=True)
    sso_ref[...] += jnp.sum(y3 * y3, axis=0, keepdims=True)


def bn_gelu_matmul_stats(y, s, ss, g, b, w, *, count, exact_gelu, tm):
    M, cin = y.shape
    cout = w.shape[1]
    kernel = functools.partial(_bn_gelu_matmul_stats_kernel, count=count,
                               exact_gelu=exact_gelu)
    vec_specs = [pl.BlockSpec((1, cin), lambda i: (0, 0)) for _ in range(4)]
    return pl.pallas_call(
        kernel,
        out_shape=(
            jax.ShapeDtypeStruct((M, cout), jnp.float32),
            jax.ShapeDtypeStruct((1, cout), jnp.float32),
            jax.ShapeDtypeStruct((1, cout), jnp.float32),
        ),
        grid=(M // tm,),
        in_specs=([pl.BlockSpec((tm, cin), lambda i: (i, 0))] + vec_specs
                  + [pl.BlockSpec((cin, cout), lambda i: (0, 0))]),
        out_specs=(
            pl.BlockSpec((tm, cout), lambda i: (i, 0)),
            pl.BlockSpec((1, cout), lambda i: (0, 0)),
            pl.BlockSpec((1, cout), lambda i: (0, 0)),
        ),
        compiler_params=pltpu.CompilerParams(
            dimension_semantics=("arbitrary",),
            vmem_limit_bytes=_VMEM_LIMIT),
        cost_estimate=pl.CostEstimate(
            flops=2 * M * cin * cout,
            transcendentals=M * cin,
            bytes_accessed=4 * M * (cin + cout) + 2 * cin * cout),
    )(y, s, ss, g, b, w)


# ----------------------------------------------------------------------------
# Kernel 5: fused epilogue — BN3 apply + BNd apply + residual add + GELU.
# ----------------------------------------------------------------------------
def _residual_bn_add_gelu_kernel(y3_ref, yd_ref, s3_ref, ss3_ref, g3_ref,
                                 b3_ref, sd_ref, ssd_ref, gd_ref, bd_ref,
                                 o_ref, *, count, exact_gelu):
    sc3, sh3 = _bn_scale_shift(s3_ref[...], ss3_ref[...],
                               g3_ref[...], b3_ref[...], count)
    scd, shd = _bn_scale_shift(sd_ref[...], ssd_ref[...],
                               gd_ref[...], bd_ref[...], count)
    z = (y3_ref[...] * sc3 + sh3) + (yd_ref[...] * scd + shd)
    o_ref[...] = _gelu(z, exact_gelu)


def residual_bn_add_gelu(y3, yd, s3, ss3, g3, b3, sd, ssd, gd, bd, *,
                         count, exact_gelu, tm):
    M, c = y3.shape
    kernel = functools.partial(_residual_bn_add_gelu_kernel, count=count,
                               exact_gelu=exact_gelu)
    vec_specs = [pl.BlockSpec((1, c), lambda i: (0, 0)) for _ in range(8)]
    return pl.pallas_call(
        kernel,
        out_shape=jax.ShapeDtypeStruct((M, c), jnp.float32),
        grid=(M // tm,),
        in_specs=([pl.BlockSpec((tm, c), lambda i: (i, 0)),
                   pl.BlockSpec((tm, c), lambda i: (i, 0))] + vec_specs),
        out_specs=pl.BlockSpec((tm, c), lambda i: (i, 0)),
        compiler_params=pltpu.CompilerParams(
            dimension_semantics=("parallel",),
            vmem_limit_bytes=_VMEM_LIMIT),
    )(y3, yd, s3, ss3, g3, b3, sd, ssd, gd, bd)


# ----------------------------------------------------------------------------
# Parameter init (deterministic, synthetic) + channel padding + forward pass.
# ----------------------------------------------------------------------------
def init_params(key, in_channels, out_channels):
    c_mid = out_channels
    c_out = out_channels * 4
    ks = jax.random.split(key, 12)

    def conv_w(k, shape, fan_in):
        return (jax.random.normal(k, shape, jnp.float32)
                / math.sqrt(float(fan_in)))

    return {
        "w1": conv_w(ks[0], (in_channels, c_mid), in_channels),
        "g1": 1.0 + 0.1 * jax.random.normal(ks[1], (c_mid,), jnp.float32),
        "b1": 0.1 * jax.random.normal(ks[2], (c_mid,), jnp.float32),
        "w2": conv_w(ks[3], (3, 3, 3, c_mid, c_mid), 27 * c_mid),
        "g2": 1.0 + 0.1 * jax.random.normal(ks[4], (c_mid,), jnp.float32),
        "b2": 0.1 * jax.random.normal(ks[5], (c_mid,), jnp.float32),
        "w3": conv_w(ks[6], (c_mid, c_out), c_mid),
        "g3": 1.0 + 0.1 * jax.random.normal(ks[7], (c_out,), jnp.float32),
        "b3": 0.1 * jax.random.normal(ks[8], (c_out,), jnp.float32),
        "wd": conv_w(ks[9], (in_channels, c_out), in_channels),
        "gd": 1.0 + 0.1 * jax.random.normal(ks[10], (c_out,), jnp.float32),
        "bd": 0.1 * jax.random.normal(ks[11], (c_out,), jnp.float32),
    }


def _pad_last(a, target):
    pad = target - a.shape[-1]
    if pad == 0:
        return a
    cfg = [(0, 0)] * (a.ndim - 1) + [(0, pad)]
    return jnp.pad(a, cfg)


def prepare_params(params):
    """Zero-pad channels to lane width (128) and cast conv weights to bf16.

    Padded gamma/beta are zero, so padded channels stay exactly zero through
    every BN/GELU stage (they are sliced away at the end).
    """
    cin = params["w1"].shape[0]
    cmid = params["w1"].shape[1]
    cout = params["w3"].shape[1]
    cin_p = _round_up(cin, _LANE)
    cmid_p = _round_up(cmid, _LANE)
    cout_p = _round_up(cout, _LANE)

    def pad2(w, r, c):
        w = jnp.pad(w, ((0, r - w.shape[0]), (0, c - w.shape[1])))
        return w.astype(jnp.bfloat16)

    w2 = jnp.pad(params["w2"], ((0, 0), (0, 0), (0, 0),
                                (0, cmid_p - cmid), (0, cmid_p - cmid)))
    w2 = w2.reshape(27, cmid_p, cmid_p).astype(jnp.bfloat16)

    def vec(v, c):
        return _pad_last(v, c).reshape(1, c).astype(jnp.float32)

    return {
        "w1": pad2(params["w1"], cin_p, cmid_p),
        "wd": pad2(params["wd"], cin_p, cout_p),
        "w2": w2,
        "w3": pad2(params["w3"], cmid_p, cout_p),
        "g1": vec(params["g1"], cmid_p), "b1": vec(params["b1"], cmid_p),
        "g2": vec(params["g2"], cmid_p), "b2": vec(params["b2"], cmid_p),
        "g3": vec(params["g3"], cout_p), "b3": vec(params["b3"], cout_p),
        "gd": vec(params["gd"], cout_p), "bd": vec(params["bd"], cout_p),
    }


def res_block_101(x_ncdhw, pp, *, out_channels, exact_gelu):
    N, cin, D, H, W = x_ncdhw.shape
    M = N * D * H * W
    cin_p = pp["w1"].shape[0]
    cmid_p = pp["w1"].shape[1]
    Wp = W + 2
    S2p = (H + 2) * Wp
    R_o = H * Wp - 2
    tm = _pick_row_tile(M)

    # NCDHW -> (M, Cin_p) channels-last rows with zero-padded channels.
    x = jnp.transpose(x_ncdhw, (0, 2, 3, 4, 1)).reshape(M, cin)
    x = _pad_last(x, cin_p).astype(jnp.float32)

    # conv1 + downsample conv + BN1/BNd statistics (one read of x).
    y1, yd, s1, ss1, sd, ssd = conv1_downsample_stats(
        x, pp["w1"], pp["wd"], tm=tm)

    # BN1 apply + GELU -> h1 (bf16).
    h1 = bn_gelu(y1, s1, ss1, pp["g1"], pp["b1"], count=M,
                 out_dtype=jnp.bfloat16, exact_gelu=exact_gelu, tm=tm)

    # Spatially zero-pad h1 once (this is the conv's padding=1), flatten (H,W).
    h1p = h1.reshape(N, D, H, W, cmid_p)
    h1p = jnp.pad(h1p, ((0, 0), (1, 1), (1, 1), (1, 1), (0, 0)))
    h1p = h1p.reshape(N, D + 2, S2p, cmid_p)

    # 3x3x3 conv + BN2 statistics (junk rows masked to zero in-kernel).
    y2, s2, ss2 = conv3x3x3_stats(h1p, pp["w2"], N=N, D=D, H=H, W=W)

    # Drop the junk rows of the padded-row output -> dense (M, Cmid) layout.
    y2 = jnp.pad(y2, ((0, 0), (0, 0), (0, H * Wp - R_o), (0, 0)))
    y2 = y2.reshape(N, D, H, Wp, cmid_p)[:, :, :, :W, :].reshape(M, cmid_p)

    # BN2 apply + GELU + conv3 (1x1x1 expand) + BN3 statistics, fused.
    y3, s3, ss3 = bn_gelu_matmul_stats(
        y2, s2, ss2, pp["g2"], pp["b2"], pp["w3"],
        count=M, exact_gelu=exact_gelu, tm=tm)

    # BN3 + BNd + residual add + final GELU, fused.
    out = residual_bn_add_gelu(y3, yd, s3, ss3, pp["g3"], pp["b3"],
                               sd, ssd, pp["gd"], pp["bd"],
                               count=M, exact_gelu=exact_gelu, tm=tm)

    c_out = 4 * out_channels
    out = out[:, :c_out].reshape(N, D, H, W, c_out)
    return jnp.transpose(out, (0, 4, 1, 2, 3))           # NDHWC -> NCDHW


if __name__ == "__main__":
    root = jax.random.PRNGKey(0)
    k_x, k_p = jax.random.split(root)

    # Small shapes consistent with the module: NCDHW input for Conv3d.
    N, Cin, D, H, W = 2, 4, 8, 8, 8
    out_channels = 8                    # block expands to 4*out_channels
    x = jax.random.normal(k_x, (N, Cin, D, H, W), jnp.float32)
    params = init_params(k_p, Cin, out_channels)
    pp = prepare_params(params)

    exact = _erf_supported()
    fwd = jax.jit(functools.partial(res_block_101,
                                    out_channels=out_channels,
                                    exact_gelu=exact))
    y = fwd(x, pp)
    y = jax.block_until_ready(y)

    assert y.shape == (N, 4 * out_channels, D, H, W), y.shape
    assert bool(jnp.all(jnp.isfinite(y)))
    print("KERNEL_OK")
</pallas_src>

<mosaic_0001>
module attributes {stable_mosaic.version = 11 : i64} {
  func.func @_erf_probe_kernel(%arg0: memref<8x128xf32, #tpu.memory_space<vmem>>, %arg1: memref<8x128xf32, #tpu.memory_space<vmem>>) attributes {dimension_semantics = [], scalar_prefetch = 0 : i64, scratch_operands = 0 : i64, tpu.core_type = #tpu.core_type<tc>} {
    %c0 = arith.constant 0 : index
    %c0_0 = arith.constant 0 : index
    %0 = vector.load %arg0[%c0, %c0_0] : memref<8x128xf32, #tpu.memory_space<vmem>>, vector<8x128xf32>
    %1 = math.erf %0 : vector<8x128xf32>
    %c0_1 = arith.constant 0 : index
    %c0_2 = arith.constant 0 : index
    %2 = vector.load %arg1[%c0_1, %c0_2] : memref<8x128xf32, #tpu.memory_space<vmem>>, vector<8x128xf32>
    tpu.vector_store %arg1[%c0_1, %c0_2], %1 {strides = array<i32>} : memref<8x128xf32, #tpu.memory_space<vmem>>, vector<8x128xf32>,
    return
  }
}

module attributes {stable_mosaic.version = 11 : i64} {
  func.func @_bn_gelu_kernel(%arg0: i32, %arg1: memref<512x128xf32, #tpu.memory_space<vmem>>, %arg2: memref<1x128xf32, #tpu.memory_space<vmem>>, %arg3: memref<1x128xf32, #tpu.memory_space<vmem>>, %arg4: memref<1x128xf32, #tpu.memory_space<vmem>>, %arg5: memref<1x128xf32, #tpu.memory_space<vmem>>, %arg6: memref<512x128xbf16, #tpu.memory_space<vmem>>) attributes {dimension_semantics = [#tpu.dimension_semantics<parallel>], iteration_bounds = array<i64: 2>, scalar_prefetch = 0 : i64, scratch_operands = 0 : i64, tpu.core_type = #tpu.core_type<tc>, window_params = [{transform_indices = @transform_0, window_bounds = array<i64: 512, 128>}, {pipeline_mode = #tpu.pipeline_mode<synchronous>, transform_indices = @transform_1, window_bounds = array<i64: 1, 128>}, {pipeline_mode = #tpu.pipeline_mode<synchronous>, transform_indices = @transform_2, window_bounds = array<i64: 1, 128>}, {pipeline_mode = #tpu.pipeline_mode<synchronous>, transform_indices = @transform_3, window_bounds = array<i64: 1, 128>}, {pipeline_mode = #tpu.pipeline_mode<synchronous>, transform_indices = @transform_4, window_bounds = array<i64: 1, 128>}, {transform_indices = @transform_5, window_bounds = array<i64: 512, 128>}]} {
    %c0 = arith.constant 0 : index
    %c0_0 = arith.constant 0 : index
    %0 = vector.load %arg2[%c0, %c0_0] : memref<1x128xf32, #tpu.memory_space<vmem>>, vector<1x128xf32>
    %c0_1 = arith.constant 0 : index
    %c0_2 = arith.constant 0 : index
    %1 = vector.load %arg3[%c0_1, %c0_2] : memref<1x128xf32, #tpu.memory_space<vmem>>, vector<1x128xf32>
    %c0_3 = arith.constant 0 : index
    %c0_4 = arith.constant 0 : index
    %2 = vector.load %arg4[%c0_3, %c0_4] : memref<1x128xf32, #tpu.memory_space<vmem>>, vector<1x128xf32>
    %c0_5 = arith.constant 0 : index
    %c0_6 = arith.constant 0 : index
    %3 = vector.load %arg5[%c0_5, %c0_6] : memref<1x128xf32, #tpu.memory_space<vmem>>, vector<1x128xf32>
    %cst = arith.constant 9.765625E-4 : f32
    %4 = vector.broadcast %cst : f32 to vector<1x128xf32>
    %5 = arith.mulf %0, %4 : vector<1x128xf32>
    %cst_7 = arith.constant 9.765625E-4 : f32
    %6 = vector.broadcast %cst_7 : f32 to vector<1x128xf32>
    %7 = arith.mulf %1, %6 : vector<1x128xf32>
    %8 = arith.mulf %5, %5 : vector<1x128xf32>
    %9 = arith.subf %7, %8 : vector<1x128xf32>
    %cst_8 = arith.constant 0.000000e+00 : f32
    %10 = vector.broadcast %cst_8 : f32 to vector<1x128xf32>
    %11 = arith.maximumf %9, %10 : vector<1x128xf32>
    %cst_9 = arith.constant 9.99999974E-6 : f32
    %12 = vector.broadcast %cst_9 : f32 to vector<1x128xf32>
    %13 = arith.addf %11, %12 : vector<1x128xf32>
    %14 = math.rsqrt %13 : vector<1x128xf32>
    %15 = arith.mulf %2, %14 : vector<1x128xf32>
    %16 = arith.mulf %5, %15 : vector<1x128xf32>
    %17 = arith.subf %3, %16 : vector<1x128xf32>
    %c0_10 = arith.constant 0 : index
    %c0_11 = arith.constant 0 : index
    %18 = vector.load %arg1[%c0_10, %c0_11] : memref<512x128xf32, #tpu.memory_space<vmem>>, vector<512x128xf32>
    %19 = vector.broadcast %15 : vector<1x128xf32> to vector<512x128xf32>
    %20 = arith.mulf %18, %19 : vector<512x128xf32>
    %21 = vector.broadcast %17 : vector<1x128xf32> to vector<512x128xf32>
    %22 = arith.addf %20, %21 : vector<512x128xf32>
    %cst_12 = arith.constant 5.000000e-01 : f32
    %23 = vector.broadcast %cst_12 : f32 to vector<512x128xf32>
    %24 = arith.mulf %23, %22 : vector<512x128xf32>
    %cst_13 = arith.constant 4.471500e-02 : f32
    %25 = vector.broadcast %cst_13 : f32 to vector<512x128xf32>
    %26 = arith.mulf %25, %22 : vector<512x128xf32>
    %27 = arith.mulf %26, %22 : vector<512x128xf32>
    %28 = arith.mulf %27, %22 : vector<512x128xf32>
    %29 = arith.addf %22, %28 : vector<512x128xf32>
    %cst_14 = arith.constant 0.797884583 : f32
    %30 = vector.broadcast %cst_14 : f32 to vector<512x128xf32>
    %31 = arith.mulf %30, %29 : vector<512x128xf32>
    %32 = math.tanh %31 : vector<512x128xf32>
    %cst_15 = arith.constant 1.000000e+00 : f32
    %33 = vector.broadcast %cst_15 : f32 to vector<512x128xf32>
    %34 = arith.addf %33, %32 : vector<512x128xf32>
    %35 = arith.mulf %24, %34 : vector<512x128xf32>
    %36 = arith.truncf %35 : vector<512x128xf32> to vector<512x128xbf16>
    %c0_16 = arith.constant 0 : index
    %c0_17 = arith.constant 0 : index
    %37 = vector.load %arg6[%c0_16, %c0_17] : memref<512x128xbf16, #tpu.memory_space<vmem>>, vector<512x128xbf16>
    tpu.vector_store %arg6[%c0_16, %c0_17], %36 {strides = array<i32>} : memref<512x128xbf16, #tpu.memory_space<vmem>>, vector<512x128xbf16>,
    return
  }
  func.func @transform_0(%arg0: i32) -> (i32, i32) {
    %c0_i32 = arith.constant 0 : i32
    %c0_i32_0 = arith.constant 0 : i32
    return %arg0, %c0_i32 : i32, i32
  }
  func.func @transform_1(%arg0: i32) -> (i32, i32) {
    %c0_i32 = arith.constant 0 : i32
    %c0_i32_0 = arith.constant 0 : i32
    %c0_i32_1 = arith.constant 0 : i32
    return %c0_i32, %c0_i32_0 : i32, i32
  }
  func.func @transform_2(%arg0: i32) -> (i32, i32) {
    %c0_i32 = arith.constant 0 : i32
    %c0_i32_0 = arith.constant 0 : i32
    %c0_i32_1 = arith.constant 0 : i32
    return %c0_i32, %c0_i32_0 : i32, i32
  }
  func.func @transform_3(%arg0: i32) -> (i32, i32) {
    %c0_i32 = arith.constant 0 : i32
    %c0_i32_0 = arith.constant 0 : i32
    %c0_i32_1 = arith.constant 0 : i32
    return %c0_i32, %c0_i32_0 : i32, i32
  }
  func.func @transform_4(%arg0: i32) -> (i32, i32) {
    %c0_i32 = arith.constant 0 : i32
    %c0_i32_0 = arith.constant 0 : i32
    %c0_i32_1 = arith.constant 0 : i32
    return %c0_i32, %c0_i32_0 : i32, i32
  }
  func.func @transform_5(%arg0: i32) -> (i32, i32) {
    %c0_i32 = arith.constant 0 : i32
    %c0_i32_0 = arith.constant 0 : i32
    return %arg0, %c0_i32 : i32, i32
  }
}

module attributes {stable_mosaic.version = 11 : i64} {
  func.func @_conv1_down_stats_kernel(%arg0: i32, %arg1: memref<512x128xf32, #tpu.memory_space<vmem>>, %arg2: memref<128x128xbf16, #tpu.memory_space<vmem>>, %arg3: memref<128x128xbf16, #tpu.memory_space<vmem>>, %arg4: memref<512x128xf32, #tpu.memory_space<vmem>>, %arg5: memref<512x128xf32, #tpu.memory_space<vmem>>, %arg6: memref<1x128xf32, #tpu.memory_space<vmem>>, %arg7: memref<1x128xf32, #tpu.memory_space<vmem>>, %arg8: memref<1x128xf32, #tpu.memory_space<vmem>>, %arg9: memref<1x128xf32, #tpu.memory_space<vmem>>) attributes {dimension_semantics = [#tpu.dimension_semantics<arbitrary>], iteration_bounds = array<i64: 2>, scalar_prefetch = 0 : i64, scratch_operands = 0 : i64, tpu.core_type = #tpu.core_type<tc>, window_params = [{transform_indices = @transform_0, window_bounds = array<i64: 512, 128>}, {pipeline_mode = #tpu.pipeline_mode<synchronous>, transform_indices = @transform_1, window_bounds = array<i64: 128, 128>}, {pipeline_mode = #tpu.pipeline_mode<synchronous>, transform_indices = @transform_2, window_bounds = array<i64: 128, 128>}, {transform_indices = @transform_3, window_bounds = array<i64: 512, 128>}, {transform_indices = @transform_4, window_bounds = array<i64: 512, 128>}, {pipeline_mode = #tpu.pipeline_mode<synchronous>, transform_indices = @transform_5, window_bounds = array<i64: 1, 128>}, {pipeline_mode = #tpu.pipeline_mode<synchronous>, transform_indices = @transform_6, window_bounds = array<i64: 1, 128>}, {pipeline_mode = #tpu.pipeline_mode<synchronous>, transform_indices = @transform_7, window_bounds = array<i64: 1, 128>}, {pipeline_mode = #tpu.pipeline_mode<synchronous>, transform_indices = @transform_8, window_bounds = array<i64: 1, 128>}]} {
    %c0_i32 = arith.constant 0 : i32
    %0 = arith.cmpi eq, %arg0, %c0_i32 : i32
    %1 = arith.extui %0 : i1 to i32
    %c0_i32_0 = arith.constant 0 : i32
    %2 = arith.cmpi ne, %1, %c0_i32_0 : i32
    scf.if %2 {
      %cst_31 = arith.constant 0.000000e+00 : f32
      %33 = vector.broadcast %cst_31 : f32 to vector<1x128xf32>
      %c0_32 = arith.constant 0 : index
      %c0_33 = arith.constant 0 : index
      %34 = vector.load %arg6[%c0_32, %c0_33] : memref<1x128xf32, #tpu.memory_space<vmem>>, vector<1x128xf32>
      tpu.vector_store %arg6[%c0_32, %c0_33], %33 {strides = array<i32>} : memref<1x128xf32, #tpu.memory_space<vmem>>, vector<1x128xf32>,
      %cst_34 = arith.constant 0.000000e+00 : f32
      %35 = vector.broadcast %cst_34 : f32 to vector<1x128xf32>
      %c0_35 = arith.constant 0 : index
      %c0_36 = arith.constant 0 : index
      %36 = vector.load %arg7[%c0_35, %c0_36] : memref<1x128xf32, #tpu.memory_space<vmem>>, vector<1x128xf32>
      tpu.vector_store %arg7[%c0_35, %c0_36], %35 {strides = array<i32>} : memref<1x128xf32, #tpu.memory_space<vmem>>, vector<1x128xf32>,
      %cst_37 = arith.constant 0.000000e+00 : f32
      %37 = vector.broadcast %cst_37 : f32 to vector<1x128xf32>
      %c0_38 = arith.constant 0 : index
      %c0_39 = arith.constant 0 : index
      %38 = vector.load %arg8[%c0_38, %c0_39] : memref<1x128xf32, #tpu.memory_space<vmem>>, vector<1x128xf32>
      tpu.vector_store %arg8[%c0_38, %c0_39], %37 {strides = array<i32>} : memref<1x128xf32, #tpu.memory_space<vmem>>, vector<1x128xf32>,
      %cst_40 = arith.constant 0.000000e+00 : f32
      %39 = vector.broadcast %cst_40 : f32 to vector<1x128xf32>
      %c0_41 = arith.constant 0 : index
      %c0_42 = arith.constant 0 : index
      %40 = vector.load %arg9[%c0_41, %c0_42] : memref<1x128xf32, #tpu.memory_space<vmem>>, vector<1x128xf32>
      tpu.vector_store %arg9[%c0_41, %c0_42], %39 {strides = array<i32>} : memref<1x128xf32, #tpu.memory_space<vmem>>, vector<1x128xf32>,
    } else {
    }
    %c0 = arith.constant 0 : index
    %c0_1 = arith.constant 0 : index
    %3 = vector.load %arg1[%c0, %c0_1] : memref<512x128xf32, #tpu.memory_space<vmem>>, vector<512x128xf32>
    %4 = arith.truncf %3 : vector<512x128xf32> to vector<512x128xbf16>
    %c0_2 = arith.constant 0 : index
    %c0_3 = arith.constant 0 : index
    %5 = vector.load %arg2[%c0_2, %c0_3] : memref<128x128xbf16, #tpu.memory_space<vmem>>, vector<128x128xbf16>
    %cst = arith.constant dense<0.000000e+00> : vector<512x128xf32>
    %6 = tpu.matmul %4, %5, %cst {dimension_numbers = #tpu.dot_dimension_numbers<[1], [0], [0], [1], [0, 0, 1, 1], [], []>} : vector<512x128xbf16>, vector<128x128xbf16>, vector<512x128xf32> -> vector<512x128xf32>
    %c0_4 = arith.constant 0 : index
    %c0_5 = arith.constant 0 : index
    %7 = vector.load %arg3[%c0_4, %c0_5] : memref<128x128xbf16, #tpu.memory_space<vmem>>, vector<128x128xbf16>
    %cst_6 = arith.constant dense<0.000000e+00> : vector<512x128xf32>
    %8 = tpu.matmul %4, %7, %cst_6 {dimension_numbers = #tpu.dot_dimension_numbers<[1], [0], [0], [1], [0, 0, 1, 1], [], []>} : vector<512x128xbf16>, vector<128x128xbf16>, vector<512x128xf32> -> vector<512x128xf32>
    %c0_7 = arith.constant 0 : index
    %c0_8 = arith.constant 0 : index
    %9 = vector.load %arg4[%c0_7, %c0_8] : memref<512x128xf32, #tpu.memory_space<vmem>>, vector<512x128xf32>
    tpu.vector_store %arg4[%c0_7, %c0_8], %6 {strides = array<i32>} : memref<512x128xf32, #tpu.memory_space<vmem>>, vector<512x128xf32>,
    %c0_9 = arith.constant 0 : index
    %c0_10 = arith.constant 0 : index
    %10 = vector.load %arg5[%c0_9, %c0_10] : memref<512x128xf32, #tpu.memory_space<vmem>>, vector<512x128xf32>
    tpu.vector_store %arg5[%c0_9, %c0_10], %8 {strides = array<i32>} : memref<512x128xf32, #tpu.memory_space<vmem>>, vector<512x128xf32>,
    %c0_11 = arith.constant 0 : index
    %c0_12 = arith.constant 0 : index
    %11 = vector.load %arg6[%c0_11, %c0_12] : memref<1x128xf32, #tpu.memory_space<vmem>>, vector<1x128xf32>
    %cst_13 = arith.constant dense<0.000000e+00> : vector<128xf32>
    %12 = vector.multi_reduction <add>, %6, %cst_13 [0] : vector<512x128xf32> to vector<128xf32>
    %13 = vector.shape_cast %12 : vector<128xf32> to vector<1x128xf32>
    %14 = arith.addf %11, %13 : vector<1x128xf32>
    %c0_14 = arith.constant 0 : index
    %c0_15 = arith.constant 0 : index
    %15 = vector.load %arg6[%c0_14, %c0_15] : memref<1x128xf32, #tpu.memory_space<vmem>>, vector<1x128xf32>
    tpu.vector_store %arg6[%c0_14, %c0_15], %14 {strides = array<i32>} : memref<1x128xf32, #tpu.memory_space<vmem>>, vector<1x128xf32>,
    %c0_16 = arith.constant 0 : index
    %c0_17 = arith.constant 0 : index
    %16 = vector.load %arg7[%c0_16, %c0_17] : memref<1x128xf32, #tpu.memory_space<vmem>>, vector<1x128xf32>
    %17 = arith.mulf %6, %6 : vector<512x128xf32>
    %cst_18 = arith.constant dense<0.000000e+00> : vector<128xf32>
    %18 = vector.multi_reduction <add>, %17, %cst_18 [0] : vector<512x128xf32> to vector<128xf32>
    %19 = vector.shape_cast %18 : vector<128xf32> to vector<1x128xf32>
    %20 = arith.addf %16, %19 : vector<1x128xf32>
    %c0_19 = arith.constant 0 : index
    %c0_20 = arith.constant 0 : index
    %21 = vector.load %arg7[%c0_19, %c0_20] : memref<1x128xf32, #tpu.memory_space<vmem>>, vector<1x128xf32>
    tpu.vector_store %arg7[%c0_19, %c0_20], %20 {strides = array<i32>} : memref<1x128xf32, #tpu.memory_space<vmem>>, vector<1x128xf32>,
    %c0_21 = arith.constant 0 : index
    %c0_22 = arith.constant 0 : index
    %22 = vector.load %arg8[%c0_21, %c0_22] : memref<1x128xf32, #tpu.memory_space<vmem>>, vector<1x128xf32>
    %cst_23 = arith.constant dense<0.000000e+00> : vector<128xf32>
    %23 = vector.multi_reduction <add>, %8, %cst_23 [0] : vector<512x128xf32> to vector<128xf32>
    %24 = vector.shape_cast %23 : vector<128xf32> to vector<1x128xf32>
    %25 = arith.addf %22, %24 : vector<1x128xf32>
    %c0_24 = arith.constant 0 : index
    %c0_25 = arith.constant 0 : index
    %26 = vector.load %arg8[%c0_24, %c0_25] : memref<1x128xf32, #tpu.memory_space<vmem>>, vector<1x128xf32>
    tpu.vector_store %arg8[%c0_24, %c0_25], %25 {strides = array<i32>} : memref<1x128xf32, #tpu.memory_space<vmem>>, vector<1x128xf32>,
    %c0_26 = arith.constant 0 : index
    %c0_27 = arith.constant 0 : index
    %27 = vector.load %arg9[%c0_26, %c0_27] : memref<1x128xf32, #tpu.memory_space<vmem>>, vector<1x128xf32>
    %28 = arith.mulf %8, %8 : vector<512x128xf32>
    %cst_28 = arith.constant dense<0.000000e+00> : vector<128xf32>
    %29 = vector.multi_reduction <add>, %28, %cst_28 [0] : vector<512x128xf32> to vector<128xf32>
    %30 = vector.shape_cast %29 : vector<128xf32> to vector<1x128xf32>
    %31 = arith.addf %27, %30 : vector<1x128xf32>
    %c0_29 = arith.constant 0 : index
    %c0_30 = arith.constant 0 : index
    %32 = vector.load %arg9[%c0_29, %c0_30] : memref<1x128xf32, #tpu.memory_space<vmem>>, vector<1x128xf32>
    tpu.vector_store %arg9[%c0_29, %c0_30], %31 {strides = array<i32>} : memref<1x128xf32, #tpu.memory_space<vmem>>, vector<1x128xf32>,
    return
  }
  func.func @transform_0(%arg0: i32) -> (i32, i32) {
    %c0_i32 = arith.constant 0 : i32
    %c0_i32_0 = arith.constant 0 : i32
    return %arg0, %c0_i32 : i32, i32
  }
  func.func @transform_1(%arg0: i32) -> (i32, i32) {
    %c0_i32 = arith.constant 0 : i32
    %c0_i32_0 = arith.constant 0 : i32
    %c0_i32_1 = arith.constant 0 : i32
    return %c0_i32, %c0_i32_0 : i32, i32
  }
  func.func @transform_2(%arg0: i32) -> (i32, i32) {
    %c0_i32 = arith.constant 0 : i32
    %c0_i32_0 = arith.constant 0 : i32
    %c0_i32_1 = arith.constant 0 : i32
    return %c0_i32, %c0_i32_0 : i32, i32
  }
  func.func @transform_3(%arg0: i32) -> (i32, i32) {
    %c0_i32 = arith.constant 0 : i32
    %c0_i32_0 = arith.constant 0 : i32
    return %arg0, %c0_i32 : i32, i32
  }
  func.func @transform_4(%arg0: i32) -> (i32, i32) {
    %c0_i32 = arith.constant 0 : i32
    %c0_i32_0 = arith.constant 0 : i32
    return %arg0, %c0_i32 : i32, i32
  }
  func.func @transform_5(%arg0: i32) -> (i32, i32) {
    %c0_i32 = arith.constant 0 : i32
    %c0_i32_0 = arith.constant 0 : i32
    %c0_i32_1 = arith.constant 0 : i32
    return %c0_i32, %c0_i32_0 : i32, i32
  }
  func.func @transform_6(%arg0: i32) -> (i32, i32) {
    %c0_i32 = arith.constant 0 : i32
    %c0_i32_0 = arith.constant 0 : i32
    %c0_i32_1 = arith.constant 0 : i32
    return %c0_i32, %c0_i32_0 : i32, i32
  }
  func.func @transform_7(%arg0: i32) -> (i32, i32) {
    %c0_i32 = arith.constant 0 : i32
    %c0_i32_0 = arith.constant 0 : i32
    %c0_i32_1 = arith.constant 0 : i32
    return %c0_i32, %c0_i32_0 : i32, i32
  }
  func.func @transform_8(%arg0: i32) -> (i32, i32) {
    %c0_i32 = arith.constant 0 : i32
    %c0_i32_0 = arith.constant 0 : i32
    %c0_i32_1 = arith.constant 0 : i32
    return %c0_i32, %c0_i32_0 : i32, i32
  }
}

module attributes {stable_mosaic.version = 11 : i64} {
  func.func @_conv3x3x3_stats_kernel(%arg0: i32, %arg1: i32, %arg2: memref<1x1x100x128xbf16, #tpu.memory_space<vmem>>, %arg3: memref<1x1x100x128xbf16, #tpu.memory_space<vmem>>, %arg4: memref<1x1x100x128xbf16, #tpu.memory_space<vmem>>, %arg5: memref<27x128x128xbf16, #tpu.memory_space<vmem>>, %arg6: memref<1x1x78x128xf32, #tpu.memory_space<vmem>>, %arg7: memref<1x128xf32, #tpu.memory_space<vmem>>, %arg8: memref<1x128xf32, #tpu.memory_space<vmem>>) attributes {dimension_semantics = [#tpu.dimension_semantics<arbitrary>, #tpu.dimension_semantics<arbitrary>], iteration_bounds = array<i64: 2, 8>, scalar_prefetch = 0 : i64, scratch_operands = 0 : i64, tpu.core_type = #tpu.core_type<tc>, window_params = [{transform_indices = @transform_0, window_bounds = array<i64: 1, 1, 100, 128>}, {transform_indices = @transform_1, window_bounds = array<i64: 1, 1, 100, 128>}, {transform_indices = @transform_2, window_bounds = array<i64: 1, 1, 100, 128>}, {pipeline_mode = #tpu.pipeline_mode<synchronous>, transform_indices = @transform_3, window_bounds = array<i64: 27, 128, 128>}, {transform_indices = @transform_4, window_bounds = array<i64: 1, 1, 78, 128>}, {pipeline_mode = #tpu.pipeline_mode<synchronous>, transform_indices = @transform_5, window_bounds = array<i64: 1, 128>}, {pipeline_mode = #tpu.pipeline_mode<synchronous>, transform_indices = @transform_6, window_bounds = array<i64: 1, 128>}]} {
    %0 = arith.addi %arg0, %arg1 : i32
    %c0_i32 = arith.constant 0 : i32
    %1 = arith.cmpi eq, %0, %c0_i32 : i32
    %2 = arith.extui %1 : i1 to i32
    %c0_i32_0 = arith.constant 0 : i32
    %3 = arith.cmpi ne, %2, %c0_i32_0 : i32
    scf.if %3 {
      %cst_208 = arith.constant 0.000000e+00 : f32
      %204 = vector.broadcast %cst_208 : f32 to vector<1x128xf32>
      %c0_209 = arith.constant 0 : index
      %c0_210 = arith.constant 0 : index
      %205 = vector.load %arg7[%c0_209, %c0_210] : memref<1x128xf32, #tpu.memory_space<vmem>>, vector<1x128xf32>
      tpu.vector_store %arg7[%c0_209, %c0_210], %204 {strides = array<i32>} : memref<1x128xf32, #tpu.memory_space<vmem>>, vector<1x128xf32>,
      %cst_211 = arith.constant 0.000000e+00 : f32
      %206 = vector.broadcast %cst_211 : f32 to vector<1x128xf32>
      %c0_212 = arith.constant 0 : index
      %c0_213 = arith.constant 0 : index
      %207 = vector.load %arg8[%c0_212, %c0_213] : memref<1x128xf32, #tpu.memory_space<vmem>>, vector<1x128xf32>
      tpu.vector_store %arg8[%c0_212, %c0_213], %206 {strides = array<i32>} : memref<1x128xf32, #tpu.memory_space<vmem>>, vector<1x128xf32>,
    } else {
    }
    %cst = arith.constant 0.000000e+00 : f32
    %4 = vector.broadcast %cst : f32 to vector<78x128xf32>
    %c0 = arith.constant 0 : index
    %c0_1 = arith.constant 0 : index
    %c0_2 = arith.constant 0 : index
    %c0_3 = arith.constant 0 : index
    %5 = vector.load %arg2[%c0, %c0_1, %c0_2, %c0_3] : memref<1x1x100x128xbf16, #tpu.memory_space<vmem>>, vector<1x1x78x128xbf16>
    %6 = vector.shape_cast %5 : vector<1x1x78x128xbf16> to vector<78x128xbf16>
    %c0_4 = arith.constant 0 : index
    %c0_5 = arith.constant 0 : index
    %c0_6 = arith.constant 0 : index
    %7 = vector.load %arg5[%c0_4, %c0_5, %c0_6] : memref<27x128x128xbf16, #tpu.memory_space<vmem>>, vector<1x128x128xbf16>
    %8 = vector.shape_cast %7 : vector<1x128x128xbf16> to vector<128x128xbf16>
    %cst_7 = arith.constant dense<0.000000e+00> : vector<78x128xf32>
    %9 = tpu.matmul %6, %8, %cst_7 {dimension_numbers = #tpu.dot_dimension_numbers<[1], [0], [0], [1], [0, 0, 1, 1], [], []>} : vector<78x128xbf16>, vector<128x128xbf16>, vector<78x128xf32> -> vector<78x128xf32>
    %10 = arith.addf %4, %9 : vector<78x128xf32>
    %c0_8 = arith.constant 0 : index
    %c0_9 = arith.constant 0 : index
    %c1 = arith.constant 1 : index
    %c0_10 = arith.constant 0 : index
    %11 = vector.load %arg2[%c0_8, %c0_9, %c1, %c0_10] : memref<1x1x100x128xbf16, #tpu.memory_space<vmem>>, vector<1x1x78x128xbf16>
    %12 = vector.shape_cast %11 : vector<1x1x78x128xbf16> to vector<78x128xbf16>
    %c1_11 = arith.constant 1 : index
    %c0_12 = arith.constant 0 : index
    %c0_13 = arith.constant 0 : index
    %13 = vector.load %arg5[%c1_11, %c0_12, %c0_13] : memref<27x128x128xbf16, #tpu.memory_space<vmem>>, vector<1x128x128xbf16>
    %14 = vector.shape_cast %13 : vector<1x128x128xbf16> to vector<128x128xbf16>
    %cst_14 = arith.constant dense<0.000000e+00> : vector<78x128xf32>
    %15 = tpu.matmul %12, %14, %cst_14 {dimension_numbers = #tpu.dot_dimension_numbers<[1], [0], [0], [1], [0, 0, 1, 1], [], []>} : vector<78x128xbf16>, vector<128x128xbf16>, vector<78x128xf32> -> vector<78x128xf32>
    %16 = arith.addf %10, %15 : vector<78x128xf32>
    %c0_15 = arith.constant 0 : index
    %c0_16 = arith.constant 0 : index
    %c2 = arith.constant 2 : index
    %c0_17 = arith.constant 0 : index
    %17 = vector.load %arg2[%c0_15, %c0_16, %c2, %c0_17] : memref<1x1x100x128xbf16, #tpu.memory_space<vmem>>, vector<1x1x78x128xbf16>
    %18 = vector.shape_cast %17 : vector<1x1x78x128xbf16> to vector<78x128xbf16>
    %c2_18 = arith.constant 2 : index
    %c0_19 = arith.constant 0 : index
    %c0_20 = arith.constant 0 : index
    %19 = vector.load %arg5[%c2_18, %c0_19, %c0_20] : memref<27x128x128xbf16, #tpu.memory_space<vmem>>, vector<1x128x128xbf16>
    %20 = vector.shape_cast %19 : vector<1x128x128xbf16> to vector<128x128xbf16>
    %cst_21 = arith.constant dense<0.000000e+00> : vector<78x128xf32>
    %21 = tpu.matmul %18, %20, %cst_21 {dimension_numbers = #tpu.dot_dimension_numbers<[1], [0], [0], [1], [0, 0, 1, 1], [], []>} : vector<78x128xbf16>, vector<128x128xbf16>, vector<78x128xf32> -> vector<78x128xf32>
    %22 = arith.addf %16, %21 : vector<78x128xf32>
    %c0_22 = arith.constant 0 : index
    %c0_23 = arith.constant 0 : index
    %c10 = arith.constant 10 : index
    %c0_24 = arith.constant 0 : index
    %23 = vector.load %arg2[%c0_22, %c0_23, %c10, %c0_24] : memref<1x1x100x128xbf16, #tpu.memory_space<vmem>>, vector<1x1x78x128xbf16>
    %24 = vector.shape_cast %23 : vector<1x1x78x128xbf16> to vector<78x128xbf16>
    %c3 = arith.constant 3 : index
    %c0_25 = arith.constant 0 : index
    %c0_26 = arith.constant 0 : index
    %25 = vector.load %arg5[%c3, %c0_25, %c0_26] : memref<27x128x128xbf16, #tpu.memory_space<vmem>>, vector<1x128x128xbf16>
    %26 = vector.shape_cast %25 : vector<1x128x128xbf16> to vector<128x128xbf16>
    %cst_27 = arith.constant dense<0.000000e+00> : vector<78x128xf32>
    %27 = tpu.matmul %24, %26, %cst_27 {dimension_numbers = #tpu.dot_dimension_numbers<[1], [0], [0], [1], [0, 0, 1, 1], [], []>} : vector<78x128xbf16>, vector<128x128xbf16>, vector<78x128xf32> -> vector<78x128xf32>
    %28 = arith.addf %22, %27 : vector<78x128xf32>
    %c0_28 = arith.constant 0 : index
    %c0_29 = arith.constant 0 : index
    %c11 = arith.constant 11 : index
    %c0_30 = arith.constant 0 : index
    %29 = vector.load %arg2[%c0_28, %c0_29, %c11, %c0_30] : memref<1x1x100x128xbf16, #tpu.memory_space<vmem>>, vector<1x1x78x128xbf16>
    %30 = vector.shape_cast %29 : vector<1x1x78x128xbf16> to vector<78x128xbf16>
    %c4 = arith.constant 4 : index
    %c0_31 = arith.constant 0 : index
    %c0_32 = arith.constant 0 : index
    %31 = vector.load %arg5[%c4, %c0_31, %c0_32] : memref<27x128x128xbf16, #tpu.memory_space<vmem>>, vector<1x128x128xbf16>
    %32 = vector.shape_cast %31 : vector<1x128x128xbf16> to vector<128x128xbf16>
    %cst_33 = arith.constant dense<0.000000e+00> : vector<78x128xf32>
    %33 = tpu.matmul %30, %32, %cst_33 {dimension_numbers = #tpu.dot_dimension_numbers<[1], [0], [0], [1], [0, 0, 1, 1], [], []>} : vector<78x128xbf16>, vector<128x128xbf16>, vector<78x128xf32> -> vector<78x128xf32>
    %34 = arith.addf %28, %33 : vector<78x128xf32>
    %c0_34 = arith.constant 0 : index
    %c0_35 = arith.constant 0 : index
    %c12 = arith.constant 12 : index
    %c0_36 = arith.constant 0 : index
    %35 = vector.load %arg2[%c0_34, %c0_35, %c12, %c0_36] : memref<1x1x100x128xbf16, #tpu.memory_space<vmem>>, vector<1x1x78x128xbf16>
    %36 = vector.shape_cast %35 : vector<1x1x78x128xbf16> to vector<78x128xbf16>
    %c5 = arith.constant 5 : index
    %c0_37 = arith.constant 0 : index
    %c0_38 = arith.constant 0 : index
    %37 = vector.load %arg5[%c5, %c0_37, %c0_38] : memref<27x128x128xbf16, #tpu.memory_space<vmem>>, vector<1x128x128xbf16>
    %38 = vector.shape_cast %37 : vector<1x128x128xbf16> to vector<128x128xbf16>
    %cst_39 = arith.constant dense<0.000000e+00> : vector<78x128xf32>
    %39 = tpu.matmul %36, %38, %cst_39 {dimension_numbers = #tpu.dot_dimension_numbers<[1], [0], [0], [1], [0, 0, 1, 1], [], []>} : vector<78x128xbf16>, vector<128x128xbf16>, vector<78x128xf32> -> vector<78x128xf32>
    %40 = arith.addf %34, %39 : vector<78x128xf32>
    %c0_40 = arith.constant 0 : index
    %c0_41 = arith.constant 0 : index
    %c20 = arith.constant 20 : index
    %c0_42 = arith.constant 0 : index
    %41 = vector.load %arg2[%c0_40, %c0_41, %c20, %c0_42] : memref<1x1x100x128xbf16, #tpu.memory_space<vmem>>, vector<1x1x78x128xbf16>
    %42 = vector.shape_cast %41 : vector<1x1x78x128xbf16> to vector<78x128xbf16>
    %c6 = arith.constant 6 : index
    %c0_43 = arith.constant 0 : index
    %c0_44 = arith.constant 0 : index
    %43 = vector.load %arg5[%c6, %c0_43, %c0_44] : memref<27x128x128xbf16, #tpu.memory_space<vmem>>, vector<1x128x128xbf16>
    %44 = vector.shape_cast %43 : vector<1x128x128xbf16> to vector<128x128xbf16>
    %cst_45 = arith.constant dense<0.000000e+00> : vector<78x128xf32>
    %45 = tpu.matmul %42, %44, %cst_45 {dimension_numbers = #tpu.dot_dimension_numbers<[1], [0], [0], [1], [0, 0, 1, 1], [], []>} : vector<78x128xbf16>, vector<128x128xbf16>, vector<78x128xf32> -> vector<78x128xf32>
    %46 = arith.addf %40, %45 : vector<78x128xf32>
    %c0_46 = arith.constant 0 : index
    %c0_47 = arith.constant 0 : index
    %c21 = arith.constant 21 : index
    %c0_48 = arith.constant 0 : index
    %47 = vector.load %arg2[%c0_46, %c0_47, %c21, %c0_48] : memref<1x1x100x128xbf16, #tpu.memory_space<vmem>>, vector<1x1x78x128xbf16>
    %48 = vector.shape_cast %47 : vector<1x1x78x128xbf16> to vector<78x128xbf16>
    %c7 = arith.constant 7 : index
    %c0_49 = arith.constant 0 : index
    %c0_50 = arith.constant 0 : index
    %49 = vector.load %arg5[%c7, %c0_49, %c0_50] : memref<27x128x128xbf16, #tpu.memory_space<vmem>>, vector<1x128x128xbf16>
    %50 = vector.shape_cast %49 : vector<1x128x128xbf16> to vector<128x128xbf16>
    %cst_51 = arith.constant dense<0.000000e+00> : vector<78x128xf32>
    %51 = tpu.matmul %48, %50, %cst_51 {dimension_numbers = #tpu.dot_dimension_numbers<[1], [0], [0], [1], [0, 0, 1, 1], [], []>} : vector<78x128xbf16>, vector<128x128xbf16>, vector<78x128xf32> -> vector<78x128xf32>
    %52 = arith.addf %46, %51 : vector<78x128xf32>
    %c0_52 = arith.constant 0 : index
    %c0_53 = arith.constant 0 : index
    %c22 = arith.constant 22 : index
    %c0_54 = arith.constant 0 : index
    %53 = vector.load %arg2[%c0_52, %c0_53, %c22, %c0_54] : memref<1x1x100x128xbf16, #tpu.memory_space<vmem>>, vector<1x1x78x128xbf16>
    %54 = vector.shape_cast %53 : vector<1x1x78x128xbf16> to vector<78x128xbf16>
    %c8 = arith.constant 8 : index
    %c0_55 = arith.constant 0 : index
    %c0_56 = arith.constant 0 : index
    %55 = vector.load %arg5[%c8, %c0_55, %c0_56] : memref<27x128x128xbf16, #tpu.memory_space<vmem>>, vector<1x128x128xbf16>
    %56 = vector.shape_cast %55 : vector<1x128x128xbf16> to vector<128x128xbf16>
    %cst_57 = arith.constant dense<0.000000e+00> : vector<78x128xf32>
    %57 = tpu.matmul %54, %56, %cst_57 {dimension_numbers = #tpu.dot_dimension_numbers<[1], [0], [0], [1], [0, 0, 1, 1], [], []>} : vector<78x128xbf16>, vector<128x128xbf16>, vector<78x128xf32> -> vector<78x128xf32>
    %58 = arith.addf %52, %57 : vector<78x128xf32>
    %c0_58 = arith.constant 0 : index
    %c0_59 = arith.constant 0 : index
    %c0_60 = arith.constant 0 : index
    %c0_61 = arith.constant 0 : index
    %59 = vector.load %arg3[%c0_58, %c0_59, %c0_60, %c0_61] : memref<1x1x100x128xbf16, #tpu.memory_space<vmem>>, vector<1x1x78x128xbf16>
    %60 = vector.shape_cast %59 : vector<1x1x78x128xbf16> to vector<78x128xbf16>
    %c9 = arith.constant 9 : index
    %c0_62 = arith.constant 0 : index
    %c0_63 = arith.constant 0 : index
    %61 = vector.load %arg5[%c9, %c0_62, %c0_63] : memref<27x128x128xbf16, #tpu.memory_space<vmem>>, vector<1x128x128xbf16>
    %62 = vector.shape_cast %61 : vector<1x128x128xbf16> to vector<128x128xbf16>
    %cst_64 = arith.constant dense<0.000000e+00> : vector<78x128xf32>
    %63 = tpu.matmul %60, %62, %cst_64 {dimension_numbers = #tpu.dot_dimension_numbers<[1], [0], [0], [1], [0, 0, 1, 1], [], []>} : vector<78x128xbf16>, vector<128x128xbf16>, vector<78x128xf32> -> vector<78x128xf32>
    %64 = arith.addf %58, %63 : vector<78x128xf32>
    %c0_65 = arith.constant 0 : index
    %c0_66 = arith.constant 0 : index
    %c1_67 = arith.constant 1 : index
    %c0_68 = arith.constant 0 : index
    %65 = vector.load %arg3[%c0_65, %c0_66, %c1_67, %c0_68] : memref<1x1x100x128xbf16, #tpu.memory_space<vmem>>, vector<1x1x78x128xbf16>
    %66 = vector.shape_cast %65 : vector<1x1x78x128xbf16> to vector<78x128xbf16>
    %c10_69 = arith.constant 10 : index
    %c0_70 = arith.constant 0 : index
    %c0_71 = arith.constant 0 : index
    %67 = vector.load %arg5[%c10_69, %c0_70, %c0_71] : memref<27x128x128xbf16, #tpu.memory_space<vmem>>, vector<1x128x128xbf16>
    %68 = vector.shape_cast %67 : vector<1x128x128xbf16> to vector<128x128xbf16>
    %cst_72 = arith.constant dense<0.000000e+00> : vector<78x128xf32>
    %69 = tpu.matmul %66, %68, %cst_72 {dimension_numbers = #tpu.dot_dimension_numbers<[1], [0], [0], [1], [0, 0, 1, 1], [], []>} : vector<78x128xbf16>, vector<128x128xbf16>, vector<78x128xf32> -> vector<78x128xf32>
    %70 = arith.addf %64, %69 : vector<78x128xf32>
    %c0_73 = arith.constant 0 : index
    %c0_74 = arith.constant 0 : index
    %c2_75 = arith.constant 2 : index
    %c0_76 = arith.constant 0 : index
    %71 = vector.load %arg3[%c0_73, %c0_74, %c2_75, %c0_76] : memref<1x1x100x128xbf16, #tpu.memory_space<vmem>>, vector<1x1x78x128xbf16>
    %72 = vector.shape_cast %71 : vector<1x1x78x128xbf16> to vector<78x128xbf16>
    %c11_77 = arith.constant 11 : index
    %c0_78 = arith.constant 0 : index
    %c0_79 = arith.constant 0 : index
    %73 = vector.load %arg5[%c11_77, %c0_78, %c0_79] : memref<27x128x128xbf16, #tpu.memory_space<vmem>>, vector<1x128x128xbf16>
    %74 = vector.shape_cast %73 : vector<1x128x128xbf16> to vector<128x128xbf16>
    %cst_80 = arith.constant dense<0.000000e+00> : vector<78x128xf32>
    %75 = tpu.matmul %72, %74, %cst_80 {dimension_numbers = #tpu.dot_dimension_numbers<[1], [0], [0], [1], [0, 0, 1, 1], [], []>} : vector<78x128xbf16>, vector<128x128xbf16>, vector<78x128xf32> -> vector<78x128xf32>
    %76 = arith.addf %70, %75 : vector<78x128xf32>
    %c0_81 = arith.constant 0 : index
    %c0_82 = arith.constant 0 : index
    %c10_83 = arith.constant 10 : index
    %c0_84 = arith.constant 0 : index
    %77 = vector.load %arg3[%c0_81, %c0_82, %c10_83, %c0_84] : memref<1x1x100x128xbf16, #tpu.memory_space<vmem>>, vector<1x1x78x128xbf16>
    %78 = vector.shape_cast %77 : vector<1x1x78x128xbf16> to vector<78x128xbf16>
    %c12_85 = arith.constant 12 : index
    %c0_86 = arith.constant 0 : index
    %c0_87 = arith.constant 0 : index
    %79 = vector.load %arg5[%c12_85, %c0_86, %c0_87] : memref<27x128x128xbf16, #tpu.memory_space<vmem>>, vector<1x128x128xbf16>
    %80 = vector.shape_cast %79 : vector<1x128x128xbf16> to vector<128x128xbf16>
    %cst_88 = arith.constant dense<0.000000e+00> : vector<78x128xf32>
    %81 = tpu.matmul %78, %80, %cst_88 {dimension_numbers = #tpu.dot_dimension_numbers<[1], [0], [0], [1], [0, 0, 1, 1], [], []>} : vector<78x128xbf16>, vector<128x128xbf16>, vector<78x128xf32> -> vector<78x128xf32>
    %82 = arith.addf %76, %81 : vector<78x128xf32>
    %c0_89 = arith.constant 0 : index
    %c0_90 = arith.constant 0 : index
    %c11_91 = arith.constant 11 : index
    %c0_92 = arith.constant 0 : index
    %83 = vector.load %arg3[%c0_89, %c0_90, %c11_91, %c0_92] : memref<1x1x100x128xbf16, #tpu.memory_space<vmem>>, vector<1x1x78x128xbf16>
    %84 = vector.shape_cast %83 : vector<1x1x78x128xbf16> to vector<78x128xbf16>
    %c13 = arith.constant 13 : index
    %c0_93 = arith.constant 0 : index
    %c0_94 = arith.constant 0 : index
    %85 = vector.load %arg5[%c13, %c0_93, %c0_94] : memref<27x128x128xbf16, #tpu.memory_space<vmem>>, vector<1x128x128xbf16>
    %86 = vector.shape_cast %85 : vector<1x128x128xbf16> to vector<128x128xbf16>
    %cst_95 = arith.constant dense<0.000000e+00> : vector<78x128xf32>
    %87 = tpu.matmul %84, %86, %cst_95 {dimension_numbers = #tpu.dot_dimension_numbers<[1], [0], [0], [1], [0, 0, 1, 1], [], []>} : vector<78x128xbf16>, vector<128x128xbf16>, vector<78x128xf32> -> vector<78x128xf32>
    %88 = arith.addf %82, %87 : vector<78x128xf32>
    %c0_96 = arith.constant 0 : index
    %c0_97 = arith.constant 0 : index
    %c12_98 = arith.constant 12 : index
    %c0_99 = arith.constant 0 : index
    %89 = vector.load %arg3[%c0_96, %c0_97, %c12_98, %c0_99] : memref<1x1x100x128xbf16, #tpu.memory_space<vmem>>, vector<1x1x78x128xbf16>
    %90 = vector.shape_cast %89 : vector<1x1x78x128xbf16> to vector<78x128xbf16>
    %c14 = arith.constant 14 : index
    %c0_100 = arith.constant 0 : index
    %c0_101 = arith.constant 0 : index
    %91 = vector.load %arg5[%c14, %c0_100, %c0_101] : memref<27x128x128xbf16, #tpu.memory_space<vmem>>, vector<1x128x128xbf16>
    %92 = vector.shape_cast %91 : vector<1x128x128xbf16> to vector<128x128xbf16>
    %cst_102 = arith.constant dense<0.000000e+00> : vector<78x128xf32>
    %93 = tpu.matmul %90, %92, %cst_102 {dimension_numbers = #tpu.dot_dimension_numbers<[1], [0], [0], [1], [0, 0, 1, 1], [], []>} : vector<78x128xbf16>, vector<128x128xbf16>, vector<78x128xf32> -> vector<78x128xf32>
    %94 = arith.addf %88, %93 : vector<78x128xf32>
    %c0_103 = arith.constant 0 : index
    %c0_104 = arith.constant 0 : index
    %c20_105 = arith.constant 20 : index
    %c0_106 = arith.constant 0 : index
    %95 = vector.load %arg3[%c0_103, %c0_104, %c20_105, %c0_106] : memref<1x1x100x128xbf16, #tpu.memory_space<vmem>>, vector<1x1x78x128xbf16>
    %96 = vector.shape_cast %95 : vector<1x1x78x128xbf16> to vector<78x128xbf16>
    %c15 = arith.constant 15 : index
    %c0_107 = arith.constant 0 : index
    %c0_108 = arith.constant 0 : index
    %97 = vector.load %arg5[%c15, %c0_107, %c0_108] : memref<27x128x128xbf16, #tpu.memory_space<vmem>>, vector<1x128x128xbf16>
    %98 = vector.shape_cast %97 : vector<1x128x128xbf16> to vector<128x128xbf16>
    %cst_109 = arith.constant dense<0.000000e+00> : vector<78x128xf32>
    %99 = tpu.matmul %96, %98, %cst_109 {dimension_numbers = #tpu.dot_dimension_numbers<[1], [0], [0], [1], [0, 0, 1, 1], [], []>} : vector<78x128xbf16>, vector<128x128xbf16>, vector<78x128xf32> -> vector<78x128xf32>
    %100 = arith.addf %94, %99 : vector<78x128xf32>
    %c0_110 = arith.constant 0 : index
    %c0_111 = arith.constant 0 : index
    %c21_112 = arith.constant 21 : index
    %c0_113 = arith.constant 0 : index
    %101 = vector.load %arg3[%c0_110, %c0_111, %c21_112, %c0_113] : memref<1x1x100x128xbf16, #tpu.memory_space<vmem>>, vector<1x1x78x128xbf16>
    %102 = vector.shape_cast %101 : vector<1x1x78x128xbf16> to vector<78x128xbf16>
    %c16 = arith.constant 16 : index
    %c0_114 = arith.constant 0 : index
    %c0_115 = arith.constant 0 : index
    %103 = vector.load %arg5[%c16, %c0_114, %c0_115] : memref<27x128x128xbf16, #tpu.memory_space<vmem>>, vector<1x128x128xbf16>
    %104 = vector.shape_cast %103 : vector<1x128x128xbf16> to vector<128x128xbf16>
    %cst_116 = arith.constant dense<0.000000e+00> : vector<78x128xf32>
    %105 = tpu.matmul %102, %104, %cst_116 {dimension_numbers = #tpu.dot_dimension_numbers<[1], [0], [0], [1], [0, 0, 1, 1], [], []>} : vector<78x128xbf16>, vector<128x128xbf16>, vector<78x128xf32> -> vector<78x128xf32>
    %106 = arith.addf %100, %105 : vector<78x128xf32>
    %c0_117 = arith.constant 0 : index
    %c0_118 = arith.constant 0 : index
    %c22_119 = arith.constant 22 : index
    %c0_120 = arith.constant 0 : index
    %107 = vector.load %arg3[%c0_117, %c0_118, %c22_119, %c0_120] : memref<1x1x100x128xbf16, #tpu.memory_space<vmem>>, vector<1x1x78x128xbf16>
    %108 = vector.shape_cast %107 : vector<1x1x78x128xbf16> to vector<78x128xbf16>
    %c17 = arith.constant 17 : index
    %c0_121 = arith.constant 0 : index
    %c0_122 = arith.constant 0 : index
    %109 = vector.load %arg5[%c17, %c0_121, %c0_122] : memref<27x128x128xbf16, #tpu.memory_space<vmem>>, vector<1x128x128xbf16>
    %110 = vector.shape_cast %109 : vector<1x128x128xbf16> to vector<128x128xbf16>
    %cst_123 = arith.constant dense<0.000000e+00> : vector<78x128xf32>
    %111 = tpu.matmul %108, %110, %cst_123 {dimension_numbers = #tpu.dot_dimension_numbers<[1], [0], [0], [1], [0, 0, 1, 1], [], []>} : vector<78x128xbf16>, vector<128x128xbf16>, vector<78x128xf32> -> vector<78x128xf32>
    %112 = arith.addf %106, %111 : vector<78x128xf32>
    %c0_124 = arith.constant 0 : index
    %c0_125 = arith.constant 0 : index
    %c0_126 = arith.constant 0 : index
    %c0_127 = arith.constant 0 : index
    %113 = vector.load %arg4[%c0_124, %c0_125, %c0_126, %c0_127] : memref<1x1x100x128xbf16, #tpu.memory_space<vmem>>, vector<1x1x78x128xbf16>
    %114 = vector.shape_cast %113 : vector<1x1x78x128xbf16> to vector<78x128xbf16>
    %c18 = arith.constant 18 : index
    %c0_128 = arith.constant 0 : index
    %c0_129 = arith.constant 0 : index
    %115 = vector.load %arg5[%c18, %c0_128, %c0_129] : memref<27x128x128xbf16, #tpu.memory_space<vmem>>, vector<1x128x128xbf16>
    %116 = vector.shape_cast %115 : vector<1x128x128xbf16> to vector<128x128xbf16>
    %cst_130 = arith.constant dense<0.000000e+00> : vector<78x128xf32>
    %117 = tpu.matmul %114, %116, %cst_130 {dimension_numbers = #tpu.dot_dimension_numbers<[1], [0], [0], [1], [0, 0, 1, 1], [], []>} : vector<78x128xbf16>, vector<128x128xbf16>, vector<78x128xf32> -> vector<78x128xf32>
    %118 = arith.addf %112, %117 : vector<78x128xf32>
    %c0_131 = arith.constant 0 : index
    %c0_132 = arith.constant 0 : index
    %c1_133 = arith.constant 1 : index
    %c0_134 = arith.constant 0 : index
    %119 = vector.load %arg4[%c0_131, %c0_132, %c1_133, %c0_134] : memref<1x1x100x128xbf16, #tpu.memory_space<vmem>>, vector<1x1x78x128xbf16>
    %120 = vector.shape_cast %119 : vector<1x1x78x128xbf16> to vector<78x128xbf16>
    %c19 = arith.constant 19 : index
    %c0_135 = arith.constant 0 : index
    %c0_136 = arith.constant 0 : index
    %121 = vector.load %arg5[%c19, %c0_135, %c0_136] : memref<27x128x128xbf16, #tpu.memory_space<vmem>>, vector<1x128x128xbf16>
    %122 = vector.shape_cast %121 : vector<1x128x128xbf16> to vector<128x128xbf16>
    %cst_137 = arith.constant dense<0.000000e+00> : vector<78x128xf32>
    %123 = tpu.matmul %120, %122, %cst_137 {dimension_numbers = #tpu.dot_dimension_numbers<[1], [0], [0], [1], [0, 0, 1, 1], [], []>} : vector<78x128xbf16>, vector<128x128xbf16>, vector<78x128xf32> -> vector<78x128xf32>
    %124 = arith.addf %118, %123 : vector<78x128xf32>
    %c0_138 = arith.constant 0 : index
    %c0_139 = arith.constant 0 : index
    %c2_140 = arith.constant 2 : index
    %c0_141 = arith.constant 0 : index
    %125 = vector.load %arg4[%c0_138, %c0_139, %c2_140, %c0_141] : memref<1x1x100x128xbf16, #tpu.memory_space<vmem>>, vector<1x1x78x128xbf16>
    %126 = vector.shape_cast %125 : vector<1x1x78x128xbf16> to vector<78x128xbf16>
    %c20_142 = arith.constant 20 : index
    %c0_143 = arith.constant 0 : index
    %c0_144 = arith.constant 0 : index
    %127 = vector.load %arg5[%c20_142, %c0_143, %c0_144] : memref<27x128x128xbf16, #tpu.memory_space<vmem>>, vector<1x128x128xbf16>
    %128 = vector.shape_cast %127 : vector<1x128x128xbf16> to vector<128x128xbf16>
    %cst_145 = arith.constant dense<0.000000e+00> : vector<78x128xf32>
    %129 = tpu.matmul %126, %128, %cst_145 {dimension_numbers = #tpu.dot_dimension_numbers<[1], [0], [0], [1], [0, 0, 1, 1], [], []>} : vector<78x128xbf16>, vector<128x128xbf16>, vector<78x128xf32> -> vector<78x128xf32>
    %130 = arith.addf %124, %129 : vector<78x128xf32>
    %c0_146 = arith.constant 0 : index
    %c0_147 = arith.constant 0 : index
    %c10_148 = arith.constant 10 : index
    %c0_149 = arith.constant 0 : index
    %131 = vector.load %arg4[%c0_146, %c0_147, %c10_148, %c0_149] : memref<1x1x100x128xbf16, #tpu.memory_space<vmem>>, vector<1x1x78x128xbf16>
    %132 = vector.shape_cast %131 : vector<1x1x78x128xbf16> to vector<78x128xbf16>
    %c21_150 = arith.constant 21 : index
    %c0_151 = arith.constant 0 : index
    %c0_152 = arith.constant 0 : index
    %133 = vector.load %arg5[%c21_150, %c0_151, %c0_152] : memref<27x128x128xbf16, #tpu.memory_space<vmem>>, vector<1x128x128xbf16>
    %134 = vector.shape_cast %133 : vector<1x128x128xbf16> to vector<128x128xbf16>
    %cst_153 = arith.constant dense<0.000000e+00> : vector<78x128xf32>
    %135 = tpu.matmul %132, %134, %cst_153 {dimension_numbers = #tpu.dot_dimension_numbers<[1], [0], [0], [1], [0, 0, 1, 1], [], []>} : vector<78x128xbf16>, vector<128x128xbf16>, vector<78x128xf32> -> vector<78x128xf32>
    %136 = arith.addf %130, %135 : vector<78x128xf32>
    %c0_154 = arith.constant 0 : index
    %c0_155 = arith.constant 0 : index
    %c11_156 = arith.constant 11 : index
    %c0_157 = arith.constant 0 : index
    %137 = vector.load %arg4[%c0_154, %c0_155, %c11_156, %c0_157] : memref<1x1x100x128xbf16, #tpu.memory_space<vmem>>, vector<1x1x78x128xbf16>
    %138 = vector.shape_cast %137 : vector<1x1x78x128xbf16> to vector<78x128xbf16>
    %c22_158 = arith.constant 22 : index
    %c0_159 = arith.constant 0 : index
    %c0_160 = arith.constant 0 : index
    %139 = vector.load %arg5[%c22_158, %c0_159, %c0_160] : memref<27x128x128xbf16, #tpu.memory_space<vmem>>, vector<1x128x128xbf16>
    %140 = vector.shape_cast %139 : vector<1x128x128xbf16> to vector<128x128xbf16>
    %cst_161 = arith.constant dense<0.000000e+00> : vector<78x128xf32>
    %141 = tpu.matmul %138, %140, %cst_161 {dimension_numbers = #tpu.dot_dimension_numbers<[1], [0], [0], [1], [0, 0, 1, 1], [], []>} : vector<78x128xbf16>, vector<128x128xbf16>, vector<78x128xf32> -> vector<78x128xf32>
    %142 = arith.addf %136, %141 : vector<78x128xf32>
    %c0_162 = arith.constant 0 : index
    %c0_163 = arith.constant 0 : index
    %c12_164 = arith.constant 12 : index
    %c0_165 = arith.constant 0 : index
    %143 = vector.load %arg4[%c0_162, %c0_163, %c12_164, %c0_165] : memref<1x1x100x128xbf16, #tpu.memory_space<vmem>>, vector<1x1x78x128xbf16>
    %144 = vector.shape_cast %143 : vector<1x1x78x128xbf16> to vector<78x128xbf16>
    %c23 = arith.constant 23 : index
    %c0_166 = arith.constant 0 : index
    %c0_167 = arith.constant 0 : index
    %145 = vector.load %arg5[%c23, %c0_166, %c0_167] : memref<27x128x128xbf16, #tpu.memory_space<vmem>>, vector<1x128x128xbf16>
    %146 = vector.shape_cast %145 : vector<1x128x128xbf16> to vector<128x128xbf16>
    %cst_168 = arith.constant dense<0.000000e+00> : vector<78x128xf32>
    %147 = tpu.matmul %144, %146, %cst_168 {dimension_numbers = #tpu.dot_dimension_numbers<[1], [0], [0], [1], [0, 0, 1, 1], [], []>} : vector<78x128xbf16>, vector<128x128xbf16>, vector<78x128xf32> -> vector<78x128xf32>
    %148 = arith.addf %142, %147 : vector<78x128xf32>
    %c0_169 = arith.constant 0 : index
    %c0_170 = arith.constant 0 : index
    %c20_171 = arith.constant 20 : index
    %c0_172 = arith.constant 0 : index
    %149 = vector.load %arg4[%c0_169, %c0_170, %c20_171, %c0_172] : memref<1x1x100x128xbf16, #tpu.memory_space<vmem>>, vector<1x1x78x128xbf16>
    %150 = vector.shape_cast %149 : vector<1x1x78x128xbf16> to vector<78x128xbf16>
    %c24 = arith.constant 24 : index
    %c0_173 = arith.constant 0 : index
    %c0_174 = arith.constant 0 : index
    %151 = vector.load %arg5[%c24, %c0_173, %c0_174] : memref<27x128x128xbf16, #tpu.memory_space<vmem>>, vector<1x128x128xbf16>
    %152 = vector.shape_cast %151 : vector<1x128x128xbf16> to vector<128x128xbf16>
    %cst_175 = arith.constant dense<0.000000e+00> : vector<78x128xf32>
    %153 = tpu.matmul %150, %152, %cst_175 {dimension_numbers = #tpu.dot_dimension_numbers<[1], [0], [0], [1], [0, 0, 1, 1], [], []>} : vector<78x128xbf16>, vector<128x128xbf16>, vector<78x128xf32> -> vector<78x128xf32>
    %154 = arith.addf %148, %153 : vector<78x128xf32>
    %c0_176 = arith.constant 0 : index
    %c0_177 = arith.constant 0 : index
    %c21_178 = arith.constant 21 : index
    %c0_179 = arith.constant 0 : index
    %155 = vector.load %arg4[%c0_176, %c0_177, %c21_178, %c0_179] : memref<1x1x100x128xbf16, #tpu.memory_space<vmem>>, vector<1x1x78x128xbf16>
    %156 = vector.shape_cast %155 : vector<1x1x78x128xbf16> to vector<78x128xbf16>
    %c25 = arith.constant 25 : index
    %c0_180 = arith.constant 0 : index
    %c0_181 = arith.constant 0 : index
    %157 = vector.load %arg5[%c25, %c0_180, %c0_181] : memref<27x128x128xbf16, #tpu.memory_space<vmem>>, vector<1x128x128xbf16>
    %158 = vector.shape_cast %157 : vector<1x128x128xbf16> to vector<128x128xbf16>
    %cst_182 = arith.constant dense<0.000000e+00> : vector<78x128xf32>
    %159 = tpu.matmul %156, %158, %cst_182 {dimension_numbers = #tpu.dot_dimension_numbers<[1], [0], [0], [1], [0, 0, 1, 1], [], []>} : vector<78x128xbf16>, vector<128x128xbf16>, vector<78x128xf32> -> vector<78x128xf32>
    %160 = arith.addf %154, %159 : vector<78x128xf32>
    %c0_183 = arith.constant 0 : index
    %c0_184 = arith.constant 0 : index
    %c22_185 = arith.constant 22 : index
    %c0_186 = arith.constant 0 : index
    %161 = vector.load %arg4[%c0_183, %c0_184, %c22_185, %c0_186] : memref<1x1x100x128xbf16, #tpu.memory_space<vmem>>, vector<1x1x78x128xbf16>
    %162 = vector.shape_cast %161 : vector<1x1x78x128xbf16> to vector<78x128xbf16>
    %c26 = arith.constant 26 : index
    %c0_187 = arith.constant 0 : index
    %c0_188 = arith.constant 0 : index
    %163 = vector.load %arg5[%c26, %c0_187, %c0_188] : memref<27x128x128xbf16, #tpu.memory_space<vmem>>, vector<1x128x128xbf16>
    %164 = vector.shape_cast %163 : vector<1x128x128xbf16> to vector<128x128xbf16>
    %cst_189 = arith.constant dense<0.000000e+00> : vector<78x128xf32>
    %165 = tpu.matmul %162, %164, %cst_189 {dimension_numbers = #tpu.dot_dimension_numbers<[1], [0], [0], [1], [0, 0, 1, 1], [], []>} : vector<78x128xbf16>, vector<128x128xbf16>, vector<78x128xf32> -> vector<78x128xf32>
    %166 = arith.addf %160, %165 : vector<78x128xf32>
    %167 = tpu.iota {dimensions = array<i32: 0>} : vector<78x1xi32>
    %c10_i32 = arith.constant 10 : i32
    %c0_i32_190 = arith.constant 0 : i32
    %168 = arith.cmpi eq, %c10_i32, %c0_i32_190 : i32
    %c1_i32 = arith.constant 1 : i32
    %169 = arith.select %168, %c1_i32, %c10_i32 : i32
    %170 = vector.broadcast %169 : i32 to vector<78x1xi32>
    %171 = arith.remsi %167, %170 : vector<78x1xi32>
    %c0_i32_191 = arith.constant 0 : i32
    %172 = vector.broadcast %c0_i32_191 : i32 to vector<78x1xi32>
    %173 = arith.cmpi ne, %171, %172 : vector<78x1xi32>
    %c0_i32_192 = arith.constant 0 : i32
    %174 = vector.broadcast %c0_i32_192 : i32 to vector<78x1xi32>
    %175 = arith.cmpi slt, %171, %174 : vector<78x1xi32>
    %c0_i32_193 = arith.constant 0 : i32
    %176 = arith.cmpi slt, %169, %c0_i32_193 : i32
    %177 = vector.broadcast %176 : i1 to vector<78x1xi1>
    %178 = vector.broadcast %177 : vector<78x1xi1> to vector<78x1xi1>
    %179 = arith.xori %175, %178 : vector<78x1xi1>
    %180 = arith.andi %179, %173 : vector<78x1xi1>
    %181 = vector.broadcast %169 : i32 to vector<78x1xi32>
    %182 = arith.addi %171, %181 : vector<78x1xi32>
    %183 = arith.select %180, %182, %171 : vector<78x1xi1>, vector<78x1xi32>
    %c8_i32 = arith.constant 8 : i32
    %184 = vector.broadcast %c8_i32 : i32 to vector<78x1xi32>
    %185 = arith.cmpi slt, %183, %184 : vector<78x1xi32>
    %186 = arith.extui %185 : vector<78x1xi1> to vector<78x1xi32>
    %187 = arith.sitofp %186 : vector<78x1xi32> to vector<78x1xf32>
    %188 = vector.broadcast %187 : vector<78x1xf32> to vector<78x128xf32>
    %189 = arith.mulf %166, %188 : vector<78x128xf32>
    %c0_194 = arith.constant 0 : index
    %c0_195 = arith.constant 0 : index
    %c0_196 = arith.constant 0 : index
    %c0_197 = arith.constant 0 : index
    %190 = vector.load %arg6[%c0_194, %c0_195, %c0_196, %c0_197] : memref<1x1x78x128xf32, #tpu.memory_space<vmem>>, vector<1x1x78x128xf32>
    %191 = vector.shape_cast %190 : vector<1x1x78x128xf32> to vector<78x128xf32>
    %192 = vector.shape_cast %189 : vector<78x128xf32> to vector<1x1x78x128xf32>
    tpu.vector_store %arg6[%c0_194, %c0_195, %c0_196, %c0_197], %192 {strides = array<i32>} : memref<1x1x78x128xf32, #tpu.memory_space<vmem>>, vector<1x1x78x128xf32>,
    %c0_198 = arith.constant 0 : index
    %c0_199 = arith.constant 0 : index
    %193 = vector.load %arg7[%c0_198, %c0_199] : memref<1x128xf32, #tpu.memory_space<vmem>>, vector<1x128xf32>
    %cst_200 = arith.constant dense<0.000000e+00> : vector<128xf32>
    %194 = vector.multi_reduction <add>, %189, %cst_200 [0] : vector<78x128xf32> to vector<128xf32>
    %195 = vector.shape_cast %194 : vector<128xf32> to vector<1x128xf32>
    %196 = arith.addf %193, %195 : vector<1x128xf32>
    %c0_201 = arith.constant 0 : index
    %c0_202 = arith.constant 0 : index
    %197 = vector.load %arg7[%c0_201, %c0_202] : memref<1x128xf32, #tpu.memory_space<vmem>>, vector<1x128xf32>
    tpu.vector_store %arg7[%c0_201, %c0_202], %196 {strides = array<i32>} : memref<1x128xf32, #tpu.memory_space<vmem>>, vector<1x128xf32>,
    %c0_203 = arith.constant 0 : index
    %c0_204 = arith.constant 0 : index
    %198 = vector.load %arg8[%c0_203, %c0_204] : memref<1x128xf32, #tpu.memory_space<vmem>>, vector<1x128xf32>
    %199 = arith.mulf %189, %189 : vector<78x128xf32>
    %cst_205 = arith.constant dense<0.000000e+00> : vector<128xf32>
    %200 = vector.multi_reduction <add>, %199, %cst_205 [0] : vector<78x128xf32> to vector<128xf32>
    %201 = vector.shape_cast %200 : vector<128xf32> to vector<1x128xf32>
    %202 = arith.addf %198, %201 : vector<1x128xf32>
    %c0_206 = arith.constant 0 : index
    %c0_207 = arith.constant 0 : index
    %203 = vector.load %arg8[%c0_206, %c0_207] : memref<1x128xf32, #tpu.memory_space<vmem>>, vector<1x128xf32>
    tpu.vector_store %arg8[%c0_206, %c0_207], %202 {strides = array<i32>} : memref<1x128xf32, #tpu.memory_space<vmem>>, vector<1x128xf32>,
    return
  }
  func.func @transform_0(%arg0: i32, %arg1: i32) -> (i32, i32, i32, i32) {
    %c0_i32 = arith.constant 0 : i32
    %0 = arith.addi %arg1, %c0_i32 : i32
    %c0_i32_0 = arith.constant 0 : i32
    %c0_i32_1 = arith.constant 0 : i32
    %c0_i32_2 = arith.constant 0 : i32
    return %arg0, %0, %c0_i32_0, %c0_i32_1 : i32, i32, i32, i32
  }
  func.func @transform_1(%arg0: i32, %arg1: i32) -> (i32, i32, i32, i32) {
    %c1_i32 = arith.constant 1 : i32
    %0 = arith.addi %arg1, %c1_i32 : i32
    %c0_i32 = arith.constant 0 : i32
    %c0_i32_0 = arith.constant 0 : i32
    %c0_i32_1 = arith.constant 0 : i32
    return %arg0, %0, %c0_i32, %c0_i32_0 : i32, i32, i32, i32
  }
  func.func @transform_2(%arg0: i32, %arg1: i32) -> (i32, i32, i32, i32) {
    %c2_i32 = arith.constant 2 : i32
    %0 = arith.addi %arg1, %c2_i32 : i32
    %c0_i32 = arith.constant 0 : i32
    %c0_i32_0 = arith.constant 0 : i32
    %c0_i32_1 = arith.constant 0 : i32
    return %arg0, %0, %c0_i32, %c0_i32_0 : i32, i32, i32, i32
  }
  func.func @transform_3(%arg0: i32, %arg1: i32) -> (i32, i32, i32) {
    %c0_i32 = arith.constant 0 : i32
    %c0_i32_0 = arith.constant 0 : i32
    %c0_i32_1 = arith.constant 0 : i32
    %c0_i32_2 = arith.constant 0 : i32
    return %c0_i32, %c0_i32_0, %c0_i32_1 : i32, i32, i32
  }
  func.func @transform_4(%arg0: i32, %arg1: i32) -> (i32, i32, i32, i32) {
    %c0_i32 = arith.constant 0 : i32
    %c0_i32_0 = arith.constant 0 : i32
    %c0_i32_1 = arith.constant 0 : i32
    return %arg0, %arg1, %c0_i32, %c0_i32_0 : i32, i32, i32, i32
  }
  func.func @transform_5(%arg0: i32, %arg1: i32) -> (i32, i32) {
    %c0_i32 = arith.constant 0 : i32
    %c0_i32_0 = arith.constant 0 : i32
    %c0_i32_1 = arith.constant 0 : i32
    return %c0_i32, %c0_i32_0 : i32, i32
  }
  func.func @transform_6(%arg0: i32, %arg1: i32) -> (i32, i32) {
    %c0_i32 = arith.constant 0 : i32
    %c0_i32_0 = arith.constant 0 : i32
    %c0_i32_1 = arith.constant 0 : i32
    return %c0_i32, %c0_i32_0 : i32, i32
  }
}

module attributes {stable_mosaic.version = 11 : i64} {
  func.func @_bn_gelu_matmul_stats_kernel(%arg0: i32, %arg1: memref<512x128xf32, #tpu.memory_space<vmem>>, %arg2: memref<1x128xf32, #tpu.memory_space<vmem>>, %arg3: memref<1x128xf32, #tpu.memory_space<vmem>>, %arg4: memref<1x128xf32, #tpu.memory_space<vmem>>, %arg5: memref<1x128xf32, #tpu.memory_space<vmem>>, %arg6: memref<128x128xbf16, #tpu.memory_space<vmem>>, %arg7: memref<512x128xf32, #tpu.memory_space<vmem>>, %arg8: memref<1x128xf32, #tpu.memory_space<vmem>>, %arg9: memref<1x128xf32, #tpu.memory_space<vmem>>) attributes {dimension_semantics = [#tpu.dimension_semantics<arbitrary>], iteration_bounds = array<i64: 2>, scalar_prefetch = 0 : i64, scratch_operands = 0 : i64, tpu.core_type = #tpu.core_type<tc>, window_params = [{transform_indices = @transform_0, window_bounds = array<i64: 512, 128>}, {pipeline_mode = #tpu.pipeline_mode<synchronous>, transform_indices = @transform_1, window_bounds = array<i64: 1, 128>}, {pipeline_mode = #tpu.pipeline_mode<synchronous>, transform_indices = @transform_2, window_bounds = array<i64: 1, 128>}, {pipeline_mode = #tpu.pipeline_mode<synchronous>, transform_indices = @transform_3, window_bounds = array<i64: 1, 128>}, {pipeline_mode = #tpu.pipeline_mode<synchronous>, transform_indices = @transform_4, window_bounds = array<i64: 1, 128>}, {pipeline_mode = #tpu.pipeline_mode<synchronous>, transform_indices = @transform_5, window_bounds = array<i64: 128, 128>}, {transform_indices = @transform_6, window_bounds = array<i64: 512, 128>}, {pipeline_mode = #tpu.pipeline_mode<synchronous>, transform_indices = @transform_7, window_bounds = array<i64: 1, 128>}, {pipeline_mode = #tpu.pipeline_mode<synchronous>, transform_indices = @transform_8, window_bounds = array<i64: 1, 128>}]} {
    %c0_i32 = arith.constant 0 : i32
    %0 = arith.cmpi eq, %arg0, %c0_i32 : i32
    %1 = arith.extui %0 : i1 to i32
    %c0_i32_0 = arith.constant 0 : i32
    %2 = arith.cmpi ne, %1, %c0_i32_0 : i32
    scf.if %2 {
      %cst_32 = arith.constant 0.000000e+00 : f32
      %54 = vector.broadcast %cst_32 : f32 to vector<1x128xf32>
      %c0_33 = arith.constant 0 : index
      %c0_34 = arith.constant 0 : index
      %55 = vector.load %arg8[%c0_33, %c0_34] : memref<1x128xf32, #tpu.memory_space<vmem>>, vector<1x128xf32>
      tpu.vector_store %arg8[%c0_33, %c0_34], %54 {strides = array<i32>} : memref<1x128xf32, #tpu.memory_space<vmem>>, vector<1x128xf32>,
      %cst_35 = arith.constant 0.000000e+00 : f32
      %56 = vector.broadcast %cst_35 : f32 to vector<1x128xf32>
      %c0_36 = arith.constant 0 : index
      %c0_37 = arith.constant 0 : index
      %57 = vector.load %arg9[%c0_36, %c0_37] : memref<1x128xf32, #tpu.memory_space<vmem>>, vector<1x128xf32>
      tpu.vector_store %arg9[%c0_36, %c0_37], %56 {strides = array<i32>} : memref<1x128xf32, #tpu.memory_space<vmem>>, vector<1x128xf32>,
    } else {
    }
    %c0 = arith.constant 0 : index
    %c0_1 = arith.constant 0 : index
    %3 = vector.load %arg2[%c0, %c0_1] : memref<1x128xf32, #tpu.memory_space<vmem>>, vector<1x128xf32>
    %c0_2 = arith.constant 0 : index
    %c0_3 = arith.constant 0 : index
    %4 = vector.load %arg3[%c0_2, %c0_3] : memref<1x128xf32, #tpu.memory_space<vmem>>, vector<1x128xf32>
    %c0_4 = arith.constant 0 : index
    %c0_5 = arith.constant 0 : index
    %5 = vector.load %arg4[%c0_4, %c0_5] : memref<1x128xf32, #tpu.memory_space<vmem>>, vector<1x128xf32>
    %c0_6 = arith.constant 0 : index
    %c0_7 = arith.constant 0 : index
    %6 = vector.load %arg5[%c0_6, %c0_7] : memref<1x128xf32, #tpu.memory_space<vmem>>, vector<1x128xf32>
    %cst = arith.constant 9.765625E-4 : f32
    %7 = vector.broadcast %cst : f32 to vector<1x128xf32>
    %8 = arith.mulf %3, %7 : vector<1x128xf32>
    %cst_8 = arith.constant 9.765625E-4 : f32
    %9 = vector.broadcast %cst_8 : f32 to vector<1x128xf32>
    %10 = arith.mulf %4, %9 : vector<1x128xf32>
    %11 = arith.mulf %8, %8 : vector<1x128xf32>
    %12 = arith.subf %10, %11 : vector<1x128xf32>
    %cst_9 = arith.constant 0.000000e+00 : f32
    %13 = vector.broadcast %cst_9 : f32 to vector<1x128xf32>
    %14 = arith.maximumf %12, %13 : vector<1x128xf32>
    %cst_10 = arith.constant 9.99999974E-6 : f32
    %15 = vector.broadcast %cst_10 : f32 to vector<1x128xf32>
    %16 = arith.addf %14, %15 : vector<1x128xf32>
    %17 = math.rsqrt %16 : vector<1x128xf32>
    %18 = arith.mulf %5, %17 : vector<1x128xf32>
    %19 = arith.mulf %8, %18 : vector<1x128xf32>
    %20 = arith.subf %6, %19 : vector<1x128xf32>
    %c0_11 = arith.constant 0 : index
    %c0_12 = arith.constant 0 : index
    %21 = vector.load %arg1[%c0_11, %c0_12] : memref<512x128xf32, #tpu.memory_space<vmem>>, vector<512x128xf32>
    %22 = vector.broadcast %18 : vector<1x128xf32> to vector<512x128xf32>
    %23 = arith.mulf %21, %22 : vector<512x128xf32>
    %24 = vector.broadcast %20 : vector<1x128xf32> to vector<512x128xf32>
    %25 = arith.addf %23, %24 : vector<512x128xf32>
    %cst_13 = arith.constant 5.000000e-01 : f32
    %26 = vector.broadcast %cst_13 : f32 to vector<512x128xf32>
    %27 = arith.mulf %26, %25 : vector<512x128xf32>
    %cst_14 = arith.constant 4.471500e-02 : f32
    %28 = vector.broadcast %cst_14 : f32 to vector<512x128xf32>
    %29 = arith.mulf %28, %25 : vector<512x128xf32>
    %30 = arith.mulf %29, %25 : vector<512x128xf32>
    %31 = arith.mulf %30, %25 : vector<512x128xf32>
    %32 = arith.addf %25, %31 : vector<512x128xf32>
    %cst_15 = arith.constant 0.797884583 : f32
    %33 = vector.broadcast %cst_15 : f32 to vector<512x128xf32>
    %34 = arith.mulf %33, %32 : vector<512x128xf32>
    %35 = math.tanh %34 : vector<512x128xf32>
    %cst_16 = arith.constant 1.000000e+00 : f32
    %36 = vector.broadcast %cst_16 : f32 to vector<512x128xf32>
    %37 = arith.addf %36, %35 : vector<512x128xf32>
    %38 = arith.mulf %27, %37 : vector<512x128xf32>
    %39 = arith.truncf %38 : vector<512x128xf32> to vector<512x128xbf16>
    %c0_17 = arith.constant 0 : index
    %c0_18 = arith.constant 0 : index
    %40 = vector.load %arg6[%c0_17, %c0_18] : memref<128x128xbf16, #tpu.memory_space<vmem>>, vector<128x128xbf16>
    %cst_19 = arith.constant dense<0.000000e+00> : vector<512x128xf32>
    %41 = tpu.matmul %39, %40, %cst_19 {dimension_numbers = #tpu.dot_dimension_numbers<[1], [0], [0], [1], [0, 0, 1, 1], [], []>} : vector<512x128xbf16>, vector<128x128xbf16>, vector<512x128xf32> -> vector<512x128xf32>
    %c0_20 = arith.constant 0 : index
    %c0_21 = arith.constant 0 : index
    %42 = vector.load %arg7[%c0_20, %c0_21] : memref<512x128xf32, #tpu.memory_space<vmem>>, vector<512x128xf32>
    tpu.vector_store %arg7[%c0_20, %c0_21], %41 {strides = array<i32>} : memref<512x128xf32, #tpu.memory_space<vmem>>, vector<512x128xf32>,
    %c0_22 = arith.constant 0 : index
    %c0_23 = arith.constant 0 : index
    %43 = vector.load %arg8[%c0_22, %c0_23] : memref<1x128xf32, #tpu.memory_space<vmem>>, vector<1x128xf32>
    %cst_24 = arith.constant dense<0.000000e+00> : vector<128xf32>
    %44 = vector.multi_reduction <add>, %41, %cst_24 [0] : vector<512x128xf32> to vector<128xf32>
    %45 = vector.shape_cast %44 : vector<128xf32> to vector<1x128xf32>
    %46 = arith.addf %43, %45 : vector<1x128xf32>
    %c0_25 = arith.constant 0 : index
    %c0_26 = arith.constant 0 : index
    %47 = vector.load %arg8[%c0_25, %c0_26] : memref<1x128xf32, #tpu.memory_space<vmem>>, vector<1x128xf32>
    tpu.vector_store %arg8[%c0_25, %c0_26], %46 {strides = array<i32>} : memref<1x128xf32, #tpu.memory_space<vmem>>, vector<1x128xf32>,
    %c0_27 = arith.constant 0 : index
    %c0_28 = arith.constant 0 : index
    %48 = vector.load %arg9[%c0_27, %c0_28] : memref<1x128xf32, #tpu.memory_space<vmem>>, vector<1x128xf32>
    %49 = arith.mulf %41, %41 : vector<512x128xf32>
    %cst_29 = arith.constant dense<0.000000e+00> : vector<128xf32>
    %50 = vector.multi_reduction <add>, %49, %cst_29 [0] : vector<512x128xf32> to vector<128xf32>
    %51 = vector.shape_cast %50 : vector<128xf32> to vector<1x128xf32>
    %52 = arith.addf %48, %51 : vector<1x128xf32>
    %c0_30 = arith.constant 0 : index
    %c0_31 = arith.constant 0 : index
    %53 = vector.load %arg9[%c0_30, %c0_31] : memref<1x128xf32, #tpu.memory_space<vmem>>, vector<1x128xf32>
    tpu.vector_store %arg9[%c0_30, %c0_31], %52 {strides = array<i32>} : memref<1x128xf32, #tpu.memory_space<vmem>>, vector<1x128xf32>,
    return
  }
  func.func @transform_0(%arg0: i32) -> (i32, i32) {
    %c0_i32 = arith.constant 0 : i32
    %c0_i32_0 = arith.constant 0 : i32
    return %arg0, %c0_i32 : i32, i32
  }
  func.func @transform_1(%arg0: i32) -> (i32, i32) {
    %c0_i32 = arith.constant 0 : i32
    %c0_i32_0 = arith.constant 0 : i32
    %c0_i32_1 = arith.constant 0 : i32
    return %c0_i32, %c0_i32_0 : i32, i32
  }
  func.func @transform_2(%arg0: i32) -> (i32, i32) {
    %c0_i32 = arith.constant 0 : i32
    %c0_i32_0 = arith.constant 0 : i32
    %c0_i32_1 = arith.constant 0 : i32
    return %c0_i32, %c0_i32_0 : i32, i32
  }
  func.func @transform_3(%arg0: i32) -> (i32, i32) {
    %c0_i32 = arith.constant 0 : i32
    %c0_i32_0 = arith.constant 0 : i32
    %c0_i32_1 = arith.constant 0 : i32
    return %c0_i32, %c0_i32_0 : i32, i32
  }
  func.func @transform_4(%arg0: i32) -> (i32, i32) {
    %c0_i32 = arith.constant 0 : i32
    %c0_i32_0 = arith.constant 0 : i32
    %c0_i32_1 = arith.constant 0 : i32
    return %c0_i32, %c0_i32_0 : i32, i32
  }
  func.func @transform_5(%arg0: i32) -> (i32, i32) {
    %c0_i32 = arith.constant 0 : i32
    %c0_i32_0 = arith.constant 0 : i32
    %c0_i32_1 = arith.constant 0 : i32
    return %c0_i32, %c0_i32_0 : i32, i32
  }
  func.func @transform_6(%arg0: i32) -> (i32, i32) {
    %c0_i32 = arith.constant 0 : i32
    %c0_i32_0 = arith.constant 0 : i32
    return %arg0, %c0_i32 : i32, i32
  }
  func.func @transform_7(%arg0: i32) -> (i32, i32) {
    %c0_i32 = arith.constant 0 : i32
    %c0_i32_0 = arith.constant 0 : i32
    %c0_i32_1 = arith.constant 0 : i32
    return %c0_i32, %c0_i32_0 : i32, i32
  }
  func.func @transform_8(%arg0: i32) -> (i32, i32) {
    %c0_i32 = arith.constant 0 : i32
    %c0_i32_0 = arith.constant 0 : i32
    %c0_i32_1 = arith.constant 0 : i32
    return %c0_i32, %c0_i32_0 : i32, i32
  }
}

module attributes {stable_mosaic.version = 11 : i64} {
  func.func @_residual_bn_add_gelu_kernel(%arg0: i32, %arg1: memref<512x128xf32, #tpu.memory_space<vmem>>, %arg2: memref<512x128xf32, #tpu.memory_space<vmem>>, %arg3: memref<1x128xf32, #tpu.memory_space<vmem>>, %arg4: memref<1x128xf32, #tpu.memory_space<vmem>>, %arg5: memref<1x128xf32, #tpu.memory_space<vmem>>, %arg6: memref<1x128xf32, #tpu.memory_space<vmem>>, %arg7: memref<1x128xf32, #tpu.memory_space<vmem>>, %arg8: memref<1x128xf32, #tpu.memory_space<vmem>>, %arg9: memref<1x128xf32, #tpu.memory_space<vmem>>, %arg10: memref<1x128xf32, #tpu.memory_space<vmem>>, %arg11: memref<512x128xf32, #tpu.memory_space<vmem>>) attributes {dimension_semantics = [#tpu.dimension_semantics<parallel>], iteration_bounds = array<i64: 2>, scalar_prefetch = 0 : i64, scratch_operands = 0 : i64, tpu.core_type = #tpu.core_type<tc>, window_params = [{transform_indices = @transform_0, window_bounds = array<i64: 512, 128>}, {transform_indices = @transform_1, window_bounds = array<i64: 512, 128>}, {pipeline_mode = #tpu.pipeline_mode<synchronous>, transform_indices = @transform_2, window_bounds = array<i64: 1, 128>}, {pipeline_mode = #tpu.pipeline_mode<synchronous>, transform_indices = @transform_3, window_bounds = array<i64: 1, 128>}, {pipeline_mode = #tpu.pipeline_mode<synchronous>, transform_indices = @transform_4, window_bounds = array<i64: 1, 128>}, {pipeline_mode = #tpu.pipeline_mode<synchronous>, transform_indices = @transform_5, window_bounds = array<i64: 1, 128>}, {pipeline_mode = #tpu.pipeline_mode<synchronous>, transform_indices = @transform_6, window_bounds = array<i64: 1, 128>}, {pipeline_mode = #tpu.pipeline_mode<synchronous>, transform_indices = @transform_7, window_bounds = array<i64: 1, 128>}, {pipeline_mode = #tpu.pipeline_mode<synchronous>, transform_indices = @transform_8, window_bounds = array<i64: 1, 128>}, {pipeline_mode = #tpu.pipeline_mode<synchronous>, transform_indices = @transform_9, window_bounds = array<i64: 1, 128>}, {transform_indices = @transform_10, window_bounds = array<i64: 512, 128>}]} {
    %c0 = arith.constant 0 : index
    %c0_0 = arith.constant 0 : index
    %0 = vector.load %arg3[%c0, %c0_0] : memref<1x128xf32, #tpu.memory_space<vmem>>, vector<1x128xf32>
    %c0_1 = arith.constant 0 : index
    %c0_2 = arith.constant 0 : index
    %1 = vector.load %arg4[%c0_1, %c0_2] : memref<1x128xf32, #tpu.memory_space<vmem>>, vector<1x128xf32>
    %c0_3 = arith.constant 0 : index
    %c0_4 = arith.constant 0 : index
    %2 = vector.load %arg5[%c0_3, %c0_4] : memref<1x128xf32, #tpu.memory_space<vmem>>, vector<1x128xf32>
    %c0_5 = arith.constant 0 : index
    %c0_6 = arith.constant 0 : index
    %3 = vector.load %arg6[%c0_5, %c0_6] : memref<1x128xf32, #tpu.memory_space<vmem>>, vector<1x128xf32>
    %cst = arith.constant 9.765625E-4 : f32
    %4 = vector.broadcast %cst : f32 to vector<1x128xf32>
    %5 = arith.mulf %0, %4 : vector<1x128xf32>
    %cst_7 = arith.constant 9.765625E-4 : f32
    %6 = vector.broadcast %cst_7 : f32 to vector<1x128xf32>
    %7 = arith.mulf %1, %6 : vector<1x128xf32>
    %8 = arith.mulf %5, %5 : vector<1x128xf32>
    %9 = arith.subf %7, %8 : vector<1x128xf32>
    %cst_8 = arith.constant 0.000000e+00 : f32
    %10 = vector.broadcast %cst_8 : f32 to vector<1x128xf32>
    %11 = arith.maximumf %9, %10 : vector<1x128xf32>
    %cst_9 = arith.constant 9.99999974E-6 : f32
    %12 = vector.broadcast %cst_9 : f32 to vector<1x128xf32>
    %13 = arith.addf %11, %12 : vector<1x128xf32>
    %14 = math.rsqrt %13 : vector<1x128xf32>
    %15 = arith.mulf %2, %14 : vector<1x128xf32>
    %16 = arith.mulf %5, %15 : vector<1x128xf32>
    %17 = arith.subf %3, %16 : vector<1x128xf32>
    %c0_10 = arith.constant 0 : index
    %c0_11 = arith.constant 0 : index
    %18 = vector.load %arg7[%c0_10, %c0_11] : memref<1x128xf32, #tpu.memory_space<vmem>>, vector<1x128xf32>
    %c0_12 = arith.constant 0 : index
    %c0_13 = arith.constant 0 : index
    %19 = vector.load %arg8[%c0_12, %c0_13] : memref<1x128xf32, #tpu.memory_space<vmem>>, vector<1x128xf32>
    %c0_14 = arith.constant 0 : index
    %c0_15 = arith.constant 0 : index
    %20 = vector.load %arg9[%c0_14, %c0_15] : memref<1x128xf32, #tpu.memory_space<vmem>>, vector<1x128xf32>
    %c0_16 = arith.constant 0 : index
    %c0_17 = arith.constant 0 : index
    %21 = vector.load %arg10[%c0_16, %c0_17] : memref<1x128xf32, #tpu.memory_space<vmem>>, vector<1x128xf32>
    %cst_18 = arith.constant 9.765625E-4 : f32
    %22 = vector.broadcast %cst_18 : f32 to vector<1x128xf32>
    %23 = arith.mulf %18, %22 : vector<1x128xf32>
    %cst_19 = arith.constant 9.765625E-4 : f32
    %24 = vector.broadcast %cst_19 : f32 to vector<1x128xf32>
    %25 = arith.mulf %19, %24 : vector<1x128xf32>
    %26 = arith.mulf %23, %23 : vector<1x128xf32>
    %27 = arith.subf %25, %26 : vector<1x128xf32>
    %cst_20 = arith.constant 0.000000e+00 : f32
    %28 = vector.broadcast %cst_20 : f32 to vector<1x128xf32>
    %29 = arith.maximumf %27, %28 : vector<1x128xf32>
    %cst_21 = arith.constant 9.99999974E-6 : f32
    %30 = vector.broadcast %cst_21 : f32 to vector<1x128xf32>
    %31 = arith.addf %29, %30 : vector<1x128xf32>
    %32 = math.rsqrt %31 : vector<1x128xf32>
    %33 = arith.mulf %20, %32 : vector<1x128xf32>
    %34 = arith.mulf %23, %33 : vector<1x128xf32>
    %35 = arith.subf %21, %34 : vector<1x128xf32>
    %c0_22 = arith.constant 0 : index
    %c0_23 = arith.constant 0 : index
    %36 = vector.load %arg1[%c0_22, %c0_23] : memref<512x128xf32, #tpu.memory_space<vmem>>, vector<512x128xf32>
    %37 = vector.broadcast %15 : vector<1x128xf32> to vector<512x128xf32>
    %38 = arith.mulf %36, %37 : vector<512x128xf32>
    %39 = vector.broadcast %17 : vector<1x128xf32> to vector<512x128xf32>
    %40 = arith.addf %38, %39 : vector<512x128xf32>
    %c0_24 = arith.constant 0 : index
    %c0_25 = arith.constant 0 : index
    %41 = vector.load %arg2[%c0_24, %c0_25] : memref<512x128xf32, #tpu.memory_space<vmem>>, vector<512x128xf32>
    %42 = vector.broadcast %33 : vector<1x128xf32> to vector<512x128xf32>
    %43 = arith.mulf %41, %42 : vector<512x128xf32>
    %44 = vector.broadcast %35 : vector<1x128xf32> to vector<512x128xf32>
    %45 = arith.addf %43, %44 : vector<512x128xf32>
    %46 = arith.addf %40, %45 : vector<512x128xf32>
    %cst_26 = arith.constant 5.000000e-01 : f32
    %47 = vector.broadcast %cst_26 : f32 to vector<512x128xf32>
    %48 = arith.mulf %47, %46 : vector<512x128xf32>
    %cst_27 = arith.constant 4.471500e-02 : f32
    %49 = vector.broadcast %cst_27 : f32 to vector<512x128xf32>
    %50 = arith.mulf %49, %46 : vector<512x128xf32>
    %51 = arith.mulf %50, %46 : vector<512x128xf32>
    %52 = arith.mulf %51, %46 : vector<512x128xf32>
    %53 = arith.addf %46, %52 : vector<512x128xf32>
    %cst_28 = arith.constant 0.797884583 : f32
    %54 = vector.broadcast %cst_28 : f32 to vector<512x128xf32>
    %55 = arith.mulf %54, %53 : vector<512x128xf32>
    %56 = math.tanh %55 : vector<512x128xf32>
    %cst_29 = arith.constant 1.000000e+00 : f32
    %57 = vector.broadcast %cst_29 : f32 to vector<512x128xf32>
    %58 = arith.addf %57, %56 : vector<512x128xf32>
    %59 = arith.mulf %48, %58 : vector<512x128xf32>
    %c0_30 = arith.constant 0 : index
    %c0_31 = arith.constant 0 : index
    %60 = vector.load %arg11[%c0_30, %c0_31] : memref<512x128xf32, #tpu.memory_space<vmem>>, vector<512x128xf32>
    tpu.vector_store %arg11[%c0_30, %c0_31], %59 {strides = array<i32>} : memref<512x128xf32, #tpu.memory_space<vmem>>, vector<512x128xf32>,
    return
  }
  func.func @transform_0(%arg0: i32) -> (i32, i32) {
    %c0_i32 = arith.constant 0 : i32
    %c0_i32_0 = arith.constant 0 : i32
    return %arg0, %c0_i32 : i32, i32
  }
  func.func @transform_1(%arg0: i32) -> (i32, i32) {
    %c0_i32 = arith.constant 0 : i32
    %c0_i32_0 = arith.constant 0 : i32
    return %arg0, %c0_i32 : i32, i32
  }
  func.func @transform_2(%arg0: i32) -> (i32, i32) {
    %c0_i32 = arith.constant 0 : i32
    %c0_i32_0 = arith.constant 0 : i32
    %c0_i32_1 = arith.constant 0 : i32
    return %c0_i32, %c0_i32_0 : i32, i32
  }
  func.func @transform_3(%arg0: i32) -> (i32, i32) {
    %c0_i32 = arith.constant 0 : i32
    %c0_i32_0 = arith.constant 0 : i32
    %c0_i32_1 = arith.constant 0 : i32
    return %c0_i32, %c0_i32_0 : i32, i32
  }
  func.func @transform_4(%arg0: i32) -> (i32, i32) {
    %c0_i32 = arith.constant 0 : i32
    %c0_i32_0 = arith.constant 0 : i32
    %c0_i32_1 = arith.constant 0 : i32
    return %c0_i32, %c0_i32_0 : i32, i32
  }
  func.func @transform_5(%arg0: i32) -> (i32, i32) {
    %c0_i32 = arith.constant 0 : i32
    %c0_i32_0 = arith.constant 0 : i32
    %c0_i32_1 = arith.constant 0 : i32
    return %c0_i32, %c0_i32_0 : i32, i32
  }
  func.func @transform_6(%arg0: i32) -> (i32, i32) {
    %c0_i32 = arith.constant 0 : i32
    %c0_i32_0 = arith.constant 0 : i32
    %c0_i32_1 = arith.constant 0 : i32
    return %c0_i32, %c0_i32_0 : i32, i32
  }
  func.func @transform_7(%arg0: i32) -> (i32, i32) {
    %c0_i32 = arith.constant 0 : i32
    %c0_i32_0 = arith.constant 0 : i32
    %c0_i32_1 = arith.constant 0 : i32
    return %c0_i32, %c0_i32_0 : i32, i32
  }
  func.func @transform_8(%arg0: i32) -> (i32, i32) {
    %c0_i32 = arith.constant 0 : i32
    %c0_i32_0 = arith.constant 0 : i32
    %c0_i32_1 = arith.constant 0 : i32
    return %c0_i32, %c0_i32_0 : i32, i32
  }
  func.func @transform_9(%arg0: i32) -> (i32, i32) {
    %c0_i32 = arith.constant 0 : i32
    %c0_i32_0 = arith.constant 0 : i32
    %c0_i32_1 = arith.constant 0 : i32
    return %c0_i32, %c0_i32_0 : i32, i32
  }
  func.func @transform_10(%arg0: i32) -> (i32, i32) {
    %c0_i32 = arith.constant 0 : i32
    %c0_i32_0 = arith.constant 0 : i32
    return %arg0, %c0_i32 : i32, i32
  }
}

</mosaic_0001>

<bundles_post_ra>
// kernel: tpu_custom_call.1
= control target key start
LH: loop header
LB: loop body
LE: loop exit
PB: predicated region body
PF: predicated region fallthrough
CT: control target
= control target key end

     0   :  { %6 = vsyncpa [#allocation3], 0  ;;  %s157_s0 = inlined_call_operand.hbm [shape: f32[8,128], index: 0, kind: input, shape index: {}]   ;;  %s158_s1 = inlined_call_operand.hbm [shape: f32[8,128], index: 1, kind: output, shape index: {}]  }
   0x1   :  { %7 = vsyncpa [#allocation4], 0  ;;  %s13_s8 = sshll.u32 %s157_s0, 4  ;;  %s139_s9 = smov [#allocation2]   ;;  %s14_s8 = int_to_ptr.hbm [resolvable:$true] %s13_s8 }
   0x2   :  { %s15_s10 = sshll.u32 %s139_s9, 4  ;;  %s16_s10 = int_to_ptr.vmem [resolvable:$true] %s15_s10 }
   0x3   :  { %18 = dma.hbm_to_vmem [thread:$0]  %s14_s8, 128, %s16_s10, [#allocation3]  }
   0x4   :  { %135 = dma.done.wait [#allocation3], 128  }
   0x5   :  { %136 = vsyncadd [#allocation3], 4294967168  ;;  %v23_v0 = vld [vmem:[#allocation2] sm:$0xff]  ;;  %s140_s0 = smov [#allocation5]   ;;  %s72_s14 = sshll.u32 %s158_s1, 4  ;;  %s73_s14 = int_to_ptr.hbm [resolvable:$true] %s72_s14 }
   0x6   :  { %v24_v1 = vmul.f32 %v23_v0, %v23_v0  ;;  %s70_s11 = sshll.u32 %s140_s0, 4  ;;  %s71_s11 = int_to_ptr.vmem [resolvable:$true] %s70_s11 }
   0x8   :  { %v25_v2 = vmin.f32 %v24_v1, 16.0 }
   0xa   :  { %v26_v3 = vmul.f32 2.1237322e-06, %v25_v2  ;;  %v37_v4 = vmul.f32 3.8918573e-05, %v25_v2 }
   0xc   :  { %v27_v5 = vadd.f32 0.00028619796, %v26_v3  ;;  %v38_v6 = vadd.f32 0.001143296, %v37_v4 }
   0xe   :  { %v28_v7 = vmul.f32 %v27_v5, %v25_v2  ;;  %v39_v8 = vmul.f32 %v38_v6, %v25_v2 }
  0x10   :  { %v29_v9 = vadd.f32 0.0036580483, %v28_v7  ;;  %v40_v10 = vadd.f32 0.014752088, %v39_v8 }
  0x12   :  { %v30_v11 = vmul.f32 %v29_v9, %v25_v2  ;;  %v41_v12 = vmul.f32 %v40_v10, %v25_v2 }
  0x14   :  { %v42_v13 = vadd.f32 0.112945676, %v41_v12  ;;  %v31_v14 = vadd.f32 0.05243302, %v30_v11 }
  0x16   :  { %v43_v15 = vmul.f32 %v42_v13, %v25_v2  ;;  %v32_v17 = vmul.f32 %v31_v14, %v25_v2 }
  0x18   :  { %v44_v16 = vadd.f32 0.4994258, %v43_v15  ;;  %v33_v20 = vadd.f32 0.18741608, %v32_v17 }
  0x1a   :  { %v45_v18 = vmul.f32 %v44_v16, %v25_v2  ;;  %v34_v21 = vmul.f32 %v33_v20, %v25_v2 }
  0x1c   :  { %v46_v19 = vadd.f32 1.0, %v45_v18  ;;  %v35_v24 = vadd.f32 1.1283791, %v34_v21 }
  0x1e   :  { %85 = vrcp.f32 %v46_v19  ;;  %v58_v25 = vand.u32 2147483648, %v46_v19  ;;  %vm52_vm0 = vweird.f32 %v46_v19  ;;  %v56_v27 = vand.u32 2147483647, %v46_v19 }
  0x1f   :  { %v36_v30 = vmul.f32 %v35_v24, %v23_v0 }
  0x20   :  { %v59_v29 = vor.u32 1.1754944e-38, %v58_v25  ;;  %vm57_vm3 = vcmp.eq.f32.partialorder %v56_v27, 8.507059e+37 }
  0x24   :  { %v86_v22 = vpop.eup %85 }
  0x25   :  { %v48_v23 = vmul.f32 %v86_v22, %v46_v19  ;;  %vm53_vm1 = vweird.f32 %v86_v22 }
  0x26   :  { %vm54_vm2 = vmor %vm52_vm0, %vm53_vm1 }
  0x27   :  { %v49_v26 = vsub.f32 1.0, %v48_v23 }
  0x29   :  { %v50_v28 = vmul.f32 %v86_v22, %v49_v26 }
  0x2b   :  { %v51_v31 = vadd.f32 %v86_v22, %v50_v28 }
  0x2d   :  { %v55_v32 = vsel %vm54_vm2, %v86_v22, %v51_v31 }
  0x2e   :  { %v60_v33 = vsel %vm57_vm3, %v59_v29, %v55_v32 }
  0x2f   :  { %v61_v34 = vmul.f32 %v60_v33, %v36_v30 }
  0x31   :  { %v82_v35 = vclamps-f32 %v61_v34, 1.0 }
  0x33   :  { %64 = vst [vmem:[#allocation5] sm:$0xff] %v82_v35 }
  0x34   :  { %75 = dma.vmem_to_hbm [thread:$0]  %s71_s11, 128, %s73_s14, [#allocation4]  }
  0x35   :  { %137 = dma.done.wait [#allocation4], 128  }
  0x36   :  { %138 = vsyncadd [#allocation4], 4294967168 }
  0x37   :  { %80 = vsyncpa [#allocation3], 1 }
  0x38   :  { %81 = vsyncpa [#allocation4], 1 }

// kernel: res_block_101.6
= control target key start
LH: loop header
LB: loop body
LE: loop exit
PB: predicated region body
PF: predicated region fallthrough
CT: control target
= control target key end

     0   :  { %s1587_s18 = smov 0   ;;  %s2142_s0 = inlined_call_operand.vmem [shape: f32[1024,128], index: 0, kind: input, shape index: {}]   ;;  %s2143_s1 = inlined_call_operand.vmem [shape: f32[1,128], index: 1, kind: input, shape index: {}]   ;;  %s2144_s2 = inlined_call_operand.vmem [shape: f32[1,128], index: 2, kind: input, shape index: {}]   ;;  %s2145_s3 = inlined_call_operand.vmem [shape: f32[1,128], index: 3, kind: input, shape index: {}]   ;;  %s2146_s4 = inlined_call_operand.vmem [shape: f32[1,128], index: 4, kind: input, shape index: {}]   ;;  %s2147_s5 = inlined_call_operand.vmem [shape: bf16[1024,128], index: 5, kind: output, shape index: {}]  }
   0x1 LB: > { %s1209_s19 = sadd.s32 4294967295, %s1555_s18   ;;  %p1213_p0 = scmp.ge.s32.totalorder %s1555_s18, 1  ;;  %s1555_s18 = sphi %s1587_s18, %s15_s18  }
   0x2   : > { %p188_p1 = scmp.lt.s32.totalorder %s1555_s18, 3 }
   0x4   : > { %p189_p2 = pnand %p1213_p0, %p188_p1 }
   0x5   : > { %s1214_s24 = sshll.u32 (!%p189_p2), %s1209_s19, 6 }
   0x6   : > { %192 = sbr.rel (%p189_p2) target bundleno = 243 (0xf3), region = 40  ;;  %p217_p3 = scmp.lt.s32.totalorder (!%p189_p2), %s1214_s24, 127 }
   0xb   : > { %v228_v0 = vld [vmem:[%s2143_s1] sm:$0x1]  ;;  %s2149_s24 = smov (!%p217_p3, %s1214_s24), 127 }
   0xc   : > { %v229_v1 = vld [vmem:[%s2144_s2] sm:$0x1]  ;;  %v232_v2 = vmul.f32 0.0009765625, %v228_v0  ;;  %s1215_s25 = sshll.u32 %s2149_s24, 3  ;;  %s1217_s8 = sshll.u32 %s2149_s24, 2 }
   0xd   : > { %v233_v3 = vmul.f32 0.0009765625, %v229_v1  ;;  %v230_v13 = vld [vmem:[%s2145_s3] sm:$0x1]  ;;  %s1610_s30 = scalar_lea.vmem %s2142_s0, %s1215_s25  ;;  %s1705_s11 = scalar_lea.vmem %s2147_s5, %s1217_s8 }
   0xe   : > { %v234_v4 = vmul.f32 %v232_v2, %v232_v2  ;;  %v231_v16 = vld [vmem:[%s2146_s4] sm:$0x1]  ;;  %v252_v19 = vld [vmem:[%s1610_s30 + $0x8] sm:$0xff]  ;;  %v253_v20 = vld [vmem:[%s1610_s30 + $0x10] sm:$0xff] }
   0xf   : > { %v251_v18 = vld [vmem:[%s1610_s30] sm:$0xff]  ;;  %v254_v23 = vld [vmem:[%s1610_s30 + $0x18] sm:$0xff]  ;;  %v256_v25 = vld [vmem:[%s1610_s30 + $0x28] sm:$0xff] }
  0x10   : > { %v235_v5 = vsub.f32 %v233_v3, %v234_v4  ;;  %v255_v24 = vld [vmem:[%s1610_s30 + $0x20] sm:$0xff]  ;;  %v257_v26 = vld [vmem:[%s1610_s30 + $0x30] sm:$0xff]  ;;  %v258_v31 = vld [vmem:[%s1610_s30 + $0x38] sm:$0xff] }
  0x11   : > { %v259_v32 = vld [vmem:[%s1610_s30 + $0x40] sm:$0xff]  ;;  %v260_v33 = vld [vmem:[%s1610_s30 + $0x48] sm:$0xff]  ;;  %v261_v38 = vld [vmem:[%s1610_s30 + $0x50] sm:$0xff] }
  0x12   : > { %v236_v6 = vmax.f32 %v235_v5, 0.0  ;;  %v262_v39 = vld [vmem:[%s1610_s30 + $0x58] sm:$0xff]  ;;  %v263_v44 = vld [vmem:[%s1610_s30 + $0x60] sm:$0xff]  ;;  %v264_v45 = vld [vmem:[%s1610_s30 + $0x68] sm:$0xff] }
  0x14   : > { %v237_v7 = vadd.f32 1e-05, %v236_v6 }
  0x16   : > { %1419 = vrsqrt.f32 %v237_v7  ;;  %vm244_vm0 = vweird.f32 %v237_v7 }
  0x1c   : > { %v1420_v8 = vpop.eup %1419 }
  0x1d   : > { %v239_v9 = vmul.f32 %v1420_v8, %v237_v7  ;;  %vm245_vm1 = vweird.f32 %v1420_v8 }
  0x1e   : > { %vm246_vm2 = vmor %vm244_vm0, %vm245_vm1 }
  0x1f   : > { %v240_v10 = vmul.f32 %v1420_v8, %v239_v9 }
  0x21   : > { %v241_v11 = vmul.f32 0.5, %v240_v10 }
  0x23   : > { %v242_v12 = vsub.f32 1.5, %v241_v11 }
  0x25   : > { %v243_v14 = vmul.f32 %v1420_v8, %v242_v12 }
  0x27   : > { %v247_v15 = vsel %vm246_vm2, %v1420_v8, %v243_v14 }
  0x28   : > { %v248_v17 = vmul.f32 %v247_v15, %v230_v13 }
  0x2a   : > { %v249_v21 = vmul.f32 %v248_v17, %v232_v2  ;;  %v1618_v22 = vperm.slane %v248_v17, 0 }
  0x2c   : > { %v250_v27 = vsub.f32 %v231_v16, %v249_v21  ;;  %v318_v28 = vmul.f32 %v1618_v22, %v251_v18  ;;  %v319_v29 = vmul.f32 %v1618_v22, %v252_v19  ;;  %v320_v30 = vmul.f32 %v1618_v22, %v253_v20 }
  0x2d   : > { %v321_v34 = vmul.f32 %v1618_v22, %v254_v23  ;;  %v322_v35 = vmul.f32 %v1618_v22, %v255_v24  ;;  %v323_v36 = vmul.f32 %v1618_v22, %v256_v25  ;;  %v324_v40 = vmul.f32 %v1618_v22, %v257_v26 }
  0x2e   : > { %v1633_v37 = vperm.slane %v250_v27, 0  ;;  %v325_v41 = vmul.f32 %v1618_v22, %v258_v31  ;;  %v326_v42 = vmul.f32 %v1618_v22, %v259_v32  ;;  %v327_v43 = vmul.f32 %v1618_v22, %v260_v33 }
  0x2f   : > { %v328_v52 = vmul.f32 %v1618_v22, %v261_v38  ;;  %v1651_v53 = vmul.f32 %v1618_v22, %v262_v39  ;;  %v1654_v56 = vmul.f32 %v1618_v22, %v263_v44  ;;  %v1657_v57 = vmul.f32 %v1618_v22, %v264_v45 }
  0x30   : > { %v385_v46 = vadd.f32 %v1633_v37, %v318_v28  ;;  %v386_v47 = vadd.f32 %v1633_v37, %v319_v29  ;;  %v387_v48 = vadd.f32 %v1633_v37, %v320_v30  ;;  %v388_v49 = vadd.f32 %v1633_v37, %v321_v34 }
  0x31   : > { %v389_v50 = vadd.f32 %v1633_v37, %v322_v35  ;;  %v390_v51 = vadd.f32 %v1633_v37, %v323_v36  ;;  %v391_v60 = vadd.f32 %v1633_v37, %v324_v40  ;;  %v392_v61 = vadd.f32 %v1633_v37, %v325_v41 }
  0x32   : > { %v513_v54 = vmul.f32 0.044715, %v385_v46  ;;  %v514_v55 = vmul.f32 0.044715, %v386_v47  ;;  %v515_v58 = vmul.f32 0.044715, %v387_v48  ;;  %v1670_v33 = vadd.f32 %v1633_v37, %v326_v42 }
  0x33   : > { %v516_v59 = vmul.f32 0.044715, %v388_v49  ;;  %v1661_v62 = vmul.f32 0.5, %v385_v46  ;;  %v1663_v63 = vmul.f32 0.5, %v386_v47  ;;  %v517_v4 = vmul.f32 0.044715, %v389_v50 }
  0x34   : > { %v577_v0 = vmul.f32 %v513_v54, %v385_v46  ;;  %v578_v1 = vmul.f32 %v514_v55, %v386_v47  ;;  %v579_v2 = vmul.f32 %v515_v58, %v387_v48  ;;  %v518_v5 = vmul.f32 0.044715, %v390_v51 }
  0x35   : > { %v580_v3 = vmul.f32 %v516_v59, %v388_v49  ;;  %v1665_v8 = vmul.f32 0.5, %v387_v48  ;;  %v1667_v9 = vmul.f32 0.5, %v388_v49  ;;  %v581_v12 = vmul.f32 %v517_v4, %v389_v50 }
  0x36   : > { %v641_v6 = vmul.f32 %v577_v0, %v385_v46  ;;  %v642_v7 = vmul.f32 %v578_v1, %v386_v47  ;;  %v643_v10 = vmul.f32 %v579_v2, %v387_v48  ;;  %v582_v13 = vmul.f32 %v518_v5, %v390_v51 }
  0x37   : > { %v644_v11 = vmul.f32 %v580_v3, %v388_v49  ;;  %v519_v16 = vmul.f32 0.044715, %v391_v60  ;;  %v520_v17 = vmul.f32 0.044715, %v392_v61  ;;  %v645_v20 = vmul.f32 %v581_v12, %v389_v50 }
  0x38   : > { %v705_v14 = vadd.f32 %v641_v6, %v385_v46  ;;  %v706_v15 = vadd.f32 %v642_v7, %v386_v47  ;;  %v707_v18 = vadd.f32 %v643_v10, %v387_v48  ;;  %v646_v21 = vmul.f32 %v582_v13, %v390_v51 }
  0x39   : > { %v708_v19 = vadd.f32 %v644_v11, %v388_v49  ;;  %v583_v25 = vmul.f32 %v519_v16, %v391_v60  ;;  %v584_v26 = vmul.f32 %v520_v17, %v392_v61  ;;  %v709_v29 = vadd.f32 %v645_v20, %v389_v50 }
  0x3a   : > { %v769_v23 = vmul.f32 0.7978846, %v705_v14  ;;  %v770_v24 = vmul.f32 0.7978846, %v706_v15  ;;  %v771_v27 = vmul.f32 0.7978846, %v707_v18  ;;  %v710_v30 = vadd.f32 %v646_v21, %v390_v51 }
  0x3b   : > { %v772_v28 = vmul.f32 0.7978846, %v708_v19  ;;  %v647_v31 = vmul.f32 %v583_v25, %v391_v60  ;;  %v648_v32 = vmul.f32 %v584_v26, %v392_v61  ;;  %v773_v34 = vmul.f32 0.7978846, %v709_v29 }
  0x3c   : > { %1421 = vtanh.f32 %v769_v23  ;;  %v774_v35 = vmul.f32 0.7978846, %v710_v30  ;;  %v1673_v36 = vadd.f32 %v1633_v37, %v327_v43  ;;  %v453_v38 = vmul.f32 0.5, %v389_v50 }
  0x3d   : > { %1423 = vtanh.f32 %v770_v24  ;;  %v711_v39 = vadd.f32 %v647_v31, %v391_v60  ;;  %v712_v40 = vadd.f32 %v648_v32, %v392_v61  ;;  %v454_v41 = vmul.f32 0.5, %v390_v51  ;;  %v265_v32 = vld [vmem:[%s1610_s30 + $0x70] sm:$0xff] }
  0x3e   : > { %1425 = vtanh.f32 %v771_v27  ;;  %v521_v44 = vmul.f32 0.044715, %v1670_v33  ;;  %v522_v45 = vmul.f32 0.044715, %v1673_v36  ;;  %v1678_v47 = vadd.f32 %v1633_v37, %v328_v52 }
  0x3f   : > { %1427 = vtanh.f32 %v772_v28  ;;  %v775_v46 = vmul.f32 0.7978846, %v711_v39  ;;  %v776_v42 = vmul.f32 0.7978846, %v712_v40  ;;  %v1684_v49 = vadd.f32 %v1633_v37, %v1651_v53 }
  0x40   : > { %1429 = vtanh.f32 %v773_v34  ;;  %v585_v43 = vmul.f32 %v521_v44, %v1670_v33  ;;  %v586_v48 = vmul.f32 %v522_v45, %v1673_v36  ;;  %v455_v51 = vmul.f32 0.5, %v391_v60  ;;  %v266_v34 = vld [vmem:[%s1610_s30 + $0x78] sm:$0xff]  ;;  %v268_v44 = vld [vmem:[%s1610_s30 + $0x88] sm:$0xff] }
  0x41   : > { %1431 = vtanh.f32 %v774_v35  ;;  %v456_v54 = vmul.f32 0.5, %v392_v61  ;;  %v523_v55 = vmul.f32 0.044715, %v1678_v47  ;;  %v524_v3 = vmul.f32 0.044715, %v1684_v49 }
  0x42   : > { %v1422_v50 = vpop.eup %1421  ;;  %1433 = vtanh.f32 %v775_v46  ;;  %v649_v52 = vmul.f32 %v585_v43, %v1670_v33  ;;  %v650_v0 = vmul.f32 %v586_v48, %v1673_v36  ;;  %v1694_v60 = vadd.f32 %v1633_v37, %v1654_v56 }
  0x43   : > { %v1424_v58 = vpop.eup %1423  ;;  %v897_v59 = vadd.f32 1.0, %v1422_v50  ;;  %1435 = vtanh.f32 %v776_v42  ;;  %v587_v53 = vmul.f32 %v523_v55, %v1678_v47  ;;  %v588_v13 = vmul.f32 %v524_v3, %v1684_v49 }
  0x44   : > { %v1426_v1 = vpop.eup %1425  ;;  %v898_v2 = vadd.f32 1.0, %v1424_v58  ;;  %v713_v6 = vadd.f32 %v649_v52, %v1670_v33  ;;  %v714_v7 = vadd.f32 %v650_v0, %v1673_v36  ;;  %v398_v31 = vadd.f32 %v1633_v37, %v1657_v57 }
  0x45   : > { %v1428_v61 = vpop.eup %1427  ;;  %v961_v4 = vmul.f32 %v897_v59, %v1661_v62  ;;  %v899_v5 = vadd.f32 1.0, %v1426_v1  ;;  %v651_v14 = vmul.f32 %v587_v53, %v1678_v47  ;;  %v652_v21 = vmul.f32 %v588_v13, %v1684_v49 }
  0x46   : > { %v1430_v10 = vpop.eup %1429  ;;  %v962_v11 = vmul.f32 %v898_v2, %v1663_v63  ;;  %v900_v12 = vadd.f32 1.0, %v1428_v61  ;;  %v777_v16 = vmul.f32 0.7978846, %v713_v6  ;;  %v778_v17 = vmul.f32 0.7978846, %v714_v7 }
  0x47   : > { %v1432_v15 = vpop.eup %1431  ;;  %v963_v56 = vmul.f32 %v899_v5, %v1665_v8  ;;  %v901_v62 = vadd.f32 1.0, %v1430_v10  ;;  %v715_v26 = vadd.f32 %v651_v14, %v1678_v47  ;;  %v716_v29 = vadd.f32 %v652_v21, %v1684_v49 }
  0x48   : > { %v1434_v18 = vpop.eup %1433  ;;  %v1223_v19 = vpack.c.bf16 %v962_v11, %v961_v4  ;;  %v964_v63 = vmul.f32 %v900_v12, %v1667_v9  ;;  %v902_v20 = vadd.f32 1.0, %v1432_v15  ;;  %1437 = vtanh.f32 %v777_v16 }
  0x49   : > { %v1436_v23 = vpop.eup %1435  ;;  %v965_v24 = vmul.f32 %v901_v62, %v453_v38  ;;  %v903_v25 = vadd.f32 1.0, %v1434_v18  ;;  %1439 = vtanh.f32 %v778_v17  ;;  %v779_v30 = vmul.f32 0.7978846, %v715_v26 }
  0x4a   : > { %1224 = vst [vmem:[%s1705_s11] sm:$0xff] %v1223_v19   ;;  %v1228_v8 = vpack.c.bf16 %v964_v63, %v963_v56  ;;  %v966_v27 = vmul.f32 %v902_v20, %v454_v41  ;;  %v904_v28 = vadd.f32 1.0, %v1436_v23  ;;  %v457_v39 = vmul.f32 0.5, %v1670_v33  ;;  %v267_v41 = vld [vmem:[%s1610_s30 + $0x80] sm:$0xff]  ;;  %v269_v19 = vld [vmem:[%s1610_s30 + $0x90] sm:$0xff]  ;;  %v270_v63 = vld [vmem:[%s1610_s30 + $0x98] sm:$0xff] }
  0x4b   : > { %v967_v9 = vmul.f32 %v903_v25, %v455_v51  ;;  %v525_v40 = vmul.f32 0.044715, %v1694_v60  ;;  %v458_v45 = vmul.f32 0.5, %v1673_v36  ;;  %v780_v46 = vmul.f32 0.7978846, %v716_v29 }
  0x4c   : > { %1380 = vst [vmem:[%s1705_s11 + $0x8] sm:$0xff] %v1228_v8   ;;  %v1233_v35 = vpack.c.bf16 %v966_v27, %v965_v24  ;;  %v968_v38 = vmul.f32 %v904_v28, %v456_v54  ;;  %1441 = vtanh.f32 %v779_v30  ;;  %v526_v42 = vmul.f32 0.044715, %v398_v31 }
  0x4d   : > { %v589_v57 = vmul.f32 %v525_v40, %v1694_v60  ;;  %v332_v48 = vmul.f32 %v1618_v22, %v265_v32  ;;  %v333_v50 = vmul.f32 %v1618_v22, %v266_v34  ;;  %1443 = vtanh.f32 %v780_v46  ;;  %v272_v34 = vld [vmem:[%s1610_s30 + $0xa8] sm:$0xff] }
  0x4e   : > { %1381 = vst [vmem:[%s1705_s11 + $0x10] sm:$0xff] %v1233_v35   ;;  %v1238_v43 = vpack.c.bf16 %v968_v38, %v967_v9  ;;  %v1438_v51 = vpop.eup %1437  ;;  %v590_v33 = vmul.f32 %v526_v42, %v398_v31  ;;  %v334_v54 = vmul.f32 %v1618_v22, %v267_v41  ;;  %v335_v55 = vmul.f32 %v1618_v22, %v268_v44  ;;  %v271_v9 = vld [vmem:[%s1610_s30 + $0xa0] sm:$0xff] }
  0x4f   : > { %v1440_v58 = vpop.eup %1439  ;;  %v905_v36 = vadd.f32 1.0, %v1438_v51  ;;  %v653_v59 = vmul.f32 %v589_v57, %v1694_v60  ;;  %v399_v52 = vadd.f32 %v1633_v37, %v332_v48  ;;  %v400_v0 = vadd.f32 %v1633_v37, %v333_v50 }
  0x50   : > { %1382 = vst [vmem:[%s1705_s11 + $0x18] sm:$0xff] %v1238_v43   ;;  %v906_v1 = vadd.f32 1.0, %v1440_v58  ;;  %v459_v2 = vmul.f32 0.5, %v1678_v47  ;;  %v460_v3 = vmul.f32 0.5, %v1684_v49  ;;  %v654_v53 = vmul.f32 %v590_v33, %v398_v31 }
  0x51   : > { %v969_v61 = vmul.f32 %v905_v36, %v457_v39  ;;  %v717_v4 = vadd.f32 %v653_v59, %v1694_v60  ;;  %v1737_v5 = vadd.f32 %v1633_v37, %v334_v54  ;;  %v1740_v6 = vadd.f32 %v1633_v37, %v335_v55 }
  0x52   : > { %v1442_v7 = vpop.eup %1441  ;;  %v970_v10 = vmul.f32 %v906_v1, %v458_v45  ;;  %v718_v11 = vadd.f32 %v654_v53, %v398_v31  ;;  %v527_v12 = vmul.f32 0.044715, %v399_v52  ;;  %v528_v13 = vmul.f32 0.044715, %v400_v0 }
  0x53   : > { %v907_v47 = vadd.f32 1.0, %v1442_v7  ;;  %v461_v49 = vmul.f32 0.5, %v1694_v60  ;;  %v462_v14 = vmul.f32 0.5, %v398_v31  ;;  %v781_v15 = vmul.f32 0.7978846, %v717_v4  ;;  %v1444_v56 = vpop.eup %1443  ;;  %v273_v4 = vld [vmem:[%s1610_s30 + $0xb0] sm:$0xff] }
  0x54   : > { %v1243_v62 = vpack.c.bf16 %v970_v10, %v969_v61  ;;  %v782_v16 = vmul.f32 0.7978846, %v718_v11  ;;  %v591_v17 = vmul.f32 %v527_v12, %v399_v52  ;;  %v592_v18 = vmul.f32 %v528_v13, %v400_v0  ;;  %v274_v7 = vld [vmem:[%s1610_s30 + $0xb8] sm:$0xff]  ;;  %v275_v13 = vld [vmem:[%s1610_s30 + $0xc0] sm:$0xff] }
  0x55   : > { %v908_v20 = vadd.f32 1.0, %v1444_v56  ;;  %v971_v21 = vmul.f32 %v907_v47, %v459_v2  ;;  %1445 = vtanh.f32 %v781_v15  ;;  %v529_v23 = vmul.f32 0.044715, %v1737_v5 }
  0x56   : > { %1383 = vst [vmem:[%s1705_s11 + $0x20] sm:$0xff] %v1243_v62   ;;  %1447 = vtanh.f32 %v782_v16  ;;  %v655_v24 = vmul.f32 %v591_v17, %v399_v52  ;;  %v656_v60 = vmul.f32 %v592_v18, %v400_v0  ;;  %v530_v25 = vmul.f32 0.044715, %v1740_v6 }
  0x57   : > { %v972_v26 = vmul.f32 %v908_v20, %v460_v3  ;;  %v593_v8 = vmul.f32 %v529_v23, %v1737_v5  ;;  %v336_v27 = vmul.f32 %v1618_v22, %v269_v19  ;;  %v337_v28 = vmul.f32 %v1618_v22, %v270_v63 }
  0x58   : > { %v1752_v29 = vmul.f32 0.5, %v399_v52  ;;  %v719_v30 = vadd.f32 %v655_v24, %v399_v52  ;;  %v720_v31 = vadd.f32 %v656_v60, %v400_v0  ;;  %v594_v32 = vmul.f32 %v530_v25, %v1740_v6 }
  0x59   : > { %v1248_v35 = vpack.c.bf16 %v972_v26, %v971_v21  ;;  %v657_v38 = vmul.f32 %v593_v8, %v1737_v5  ;;  %v1758_v39 = vadd.f32 %v1633_v37, %v336_v27  ;;  %v1761_v40 = vadd.f32 %v1633_v37, %v337_v28 }
  0x5a   : > { %v783_v41 = vmul.f32 0.7978846, %v719_v30  ;;  %v784_v44 = vmul.f32 0.7978846, %v720_v31  ;;  %v658_v45 = vmul.f32 %v594_v32, %v1740_v6  ;;  %v338_v46 = vmul.f32 %v1618_v22, %v271_v9  ;;  %v276_v32 = vld [vmem:[%s1610_s30 + $0xc8] sm:$0xff] }
  0x5b   : > { %v1446_v42 = vpop.eup %1445  ;;  %1384 = vst [vmem:[%s1705_s11 + $0x28] sm:$0xff] %v1248_v35   ;;  %v464_v43 = vmul.f32 0.5, %v400_v0  ;;  %v721_v57 = vadd.f32 %v657_v38, %v1737_v5  ;;  %v531_v48 = vmul.f32 0.044715, %v1758_v39  ;;  %v339_v50 = vmul.f32 %v1618_v22, %v272_v34 }
  0x5c   : > { %v1448_v51 = vpop.eup %1447  ;;  %v909_v33 = vadd.f32 1.0, %v1446_v42  ;;  %1449 = vtanh.f32 %v783_v41  ;;  %v722_v54 = vadd.f32 %v658_v45, %v1740_v6  ;;  %v532_v55 = vmul.f32 0.044715, %v1761_v40  ;;  %v277_v41 = vld [vmem:[%s1610_s30 + $0xd0] sm:$0xff] }
  0x5d   : > { %v910_v58 = vadd.f32 1.0, %v1448_v51  ;;  %1451 = vtanh.f32 %v784_v44  ;;  %v785_v36 = vmul.f32 0.7978846, %v721_v57  ;;  %v595_v59 = vmul.f32 %v531_v48, %v1758_v39 }
  0x5e   : > { %v973_v52 = vmul.f32 %v909_v33, %v461_v49  ;;  %v786_v0 = vmul.f32 0.7978846, %v722_v54  ;;  %v596_v1 = vmul.f32 %v532_v55, %v1761_v40  ;;  %v1774_v2 = vadd.f32 %v1633_v37, %v338_v46 }
  0x5f   : > { %v974_v3 = vmul.f32 %v910_v58, %v462_v14  ;;  %1453 = vtanh.f32 %v785_v36  ;;  %v659_v53 = vmul.f32 %v595_v59, %v1758_v39  ;;  %v1778_v61 = vadd.f32 %v1633_v37, %v339_v50  ;;  %v278_v36 = vld [vmem:[%s1610_s30 + $0xd8] sm:$0xff] }
  0x60   : > { %v465_v10 = vmul.f32 0.5, %v1737_v5  ;;  %1455 = vtanh.f32 %v786_v0  ;;  %v660_v11 = vmul.f32 %v596_v1, %v1761_v40  ;;  %v533_v12 = vmul.f32 0.044715, %v1774_v2 }
  0x61   : > { %v1253_v47 = vpack.c.bf16 %v974_v3, %v973_v52  ;;  %v466_v49 = vmul.f32 0.5, %v1740_v6  ;;  %v723_v14 = vadd.f32 %v659_v53, %v1758_v39  ;;  %v534_v15 = vmul.f32 0.044715, %v1778_v61 }
  0x62   : > { %v1450_v56 = vpop.eup %1449  ;;  %v724_v62 = vadd.f32 %v660_v11, %v1761_v40  ;;  %v597_v16 = vmul.f32 %v533_v12, %v1774_v2  ;;  %v340_v5 = vmul.f32 %v1618_v22, %v273_v4  ;;  %v341_v17 = vmul.f32 %v1618_v22, %v274_v7  ;;  %v279_v11 = vld [vmem:[%s1610_s30 + $0xe0] sm:$0xff] }
  0x63   : > { %v1452_v18 = vpop.eup %1451  ;;  %1385 = vst [vmem:[%s1705_s11 + $0x30] sm:$0xff] %v1253_v47   ;;  %v911_v19 = vadd.f32 1.0, %v1450_v56  ;;  %v787_v63 = vmul.f32 0.7978846, %v723_v14  ;;  %v598_v20 = vmul.f32 %v534_v15, %v1778_v61  ;;  %v342_v6 = vmul.f32 %v1618_v22, %v275_v13 }
  0x64   : > { %v912_v21 = vadd.f32 1.0, %v1452_v18  ;;  %v788_v23 = vmul.f32 0.7978846, %v724_v62  ;;  %v661_v24 = vmul.f32 %v597_v16, %v1774_v2  ;;  %v1798_v60 = vadd.f32 %v1633_v37, %v340_v5 }
  0x65   : > { %v1454_v25 = vpop.eup %1453  ;;  %v975_v26 = vmul.f32 %v911_v19, %v1752_v29  ;;  %1457 = vtanh.f32 %v787_v63  ;;  %v662_v8 = vmul.f32 %v598_v20, %v1778_v61  ;;  %v1803_v27 = vadd.f32 %v1633_v37, %v341_v17 }
  0x66   : > { %v1456_v28 = vpop.eup %1455  ;;  %v976_v9 = vmul.f32 %v912_v21, %v464_v43  ;;  %v913_v30 = vadd.f32 1.0, %v1454_v25  ;;  %1459 = vtanh.f32 %v788_v23  ;;  %v725_v31 = vadd.f32 %v661_v24, %v1774_v2  ;;  %v280_v25 = vld [vmem:[%s1610_s30 + $0xe8] sm:$0xff] }
  0x67   : > { %v914_v34 = vadd.f32 1.0, %v1456_v28  ;;  %v467_v35 = vmul.f32 0.5, %v1758_v39  ;;  %v468_v38 = vmul.f32 0.5, %v1761_v40  ;;  %v726_v29 = vadd.f32 %v662_v8, %v1778_v61 }
  0x68   : > { %v1258_v44 = vpack.c.bf16 %v976_v9, %v975_v26  ;;  %v977_v45 = vmul.f32 %v913_v30, %v465_v10  ;;  %v789_v46 = vmul.f32 0.7978846, %v725_v31  ;;  %v535_v42 = vmul.f32 0.044715, %v1798_v60  ;;  %v281_v26 = vld [vmem:[%s1610_s30 + $0xf0] sm:$0xff] }
  0x69   : > { %v978_v43 = vmul.f32 %v914_v34, %v466_v49  ;;  %v790_v57 = vmul.f32 0.7978846, %v726_v29  ;;  %v536_v48 = vmul.f32 0.044715, %v1803_v27  ;;  %v343_v50 = vmul.f32 %v1618_v22, %v276_v32  ;;  %v282_v29 = vld [vmem:[%s1610_s30 + $0xf8] sm:$0xff] }
  0x6a   : > { %1386 = vst [vmem:[%s1705_s11 + $0x38] sm:$0xff] %v1258_v44   ;;  %1461 = vtanh.f32 %v789_v46  ;;  %v599_v39 = vmul.f32 %v535_v42, %v1798_v60  ;;  %v409_v40 = vadd.f32 %v1633_v37, %v342_v6  ;;  %v344_v51 = vmul.f32 %v1618_v22, %v277_v41 }
  0x6b   : > { %v1458_v33 = vpop.eup %1457  ;;  %v1263_v54 = vpack.c.bf16 %v978_v43, %v977_v45  ;;  %1463 = vtanh.f32 %v790_v57  ;;  %v600_v55 = vmul.f32 %v536_v48, %v1803_v27  ;;  %v410_v58 = vadd.f32 %v1633_v37, %v343_v50 }
  0x6c   : > { %v1460_v59 = vpop.eup %1459  ;;  %v915_v52 = vadd.f32 1.0, %v1458_v33  ;;  %v469_v0 = vmul.f32 0.5, %v1774_v2  ;;  %v663_v1 = vmul.f32 %v599_v39, %v1798_v60  ;;  %v537_v3 = vmul.f32 0.044715, %v409_v40 }
  0x6d   : > { %1387 = vst [vmem:[%s1705_s11 + $0x40] sm:$0xff] %v1263_v54   ;;  %v916_v53 = vadd.f32 1.0, %v1460_v59  ;;  %v470_v4 = vmul.f32 0.5, %v1778_v61  ;;  %v664_v7 = vmul.f32 %v600_v55, %v1803_v27  ;;  %v538_v10 = vmul.f32 0.044715, %v410_v58 }
  0x6e   : > { %v979_v12 = vmul.f32 %v915_v52, %v467_v35  ;;  %v727_v13 = vadd.f32 %v663_v1, %v1798_v60  ;;  %v601_v47 = vmul.f32 %v537_v3, %v409_v40  ;;  %v345_v49 = vmul.f32 %v1618_v22, %v278_v36 }
  0x6f   : > { %v980_v14 = vmul.f32 %v916_v53, %v468_v38  ;;  %v728_v2 = vadd.f32 %v664_v7, %v1803_v27  ;;  %v602_v15 = vmul.f32 %v538_v10, %v410_v58  ;;  %v411_v56 = vadd.f32 %v1633_v37, %v344_v51 }
  0x70   : > { %v1462_v62 = vpop.eup %1461  ;;  %v791_v61 = vmul.f32 0.7978846, %v727_v13  ;;  %v665_v16 = vmul.f32 %v601_v47, %v409_v40  ;;  %v412_v5 = vadd.f32 %v1633_v37, %v345_v49  ;;  %v346_v17 = vmul.f32 %v1618_v22, %v279_v11 }
  0x71   : > { %v1464_v18 = vpop.eup %1463  ;;  %v1268_v19 = vpack.c.bf16 %v980_v14, %v979_v12  ;;  %v917_v63 = vadd.f32 1.0, %v1462_v62  ;;  %v792_v20 = vmul.f32 0.7978846, %v728_v2  ;;  %v666_v6 = vmul.f32 %v602_v15, %v410_v58  ;;  %v283_v62 = vld [vmem:[%s1610_s30 + $0x100] sm:$0xff] }
  0x72   : > { %v918_v21 = vadd.f32 1.0, %v1464_v18  ;;  %v471_v23 = vmul.f32 0.5, %v1798_v60  ;;  %1465 = vtanh.f32 %v791_v61  ;;  %v729_v24 = vadd.f32 %v665_v16, %v409_v40  ;;  %v285_v18 = vld [vmem:[%s1610_s30 + $0x110] sm:$0xff] }
  0x73   : > { %1388 = vst [vmem:[%s1705_s11 + $0x48] sm:$0xff] %v1268_v19   ;;  %v981_v8 = vmul.f32 %v917_v63, %v469_v0  ;;  %v472_v28 = vmul.f32 0.5, %v1803_v27  ;;  %1467 = vtanh.f32 %v792_v20  ;;  %v730_v9 = vadd.f32 %v666_v6, %v410_v58 }
  0x74   : > { %v982_v30 = vmul.f32 %v918_v21, %v470_v4  ;;  %v793_v31 = vmul.f32 0.7978846, %v729_v24  ;;  %v539_v32 = vmul.f32 0.044715, %v411_v56  ;;  %v540_v34 = vmul.f32 0.044715, %v412_v5 }
  0x75   : > { %v794_v35 = vmul.f32 0.7978846, %v730_v9  ;;  %v347_v38 = vmul.f32 %v1618_v22, %v280_v25  ;;  %v1840_v60 = vadd.f32 %v1633_v37, %v346_v17  ;;  %v348_v41 = vmul.f32 %v1618_v22, %v281_v26  ;;  %v284_v17 = vld [vmem:[%s1610_s30 + $0x108] sm:$0xff]  ;;  %v286_v24 = vld [vmem:[%s1610_s30 + $0x118] sm:$0xff] }
  0x76   : > { %v1273_v44 = vpack.c.bf16 %v982_v30, %v981_v8  ;;  %1469 = vtanh.f32 %v793_v31  ;;  %v603_v45 = vmul.f32 %v539_v32, %v411_v56  ;;  %v604_v27 = vmul.f32 %v540_v34, %v412_v5 }
  0x77   : > { %v473_v46 = vmul.f32 0.5, %v409_v40  ;;  %1471 = vtanh.f32 %v794_v35  ;;  %v414_v42 = vadd.f32 %v1633_v37, %v347_v38  ;;  %v541_v43 = vmul.f32 0.044715, %v1840_v60 }
  0x78   : > { %v1466_v57 = vpop.eup %1465  ;;  %1389 = vst [vmem:[%s1705_s11 + $0x50] sm:$0xff] %v1273_v44   ;;  %v474_v48 = vmul.f32 0.5, %v410_v58  ;;  %v667_v50 = vmul.f32 %v603_v45, %v411_v56  ;;  %v668_v39 = vmul.f32 %v604_v27, %v412_v5  ;;  %v349_v51 = vmul.f32 %v1618_v22, %v282_v29 }
  0x79   : > { %v1468_v33 = vpop.eup %1467  ;;  %v919_v54 = vadd.f32 1.0, %v1466_v57  ;;  %v542_v55 = vmul.f32 0.044715, %v414_v42  ;;  %v605_v36 = vmul.f32 %v541_v43, %v1840_v60  ;;  %v1850_v59 = vadd.f32 %v1633_v37, %v348_v41 }
  0x7a   : > { %v920_v40 = vadd.f32 1.0, %v1468_v33  ;;  %v731_v52 = vadd.f32 %v667_v50, %v411_v56  ;;  %v732_v0 = vadd.f32 %v668_v39, %v412_v5  ;;  %v416_v1 = vadd.f32 %v1633_v37, %v349_v51 }
  0x7b   : > { %v983_v3 = vmul.f32 %v919_v54, %v471_v23  ;;  %v475_v58 = vmul.f32 0.5, %v411_v56  ;;  %v606_v53 = vmul.f32 %v542_v55, %v414_v42  ;;  %v669_v4 = vmul.f32 %v605_v36, %v1840_v60 }
  0x7c   : > { %v1470_v7 = vpop.eup %1469  ;;  %v984_v10 = vmul.f32 %v920_v40, %v472_v28  ;;  %v476_v11 = vmul.f32 0.5, %v412_v5  ;;  %v795_v12 = vmul.f32 0.7978846, %v731_v52  ;;  %v796_v13 = vmul.f32 0.7978846, %v732_v0 }
  0x7d   : > { %v1472_v47 = vpop.eup %1471  ;;  %v921_v49 = vadd.f32 1.0, %v1470_v7  ;;  %v670_v14 = vmul.f32 %v606_v53, %v414_v42  ;;  %v733_v2 = vadd.f32 %v669_v4, %v1840_v60  ;;  %v543_v15 = vmul.f32 0.044715, %v1850_v59 }
  0x7e   : > { %v1278_v56 = vpack.c.bf16 %v984_v10, %v983_v3  ;;  %v922_v61 = vadd.f32 1.0, %v1472_v47  ;;  %1473 = vtanh.f32 %v795_v12  ;;  %v544_v16 = vmul.f32 0.044715, %v416_v1  ;;  %v287_v3 = vld [vmem:[%s1610_s30 + $0x120] sm:$0xff] }
  0x7f   : > { %v985_v19 = vmul.f32 %v921_v49, %v473_v46  ;;  %1475 = vtanh.f32 %v796_v13  ;;  %v734_v5 = vadd.f32 %v670_v14, %v414_v42  ;;  %v797_v63 = vmul.f32 0.7978846, %v733_v2 }
  0x80   : > { %1390 = vst [vmem:[%s1705_s11 + $0x58] sm:$0xff] %v1278_v56   ;;  %v986_v20 = vmul.f32 %v922_v61, %v474_v48  ;;  %v607_v6 = vmul.f32 %v543_v15, %v1850_v59  ;;  %v608_v21 = vmul.f32 %v544_v16, %v416_v1  ;;  %v350_v23 = vmul.f32 %v1618_v22, %v283_v62  ;;  %v290_v15 = vld [vmem:[%s1610_s30 + $0x138] sm:$0xff] }
  0x81   : > { %v798_v25 = vmul.f32 0.7978846, %v734_v5  ;;  %1477 = vtanh.f32 %v797_v63  ;;  %v351_v26 = vmul.f32 %v1618_v22, %v284_v17  ;;  %v352_v8 = vmul.f32 %v1618_v22, %v285_v18 }
  0x82   : > { %v1283_v28 = vpack.c.bf16 %v986_v20, %v985_v19  ;;  %v671_v9 = vmul.f32 %v607_v6, %v1850_v59  ;;  %v672_v30 = vmul.f32 %v608_v21, %v416_v1  ;;  %v1867_v31 = vadd.f32 %v1633_v37, %v350_v23 }
  0x83   : > { %v477_v32 = vmul.f32 0.5, %v1840_v60  ;;  %1479 = vtanh.f32 %v798_v25  ;;  %v1871_v34 = vadd.f32 %v1633_v37, %v351_v26  ;;  %v353_v35 = vmul.f32 %v1618_v22, %v286_v24 }
  0x84   : > { %v1474_v38 = vpop.eup %1473  ;;  %1391 = vst [vmem:[%s1705_s11 + $0x60] sm:$0xff] %v1283_v28   ;;  %v478_v29 = vmul.f32 0.5, %v414_v42  ;;  %v735_v41 = vadd.f32 %v671_v9, %v1850_v59  ;;  %v736_v44 = vadd.f32 %v672_v30, %v416_v1  ;;  %v545_v45 = vmul.f32 0.044715, %v1867_v31  ;;  %v292_v28 = vld [vmem:[%s1610_s30 + $0x148] sm:$0xff] }
  0x85   : > { %v1476_v27 = vpop.eup %1475  ;;  %v923_v46 = vadd.f32 1.0, %v1474_v38  ;;  %v546_v43 = vmul.f32 0.044715, %v1871_v34  ;;  %v1879_v60 = vadd.f32 %v1633_v37, %v352_v8  ;;  %v1882_v57 = vadd.f32 %v1633_v37, %v353_v35  ;;  %v291_v8 = vld [vmem:[%s1610_s30 + $0x140] sm:$0xff] }
  0x86   : > { %v924_v48 = vadd.f32 1.0, %v1476_v27  ;;  %v799_v50 = vmul.f32 0.7978846, %v735_v41  ;;  %v800_v39 = vmul.f32 0.7978846, %v736_v44  ;;  %v609_v42 = vmul.f32 %v545_v45, %v1867_v31 }
  0x87   : > { %v1478_v51 = vpop.eup %1477  ;;  %v987_v33 = vmul.f32 %v923_v46, %v475_v58  ;;  %v479_v54 = vmul.f32 0.5, %v1850_v59  ;;  %v480_v55 = vmul.f32 0.5, %v416_v1  ;;  %v610_v36 = vmul.f32 %v546_v43, %v1871_v34  ;;  %v288_v59 = vld [vmem:[%s1610_s30 + $0x128] sm:$0xff]  ;;  %v289_v1 = vld [vmem:[%s1610_s30 + $0x130] sm:$0xff] }
  0x88   : > { %v988_v40 = vmul.f32 %v924_v48, %v476_v11  ;;  %v925_v52 = vadd.f32 1.0, %v1478_v51  ;;  %1481 = vtanh.f32 %v799_v50  ;;  %v673_v0 = vmul.f32 %v609_v42, %v1867_v31 }
  0x89   : > { %v1480_v53 = vpop.eup %1479  ;;  %1483 = vtanh.f32 %v800_v39  ;;  %v674_v4 = vmul.f32 %v610_v36, %v1871_v34  ;;  %v547_v7 = vmul.f32 0.044715, %v1879_v60  ;;  %v548_v58 = vmul.f32 0.044715, %v1882_v57 }
  0x8a   : > { %v1288_v10 = vpack.c.bf16 %v988_v40, %v987_v33  ;;  %v926_v12 = vadd.f32 1.0, %v1480_v53  ;;  %v989_v11 = vmul.f32 %v925_v52, %v477_v32  ;;  %v737_v13 = vadd.f32 %v673_v0, %v1867_v31 }
  0x8b   : > { %v738_v47 = vadd.f32 %v674_v4, %v1871_v34  ;;  %v611_v49 = vmul.f32 %v547_v7, %v1879_v60  ;;  %v612_v14 = vmul.f32 %v548_v58, %v1882_v57  ;;  %v354_v2 = vmul.f32 %v1618_v22, %v287_v3 }
  0x8c   : > { %1392 = vst [vmem:[%s1705_s11 + $0x68] sm:$0xff] %v1288_v10   ;;  %v990_v62 = vmul.f32 %v926_v12, %v478_v29  ;;  %v801_v56 = vmul.f32 0.7978846, %v737_v13  ;;  %v355_v61 = vmul.f32 %v1618_v22, %v288_v59  ;;  %v356_v16 = vmul.f32 %v1618_v22, %v289_v1 }
  0x8d   : > { %v802_v17 = vmul.f32 0.7978846, %v738_v47  ;;  %v675_v18 = vmul.f32 %v611_v49, %v1879_v60  ;;  %v676_v19 = vmul.f32 %v612_v14, %v1882_v57  ;;  %v421_v5 = vadd.f32 %v1633_v37, %v354_v2  ;;  %v293_v14 = vld [vmem:[%s1610_s30 + $0x150] sm:$0xff] }
  0x8e   : > { %v1482_v63 = vpop.eup %1481  ;;  %v1293_v20 = vpack.c.bf16 %v990_v62, %v989_v11  ;;  %1485 = vtanh.f32 %v801_v56  ;;  %v422_v6 = vadd.f32 %v1633_v37, %v355_v61  ;;  %v357_v21 = vmul.f32 %v1618_v22, %v290_v15  ;;  %v294_v61 = vld [vmem:[%s1610_s30 + $0x158] sm:$0xff] }
  0x8f   : > { %v1484_v23 = vpop.eup %1483  ;;  %v927_v24 = vadd.f32 1.0, %v1482_v63  ;;  %1487 = vtanh.f32 %v802_v17  ;;  %v739_v25 = vadd.f32 %v675_v18, %v1879_v60  ;;  %v740_v26 = vadd.f32 %v676_v19, %v1882_v57  ;;  %v295_v19 = vld [vmem:[%s1610_s30 + $0x160] sm:$0xff] }
  0x90   : > { %1393 = vst [vmem:[%s1705_s11 + $0x70] sm:$0xff] %v1293_v20   ;;  %v928_v9 = vadd.f32 1.0, %v1484_v23  ;;  %v481_v30 = vmul.f32 0.5, %v1867_v31  ;;  %v482_v32 = vmul.f32 0.5, %v1871_v34  ;;  %v549_v35 = vmul.f32 0.044715, %v421_v5 }
  0x91   : > { %v991_v38 = vmul.f32 %v927_v24, %v479_v54  ;;  %v803_v29 = vmul.f32 0.7978846, %v739_v25  ;;  %v804_v41 = vmul.f32 0.7978846, %v740_v26  ;;  %v550_v44 = vmul.f32 0.044715, %v422_v6 }
  0x92   : > { %v992_v45 = vmul.f32 %v928_v9, %v480_v55  ;;  %v613_v27 = vmul.f32 %v549_v35, %v421_v5  ;;  %v1916_v46 = vadd.f32 %v1633_v37, %v356_v16  ;;  %v1919_v43 = vadd.f32 %v1633_v37, %v357_v21 }
  0x93   : > { %1489 = vtanh.f32 %v803_v29  ;;  %v614_v48 = vmul.f32 %v550_v44, %v422_v6  ;;  %v358_v31 = vmul.f32 %v1618_v22, %v291_v8  ;;  %v359_v34 = vmul.f32 %v1618_v22, %v292_v28 }
  0x94   : > { %v1486_v50 = vpop.eup %1485  ;;  %v1298_v39 = vpack.c.bf16 %v992_v45, %v991_v38  ;;  %v483_v42 = vmul.f32 0.5, %v1879_v60  ;;  %1491 = vtanh.f32 %v804_v41  ;;  %v677_v51 = vmul.f32 %v613_v27, %v421_v5  ;;  %v296_v38 = vld [vmem:[%s1610_s30 + $0x168] sm:$0xff] }
  0x95   : > { %v1488_v33 = vpop.eup %1487  ;;  %v929_v54 = vadd.f32 1.0, %v1486_v50  ;;  %v484_v55 = vmul.f32 0.5, %v1882_v57  ;;  %v678_v36 = vmul.f32 %v614_v48, %v422_v6  ;;  %v551_v40 = vmul.f32 0.044715, %v1916_v46 }
  0x96   : > { %1394 = vst [vmem:[%s1705_s11 + $0x78] sm:$0xff] %v1298_v39   ;;  %v930_v52 = vadd.f32 1.0, %v1488_v33  ;;  %v741_v0 = vadd.f32 %v677_v51, %v421_v5  ;;  %v552_v3 = vmul.f32 0.044715, %v1919_v43  ;;  %v1929_v53 = vadd.f32 %v1633_v37, %v358_v31 }
  0x97   : > { %v993_v4 = vmul.f32 %v929_v54, %v481_v30  ;;  %v742_v60 = vadd.f32 %v678_v36, %v422_v6  ;;  %v615_v7 = vmul.f32 %v551_v40, %v1916_v46  ;;  %v1933_v58 = vadd.f32 %v1633_v37, %v359_v34 }
  0x98   : > { %v994_v57 = vmul.f32 %v930_v52, %v482_v32  ;;  %v485_v59 = vmul.f32 0.5, %v421_v5  ;;  %v805_v1 = vmul.f32 0.7978846, %v741_v0  ;;  %v616_v10 = vmul.f32 %v552_v3, %v1919_v43 }
  0x99   : > { %v1490_v12 = vpop.eup %1489  ;;  %v486_v11 = vmul.f32 0.5, %v422_v6  ;;  %v806_v13 = vmul.f32 0.7978846, %v742_v60  ;;  %v679_v47 = vmul.f32 %v615_v7, %v1916_v46  ;;  %v553_v49 = vmul.f32 0.044715, %v1929_v53  ;;  %v297_v7 = vld [vmem:[%s1610_s30 + $0x170] sm:$0xff] }
  0x9a   : > { %v1492_v2 = vpop.eup %1491  ;;  %v1303_v15 = vpack.c.bf16 %v994_v57, %v993_v4  ;;  %v931_v62 = vadd.f32 1.0, %v1490_v12  ;;  %1493 = vtanh.f32 %v805_v1  ;;  %v680_v56 = vmul.f32 %v616_v10, %v1919_v43  ;;  %v298_v57 = vld [vmem:[%s1610_s30 + $0x178] sm:$0xff] }
  0x9b   : > { %v932_v16 = vadd.f32 1.0, %v1492_v2  ;;  %1495 = vtanh.f32 %v806_v13  ;;  %v743_v17 = vadd.f32 %v679_v47, %v1916_v46  ;;  %v554_v18 = vmul.f32 0.044715, %v1933_v58 }
  0x9c   : > { %1395 = vst [vmem:[%s1705_s11 + $0x80] sm:$0xff] %v1303_v15   ;;  %v995_v5 = vmul.f32 %v931_v62, %v483_v42  ;;  %v744_v63 = vadd.f32 %v680_v56, %v1919_v43  ;;  %v617_v20 = vmul.f32 %v553_v49, %v1929_v53  ;;  %v360_v6 = vmul.f32 %v1618_v22, %v293_v14  ;;  %v299_v14 = vld [vmem:[%s1610_s30 + $0x180] sm:$0xff] }
  0x9d   : > { %v996_v21 = vmul.f32 %v932_v16, %v484_v55  ;;  %v807_v23 = vmul.f32 0.7978846, %v743_v17  ;;  %v618_v24 = vmul.f32 %v554_v18, %v1933_v58  ;;  %v361_v25 = vmul.f32 %v1618_v22, %v294_v61 }
  0x9e   : > { %v808_v26 = vmul.f32 0.7978846, %v744_v63  ;;  %v681_v8 = vmul.f32 %v617_v20, %v1929_v53  ;;  %v1952_v28 = vadd.f32 %v1633_v37, %v360_v6  ;;  %v362_v9 = vmul.f32 %v1618_v22, %v295_v19 }
  0x9f   : > { %v1308_v30 = vpack.c.bf16 %v996_v21, %v995_v5  ;;  %1497 = vtanh.f32 %v807_v23  ;;  %v682_v32 = vmul.f32 %v618_v24, %v1933_v58  ;;  %v1957_v35 = vadd.f32 %v1633_v37, %v361_v25  ;;  %v300_v24 = vld [vmem:[%s1610_s30 + $0x188] sm:$0xff] }
  0xa0   : > { %v1494_v29 = vpop.eup %1493  ;;  %v487_v41 = vmul.f32 0.5, %v1916_v46  ;;  %1499 = vtanh.f32 %v808_v26  ;;  %v745_v44 = vadd.f32 %v681_v8, %v1929_v53  ;;  %v555_v45 = vmul.f32 0.044715, %v1952_v28 }
  0xa1   : > { %v1496_v27 = vpop.eup %1495  ;;  %1396 = vst [vmem:[%s1705_s11 + $0x88] sm:$0xff] %v1308_v30   ;;  %v933_v48 = vadd.f32 1.0, %v1494_v29  ;;  %v488_v31 = vmul.f32 0.5, %v1919_v43  ;;  %v746_v34 = vadd.f32 %v682_v32, %v1933_v58  ;;  %v556_v50 = vmul.f32 0.044715, %v1957_v35 }
  0xa2   : > { %v934_v39 = vadd.f32 1.0, %v1496_v27  ;;  %v809_v42 = vmul.f32 0.7978846, %v745_v44  ;;  %v619_v51 = vmul.f32 %v555_v45, %v1952_v28  ;;  %v363_v46 = vmul.f32 %v1618_v22, %v296_v38 }
  0xa3   : > { %v997_v33 = vmul.f32 %v933_v48, %v485_v59  ;;  %v810_v54 = vmul.f32 0.7978846, %v746_v34  ;;  %v620_v55 = vmul.f32 %v556_v50, %v1957_v35  ;;  %v429_v36 = vadd.f32 %v1633_v37, %v362_v9  ;;  %v302_v50 = vld [vmem:[%s1610_s30 + $0x198] sm:$0xff] }
  0xa4   : > { %v998_v40 = vmul.f32 %v934_v39, %v486_v11  ;;  %1501 = vtanh.f32 %v809_v42  ;;  %v683_v43 = vmul.f32 %v619_v51, %v1952_v28  ;;  %v1973_v52 = vadd.f32 %v1633_v37, %v363_v46 }
  0xa5   : > { %v1498_v0 = vpop.eup %1497  ;;  %v489_v3 = vmul.f32 0.5, %v1929_v53  ;;  %1503 = vtanh.f32 %v810_v54  ;;  %v684_v4 = vmul.f32 %v620_v55, %v1957_v35  ;;  %v557_v60 = vmul.f32 0.044715, %v429_v36 }
  0xa6   : > { %v1500_v59 = vpop.eup %1499  ;;  %v1313_v1 = vpack.c.bf16 %v998_v40, %v997_v33  ;;  %v935_v10 = vadd.f32 1.0, %v1498_v0  ;;  %v490_v12 = vmul.f32 0.5, %v1933_v58  ;;  %v747_v11 = vadd.f32 %v683_v43, %v1952_v28 }
  0xa7   : > { %v936_v13 = vadd.f32 1.0, %v1500_v59  ;;  %v748_v47 = vadd.f32 %v684_v4, %v1957_v35  ;;  %v558_v49 = vmul.f32 0.044715, %v1973_v52  ;;  %v621_v53 = vmul.f32 %v557_v60, %v429_v36  ;;  %v303_v59 = vld [vmem:[%s1610_s30 + $0x1a0] sm:$0xff] }
  0xa8   : > { %1397 = vst [vmem:[%s1705_s11 + $0x90] sm:$0xff] %v1313_v1   ;;  %v999_v2 = vmul.f32 %v935_v10, %v487_v41  ;;  %v811_v15 = vmul.f32 0.7978846, %v747_v11  ;;  %v364_v62 = vmul.f32 %v1618_v22, %v297_v7  ;;  %v365_v56 = vmul.f32 %v1618_v22, %v298_v57  ;;  %v301_v41 = vld [vmem:[%s1610_s30 + $0x190] sm:$0xff] }
  0xa9   : > { %v1000_v61 = vmul.f32 %v936_v13, %v488_v31  ;;  %v812_v16 = vmul.f32 0.7978846, %v748_v47  ;;  %v622_v58 = vmul.f32 %v558_v49, %v1973_v52  ;;  %v685_v17 = vmul.f32 %v621_v53, %v429_v36 }
  0xaa   : > { %v1502_v18 = vpop.eup %1501  ;;  %1505 = vtanh.f32 %v811_v15  ;;  %v431_v19 = vadd.f32 %v1633_v37, %v364_v62  ;;  %v432_v5 = vadd.f32 %v1633_v37, %v365_v56  ;;  %v366_v63 = vmul.f32 %v1618_v22, %v299_v14  ;;  %v304_v62 = vld [vmem:[%s1610_s30 + $0x1a8] sm:$0xff] }
  0xab   : > { %v1504_v20 = vpop.eup %1503  ;;  %v1318_v6 = vpack.c.bf16 %v1000_v61, %v999_v2  ;;  %v937_v21 = vadd.f32 1.0, %v1502_v18  ;;  %1507 = vtanh.f32 %v812_v16  ;;  %v686_v23 = vmul.f32 %v622_v58, %v1973_v52 }
  0xac   : > { %v938_v25 = vadd.f32 1.0, %v1504_v20  ;;  %v491_v26 = vmul.f32 0.5, %v1952_v28  ;;  %v492_v8 = vmul.f32 0.5, %v1957_v35  ;;  %v749_v9 = vadd.f32 %v685_v17, %v429_v36  ;;  %v305_v20 = vld [vmem:[%s1610_s30 + $0x1b0] sm:$0xff] }
  0xad   : > { %1398 = vst [vmem:[%s1705_s11 + $0x98] sm:$0xff] %v1318_v6   ;;  %v1001_v30 = vmul.f32 %v937_v21, %v489_v3  ;;  %v750_v32 = vadd.f32 %v686_v23, %v1973_v52  ;;  %v559_v38 = vmul.f32 0.044715, %v431_v19  ;;  %v560_v29 = vmul.f32 0.044715, %v432_v5 }
  0xae   : > { %v1002_v44 = vmul.f32 %v938_v25, %v490_v12  ;;  %v813_v45 = vmul.f32 0.7978846, %v749_v9  ;;  %v367_v27 = vmul.f32 %v1618_v22, %v300_v24  ;;  %v2000_v48 = vadd.f32 %v1633_v37, %v366_v63 }
  0xaf   : > { %v493_v28 = vmul.f32 0.5, %v429_v36  ;;  %v814_v31 = vmul.f32 0.7978846, %v750_v32  ;;  %v623_v35 = vmul.f32 %v559_v38, %v431_v19  ;;  %v624_v34 = vmul.f32 %v560_v29, %v432_v5  ;;  %v306_v38 = vld [vmem:[%s1610_s30 + $0x1b8] sm:$0xff] }
  0xb0   : > { %v1506_v39 = vpop.eup %1505  ;;  %v1323_v42 = vpack.c.bf16 %v1002_v44, %v1001_v30  ;;  %1509 = vtanh.f32 %v813_v45  ;;  %v434_v51 = vadd.f32 %v1633_v37, %v367_v27  ;;  %v368_v46 = vmul.f32 %v1618_v22, %v301_v41 }
  0xb1   : > { %v1508_v33 = vpop.eup %1507  ;;  %v939_v54 = vadd.f32 1.0, %v1506_v39  ;;  %1511 = vtanh.f32 %v814_v31  ;;  %v687_v55 = vmul.f32 %v623_v35, %v431_v19  ;;  %v688_v40 = vmul.f32 %v624_v34, %v432_v5 }
  0xb2   : > { %1399 = vst [vmem:[%s1705_s11 + $0xa0] sm:$0xff] %v1323_v42   ;;  %v940_v43 = vadd.f32 1.0, %v1508_v33  ;;  %v494_v36 = vmul.f32 0.5, %v1973_v52  ;;  %v561_v0 = vmul.f32 0.044715, %v2000_v48  ;;  %v369_v3 = vmul.f32 %v1618_v22, %v302_v50 }
  0xb3   : > { %v1003_v4 = vmul.f32 %v939_v54, %v491_v26  ;;  %v751_v60 = vadd.f32 %v687_v55, %v431_v19  ;;  %v752_v7 = vadd.f32 %v688_v40, %v432_v5  ;;  %v562_v57 = vmul.f32 0.044715, %v434_v51 }
  0xb4   : > { %v1004_v1 = vmul.f32 %v940_v43, %v492_v8  ;;  %v625_v10 = vmul.f32 %v561_v0, %v2000_v48  ;;  %v435_v12 = vadd.f32 %v1633_v37, %v368_v46  ;;  %v2013_v11 = vadd.f32 %v1633_v37, %v369_v3 }
  0xb5   : > { %v495_v52 = vmul.f32 0.5, %v431_v19  ;;  %v815_v13 = vmul.f32 0.7978846, %v751_v60  ;;  %v816_v47 = vmul.f32 0.7978846, %v752_v7  ;;  %v626_v49 = vmul.f32 %v562_v57, %v434_v51  ;;  %v307_v60 = vld [vmem:[%s1610_s30 + $0x1c0] sm:$0xff] }
  0xb6   : > { %v1510_v53 = vpop.eup %1509  ;;  %v1328_v14 = vpack.c.bf16 %v1004_v1, %v1003_v4  ;;  %v496_v2 = vmul.f32 0.5, %v432_v5  ;;  %v689_v15 = vmul.f32 %v625_v10, %v2000_v48  ;;  %v370_v56 = vmul.f32 %v1618_v22, %v303_v59  ;;  %v308_v10 = vld [vmem:[%s1610_s30 + $0x1c8] sm:$0xff] }
  0xb7   : > { %v1512_v61 = vpop.eup %1511  ;;  %v941_v16 = vadd.f32 1.0, %v1510_v53  ;;  %1513 = vtanh.f32 %v815_v13  ;;  %v690_v58 = vmul.f32 %v626_v49, %v434_v51  ;;  %v563_v17 = vmul.f32 0.044715, %v435_v12 }
  0xb8   : > { %1400 = vst [vmem:[%s1705_s11 + $0xa8] sm:$0xff] %v1328_v14   ;;  %v942_v18 = vadd.f32 1.0, %v1512_v61  ;;  %1515 = vtanh.f32 %v816_v47  ;;  %v753_v19 = vadd.f32 %v689_v15, %v2000_v48  ;;  %v564_v63 = vmul.f32 0.044715, %v2013_v11  ;;  %v309_v15 = vld [vmem:[%s1610_s30 + $0x1d0] sm:$0xff] }
  0xb9   : > { %v1005_v5 = vmul.f32 %v941_v16, %v493_v28  ;;  %v754_v6 = vadd.f32 %v690_v58, %v434_v51  ;;  %v627_v21 = vmul.f32 %v563_v17, %v435_v12  ;;  %v371_v23 = vmul.f32 %v1618_v22, %v304_v62 }
  0xba   : > { %v1006_v24 = vmul.f32 %v942_v18, %v494_v36  ;;  %v817_v25 = vmul.f32 0.7978846, %v753_v19  ;;  %v628_v26 = vmul.f32 %v564_v63, %v2013_v11  ;;  %v2025_v8 = vadd.f32 %v1633_v37, %v370_v56 }
  0xbb   : > { %v818_v9 = vmul.f32 0.7978846, %v754_v6  ;;  %v691_v30 = vmul.f32 %v627_v21, %v435_v12  ;;  %v2028_v32 = vadd.f32 %v1633_v37, %v371_v23  ;;  %v372_v29 = vmul.f32 %v1618_v22, %v305_v20  ;;  %v310_v6 = vld [vmem:[%s1610_s30 + $0x1d8] sm:$0xff] }
  0xbc   : > { %v1333_v41 = vpack.c.bf16 %v1006_v24, %v1005_v5  ;;  %v497_v44 = vmul.f32 0.5, %v2000_v48  ;;  %1517 = vtanh.f32 %v817_v25  ;;  %v692_v45 = vmul.f32 %v628_v26, %v2013_v11 }
  0xbd   : > { %v1514_v27 = vpop.eup %1513  ;;  %v498_v28 = vmul.f32 0.5, %v434_v51  ;;  %1519 = vtanh.f32 %v818_v9  ;;  %v755_v31 = vadd.f32 %v691_v30, %v435_v12  ;;  %v565_v35 = vmul.f32 0.044715, %v2025_v8 }
  0xbe   : > { %v1516_v34 = vpop.eup %1515  ;;  %1401 = vst [vmem:[%s1705_s11 + $0xb0] sm:$0xff] %v1333_v41   ;;  %v943_v50 = vadd.f32 1.0, %v1514_v27  ;;  %v756_v39 = vadd.f32 %v692_v45, %v2013_v11  ;;  %v566_v42 = vmul.f32 0.044715, %v2028_v32  ;;  %v373_v46 = vmul.f32 %v1618_v22, %v306_v38 }
  0xbf   : > { %v944_v48 = vadd.f32 1.0, %v1516_v34  ;;  %v819_v33 = vmul.f32 0.7978846, %v755_v31  ;;  %v629_v54 = vmul.f32 %v565_v35, %v2025_v8  ;;  %v2041_v51 = vadd.f32 %v1633_v37, %v372_v29  ;;  %v311_v29 = vld [vmem:[%s1610_s30 + $0x1e0] sm:$0xff] }
  0xc0   : > { %v1007_v55 = vmul.f32 %v943_v50, %v495_v52  ;;  %v820_v40 = vmul.f32 0.7978846, %v756_v39  ;;  %v630_v43 = vmul.f32 %v566_v42, %v2028_v32  ;;  %v2045_v36 = vadd.f32 %v1633_v37, %v373_v46  ;;  %v312_v39 = vld [vmem:[%s1610_s30 + $0x1e8] sm:$0xff] }
  0xc1   : > { %v1008_v0 = vmul.f32 %v944_v48, %v496_v2  ;;  %v499_v3 = vmul.f32 0.5, %v435_v12  ;;  %1521 = vtanh.f32 %v819_v33  ;;  %v693_v4 = vmul.f32 %v629_v54, %v2025_v8 }
  0xc2   : > { %v1518_v7 = vpop.eup %1517  ;;  %v500_v57 = vmul.f32 0.5, %v2013_v11  ;;  %1523 = vtanh.f32 %v820_v40  ;;  %v694_v59 = vmul.f32 %v630_v43, %v2028_v32  ;;  %v567_v1 = vmul.f32 0.044715, %v2041_v51 }
  0xc3   : > { %v1520_v52 = vpop.eup %1519  ;;  %v1338_v13 = vpack.c.bf16 %v1008_v0, %v1007_v55  ;;  %v945_v47 = vadd.f32 1.0, %v1518_v7  ;;  %v757_v12 = vadd.f32 %v693_v4, %v2025_v8  ;;  %v568_v49 = vmul.f32 0.044715, %v2045_v36 }
  0xc4   : > { %v946_v53 = vadd.f32 1.0, %v1520_v52  ;;  %v758_v14 = vadd.f32 %v694_v59, %v2028_v32  ;;  %v631_v2 = vmul.f32 %v567_v1, %v2041_v51  ;;  %v374_v11 = vmul.f32 %v1618_v22, %v307_v60 }
  0xc5   : > { %1402 = vst [vmem:[%s1705_s11 + $0xb8] sm:$0xff] %v1338_v13   ;;  %v1009_v62 = vmul.f32 %v945_v47, %v497_v44  ;;  %v821_v56 = vmul.f32 0.7978846, %v757_v12  ;;  %v632_v61 = vmul.f32 %v568_v49, %v2045_v36  ;;  %v375_v16 = vmul.f32 %v1618_v22, %v308_v10 }
  0xc6   : > { %v1010_v58 = vmul.f32 %v946_v53, %v498_v28  ;;  %v822_v17 = vmul.f32 0.7978846, %v758_v14  ;;  %v695_v18 = vmul.f32 %v631_v2, %v2041_v51  ;;  %v2064_v19 = vadd.f32 %v1633_v37, %v374_v11 }
  0xc7   : > { %v1522_v63 = vpop.eup %1521  ;;  %1525 = vtanh.f32 %v821_v56  ;;  %v696_v20 = vmul.f32 %v632_v61, %v2045_v36  ;;  %v2068_v5 = vadd.f32 %v1633_v37, %v375_v16  ;;  %v376_v21 = vmul.f32 %v1618_v22, %v309_v15  ;;  %v313_v16 = vld [vmem:[%s1610_s30 + $0x1f0] sm:$0xff] }
  0xc8   : > { %v1524_v23 = vpop.eup %1523  ;;  %v1343_v24 = vpack.c.bf16 %v1010_v58, %v1009_v62  ;;  %v947_v25 = vadd.f32 1.0, %v1522_v63  ;;  %1527 = vtanh.f32 %v822_v17  ;;  %v759_v26 = vadd.f32 %v695_v18, %v2041_v51  ;;  %v314_v18 = vld [vmem:[%s1610_s30 + $0x1f8] sm:$0xff] }
  0xc9   : > { %v948_v9 = vadd.f32 1.0, %v1524_v23  ;;  %v501_v30 = vmul.f32 0.5, %v2025_v8  ;;  %v760_v38 = vadd.f32 %v696_v20, %v2045_v36  ;;  %v569_v45 = vmul.f32 0.044715, %v2064_v19 }
  0xca   : > { %1403 = vst [vmem:[%s1705_s11 + $0xc0] sm:$0xff] %v1343_v24   ;;  %v1011_v41 = vmul.f32 %v947_v25, %v499_v3  ;;  %v823_v44 = vmul.f32 0.7978846, %v759_v26  ;;  %v377_v27 = vmul.f32 %v1618_v22, %v310_v6  ;;  %v570_v35 = vmul.f32 0.044715, %v2068_v5 }
  0xcb   : > { %v1012_v28 = vmul.f32 %v948_v9, %v500_v57  ;;  %v824_v31 = vmul.f32 0.7978846, %v760_v38  ;;  %v2081_v34 = vadd.f32 %v1633_v37, %v376_v21  ;;  %v633_v8 = vmul.f32 %v569_v45, %v2064_v19 }
  0xcc   : > { %1529 = vtanh.f32 %v823_v44  ;;  %v2085_v50 = vadd.f32 %v1633_v37, %v377_v27  ;;  %v378_v42 = vmul.f32 %v1618_v22, %v311_v29  ;;  %v502_v33 = vmul.f32 0.5, %v2028_v32 }
  0xcd   : > { %v1526_v46 = vpop.eup %1525  ;;  %v1348_v48 = vpack.c.bf16 %v1012_v28, %v1011_v41  ;;  %1531 = vtanh.f32 %v824_v31  ;;  %v634_v54 = vmul.f32 %v570_v35, %v2068_v5  ;;  %v503_v43 = vmul.f32 0.5, %v2041_v51 }
  0xce   : > { %v1528_v55 = vpop.eup %1527  ;;  %v949_v40 = vadd.f32 1.0, %v1526_v46  ;;  %v697_v0 = vmul.f32 %v633_v8, %v2064_v19  ;;  %v571_v3 = vmul.f32 0.044715, %v2081_v34  ;;  %v572_v7 = vmul.f32 0.044715, %v2085_v50 }
  0xcf   : > { %1404 = vst [vmem:[%s1705_s11 + $0xc8] sm:$0xff] %v1348_v48   ;;  %v950_v4 = vadd.f32 1.0, %v1528_v55  ;;  %v698_v60 = vmul.f32 %v634_v54, %v2068_v5  ;;  %v379_v57 = vmul.f32 %v1618_v22, %v312_v39  ;;  %v2101_v51 = vadd.f32 %v1633_v37, %v378_v42 }
  0xd0   : > { %v1013_v32 = vmul.f32 %v949_v40, %v501_v30  ;;  %v761_v59 = vadd.f32 %v697_v0, %v2064_v19  ;;  %v635_v1 = vmul.f32 %v571_v3, %v2081_v34  ;;  %v636_v13 = vmul.f32 %v572_v7, %v2085_v50 }
  0xd1   : > { %v1014_v10 = vmul.f32 %v950_v4, %v502_v33  ;;  %v762_v52 = vadd.f32 %v698_v60, %v2068_v5  ;;  %v2106_v47 = vadd.f32 %v1633_v37, %v379_v57  ;;  %v504_v49 = vmul.f32 0.5, %v2045_v36 }
  0xd2   : > { %v1530_v12 = vpop.eup %1529  ;;  %v825_v53 = vmul.f32 0.7978846, %v761_v59  ;;  %v699_v14 = vmul.f32 %v635_v1, %v2081_v34  ;;  %v573_v2 = vmul.f32 0.044715, %v2101_v51  ;;  %v700_v61 = vmul.f32 %v636_v13, %v2085_v50 }
  0xd3   : > { %v1532_v11 = vpop.eup %1531  ;;  %v1353_v15 = vpack.c.bf16 %v1014_v10, %v1013_v32  ;;  %v951_v62 = vadd.f32 1.0, %v1530_v12  ;;  %v826_v56 = vmul.f32 0.7978846, %v762_v52  ;;  %v574_v20 = vmul.f32 0.044715, %v2106_v47 }
  0xd4   : > { %v952_v58 = vadd.f32 1.0, %v1532_v11  ;;  %1533 = vtanh.f32 %v825_v53  ;;  %v763_v17 = vadd.f32 %v699_v14, %v2081_v34  ;;  %v764_v36 = vadd.f32 %v700_v61, %v2085_v50 }
  0xd5   : > { %1405 = vst [vmem:[%s1705_s11 + $0xd0] sm:$0xff] %v1353_v15   ;;  %v1015_v63 = vmul.f32 %v951_v62, %v503_v43  ;;  %1535 = vtanh.f32 %v826_v56  ;;  %v637_v23 = vmul.f32 %v573_v2, %v2101_v51  ;;  %v380_v24 = vmul.f32 %v1618_v22, %v313_v16 }
  0xd6   : > { %v1016_v6 = vmul.f32 %v952_v58, %v504_v49  ;;  %v827_v21 = vmul.f32 0.7978846, %v763_v17  ;;  %v828_v25 = vmul.f32 0.7978846, %v764_v36  ;;  %v638_v26 = vmul.f32 %v574_v20, %v2106_v47 }
  0xd7   : > { %v381_v9 = vmul.f32 %v1618_v22, %v314_v18  ;;  %v701_v38 = vmul.f32 %v637_v23, %v2101_v51  ;;  %v447_v29 = vadd.f32 %v1633_v37, %v380_v24  ;;  %v505_v41 = vmul.f32 0.5, %v2064_v19 }
  0xd8   : > { %v1358_v30 = vpack.c.bf16 %v1016_v6, %v1015_v63  ;;  %1537 = vtanh.f32 %v827_v21  ;;  %v702_v44 = vmul.f32 %v638_v26, %v2106_v47  ;;  %v506_v28 = vmul.f32 0.5, %v2068_v5 }
  0xd9   : > { %1539 = vtanh.f32 %v828_v25  ;;  %v448_v45 = vadd.f32 %v1633_v37, %v381_v9  ;;  %v765_v31 = vadd.f32 %v701_v38, %v2101_v51  ;;  %v575_v22 = vmul.f32 0.044715, %v447_v29 }
  0xda   : > { %v1534_v27 = vpop.eup %1533  ;;  %1406 = vst [vmem:[%s1705_s11 + $0xd8] sm:$0xff] %v1358_v30   ;;  %v766_v39 = vadd.f32 %v702_v44, %v2106_v47  ;;  %v507_v54 = vmul.f32 0.5, %v2081_v34  ;;  %v508_v5 = vmul.f32 0.5, %v2085_v50  ;;  %v509_v52 = vmul.f32 0.5, %v2101_v51 }
  0xdb   : > { %v1536_v35 = vpop.eup %1535  ;;  %v953_v8 = vadd.f32 1.0, %v1534_v27  ;;  %v576_v42 = vmul.f32 0.044715, %v448_v45  ;;  %v829_v48 = vmul.f32 0.7978846, %v765_v31  ;;  %v639_v19 = vmul.f32 %v575_v22, %v447_v29 }
  0xdc   : > { %v954_v46 = vadd.f32 1.0, %v1536_v35  ;;  %v830_v55 = vmul.f32 0.7978846, %v766_v39  ;;  %v510_v49 = vmul.f32 0.5, %v2106_v47  ;;  %v511_v62 = vmul.f32 0.5, %v447_v29 }
  0xdd   : > { %v1017_v33 = vmul.f32 %v953_v8, %v505_v41  ;;  %v640_v37 = vmul.f32 %v576_v42, %v448_v45  ;;  %1541 = vtanh.f32 %v829_v48  ;;  %v703_v0 = vmul.f32 %v639_v19, %v447_v29 }
  0xde   : > { %v1538_v40 = vpop.eup %1537  ;;  %v1018_v43 = vmul.f32 %v954_v46, %v506_v28  ;;  %1543 = vtanh.f32 %v830_v55  ;;  %v512_v16 = vmul.f32 0.5, %v448_v45 }
  0xdf   : > { %v1540_v3 = vpop.eup %1539  ;;  %v955_v4 = vadd.f32 1.0, %v1538_v40  ;;  %v704_v60 = vmul.f32 %v640_v37, %v448_v45  ;;  %v767_v32 = vadd.f32 %v703_v0, %v447_v29 }
  0xe0   : > { %v1363_v7 = vpack.c.bf16 %v1018_v43, %v1017_v33  ;;  %v956_v57 = vadd.f32 1.0, %v1540_v3 }
  0xe1   : > { %v1019_v59 = vmul.f32 %v955_v4, %v507_v54  ;;  %v768_v1 = vadd.f32 %v704_v60, %v448_v45  ;;  %v831_v10 = vmul.f32 0.7978846, %v767_v32 }
  0xe2   : > { %1407 = vst [vmem:[%s1705_s11 + $0xe0] sm:$0xff] %v1363_v7   ;;  %v1020_v34 = vmul.f32 %v956_v57, %v508_v5 }
  0xe3   : > { %v832_v13 = vmul.f32 0.7978846, %v768_v1  ;;  %v1542_v12 = vpop.eup %1541  ;;  %1545 = vtanh.f32 %v831_v10 }
  0xe4   : > { %v1368_v50 = vpack.c.bf16 %v1020_v34, %v1019_v59  ;;  %v1544_v53 = vpop.eup %1543  ;;  %v957_v14 = vadd.f32 1.0, %v1542_v12 }
  0xe5   : > { %1547 = vtanh.f32 %v832_v13  ;;  %v958_v2 = vadd.f32 1.0, %v1544_v53 }
  0xe6   : > { %1408 = vst [vmem:[%s1705_s11 + $0xe8] sm:$0xff] %v1368_v50   ;;  %v1021_v11 = vmul.f32 %v957_v14, %v509_v52 }
  0xe7   : > { %v1022_v15 = vmul.f32 %v958_v2, %v510_v49 }
  0xe9   : > { %v1546_v56 = vpop.eup %1545  ;;  %v1373_v61 = vpack.c.bf16 %v1022_v15, %v1021_v11 }
  0xea   : > { %v959_v58 = vadd.f32 1.0, %v1546_v56 }
  0xeb   : > { %v1548_v51 = vpop.eup %1547  ;;  %1409 = vst [vmem:[%s1705_s11 + $0xf0] sm:$0xff] %v1373_v61  }
  0xec   : > { %v960_v17 = vadd.f32 1.0, %v1548_v51  ;;  %v1023_v18 = vmul.f32 %v959_v58, %v511_v62 }
  0xee   : > { %v1024_v63 = vmul.f32 %v960_v17, %v512_v16 }
  0xf0   : > { %v1378_v47 = vpack.c.bf16 %v1024_v63, %v1023_v18 }
  0xf2   : > { %1410 = vst [vmem:[%s1705_s11 + $0xf8] sm:$0xff] %v1378_v47  }
  0xf3 PF: > { %s15_s18 = sadd.s32 1, %s1555_s18  }
  0xf4   : > { %p12_p4 = scmp.ge.s32.totalorder %s15_s18, 4  }
  0xf6   :  { %14 = sbr.rel (!%p12_p4) target bundleno = 1 (0x1), region = 70 }

// kernel: res_block_101.5
= control target key start
LH: loop header
LB: loop body
LE: loop exit
PB: predicated region body
PF: predicated region fallthrough
CT: control target
= control target key end

     0   :  { %s1712_s27 = smov 0   ;;  %s2506_s0 = inlined_call_operand.vmem [shape: f32[1024,128], index: 0, kind: input, shape index: {}]   ;;  %s2507_s1 = inlined_call_operand.vmem [shape: bf16[128,128], index: 1, kind: input, shape index: {}]   ;;  %s2508_s2 = inlined_call_operand.vmem [shape: bf16[128,128], index: 2, kind: input, shape index: {}]   ;;  %s2509_s3 = inlined_call_operand.vmem [shape: f32[1024,128], index: 3, kind: output, shape index: {0}]   ;;  %s2510_s4 = inlined_call_operand.vmem [shape: f32[1024,128], index: 4, kind: output, shape index: {1}]   ;;  %s2511_s5 = inlined_call_operand.vmem [shape: f32[1,128], index: 5, kind: output, shape index: {2}]   ;;  %s2512_s6 = inlined_call_operand.vmem [shape: f32[1,128], index: 6, kind: output, shape index: {3}]   ;;  %s2513_s7 = inlined_call_operand.vmem [shape: f32[1,128], index: 7, kind: output, shape index: {4}]   ;;  %s2514_s8 = inlined_call_operand.vmem [shape: f32[1,128], index: 8, kind: output, shape index: {5}]  }
   0x1 LB: > { %s1539_s28 = sadd.s32 4294967295, %s1664_s27   ;;  %p1543_p0 = scmp.ge.s32.totalorder %s1664_s27, 1  ;;  %s1664_s27 = sphi %s1712_s27, %s19_s27  }
   0x2   : > { %p254_p1 = scmp.lt.s32.totalorder %s1664_s27, 3 }
   0x4   : > { %p255_p2 = pnand %p1543_p0, %p254_p1 }
   0x6   : > { %258 = sbr.rel (%p255_p2) target bundleno = 513 (0x201), region = 32 }
   0xb   : > { %s1544_s29 = sshll.u32 %s1539_s28, 6  ;;  %p1550_p4 = scmp.ne.s32.totalorder %s1539_s28, 0 }
   0xc   : > { %p294_p3 = scmp.lt.s32.totalorder %s1544_s29, 127 }
   0xd   : > { %314 = sbr.rel (%p1550_p4) target bundleno = 23 (0x17), region = 36 }
   0xe   : > { %s2596_s29 = smov (!%p294_p3, %s1544_s29), 127 }
   0xf   : > { %s1545_s30 = sshll.u32 %s2596_s29, 3 }
  0x10   : > { %s1723_s11 = scalar_lea.vmem %s2506_s0, %s1545_s30  ;;  %s1728_s14 = scalar_lea.vmem %s2509_s3, %s1545_s30 }
  0x11   : > { %s1733_s17 = scalar_lea.vmem %s2510_s4, %s1545_s30 }
  0x12   : > { %v1666_v0 = vmov 0.0  }
  0x13   : > { %315 = vst [vmem:[%s2511_s5] sm:$0x1] %v1666_v0 }
  0x14   : > { %316 = vst [vmem:[%s2512_s6] sm:$0x1] %v1666_v0 }
  0x15   : > { %317 = vst [vmem:[%s2513_s7] sm:$0x1] %v1666_v0 }
  0x16   : > { %318 = vst [vmem:[%s2514_s8] sm:$0x1] %v1666_v0 }
  0x17 PF: > { %v1624_v1 = vld [vmem:[%s2507_s1 + $0x38] sm:$0xff]  ;;  %v1623_v3 = vld [vmem:[%s2507_s1 + $0x30] sm:$0xff]  ;;  %v1622_v5 = vld [vmem:[%s2507_s1 + $0x28] sm:$0xff] }
  0x18   : > { %v1632_v2 = vld [vmem:[%s2508_s2 + $0x38] sm:$0xff]  ;;  %479 = vmatpush.bf16.msra.mxu0 %v1624_v1  ;;  %v1631_v4 = vld [vmem:[%s2508_s2 + $0x30] sm:$0xff]  ;;  %1633 = vmatpush.bf16.msra.mxu2 %v1624_v1  ;;  %v1630_v6 = vld [vmem:[%s2508_s2 + $0x28] sm:$0xff] }
  0x19   : > { %712 = vmatpush.bf16.msra.mxu1 %v1632_v2  ;;  %1641 = vmatpush.bf16.msra.mxu3 %v1632_v2  ;;  %v1621_v7 = vld [vmem:[%s2507_s1 + $0x20] sm:$0xff]  ;;  %v1620_v9 = vld [vmem:[%s2507_s1 + $0x18] sm:$0xff]  ;;  %v1619_v11 = vld [vmem:[%s2507_s1 + $0x10] sm:$0xff] }
  0x1a   : > { %v1629_v8 = vld [vmem:[%s2508_s2 + $0x20] sm:$0xff]  ;;  %v1628_v10 = vld [vmem:[%s2508_s2 + $0x18] sm:$0xff]  ;;  %v1627_v12 = vld [vmem:[%s2508_s2 + $0x10] sm:$0xff] }
  0x1b   : > { %v1618_v13 = vld [vmem:[%s2507_s1 + $0x8] sm:$0xff]  ;;  %v1617_v15 = vld [vmem:[%s2507_s1] sm:$0xff]  ;;  %v321_v20 = vld [vmem:[%s1723_s11 + $0x10] sm:$0xff] }
  0x1c   : > { %480 = vmatpush.bf16.msra.mxu0 %v1623_v3  ;;  %1634 = vmatpush.bf16.msra.mxu2 %v1623_v3  ;;  %v1626_v14 = vld [vmem:[%s2508_s2 + $0x8] sm:$0xff]  ;;  %v1625_v16 = vld [vmem:[%s2508_s2] sm:$0xff]  ;;  %v322_v21 = vld [vmem:[%s1723_s11 + $0x18] sm:$0xff] }
  0x1d   : > { %713 = vmatpush.bf16.msra.mxu1 %v1631_v4  ;;  %1642 = vmatpush.bf16.msra.mxu3 %v1631_v4  ;;  %v319_v17 = vld [vmem:[%s1723_s11] sm:$0xff]  ;;  %v320_v18 = vld [vmem:[%s1723_s11 + $0x8] sm:$0xff]  ;;  %v384_v22 = vpack.c.bf16 %v322_v21, %v321_v20  ;;  %v353_v29 = vld [vmem:[%s1723_s11 + $0x110] sm:$0xff] }
  0x1e   : > { %v383_v19 = vpack.c.bf16 %v320_v18, %v319_v17  ;;  %v351_v23 = vld [vmem:[%s1723_s11 + $0x100] sm:$0xff]  ;;  %v352_v24 = vld [vmem:[%s1723_s11 + $0x108] sm:$0xff]  ;;  %v354_v30 = vld [vmem:[%s1723_s11 + $0x118] sm:$0xff] }
  0x1f   : > { %v399_v25 = vpack.c.bf16 %v352_v24, %v351_v23  ;;  %v323_v26 = vld [vmem:[%s1723_s11 + $0x20] sm:$0xff]  ;;  %v324_v27 = vld [vmem:[%s1723_s11 + $0x28] sm:$0xff]  ;;  %v400_v31 = vpack.c.bf16 %v354_v30, %v353_v29  ;;  %v325_v32 = vld [vmem:[%s1723_s11 + $0x30] sm:$0xff] }
  0x20   : > { %481 = vmatpush.bf16.msra.mxu0 %v1622_v5  ;;  %1635 = vmatpush.bf16.msra.mxu2 %v1622_v5  ;;  %v385_v28 = vpack.c.bf16 %v324_v27, %v323_v26  ;;  %v326_v33 = vld [vmem:[%s1723_s11 + $0x38] sm:$0xff]  ;;  %v355_v35 = vld [vmem:[%s1723_s11 + $0x120] sm:$0xff]  ;;  %v356_v36 = vld [vmem:[%s1723_s11 + $0x128] sm:$0xff] }
  0x21   : > { %714 = vmatpush.bf16.msra.mxu1 %v1630_v6  ;;  %1643 = vmatpush.bf16.msra.mxu3 %v1630_v6  ;;  %v386_v34 = vpack.c.bf16 %v326_v33, %v325_v32  ;;  %v401_v37 = vpack.c.bf16 %v356_v36, %v355_v35  ;;  %v327_v38 = vld [vmem:[%s1723_s11 + $0x40] sm:$0xff]  ;;  %v328_v39 = vld [vmem:[%s1723_s11 + $0x48] sm:$0xff]  ;;  %v357_v41 = vld [vmem:[%s1723_s11 + $0x130] sm:$0xff] }
  0x22   : > { %v387_v40 = vpack.c.bf16 %v328_v39, %v327_v38  ;;  %v358_v42 = vld [vmem:[%s1723_s11 + $0x138] sm:$0xff]  ;;  %v329_v44 = vld [vmem:[%s1723_s11 + $0x50] sm:$0xff]  ;;  %v359_v47 = vld [vmem:[%s1723_s11 + $0x140] sm:$0xff] }
  0x23   : > { %v402_v43 = vpack.c.bf16 %v358_v42, %v357_v41  ;;  %v330_v45 = vld [vmem:[%s1723_s11 + $0x58] sm:$0xff]  ;;  %v360_v48 = vld [vmem:[%s1723_s11 + $0x148] sm:$0xff]  ;;  %v331_v50 = vld [vmem:[%s1723_s11 + $0x60] sm:$0xff] }
  0x24   : > { %482 = vmatpush.bf16.msra.mxu0 %v1621_v7  ;;  %1636 = vmatpush.bf16.msra.mxu2 %v1621_v7  ;;  %v388_v46 = vpack.c.bf16 %v330_v45, %v329_v44  ;;  %v403_v49 = vpack.c.bf16 %v360_v48, %v359_v47  ;;  %v332_v51 = vld [vmem:[%s1723_s11 + $0x68] sm:$0xff]  ;;  %v361_v53 = vld [vmem:[%s1723_s11 + $0x150] sm:$0xff]  ;;  %v362_v54 = vld [vmem:[%s1723_s11 + $0x158] sm:$0xff] }
  0x25   : > { %715 = vmatpush.bf16.msra.mxu1 %v1629_v8  ;;  %1644 = vmatpush.bf16.msra.mxu3 %v1629_v8  ;;  %v389_v52 = vpack.c.bf16 %v332_v51, %v331_v50  ;;  %v404_v55 = vpack.c.bf16 %v362_v54, %v361_v53  ;;  %v333_v56 = vld [vmem:[%s1723_s11 + $0x70] sm:$0xff]  ;;  %v334_v57 = vld [vmem:[%s1723_s11 + $0x78] sm:$0xff]  ;;  %v363_v59 = vld [vmem:[%s1723_s11 + $0x160] sm:$0xff] }
  0x26   : > { %v390_v58 = vpack.c.bf16 %v334_v57, %v333_v56  ;;  %v364_v60 = vld [vmem:[%s1723_s11 + $0x168] sm:$0xff]  ;;  %v335_v62 = vld [vmem:[%s1723_s11 + $0x80] sm:$0xff]  ;;  %v365_v3 = vld [vmem:[%s1723_s11 + $0x170] sm:$0xff] }
  0x27   : > { %v405_v61 = vpack.c.bf16 %v364_v60, %v363_v59  ;;  %v336_v63 = vld [vmem:[%s1723_s11 + $0x88] sm:$0xff]  ;;  %v366_v4 = vld [vmem:[%s1723_s11 + $0x178] sm:$0xff]  ;;  %v367_v27 = vld [vmem:[%s1723_s11 + $0x180] sm:$0xff] }
  0x28   : > { %483 = vmatpush.bf16.msra.mxu0 %v1620_v9  ;;  %1637 = vmatpush.bf16.msra.mxu2 %v1620_v9  ;;  %v391_v0 = vpack.c.bf16 %v336_v63, %v335_v62  ;;  %v406_v5 = vpack.c.bf16 %v366_v4, %v365_v3  ;;  %v338_v17 = vld [vmem:[%s1723_s11 + $0x98] sm:$0xff]  ;;  %v340_v41 = vld [vmem:[%s1723_s11 + $0xa8] sm:$0xff]  ;;  %v369_v53 = vld [vmem:[%s1723_s11 + $0x190] sm:$0xff] }
  0x29   : > { %716 = vmatpush.bf16.msra.mxu1 %v1628_v10  ;;  %1645 = vmatpush.bf16.msra.mxu3 %v1628_v10  ;;  %v370_v54 = vld [vmem:[%s1723_s11 + $0x198] sm:$0xff] }
  0x2a   : > { %v342_v3 = vld [vmem:[%s1723_s11 + $0xb8] sm:$0xff] }
  0x2c   : > { %484 = vmatpush.bf16.msra.mxu0 %v1619_v11  ;;  %1638 = vmatpush.bf16.msra.mxu2 %v1619_v11 }
  0x2d   : > { %717 = vmatpush.bf16.msra.mxu1 %v1627_v12  ;;  %1646 = vmatpush.bf16.msra.mxu3 %v1627_v12 }
  0x30   : > { %485 = vmatpush.bf16.msra.mxu0 %v1618_v13  ;;  %1639 = vmatpush.bf16.msra.mxu2 %v1618_v13 }
  0x31   : > { %718 = vmatpush.bf16.msra.mxu1 %v1626_v14  ;;  %1647 = vmatpush.bf16.msra.mxu3 %v1626_v14 }
  0x34   : > { %486 = vmatpush.bf16.msra.mxu0 %v1617_v15  ;;  %1640 = vmatpush.bf16.msra.mxu2 %v1617_v15 }
  0x35   : > { %719 = vmatpush.bf16.msra.mxu1 %v1625_v16  ;;  %1648 = vmatpush.bf16.msra.mxu3 %v1625_v16  ;;  %v337_v16 = vld [vmem:[%s1723_s11 + $0x90] sm:$0xff] }
  0x36   : > { %v392_v18 = vpack.c.bf16 %v338_v17, %v337_v16  ;;  %v372_v16 = vld [vmem:[%s1723_s11 + $0x1a8] sm:$0xff] }
  0x37   : > { %487 = vmatmul.bf16.vlgmr.msra.gmra.mxu0 %v383_v19  ;;  %567 = vmatmul.bf16.vlgmr.msra.gmra.mxu2 %v399_v25 }
  0x38   : > { %720 = vmatmul.bf16.vlgmr.msra.gmra.mxu1 %v383_v19  ;;  %800 = vmatmul.bf16.vlgmr.msra.gmra.mxu3 %v399_v25 }
  0x47   : > { %492 = vmatmul.bf16.gmra.mxu0 %v384_v22  ;;  %572 = vmatmul.bf16.gmra.mxu2 %v400_v31 }
  0x48   : > { %725 = vmatmul.bf16.gmra.mxu1 %v384_v22  ;;  %805 = vmatmul.bf16.gmra.mxu3 %v400_v31 }
  0x57   : > { %497 = vmatmul.bf16.gmra.mxu0 %v385_v28  ;;  %577 = vmatmul.bf16.gmra.mxu2 %v401_v37 }
  0x58   : > { %730 = vmatmul.bf16.gmra.mxu1 %v385_v28  ;;  %810 = vmatmul.bf16.gmra.mxu3 %v401_v37  ;;  %v368_v28 = vld [vmem:[%s1723_s11 + $0x188] sm:$0xff] }
  0x59   : > { %v407_v29 = vpack.c.bf16 %v368_v28, %v367_v27  ;;  %v343_v28 = vld [vmem:[%s1723_s11 + $0xc0] sm:$0xff] }
  0x67   : > { %502 = vmatmul.bf16.gmra.mxu0 %v386_v34  ;;  %582 = vmatmul.bf16.gmra.mxu2 %v402_v43 }
  0x68   : > { %735 = vmatmul.bf16.gmra.mxu1 %v386_v34  ;;  %815 = vmatmul.bf16.gmra.mxu3 %v402_v43 }
  0x77   : > { %507 = vmatmul.bf16.gmra.mxu0 %v387_v40  ;;  %587 = vmatmul.bf16.gmra.mxu2 %v403_v49 }
  0x78   : > { %740 = vmatmul.bf16.gmra.mxu1 %v387_v40  ;;  %820 = vmatmul.bf16.gmra.mxu3 %v403_v49  ;;  %v339_v40 = vld [vmem:[%s1723_s11 + $0xa0] sm:$0xff] }
  0x79   : > { %v393_v42 = vpack.c.bf16 %v340_v41, %v339_v40 }
  0x87   : > { %512 = vmatmul.bf16.gmra.mxu0 %v388_v46  ;;  %592 = vmatmul.bf16.gmra.mxu2 %v404_v55 }
  0x88   : > { %745 = vmatmul.bf16.gmra.mxu1 %v388_v46  ;;  %825 = vmatmul.bf16.gmra.mxu3 %v404_v55  ;;  %v408_v55 = vpack.c.bf16 %v370_v54, %v369_v53 }
  0x97   : > { %517 = vmatmul.bf16.gmra.mxu0 %v389_v52  ;;  %597 = vmatmul.bf16.gmra.mxu2 %v405_v61 }
  0x98   : > { %750 = vmatmul.bf16.gmra.mxu1 %v389_v52  ;;  %830 = vmatmul.bf16.gmra.mxu3 %v405_v61 }
  0xa7   : > { %522 = vmatmul.bf16.gmra.mxu0 %v390_v58  ;;  %602 = vmatmul.bf16.gmra.mxu2 %v406_v5 }
  0xa8   : > { %755 = vmatmul.bf16.gmra.mxu1 %v390_v58  ;;  %835 = vmatmul.bf16.gmra.mxu3 %v406_v5 }
  0xb4   : > { %v488_v1 = vpop.f32.mrf.mxu0 }
  0xb5   : > { %v721_v2 = vpop.f32.mrf.mxu1  ;;  %881 = vst [vmem:[%s1728_s14] sm:$0xff] %v488_v1  ;;  %v1082_v6 = vmul.f32 %v488_v1, %v488_v1 }
  0xb6   : > { %945 = vst [vmem:[%s1733_s17] sm:$0xff] %v721_v2  ;;  %v1290_v7 = vmul.f32 %v721_v2, %v721_v2 }
  0xb7   : > { %527 = vmatmul.bf16.gmra.mxu0 %v391_v0  ;;  %607 = vmatmul.bf16.gmra.mxu2 %v407_v29 }
  0xb8   : > { %760 = vmatmul.bf16.gmra.mxu1 %v391_v0  ;;  %840 = vmatmul.bf16.gmra.mxu3 %v407_v29  ;;  %v344_v29 = vld [vmem:[%s1723_s11 + $0xc8] sm:$0xff] }
  0xba   : > { %v1840_v36 = vpop.f32.mrf.mxu2 }
  0xbb   : > { %v1842_v37 = vpop.f32.mrf.mxu3  ;;  %913 = vst [vmem:[%s1728_s14 + $0x100] sm:$0xff] %v1840_v36 }
  0xbc   : > { %v490_v8 = vpop.f32.mrf.mxu0  ;;  %977 = vst [vmem:[%s1733_s17 + $0x100] sm:$0xff] %v1842_v37 }
  0xbd   : > { %v723_v9 = vpop.f32.mrf.mxu1  ;;  %882 = vst [vmem:[%s1728_s14 + $0x8] sm:$0xff] %v490_v8  ;;  %v1083_v10 = vmul.f32 %v490_v8, %v490_v8  ;;  %v1010_v12 = vadd.f32 %v490_v8, %v488_v1 }
  0xbe   : > { %v1291_v11 = vmul.f32 %v723_v9, %v723_v9  ;;  %v1218_v13 = vadd.f32 %v723_v9, %v721_v2  ;;  %946 = vst [vmem:[%s1733_s17 + $0x8] sm:$0xff] %v723_v9  ;;  %v341_v2 = vld [vmem:[%s1723_s11 + $0xb0] sm:$0xff] }
  0xbf   : > { %v1146_v14 = vadd.f32 %v1083_v10, %v1082_v6  ;;  %v394_v4 = vpack.c.bf16 %v342_v3, %v341_v2 }
  0xc0   : > { %v1354_v15 = vadd.f32 %v1291_v11, %v1290_v7 }
  0xc2   : > { %v1852_v49 = vpop.f32.mrf.mxu2 }
  0xc3   : > { %v1854_v50 = vpop.f32.mrf.mxu3  ;;  %914 = vst [vmem:[%s1728_s14 + $0x108] sm:$0xff] %v1852_v49 }
  0xc4   : > { %v493_v19 = vpop.f32.mrf.mxu0  ;;  %978 = vst [vmem:[%s1733_s17 + $0x108] sm:$0xff] %v1854_v50 }
  0xc5   : > { %v726_v20 = vpop.f32.mrf.mxu1  ;;  %883 = vst [vmem:[%s1728_s14 + $0x10] sm:$0xff] %v493_v19  ;;  %v1011_v21 = vadd.f32 %v1010_v12, %v493_v19  ;;  %v1084_v22 = vmul.f32 %v493_v19, %v493_v19 }
  0xc6   : > { %v1219_v23 = vadd.f32 %v1218_v13, %v726_v20  ;;  %v1292_v24 = vmul.f32 %v726_v20, %v726_v20  ;;  %947 = vst [vmem:[%s1733_s17 + $0x10] sm:$0xff] %v726_v20 }
  0xc7   : > { %v1147_v25 = vadd.f32 %v1146_v14, %v1084_v22  ;;  %532 = vmatmul.bf16.gmra.mxu0 %v392_v18  ;;  %612 = vmatmul.bf16.gmra.mxu2 %v408_v55 }
  0xc8   : > { %v1355_v26 = vadd.f32 %v1354_v15, %v1292_v24  ;;  %765 = vmatmul.bf16.gmra.mxu1 %v392_v18  ;;  %845 = vmatmul.bf16.gmra.mxu3 %v408_v55  ;;  %v371_v15 = vld [vmem:[%s1723_s11 + $0x1a0] sm:$0xff] }
  0xc9   : > { %v409_v17 = vpack.c.bf16 %v372_v16, %v371_v15 }
  0xca   : > { %v1864_v62 = vpop.f32.mrf.mxu2 }
  0xcb   : > { %v1866_v63 = vpop.f32.mrf.mxu3  ;;  %915 = vst [vmem:[%s1728_s14 + $0x110] sm:$0xff] %v1864_v62 }
  0xcc   : > { %v495_v30 = vpop.f32.mrf.mxu0  ;;  %979 = vst [vmem:[%s1733_s17 + $0x110] sm:$0xff] %v1866_v63 }
  0xcd   : > { %v728_v31 = vpop.f32.mrf.mxu1  ;;  %884 = vst [vmem:[%s1728_s14 + $0x18] sm:$0xff] %v495_v30  ;;  %v1085_v32 = vmul.f32 %v495_v30, %v495_v30  ;;  %v1012_v34 = vadd.f32 %v1011_v21, %v495_v30  ;;  %v395_v30 = vpack.c.bf16 %v344_v29, %v343_v28 }
  0xce   : > { %v1293_v33 = vmul.f32 %v728_v31, %v728_v31  ;;  %v1220_v35 = vadd.f32 %v1219_v23, %v728_v31  ;;  %948 = vst [vmem:[%s1733_s17 + $0x18] sm:$0xff] %v728_v31 }
  0xcf   : > { %v1148_v38 = vadd.f32 %v1147_v25, %v1085_v32 }
  0xd0   : > { %v1356_v39 = vadd.f32 %v1355_v26, %v1293_v33 }
  0xd2   : > { %v1876_v11 = vpop.f32.mrf.mxu2 }
  0xd3   : > { %v1878_v12 = vpop.f32.mrf.mxu3  ;;  %916 = vst [vmem:[%s1728_s14 + $0x118] sm:$0xff] %v1876_v11 }
  0xd4   : > { %v498_v43 = vpop.f32.mrf.mxu0  ;;  %980 = vst [vmem:[%s1733_s17 + $0x118] sm:$0xff] %v1878_v12 }
  0xd5   : > { %v731_v44 = vpop.f32.mrf.mxu1  ;;  %885 = vst [vmem:[%s1728_s14 + $0x20] sm:$0xff] %v498_v43  ;;  %v1013_v45 = vadd.f32 %v1012_v34, %v498_v43  ;;  %v1086_v46 = vmul.f32 %v498_v43, %v498_v43  ;;  %v373_v43 = vld [vmem:[%s1723_s11 + $0x1b0] sm:$0xff] }
  0xd6   : > { %v1221_v47 = vadd.f32 %v1220_v35, %v731_v44  ;;  %v1294_v48 = vmul.f32 %v731_v44, %v731_v44  ;;  %949 = vst [vmem:[%s1733_s17 + $0x20] sm:$0xff] %v731_v44  ;;  %v374_v44 = vld [vmem:[%s1723_s11 + $0x1b8] sm:$0xff] }
  0xd7   : > { %v1149_v51 = vadd.f32 %v1148_v38, %v1086_v46  ;;  %537 = vmatmul.bf16.gmra.mxu0 %v393_v42  ;;  %617 = vmatmul.bf16.gmra.mxu2 %v409_v17 }
  0xd8   : > { %v1357_v52 = vadd.f32 %v1356_v39, %v1294_v48  ;;  %770 = vmatmul.bf16.gmra.mxu1 %v393_v42  ;;  %850 = vmatmul.bf16.gmra.mxu3 %v409_v17 }
  0xda   : > { %v1888_v24 = vpop.f32.mrf.mxu2 }
  0xdb   : > { %v1890_v25 = vpop.f32.mrf.mxu3  ;;  %917 = vst [vmem:[%s1728_s14 + $0x120] sm:$0xff] %v1888_v24 }
  0xdc   : > { %v500_v56 = vpop.f32.mrf.mxu0  ;;  %981 = vst [vmem:[%s1733_s17 + $0x120] sm:$0xff] %v1890_v25 }
  0xdd   : > { %v733_v57 = vpop.f32.mrf.mxu1  ;;  %886 = vst [vmem:[%s1728_s14 + $0x28] sm:$0xff] %v500_v56  ;;  %v1087_v58 = vmul.f32 %v500_v56, %v500_v56  ;;  %v1014_v60 = vadd.f32 %v1013_v45, %v500_v56  ;;  %v410_v45 = vpack.c.bf16 %v374_v44, %v373_v43  ;;  %v377_v43 = vld [vmem:[%s1723_s11 + $0x1d0] sm:$0xff]  ;;  %v378_v44 = vld [vmem:[%s1723_s11 + $0x1d8] sm:$0xff] }
  0xde   : > { %v1295_v59 = vmul.f32 %v733_v57, %v733_v57  ;;  %v1222_v61 = vadd.f32 %v1221_v47, %v733_v57  ;;  %950 = vst [vmem:[%s1733_s17 + $0x28] sm:$0xff] %v733_v57 }
  0xdf   : > { %v1150_v0 = vadd.f32 %v1149_v51, %v1087_v58  ;;  %v345_v58 = vld [vmem:[%s1723_s11 + $0xd0] sm:$0xff] }
  0xe0   : > { %v1358_v1 = vadd.f32 %v1357_v52, %v1295_v59  ;;  %v346_v59 = vld [vmem:[%s1723_s11 + $0xd8] sm:$0xff] }
  0xe2   : > { %v1900_v39 = vpop.f32.mrf.mxu2 }
  0xe3   : > { %v1902_v40 = vpop.f32.mrf.mxu3  ;;  %918 = vst [vmem:[%s1728_s14 + $0x128] sm:$0xff] %v1900_v39 }
  0xe4   : > { %v503_v5 = vpop.f32.mrf.mxu0  ;;  %982 = vst [vmem:[%s1733_s17 + $0x128] sm:$0xff] %v1902_v40 }
  0xe5   : > { %v736_v6 = vpop.f32.mrf.mxu1  ;;  %887 = vst [vmem:[%s1728_s14 + $0x30] sm:$0xff] %v503_v5  ;;  %v1015_v7 = vadd.f32 %v1014_v60, %v503_v5  ;;  %v1088_v8 = vmul.f32 %v503_v5, %v503_v5  ;;  %v396_v60 = vpack.c.bf16 %v346_v59, %v345_v58 }
  0xe6   : > { %v1223_v9 = vadd.f32 %v1222_v61, %v736_v6  ;;  %v1296_v10 = vmul.f32 %v736_v6, %v736_v6  ;;  %951 = vst [vmem:[%s1733_s17 + $0x30] sm:$0xff] %v736_v6 }
  0xe7   : > { %v1151_v13 = vadd.f32 %v1150_v0, %v1088_v8  ;;  %542 = vmatmul.bf16.gmra.mxu0 %v394_v4  ;;  %622 = vmatmul.bf16.gmra.mxu2 %v410_v45 }
  0xe8   : > { %v1359_v14 = vadd.f32 %v1358_v1, %v1296_v10  ;;  %775 = vmatmul.bf16.gmra.mxu1 %v394_v4  ;;  %855 = vmatmul.bf16.gmra.mxu3 %v410_v45  ;;  %v376_v10 = vld [vmem:[%s1723_s11 + $0x1c8] sm:$0xff]  ;;  %v412_v45 = vpack.c.bf16 %v378_v44, %v377_v43 }
  0xea   : > { %v1912_v54 = vpop.f32.mrf.mxu2 }
  0xeb   : > { %v1914_v55 = vpop.f32.mrf.mxu3  ;;  %919 = vst [vmem:[%s1728_s14 + $0x130] sm:$0xff] %v1912_v54 }
  0xec   : > { %v505_v18 = vpop.f32.mrf.mxu0  ;;  %983 = vst [vmem:[%s1733_s17 + $0x130] sm:$0xff] %v1914_v55 }
  0xed   : > { %v738_v19 = vpop.f32.mrf.mxu1  ;;  %888 = vst [vmem:[%s1728_s14 + $0x38] sm:$0xff] %v505_v18  ;;  %v1089_v20 = vmul.f32 %v505_v18, %v505_v18  ;;  %v1016_v22 = vadd.f32 %v1015_v7, %v505_v18 }
  0xee   : > { %v1297_v21 = vmul.f32 %v738_v19, %v738_v19  ;;  %v1224_v23 = vadd.f32 %v1223_v9, %v738_v19  ;;  %952 = vst [vmem:[%s1733_s17 + $0x38] sm:$0xff] %v738_v19  ;;  %v375_v9 = vld [vmem:[%s1723_s11 + $0x1c0] sm:$0xff] }
  0xef   : > { %v1152_v26 = vadd.f32 %v1151_v13, %v1089_v20  ;;  %v411_v13 = vpack.c.bf16 %v376_v10, %v375_v9 }
  0xf0   : > { %v1360_v27 = vadd.f32 %v1359_v14, %v1297_v21 }
  0xf2   : > { %v1924_v5 = vpop.f32.mrf.mxu2 }
  0xf3   : > { %v1926_v6 = vpop.f32.mrf.mxu3  ;;  %920 = vst [vmem:[%s1728_s14 + $0x138] sm:$0xff] %v1924_v5 }
  0xf4   : > { %v508_v31 = vpop.f32.mrf.mxu0  ;;  %984 = vst [vmem:[%s1733_s17 + $0x138] sm:$0xff] %v1926_v6 }
  0xf5   : > { %v741_v32 = vpop.f32.mrf.mxu1  ;;  %889 = vst [vmem:[%s1728_s14 + $0x40] sm:$0xff] %v508_v31  ;;  %v1017_v33 = vadd.f32 %v1016_v22, %v508_v31  ;;  %v1090_v34 = vmul.f32 %v508_v31, %v508_v31 }
  0xf6   : > { %v1225_v35 = vadd.f32 %v1224_v23, %v741_v32  ;;  %v1298_v38 = vmul.f32 %v741_v32, %v741_v32  ;;  %953 = vst [vmem:[%s1733_s17 + $0x40] sm:$0xff] %v741_v32 }
  0xf7   : > { %v1153_v41 = vadd.f32 %v1152_v26, %v1090_v34  ;;  %547 = vmatmul.bf16.gmra.mxu0 %v395_v30  ;;  %627 = vmatmul.bf16.gmra.mxu2 %v411_v13  ;;  %v347_v26 = vld [vmem:[%s1723_s11 + $0xe0] sm:$0xff] }
  0xf8   : > { %v1361_v42 = vadd.f32 %v1360_v27, %v1298_v38  ;;  %780 = vmatmul.bf16.gmra.mxu1 %v395_v30  ;;  %860 = vmatmul.bf16.gmra.mxu3 %v411_v13  ;;  %v348_v27 = vld [vmem:[%s1723_s11 + $0xe8] sm:$0xff] }
  0xf9   : > { %v397_v28 = vpack.c.bf16 %v348_v27, %v347_v26 }
  0xfa   : > { %v1936_v20 = vpop.f32.mrf.mxu2 }
  0xfb   : > { %v1938_v21 = vpop.f32.mrf.mxu3  ;;  %921 = vst [vmem:[%s1728_s14 + $0x140] sm:$0xff] %v1936_v20 }
  0xfc   : > { %v510_v46 = vpop.f32.mrf.mxu0  ;;  %985 = vst [vmem:[%s1733_s17 + $0x140] sm:$0xff] %v1938_v21 }
  0xfd   : > { %v743_v47 = vpop.f32.mrf.mxu1  ;;  %890 = vst [vmem:[%s1728_s14 + $0x48] sm:$0xff] %v510_v46  ;;  %v1018_v48 = vadd.f32 %v1017_v33, %v510_v46  ;;  %v1091_v51 = vmul.f32 %v510_v46, %v510_v46 }
  0xfe   : > { %v1226_v52 = vadd.f32 %v1225_v35, %v743_v47  ;;  %v1299_v53 = vmul.f32 %v743_v47, %v743_v47  ;;  %954 = vst [vmem:[%s1733_s17 + $0x48] sm:$0xff] %v743_v47 }
  0xff   : > { %v1154_v56 = vadd.f32 %v1153_v41, %v1091_v51 }
 0x100   : > { %v1362_v57 = vadd.f32 %v1361_v42, %v1299_v53 }
 0x102   : > { %v1948_v35 = vpop.f32.mrf.mxu2 }
 0x103   : > { %v1950_v38 = vpop.f32.mrf.mxu3  ;;  %922 = vst [vmem:[%s1728_s14 + $0x148] sm:$0xff] %v1948_v35 }
 0x104   : > { %v513_v61 = vpop.f32.mrf.mxu0  ;;  %986 = vst [vmem:[%s1733_s17 + $0x148] sm:$0xff] %v1950_v38 }
 0x105   : > { %v746_v0 = vpop.f32.mrf.mxu1  ;;  %891 = vst [vmem:[%s1728_s14 + $0x50] sm:$0xff] %v513_v61  ;;  %v1019_v1 = vadd.f32 %v1018_v48, %v513_v61  ;;  %v1092_v2 = vmul.f32 %v513_v61, %v513_v61  ;;  %v350_v61 = vld [vmem:[%s1723_s11 + $0xf8] sm:$0xff] }
 0x106   : > { %v1227_v3 = vadd.f32 %v1226_v52, %v746_v0  ;;  %v1300_v4 = vmul.f32 %v746_v0, %v746_v0  ;;  %955 = vst [vmem:[%s1733_s17 + $0x50] sm:$0xff] %v746_v0 }
 0x107   : > { %v1155_v7 = vadd.f32 %v1154_v56, %v1092_v2  ;;  %552 = vmatmul.bf16.gmra.mxu0 %v396_v60  ;;  %632 = vmatmul.bf16.gmra.mxu2 %v412_v45 }
 0x108   : > { %v1363_v8 = vadd.f32 %v1362_v57, %v1300_v4  ;;  %785 = vmatmul.bf16.gmra.mxu1 %v396_v60  ;;  %865 = vmatmul.bf16.gmra.mxu3 %v412_v45  ;;  %v349_v60 = vld [vmem:[%s1723_s11 + $0xf0] sm:$0xff] }
 0x109   : > { %v398_v0 = vpack.c.bf16 %v350_v61, %v349_v60 }
 0x10a   : > { %v1960_v56 = vpop.f32.mrf.mxu2 }
 0x10b   : > { %v1962_v57 = vpop.f32.mrf.mxu3  ;;  %923 = vst [vmem:[%s1728_s14 + $0x150] sm:$0xff] %v1960_v56 }
 0x10c   : > { %v515_v14 = vpop.f32.mrf.mxu0  ;;  %987 = vst [vmem:[%s1733_s17 + $0x150] sm:$0xff] %v1962_v57 }
 0x10d   : > { %v748_v15 = vpop.f32.mrf.mxu1  ;;  %892 = vst [vmem:[%s1728_s14 + $0x58] sm:$0xff] %v515_v14  ;;  %v1020_v16 = vadd.f32 %v1019_v1, %v515_v14  ;;  %v1093_v17 = vmul.f32 %v515_v14, %v515_v14 }
 0x10e   : > { %v1228_v18 = vadd.f32 %v1227_v3, %v748_v15  ;;  %v1301_v19 = vmul.f32 %v748_v15, %v748_v15  ;;  %956 = vst [vmem:[%s1733_s17 + $0x58] sm:$0xff] %v748_v15  ;;  %v379_v15 = vld [vmem:[%s1723_s11 + $0x1e0] sm:$0xff] }
 0x10f   : > { %v1156_v22 = vadd.f32 %v1155_v7, %v1093_v17 }
 0x110   : > { %v1364_v23 = vadd.f32 %v1363_v8, %v1301_v19 }
 0x112   : > { %v1972_v9 = vpop.f32.mrf.mxu2 }
 0x113   : > { %v1974_v10 = vpop.f32.mrf.mxu3  ;;  %924 = vst [vmem:[%s1728_s14 + $0x158] sm:$0xff] %v1972_v9 }
 0x114   : > { %v518_v29 = vpop.f32.mrf.mxu0  ;;  %988 = vst [vmem:[%s1733_s17 + $0x158] sm:$0xff] %v1974_v10 }
 0x115   : > { %v751_v30 = vpop.f32.mrf.mxu1  ;;  %893 = vst [vmem:[%s1728_s14 + $0x60] sm:$0xff] %v518_v29  ;;  %v1021_v31 = vadd.f32 %v1020_v16, %v518_v29  ;;  %v1094_v32 = vmul.f32 %v518_v29, %v518_v29  ;;  %v380_v16 = vld [vmem:[%s1723_s11 + $0x1e8] sm:$0xff] }
 0x116   : > { %v1229_v33 = vadd.f32 %v1228_v18, %v751_v30  ;;  %v1302_v34 = vmul.f32 %v751_v30, %v751_v30  ;;  %957 = vst [vmem:[%s1733_s17 + $0x60] sm:$0xff] %v751_v30  ;;  %v413_v17 = vpack.c.bf16 %v380_v16, %v379_v15 }
 0x117   : > { %v1157_v41 = vadd.f32 %v1156_v22, %v1094_v32  ;;  %557 = vmatmul.bf16.gmra.mxu0 %v397_v28 }
 0x118   : > { %v1365_v42 = vadd.f32 %v1364_v23, %v1302_v34  ;;  %790 = vmatmul.bf16.gmra.mxu1 %v397_v28  ;;  %637 = vmatmul.bf16.gmra.mxu2 %v413_v17 }
 0x119   : > { %870 = vmatmul.bf16.gmra.mxu3 %v413_v17 }
 0x11a   : > { %v1984_v28 = vpop.f32.mrf.mxu2 }
 0x11b   : > { %v1986_v29 = vpop.f32.mrf.mxu3  ;;  %925 = vst [vmem:[%s1728_s14 + $0x160] sm:$0xff] %v1984_v28 }
 0x11c   : > { %v520_v46 = vpop.f32.mrf.mxu0  ;;  %989 = vst [vmem:[%s1733_s17 + $0x160] sm:$0xff] %v1986_v29 }
 0x11d   : > { %v753_v47 = vpop.f32.mrf.mxu1  ;;  %894 = vst [vmem:[%s1728_s14 + $0x68] sm:$0xff] %v520_v46  ;;  %v1022_v48 = vadd.f32 %v1021_v31, %v520_v46  ;;  %v1095_v51 = vmul.f32 %v520_v46, %v520_v46 }
 0x11e   : > { %v1230_v52 = vadd.f32 %v1229_v33, %v753_v47  ;;  %v1303_v53 = vmul.f32 %v753_v47, %v753_v47  ;;  %958 = vst [vmem:[%s1733_s17 + $0x68] sm:$0xff] %v753_v47 }
 0x11f   : > { %v1158_v58 = vadd.f32 %v1157_v41, %v1095_v51  ;;  %v382_v51 = vld [vmem:[%s1723_s11 + $0x1f8] sm:$0xff] }
 0x120   : > { %v1366_v59 = vadd.f32 %v1365_v42, %v1303_v53 }
 0x122   : > { %v1994_v44 = vpop.f32.mrf.mxu2 }
 0x123   : > { %v1996_v45 = vpop.f32.mrf.mxu3  ;;  %926 = vst [vmem:[%s1728_s14 + $0x168] sm:$0xff] %v1994_v44 }
 0x124   : > { %v523_v1 = vpop.f32.mrf.mxu0  ;;  %990 = vst [vmem:[%s1733_s17 + $0x168] sm:$0xff] %v1996_v45 }
 0x125   : > { %v756_v2 = vpop.f32.mrf.mxu1  ;;  %895 = vst [vmem:[%s1728_s14 + $0x70] sm:$0xff] %v523_v1  ;;  %v1023_v3 = vadd.f32 %v1022_v48, %v523_v1  ;;  %v1096_v4 = vmul.f32 %v523_v1, %v523_v1  ;;  %v381_v48 = vld [vmem:[%s1723_s11 + $0x1f0] sm:$0xff] }
 0x126   : > { %v1231_v7 = vadd.f32 %v1230_v52, %v756_v2  ;;  %v1304_v8 = vmul.f32 %v756_v2, %v756_v2  ;;  %959 = vst [vmem:[%s1733_s17 + $0x70] sm:$0xff] %v756_v2  ;;  %v414_v52 = vpack.c.bf16 %v382_v51, %v381_v48 }
 0x127   : > { %v1159_v13 = vadd.f32 %v1158_v58, %v1096_v4  ;;  %562 = vmatmul.bf16.gmra.mxu0 %v398_v0 }
 0x128   : > { %v1367_v14 = vadd.f32 %v1366_v59, %v1304_v8  ;;  %795 = vmatmul.bf16.gmra.mxu1 %v398_v0  ;;  %642 = vmatmul.bf16.gmra.mxu2 %v414_v52 }
 0x129   : > { %875 = vmatmul.bf16.gmra.mxu3 %v414_v52 }
 0x12a   : > { %v2006_v1 = vpop.f32.mrf.mxu2 }
 0x12b   : > { %v2008_v2 = vpop.f32.mrf.mxu3  ;;  %927 = vst [vmem:[%s1728_s14 + $0x170] sm:$0xff] %v2006_v1 }
 0x12c   : > { %v525_v18 = vpop.f32.mrf.mxu0  ;;  %991 = vst [vmem:[%s1733_s17 + $0x170] sm:$0xff] %v2008_v2 }
 0x12d   : > { %v758_v19 = vpop.f32.mrf.mxu1  ;;  %896 = vst [vmem:[%s1728_s14 + $0x78] sm:$0xff] %v525_v18  ;;  %v1024_v22 = vadd.f32 %v1023_v3, %v525_v18  ;;  %v1097_v23 = vmul.f32 %v525_v18, %v525_v18 }
 0x12e   : > { %v1232_v26 = vadd.f32 %v1231_v7, %v758_v19  ;;  %v1305_v27 = vmul.f32 %v758_v19, %v758_v19  ;;  %960 = vst [vmem:[%s1733_s17 + $0x78] sm:$0xff] %v758_v19 }
 0x12f   : > { %v1160_v30 = vadd.f32 %v1159_v13, %v1097_v23 }
 0x130   : > { %v1368_v31 = vadd.f32 %v1367_v14, %v1305_v27 }
 0x132   : > { %v2016_v17 = vpop.f32.mrf.mxu2 }
 0x133   : > { %v2018_v18 = vpop.f32.mrf.mxu3  ;;  %928 = vst [vmem:[%s1728_s14 + $0x178] sm:$0xff] %v2016_v17 }
 0x134   : > { %v528_v32 = vpop.f32.mrf.mxu0  ;;  %992 = vst [vmem:[%s1733_s17 + $0x178] sm:$0xff] %v2018_v18 }
 0x135   : > { %v761_v33 = vpop.f32.mrf.mxu1  ;;  %897 = vst [vmem:[%s1728_s14 + $0x80] sm:$0xff] %v528_v32  ;;  %v1025_v34 = vadd.f32 %v1024_v22, %v528_v32  ;;  %v1098_v41 = vmul.f32 %v528_v32, %v528_v32 }
 0x136   : > { %v1233_v42 = vadd.f32 %v1232_v26, %v761_v33  ;;  %v1306_v43 = vmul.f32 %v761_v33, %v761_v33  ;;  %961 = vst [vmem:[%s1733_s17 + $0x80] sm:$0xff] %v761_v33 }
 0x137   : > { %v1161_v46 = vadd.f32 %v1160_v30, %v1098_v41 }
 0x138   : > { %v1369_v47 = vadd.f32 %v1368_v31, %v1306_v43 }
 0x13a   : > { %v2026_v33 = vpop.f32.mrf.mxu2 }
 0x13b   : > { %2555 = vst [vmem:[#allocation2_spill] sm:$0xff] %v2026_v33 }
 0x13c   : > { %v530_v53 = vpop.f32.mrf.mxu0  ;;  %929 = vst [vmem:[%s1728_s14 + $0x180] sm:$0xff] %v2026_v33 }
 0x13d   : > { %v763_v58 = vpop.f32.mrf.mxu1  ;;  %898 = vst [vmem:[%s1728_s14 + $0x88] sm:$0xff] %v530_v53  ;;  %v1026_v59 = vadd.f32 %v1025_v34, %v530_v53  ;;  %v1099_v60 = vmul.f32 %v530_v53, %v530_v53  ;;  %v2028_v34 = vpop.f32.mrf.mxu3 }
 0x13e   : > { %v1234_v61 = vadd.f32 %v1233_v42, %v763_v58  ;;  %v1307_v0 = vmul.f32 %v763_v58, %v763_v58  ;;  %962 = vst [vmem:[%s1733_s17 + $0x88] sm:$0xff] %v763_v58 }
 0x13f   : > { %v1162_v3 = vadd.f32 %v1161_v46, %v1099_v60  ;;  %2556 = vst [vmem:[#allocation3_spill] sm:$0xff] %v2028_v34 }
 0x140   : > { %v1370_v4 = vadd.f32 %v1369_v47, %v1307_v0  ;;  %993 = vst [vmem:[%s1733_s17 + $0x180] sm:$0xff] %v2028_v34 }
 0x142   : > { %v2040_v53 = vpop.f32.mrf.mxu2 }
 0x143   : > { %2557 = vst [vmem:[#allocation4_spill] sm:$0xff] %v2040_v53 }
 0x144   : > { %v533_v7 = vpop.f32.mrf.mxu0  ;;  %930 = vst [vmem:[%s1728_s14 + $0x188] sm:$0xff] %v2040_v53 }
 0x145   : > { %v766_v8 = vpop.f32.mrf.mxu1  ;;  %899 = vst [vmem:[%s1728_s14 + $0x90] sm:$0xff] %v533_v7  ;;  %v1027_v13 = vadd.f32 %v1026_v59, %v533_v7  ;;  %v1100_v14 = vmul.f32 %v533_v7, %v533_v7  ;;  %v2042_v58 = vpop.f32.mrf.mxu3 }
 0x146   : > { %v1235_v15 = vadd.f32 %v1234_v61, %v766_v8  ;;  %v1308_v16 = vmul.f32 %v766_v8, %v766_v8  ;;  %963 = vst [vmem:[%s1733_s17 + $0x90] sm:$0xff] %v766_v8 }
 0x147   : > { %v1163_v19 = vadd.f32 %v1162_v3, %v1100_v14  ;;  %2558 = vst [vmem:[#allocation5_spill] sm:$0xff] %v2042_v58 }
 0x148   : > { %v1371_v22 = vadd.f32 %v1370_v4, %v1308_v16  ;;  %994 = vst [vmem:[%s1733_s17 + $0x188] sm:$0xff] %v2042_v58 }
 0x14a   : > { %v2059_v3 = vpop.f32.mrf.mxu2 }
 0x14b   : > { %2559 = vst [vmem:[#allocation6_spill] sm:$0xff] %v2059_v3 }
 0x14c   : > { %v535_v23 = vpop.f32.mrf.mxu0  ;;  %931 = vst [vmem:[%s1728_s14 + $0x190] sm:$0xff] %v2059_v3 }
 0x14d   : > { %v768_v26 = vpop.f32.mrf.mxu1  ;;  %900 = vst [vmem:[%s1728_s14 + $0x98] sm:$0xff] %v535_v23  ;;  %v1028_v27 = vadd.f32 %v1027_v13, %v535_v23  ;;  %v1101_v30 = vmul.f32 %v535_v23, %v535_v23  ;;  %v2061_v4 = vpop.f32.mrf.mxu3 }
 0x14e   : > { %v1236_v31 = vadd.f32 %v1235_v15, %v768_v26  ;;  %v1309_v32 = vmul.f32 %v768_v26, %v768_v26  ;;  %964 = vst [vmem:[%s1733_s17 + $0x98] sm:$0xff] %v768_v26 }
 0x14f   : > { %v1164_v41 = vadd.f32 %v1163_v19, %v1101_v30  ;;  %2560 = vst [vmem:[#allocation7_spill] sm:$0xff] %v2061_v4 }
 0x150   : > { %v1372_v42 = vadd.f32 %v1371_v22, %v1309_v32  ;;  %995 = vst [vmem:[%s1733_s17 + $0x190] sm:$0xff] %v2061_v4 }
 0x152   : > { %v2075_v13 = vpop.f32.mrf.mxu2 }
 0x153   : > { %2561 = vst [vmem:[#allocation8_spill] sm:$0xff] %v2075_v13 }
 0x154   : > { %v538_v43 = vpop.f32.mrf.mxu0  ;;  %932 = vst [vmem:[%s1728_s14 + $0x198] sm:$0xff] %v2075_v13 }
 0x155   : > { %v771_v46 = vpop.f32.mrf.mxu1  ;;  %901 = vst [vmem:[%s1728_s14 + $0xa0] sm:$0xff] %v538_v43  ;;  %v2036_v47 = vadd.f32 %v1028_v27, %v538_v43  ;;  %v1102_v48 = vmul.f32 %v538_v43, %v538_v43  ;;  %v2077_v14 = vpop.f32.mrf.mxu3 }
 0x156   : > { %v2038_v51 = vadd.f32 %v1236_v31, %v771_v46  ;;  %v1310_v52 = vmul.f32 %v771_v46, %v771_v46  ;;  %965 = vst [vmem:[%s1733_s17 + $0xa0] sm:$0xff] %v771_v46 }
 0x157   : > { %v2045_v59 = vadd.f32 %v1164_v41, %v1102_v48  ;;  %2562 = vst [vmem:[#allocation9_spill] sm:$0xff] %v2077_v14 }
 0x158   : > { %v2047_v60 = vadd.f32 %v1372_v42, %v1310_v52  ;;  %996 = vst [vmem:[%s1733_s17 + $0x198] sm:$0xff] %v2077_v14 }
 0x15a   : > { %v2091_v19 = vpop.f32.mrf.mxu2 }
 0x15b   : > { %2563 = vst [vmem:[#allocation10_spill] sm:$0xff] %v2091_v19 }
 0x15c   : > { %v2053_v61 = vpop.f32.mrf.mxu0  ;;  %933 = vst [vmem:[%s1728_s14 + $0x1a0] sm:$0xff] %v2091_v19 }
 0x15d   : > { %v2055_v0 = vpop.f32.mrf.mxu1  ;;  %902 = vst [vmem:[%s1728_s14 + $0xa8] sm:$0xff] %v2053_v61  ;;  %v2093_v22 = vpop.f32.mrf.mxu3  ;;  %v1103_v14 = vmul.f32 %v2053_v61, %v2053_v61  ;;  %v1030_v4 = vadd.f32 %v2036_v47, %v2053_v61 }
 0x15e   : > { %966 = vst [vmem:[%s1733_s17 + $0xa8] sm:$0xff] %v2055_v0  ;;  %v1311_v13 = vmul.f32 %v2055_v0, %v2055_v0  ;;  %v1238_v3 = vadd.f32 %v2038_v51, %v2055_v0 }
 0x15f   : > { %2564 = vst [vmem:[#allocation11_spill] sm:$0xff] %v2093_v22  ;;  %v1166_v58 = vadd.f32 %v2045_v59, %v1103_v14 }
 0x160   : > { %997 = vst [vmem:[%s1733_s17 + $0x1a0] sm:$0xff] %v2093_v22  ;;  %v1374_v53 = vadd.f32 %v2047_v60, %v1311_v13 }
 0x162   : > { %v2107_v27 = vpop.f32.mrf.mxu2 }
 0x163   : > { %2565 = vst [vmem:[#allocation12_spill] sm:$0xff] %v2107_v27 }
 0x164   : > { %v2069_v7 = vpop.f32.mrf.mxu0  ;;  %934 = vst [vmem:[%s1728_s14 + $0x1a8] sm:$0xff] %v2107_v27 }
 0x165   : > { %v2071_v8 = vpop.f32.mrf.mxu1  ;;  %903 = vst [vmem:[%s1728_s14 + $0xb0] sm:$0xff] %v2069_v7  ;;  %v2109_v30 = vpop.f32.mrf.mxu3  ;;  %v1031_v33 = vadd.f32 %v1030_v4, %v2069_v7 }
 0x166   : > { %967 = vst [vmem:[%s1733_s17 + $0xb0] sm:$0xff] %v2071_v8 }
 0x167   : > { %2566 = vst [vmem:[#allocation13_spill] sm:$0xff] %v2109_v30 }
 0x168   : > { %998 = vst [vmem:[%s1733_s17 + $0x1a8] sm:$0xff] %v2109_v30 }
 0x16a   : > { %v2123_v41 = vpop.f32.mrf.mxu2 }
 0x16b   : > { %2567 = vst [vmem:[#allocation14_spill] sm:$0xff] %v2123_v41 }
 0x16c   : > { %v2085_v15 = vpop.f32.mrf.mxu0  ;;  %935 = vst [vmem:[%s1728_s14 + $0x1b0] sm:$0xff] %v2123_v41 }
 0x16d   : > { %v2087_v16 = vpop.f32.mrf.mxu1  ;;  %904 = vst [vmem:[%s1728_s14 + $0xb8] sm:$0xff] %v2085_v15  ;;  %v2125_v42 = vpop.f32.mrf.mxu3  ;;  %v1032_v13 = vadd.f32 %v1031_v33, %v2085_v15 }
 0x16e   : > { %968 = vst [vmem:[%s1733_s17 + $0xb8] sm:$0xff] %v2087_v16  ;;  %v1313_v34 = vmul.f32 %v2087_v16, %v2087_v16 }
 0x16f   : > { %2568 = vst [vmem:[#allocation15_spill] sm:$0xff] %v2125_v42 }
 0x170   : > { %999 = vst [vmem:[%s1733_s17 + $0x1b0] sm:$0xff] %v2125_v42 }
 0x172   : > { %v2139_v48 = vpop.f32.mrf.mxu2 }
 0x173   : > { %2569 = vst [vmem:[#allocation16_spill] sm:$0xff] %v2139_v48 }
 0x174   : > { %v2101_v23 = vpop.f32.mrf.mxu0  ;;  %936 = vst [vmem:[%s1728_s14 + $0x1b8] sm:$0xff] %v2139_v48 }
 0x175   : > { %v2103_v26 = vpop.f32.mrf.mxu1  ;;  %905 = vst [vmem:[%s1728_s14 + $0xc0] sm:$0xff] %v2101_v23  ;;  %v2141_v52 = vpop.f32.mrf.mxu3  ;;  %v1106_v51 = vmul.f32 %v2101_v23, %v2101_v23 }
 0x176   : > { %969 = vst [vmem:[%s1733_s17 + $0xc0] sm:$0xff] %v2103_v26  ;;  %v1314_v59 = vmul.f32 %v2103_v26, %v2103_v26 }
 0x177   : > { %2570 = vst [vmem:[#allocation17_spill] sm:$0xff] %v2141_v52 }
 0x178   : > { %1000 = vst [vmem:[%s1733_s17 + $0x1b8] sm:$0xff] %v2141_v52 }
 0x17a   : > { %v2155_v30 = vpop.f32.mrf.mxu2 }
 0x17b   : > { %2571 = vst [vmem:[#allocation18_spill] sm:$0xff] %v2155_v30 }
 0x17c   : > { %v2117_v31 = vpop.f32.mrf.mxu0  ;;  %937 = vst [vmem:[%s1728_s14 + $0x1c0] sm:$0xff] %v2155_v30  ;;  %v1312_v30 = vmul.f32 %v2071_v8, %v2071_v8 }
 0x17d   : > { %v2119_v32 = vpop.f32.mrf.mxu1  ;;  %906 = vst [vmem:[%s1728_s14 + $0xc8] sm:$0xff] %v2117_v31  ;;  %v2157_v27 = vpop.f32.mrf.mxu3 }
 0x17e   : > { %970 = vst [vmem:[%s1733_s17 + $0xc8] sm:$0xff] %v2119_v32  ;;  %v1375_v61 = vadd.f32 %v1374_v53, %v1312_v30 }
 0x17f   : > { %2572 = vst [vmem:[#allocation19_spill] sm:$0xff] %v2157_v27 }
 0x180   : > { %1001 = vst [vmem:[%s1733_s17 + $0x1c0] sm:$0xff] %v2157_v27  ;;  %v1104_v27 = vmul.f32 %v2069_v7, %v2069_v7  ;;  %v1107_v7 = vmul.f32 %v2117_v31, %v2117_v31 }
 0x182   : > { %v2171_v22 = vpop.f32.mrf.mxu2  ;;  %v1167_v47 = vadd.f32 %v1166_v58, %v1104_v27  ;;  %v1376_v58 = vadd.f32 %v1375_v61, %v1313_v34  ;;  %v1033_v27 = vadd.f32 %v1032_v13, %v2101_v23 }
 0x183   : > { %2573 = vst [vmem:[#allocation20_spill] sm:$0xff] %v2171_v22 }
 0x184   : > { %v2133_v43 = vpop.f32.mrf.mxu0  ;;  %938 = vst [vmem:[%s1728_s14 + $0x1c8] sm:$0xff] %v2171_v22  ;;  %v1105_v22 = vmul.f32 %v2085_v15, %v2085_v15 }
 0x185   : > { %v2135_v46 = vpop.f32.mrf.mxu1  ;;  %907 = vst [vmem:[%s1728_s14 + $0xd0] sm:$0xff] %v2133_v43  ;;  %v2173_v19 = vpop.f32.mrf.mxu3 }
 0x186   : > { %971 = vst [vmem:[%s1733_s17 + $0xd0] sm:$0xff] %v2135_v46  ;;  %v1168_v53 = vadd.f32 %v1167_v47, %v1105_v22  ;;  %v1316_v34 = vmul.f32 %v2135_v46, %v2135_v46  ;;  %v1034_v22 = vadd.f32 %v1033_v27, %v2117_v31 }
 0x187   : > { %2574 = vst [vmem:[#allocation21_spill] sm:$0xff] %v2173_v19 }
 0x188   : > { %1002 = vst [vmem:[%s1733_s17 + $0x1c8] sm:$0xff] %v2173_v19  ;;  %v1239_v19 = vadd.f32 %v1238_v3, %v2071_v8  ;;  %v1315_v8 = vmul.f32 %v2119_v32, %v2119_v32  ;;  %v1169_v15 = vadd.f32 %v1168_v53, %v1106_v51  ;;  %v1035_v51 = vadd.f32 %v1034_v22, %v2133_v43 }
 0x18a   : > { %v1240_v14 = vadd.f32 %v1239_v19, %v2087_v16  ;;  %v2208_v4 = vpop.f32.mrf.mxu2  ;;  %v1377_v16 = vadd.f32 %v1376_v58, %v1314_v59  ;;  %v1108_v19 = vmul.f32 %v2133_v43, %v2133_v43  ;;  %v1170_v23 = vadd.f32 %v1169_v15, %v1107_v7 }
 0x18b   : > { %939 = vst [vmem:[%s1728_s14 + $0x1d0] sm:$0xff] %v2208_v4 }
 0x18c   : > { %v2149_v42 = vpop.f32.mrf.mxu0  ;;  %v1241_v33 = vadd.f32 %v1240_v14, %v2103_v26  ;;  %v1378_v47 = vadd.f32 %v1377_v16, %v1315_v8  ;;  %v1171_v13 = vadd.f32 %v1170_v23, %v1108_v19 }
 0x18d   : > { %v2151_v41 = vpop.f32.mrf.mxu1  ;;  %908 = vst [vmem:[%s1728_s14 + $0xd8] sm:$0xff] %v2149_v42  ;;  %v2210_v3 = vpop.f32.mrf.mxu3  ;;  %v1109_v26 = vmul.f32 %v2149_v42, %v2149_v42  ;;  %v1036_v7 = vadd.f32 %v1035_v51, %v2149_v42 }
 0x18e   : > { %972 = vst [vmem:[%s1733_s17 + $0xd8] sm:$0xff] %v2151_v41  ;;  %v1242_v30 = vadd.f32 %v1241_v33, %v2119_v32  ;;  %v1317_v61 = vmul.f32 %v2151_v41, %v2151_v41  ;;  %v1379_v14 = vadd.f32 %v1378_v47, %v1316_v34 }
 0x18f   : > { %1003 = vst [vmem:[%s1733_s17 + $0x1d0] sm:$0xff] %v2210_v3  ;;  %v1172_v27 = vadd.f32 %v1171_v13, %v1109_v26 }
 0x190   : > { %v1243_v59 = vadd.f32 %v1242_v30, %v2135_v46  ;;  %v1380_v33 = vadd.f32 %v1379_v14, %v1317_v61 }
 0x192   : > { %v1244_v8 = vadd.f32 %v1243_v59, %v2151_v41  ;;  %v2242_v43 = vpop.f32.mrf.mxu2 }
 0x193   : > { %940 = vst [vmem:[%s1728_s14 + $0x1d8] sm:$0xff] %v2242_v43 }
 0x194   : > { %v2165_v52 = vpop.f32.mrf.mxu0 }
 0x195   : > { %v2167_v48 = vpop.f32.mrf.mxu1  ;;  %909 = vst [vmem:[%s1728_s14 + $0xe0] sm:$0xff] %v2165_v52  ;;  %v1110_v31 = vmul.f32 %v2165_v52, %v2165_v52  ;;  %v2244_v46 = vpop.f32.mrf.mxu3  ;;  %v1037_v19 = vadd.f32 %v1036_v7, %v2165_v52 }
 0x196   : > { %973 = vst [vmem:[%s1733_s17 + $0xe0] sm:$0xff] %v2167_v48  ;;  %v1318_v32 = vmul.f32 %v2167_v48, %v2167_v48  ;;  %v1245_v34 = vadd.f32 %v1244_v8, %v2167_v48 }
 0x197   : > { %v1173_v42 = vadd.f32 %v1172_v27, %v1110_v31  ;;  %1004 = vst [vmem:[%s1733_s17 + $0x1d8] sm:$0xff] %v2244_v46 }
 0x198   : > { %v1381_v41 = vadd.f32 %v1380_v33, %v1318_v32 }
 0x19b   : > { %v2254_v27 = vpop.f32.mrf.mxu2 }
 0x19c   : > { %v560_v60 = vpop.f32.mrf.mxu0  ;;  %941 = vst [vmem:[%s1728_s14 + $0x1e0] sm:$0xff] %v2254_v27 }
 0x19d   : > { %v793_v0 = vpop.f32.mrf.mxu1  ;;  %910 = vst [vmem:[%s1728_s14 + $0xe8] sm:$0xff] %v560_v60  ;;  %v1111_v15 = vmul.f32 %v560_v60, %v560_v60  ;;  %v1038_v23 = vadd.f32 %v1037_v19, %v560_v60  ;;  %v2256_v60 = vpop.f32.mrf.mxu3  ;;  %v1115_v19 = vmul.f32 %v1852_v49, %v1852_v49 }
 0x19e   : > { %974 = vst [vmem:[%s1733_s17 + $0xe8] sm:$0xff] %v793_v0  ;;  %v1319_v16 = vmul.f32 %v793_v0, %v793_v0  ;;  %v1246_v47 = vadd.f32 %v1245_v34, %v793_v0  ;;  %v1114_v0 = vmul.f32 %v1840_v36, %v1840_v36  ;;  %v1323_v34 = vmul.f32 %v1854_v50, %v1854_v50 }
 0x19f   : > { %v1174_v26 = vadd.f32 %v1173_v42, %v1111_v15  ;;  %1005 = vst [vmem:[%s1733_s17 + $0x1e0] sm:$0xff] %v2256_v60 }
 0x1a0   : > { %v1382_v61 = vadd.f32 %v1381_v41, %v1319_v16 }
 0x1a4   : > { %v563_v53 = vpop.f32.mrf.mxu0 }
 0x1a5   : > { %v796_v58 = vpop.f32.mrf.mxu1  ;;  %911 = vst [vmem:[%s1728_s14 + $0xf0] sm:$0xff] %v563_v53  ;;  %v1112_v22 = vmul.f32 %v563_v53, %v563_v53  ;;  %v1039_v51 = vadd.f32 %v1038_v23, %v563_v53  ;;  %v1322_v53 = vmul.f32 %v1842_v37, %v1842_v37 }
 0x1a6   : > { %975 = vst [vmem:[%s1733_s17 + $0xf0] sm:$0xff] %v796_v58  ;;  %v1320_v30 = vmul.f32 %v796_v58, %v796_v58  ;;  %v1247_v59 = vadd.f32 %v1246_v47, %v796_v58 }
 0x1a7   : > { %v1175_v13 = vadd.f32 %v1174_v26, %v1112_v22 }
 0x1a8   : > { %v1383_v52 = vadd.f32 %v1382_v61, %v1320_v30  ;;  %v1324_v30 = vmul.f32 %v1866_v63, %v1866_v63 }
 0x1ac   : > { %v565_v14 = vpop.f32.mrf.mxu0 }
 0x1ad   : > { %v798_v48 = vpop.f32.mrf.mxu1  ;;  %912 = vst [vmem:[%s1728_s14 + $0xf8] sm:$0xff] %v565_v14  ;;  %v1040_v7 = vadd.f32 %v1039_v51, %v565_v14  ;;  %v1113_v31 = vmul.f32 %v565_v14, %v565_v14  ;;  %v2287_v14 = vpop.f32.mrf.mxu2 }
 0x1ae   : > { %v1248_v32 = vadd.f32 %v1247_v59, %v798_v48  ;;  %v1321_v8 = vmul.f32 %v798_v48, %v798_v48  ;;  %976 = vst [vmem:[%s1733_s17 + $0xf8] sm:$0xff] %v798_v48  ;;  %v1326_v48 = vmul.f32 %v1890_v25, %v1890_v25 }
 0x1af   : > { %v1041_v58 = vadd.f32 %v1040_v7, %v1840_v36  ;;  %v1176_v33 = vadd.f32 %v1175_v13, %v1113_v31  ;;  %942 = vst [vmem:[%s1728_s14 + $0x1e8] sm:$0xff] %v2287_v14 }
 0x1b0   : > { %v1249_v15 = vadd.f32 %v1248_v32, %v1842_v37  ;;  %v1384_v16 = vadd.f32 %v1383_v52, %v1321_v8  ;;  %v1116_v37 = vmul.f32 %v1864_v62, %v1864_v62  ;;  %v1327_v8 = vmul.f32 %v1902_v40, %v1902_v40 }
 0x1b1   : > { %v1042_v42 = vadd.f32 %v1041_v58, %v1852_v49  ;;  %v1177_v41 = vadd.f32 %v1176_v33, %v1114_v0  ;;  %v1117_v49 = vmul.f32 %v1876_v11, %v1876_v11 }
 0x1b2   : > { %v1250_v22 = vadd.f32 %v1249_v15, %v1854_v50  ;;  %v1385_v36 = vadd.f32 %v1384_v16, %v1322_v53  ;;  %v1325_v50 = vmul.f32 %v1878_v12, %v1878_v12 }
 0x1b3   : > { %v1043_v23 = vadd.f32 %v1042_v42, %v1864_v62  ;;  %v1178_v47 = vadd.f32 %v1177_v41, %v1115_v19  ;;  %v2289_v62 = vpop.f32.mrf.mxu3 }
 0x1b4   : > { %v1251_v26 = vadd.f32 %v1250_v22, %v1866_v63  ;;  %v1386_v61 = vadd.f32 %v1385_v36, %v1323_v34  ;;  %v1118_v63 = vmul.f32 %v1888_v24, %v1888_v24  ;;  %1006 = vst [vmem:[%s1733_s17 + $0x1e8] sm:$0xff] %v2289_v62 }
 0x1b5   : > { %v1044_v51 = vadd.f32 %v1043_v23, %v1876_v11  ;;  %v1179_v59 = vadd.f32 %v1178_v47, %v1116_v37  ;;  %v2319_v37 = vpop.f32.mrf.mxu2 }
 0x1b6   : > { %v1252_v13 = vadd.f32 %v1251_v26, %v1878_v12  ;;  %v1387_v52 = vadd.f32 %v1386_v61, %v1324_v30  ;;  %v1119_v12 = vmul.f32 %v1900_v39, %v1900_v39  ;;  %v1330_v30 = vmul.f32 %v1938_v21, %v1938_v21  ;;  %943 = vst [vmem:[%s1728_s14 + $0x1f0] sm:$0xff] %v2319_v37 }
 0x1b7   : > { %v1045_v7 = vadd.f32 %v1044_v51, %v1888_v24  ;;  %v1180_v31 = vadd.f32 %v1179_v59, %v1117_v49  ;;  %v1120_v24 = vmul.f32 %v1912_v54, %v1912_v54  ;;  %v1331_v61 = vmul.f32 %v1950_v38, %v1950_v38 }
 0x1b8   : > { %v1253_v11 = vadd.f32 %v1252_v13, %v1890_v25  ;;  %v1388_v32 = vadd.f32 %v1387_v52, %v1325_v50  ;;  %v1328_v25 = vmul.f32 %v1914_v55, %v1914_v55 }
 0x1b9   : > { %v1046_v0 = vadd.f32 %v1045_v7, %v1900_v39  ;;  %v1181_v53 = vadd.f32 %v1180_v31, %v1118_v63  ;;  %v1121_v39 = vmul.f32 %v1924_v5, %v1924_v5 }
 0x1ba   : > { %v1254_v58 = vadd.f32 %v1253_v11, %v1902_v40  ;;  %v1389_v33 = vadd.f32 %v1388_v32, %v1326_v48  ;;  %v1329_v40 = vmul.f32 %v1926_v6, %v1926_v6 }
 0x1bb   : > { %v1047_v15 = vadd.f32 %v1046_v0, %v1912_v54  ;;  %v1182_v16 = vadd.f32 %v1181_v53, %v1119_v12  ;;  %v2321_v54 = vpop.f32.mrf.mxu3 }
 0x1bc   : > { %v1255_v19 = vadd.f32 %v1254_v58, %v1914_v55  ;;  %v1390_v34 = vadd.f32 %v1389_v33, %v1327_v8  ;;  %v1122_v55 = vmul.f32 %v1936_v20, %v1936_v20  ;;  %1007 = vst [vmem:[%s1733_s17 + $0x1f0] sm:$0xff] %v2321_v54  ;;  %v1334_v8 = vmul.f32 %v1986_v29, %v1986_v29 }
 0x1bd   : > { %v1048_v42 = vadd.f32 %v1047_v15, %v1924_v5  ;;  %v1183_v41 = vadd.f32 %v1182_v16, %v1120_v24  ;;  %v2351_v12 = vpop.f32.mrf.mxu2  ;;  %v1335_v33 = vmul.f32 %v1996_v45, %v1996_v45 }
 0x1be   : > { %v1256_v22 = vadd.f32 %v1255_v19, %v1926_v6  ;;  %v1391_v36 = vadd.f32 %v1390_v34, %v1328_v25  ;;  %v1123_v6 = vmul.f32 %v1948_v35, %v1948_v35  ;;  %944 = vst [vmem:[%s1728_s14 + $0x1f8] sm:$0xff] %v2351_v12 }
 0x1bf   : > { %v1049_v23 = vadd.f32 %v1048_v42, %v1936_v20  ;;  %v1184_v47 = vadd.f32 %v1183_v41, %v1121_v39  ;;  %v1124_v20 = vmul.f32 %v1960_v56, %v1960_v56  ;;  %v1129_v42 = vmul.f32 %v2016_v17, %v2016_v17 }
 0x1c0   : > { %v1257_v5 = vadd.f32 %v1256_v22, %v1938_v21  ;;  %v1392_v26 = vadd.f32 %v1391_v36, %v1329_v40  ;;  %v1332_v21 = vmul.f32 %v1962_v57, %v1962_v57 }
 0x1c1   : > { %v1050_v49 = vadd.f32 %v1049_v23, %v1948_v35  ;;  %v1185_v50 = vadd.f32 %v1184_v47, %v1122_v55  ;;  %v1125_v35 = vmul.f32 %v1972_v9, %v1972_v9  ;;  %v2575_v55 = vld [vmem:[#allocation2_spill] sm:$0xff] }
 0x1c2   : > { %v1258_v51 = vadd.f32 %v1257_v5, %v1950_v38  ;;  %v1393_v59 = vadd.f32 %v1392_v26, %v1330_v30  ;;  %v1333_v38 = vmul.f32 %v1974_v10, %v1974_v10  ;;  %v1130_v30 = vmul.f32 %v2575_v55, %v2575_v55 }
 0x1c3   : > { %v1051_v13 = vadd.f32 %v1050_v49, %v1960_v56  ;;  %v1186_v52 = vadd.f32 %v1185_v50, %v1123_v6  ;;  %v2353_v56 = vpop.f32.mrf.mxu3  ;;  %v2577_v6 = vld [vmem:[#allocation4_spill] sm:$0xff] }
 0x1c4   : > { %v1259_v63 = vadd.f32 %v1258_v51, %v1962_v57  ;;  %v1394_v48 = vadd.f32 %v1393_v59, %v1331_v61  ;;  %v1126_v57 = vmul.f32 %v1984_v28, %v1984_v28  ;;  %1008 = vst [vmem:[%s1733_s17 + $0x1f8] sm:$0xff] %v2353_v56  ;;  %v1131_v61 = vmul.f32 %v2577_v6, %v2577_v6 }
 0x1c5   : > { %v1052_v7 = vadd.f32 %v1051_v13, %v1972_v9  ;;  %v1187_v31 = vadd.f32 %v1186_v52, %v1124_v20  ;;  %v2579_v20 = vld [vmem:[#allocation6_spill] sm:$0xff]  ;;  %v2580_v13 = vld [vmem:[#allocation7_spill] sm:$0xff] }
 0x1c6   : > { %v1260_v11 = vadd.f32 %v1259_v63, %v1974_v10  ;;  %v1395_v32 = vadd.f32 %v1394_v48, %v1332_v21  ;;  %v1127_v10 = vmul.f32 %v1994_v44, %v1994_v44  ;;  %v1132_v21 = vmul.f32 %v2579_v20, %v2579_v20 }
 0x1c7   : > { %v1188_v0 = vadd.f32 %v1187_v31, %v1125_v35  ;;  %v1053_v53 = vadd.f32 %v1052_v7, %v1984_v28  ;;  %v1128_v28 = vmul.f32 %v2006_v1, %v2006_v1  ;;  %v1340_v52 = vmul.f32 %v2580_v13, %v2580_v13  ;;  %v2581_v7 = vld [vmem:[#allocation8_spill] sm:$0xff] }
 0x1c8   : > { %v1396_v9 = vadd.f32 %v1395_v32, %v1333_v38  ;;  %v1261_v58 = vadd.f32 %v1260_v11, %v1986_v29  ;;  %v1336_v29 = vmul.f32 %v2008_v2, %v2008_v2  ;;  %v1133_v31 = vmul.f32 %v2581_v7, %v2581_v7  ;;  %v2582_v11 = vld [vmem:[#allocation9_spill] sm:$0xff] }
 0x1c9   : > { %v1054_v24 = vadd.f32 %v1053_v53, %v1994_v44  ;;  %v1189_v25 = vadd.f32 %v1188_v0, %v1126_v57  ;;  %v1337_v44 = vmul.f32 %v2018_v18, %v2018_v18  ;;  %v1341_v32 = vmul.f32 %v2582_v11, %v2582_v11 }
 0x1ca   : > { %v1262_v15 = vadd.f32 %v1261_v58, %v1996_v45  ;;  %v1397_v16 = vadd.f32 %v1396_v9, %v1334_v8  ;;  %v2583_v9 = vld [vmem:[#allocation10_spill] sm:$0xff] }
 0x1cb   : > { %v1055_v19 = vadd.f32 %v1054_v24, %v2006_v1  ;;  %v1190_v34 = vadd.f32 %v1189_v25, %v1127_v10  ;;  %v2576_v1 = vld [vmem:[#allocation3_spill] sm:$0xff]  ;;  %v1134_v58 = vmul.f32 %v2583_v9, %v2583_v9 }
 0x1cc   : > { %v1263_v39 = vadd.f32 %v1262_v15, %v2008_v2  ;;  %v1398_v40 = vadd.f32 %v1397_v16, %v1335_v33  ;;  %v1338_v23 = vmul.f32 %v2576_v1, %v2576_v1  ;;  %v2584_v10 = vld [vmem:[#allocation11_spill] sm:$0xff] }
 0x1cd   : > { %v1056_v45 = vadd.f32 %v1055_v19, %v2016_v17  ;;  %v1191_v41 = vadd.f32 %v1190_v34, %v1128_v28  ;;  %v2578_v17 = vld [vmem:[#allocation5_spill] sm:$0xff]  ;;  %v1342_v33 = vmul.f32 %v2584_v10, %v2584_v10  ;;  %v2585_v28 = vld [vmem:[#allocation12_spill] sm:$0xff] }
 0x1ce   : > { %v1264_v22 = vadd.f32 %v1263_v39, %v2018_v18  ;;  %v1399_v36 = vadd.f32 %v1398_v40, %v1336_v29  ;;  %v1339_v49 = vmul.f32 %v2578_v17, %v2578_v17  ;;  %v1135_v29 = vmul.f32 %v2585_v28, %v2585_v28  ;;  %v2586_v19 = vld [vmem:[#allocation13_spill] sm:$0xff] }
 0x1cf   : > { %v1057_v2 = vadd.f32 %v1056_v45, %v2575_v55  ;;  %v1192_v47 = vadd.f32 %v1191_v41, %v1129_v42  ;;  %v1343_v34 = vmul.f32 %v2586_v19, %v2586_v19  ;;  %v2587_v45 = vld [vmem:[#allocation14_spill] sm:$0xff] }
 0x1d0   : > { %v1265_v5 = vadd.f32 %v1264_v22, %v2576_v1  ;;  %v1400_v26 = vadd.f32 %v1399_v36, %v1337_v44  ;;  %v1136_v41 = vmul.f32 %v2587_v45, %v2587_v45  ;;  %v2588_v22 = vld [vmem:[#allocation15_spill] sm:$0xff] }
 0x1d1   : > { %v1058_v18 = vadd.f32 %v1057_v2, %v2577_v6  ;;  %v1193_v50 = vadd.f32 %v1192_v47, %v1130_v30  ;;  %v1344_v36 = vmul.f32 %v2588_v22, %v2588_v22  ;;  %v2589_v2 = vld [vmem:[#allocation16_spill] sm:$0xff] }
 0x1d2   : > { %v1266_v51 = vadd.f32 %v1265_v5, %v2578_v17  ;;  %v1401_v59 = vadd.f32 %v1400_v26, %v1338_v23  ;;  %v1137_v47 = vmul.f32 %v2589_v2, %v2589_v2  ;;  %v2590_v5 = vld [vmem:[#allocation17_spill] sm:$0xff] }
 0x1d3   : > { %v1059_v63 = vadd.f32 %v1058_v18, %v2579_v20  ;;  %v1194_v48 = vadd.f32 %v1193_v50, %v1131_v61  ;;  %v1345_v26 = vmul.f32 %v2590_v5, %v2590_v5  ;;  %v2591_v18 = vld [vmem:[#allocation18_spill] sm:$0xff] }
 0x1d4   : > { %v1267_v35 = vadd.f32 %v1266_v51, %v2580_v13  ;;  %v1402_v38 = vadd.f32 %v1401_v59, %v1339_v49  ;;  %v1138_v50 = vmul.f32 %v2591_v18, %v2591_v18  ;;  %v2592_v51 = vld [vmem:[#allocation19_spill] sm:$0xff] }
 0x1d5   : > { %v1060_v57 = vadd.f32 %v1059_v63, %v2581_v7  ;;  %v1195_v8 = vadd.f32 %v1194_v48, %v1132_v21  ;;  %v1346_v59 = vmul.f32 %v2592_v51, %v2592_v51  ;;  %v2593_v63 = vld [vmem:[#allocation20_spill] sm:$0xff] }
 0x1d6   : > { %v1268_v0 = vadd.f32 %v1267_v35, %v2582_v11  ;;  %v1403_v53 = vadd.f32 %v1402_v38, %v1340_v52  ;;  %v1139_v48 = vmul.f32 %v2593_v63, %v2593_v63  ;;  %v2594_v35 = vld [vmem:[#allocation21_spill] sm:$0xff] }
 0x1d7   : > { %v1061_v24 = vadd.f32 %v1060_v57, %v2583_v9  ;;  %v1196_v25 = vadd.f32 %v1195_v8, %v1133_v31  ;;  %v1347_v38 = vmul.f32 %v2594_v35, %v2594_v35  ;;  %v1140_v57 = vmul.f32 %v2208_v4, %v2208_v4 }
 0x1d8   : > { %v1269_v15 = vadd.f32 %v1268_v0, %v2584_v10  ;;  %v1404_v16 = vadd.f32 %v1403_v53, %v1341_v32  ;;  %v1348_v8 = vmul.f32 %v2210_v3, %v2210_v3  ;;  %v1141_v10 = vmul.f32 %v2242_v43, %v2242_v43 }
 0x1d9   : > { %v1062_v39 = vadd.f32 %v1061_v24, %v2585_v28  ;;  %v1197_v40 = vadd.f32 %v1196_v25, %v1134_v58  ;;  %v1142_v28 = vmul.f32 %v2254_v27, %v2254_v27 }
 0x1da   : > { %v1270_v42 = vadd.f32 %v1269_v15, %v2586_v19  ;;  %v1405_v44 = vadd.f32 %v1404_v16, %v1342_v33  ;;  %v1349_v33 = vmul.f32 %v2244_v46, %v2244_v46 }
 0x1db   : > { %v1063_v55 = vadd.f32 %v1062_v39, %v2587_v45  ;;  %v1198_v30 = vadd.f32 %v1197_v40, %v1135_v29  ;;  %v1143_v39 = vmul.f32 %v2287_v14, %v2287_v14  ;;  %v1144_v45 = vmul.f32 %v2319_v37, %v2319_v37 }
 0x1dc   : > { %v1271_v1 = vadd.f32 %v1270_v42, %v2588_v22  ;;  %v1406_v23 = vadd.f32 %v1405_v44, %v1343_v34 }
 0x1dd   : > { %v1064_v6 = vadd.f32 %v1063_v55, %v2589_v2  ;;  %v1199_v61 = vadd.f32 %v1198_v30, %v1136_v41  ;;  %v1145_v55 = vmul.f32 %v2351_v12, %v2351_v12 }
 0x1de   : > { %v1272_v17 = vadd.f32 %v1271_v1, %v2590_v5  ;;  %v1407_v49 = vadd.f32 %v1406_v23, %v1344_v36 }
 0x1df   : > { %v1065_v20 = vadd.f32 %v1064_v6, %v2591_v18  ;;  %v1200_v21 = vadd.f32 %v1199_v61, %v1137_v47 }
 0x1e0   : > { %v1273_v13 = vadd.f32 %v1272_v17, %v2592_v51  ;;  %v1408_v52 = vadd.f32 %v1407_v49, %v1345_v26 }
 0x1e1   : > { %v1201_v7 = vadd.f32 %v1200_v21, %v1138_v50  ;;  %v1066_v11 = vadd.f32 %v1065_v20, %v2593_v63  ;;  %v1009_v63 = vld [vmem:[%s2511_s5] sm:$0x1] }
 0x1e2   : > { %v1409_v31 = vadd.f32 %v1408_v52, %v1346_v59  ;;  %v1274_v32 = vadd.f32 %v1273_v13, %v2594_v35 }
 0x1e3   : > { %v1202_v0 = vadd.f32 %v1201_v7, %v1139_v48  ;;  %v1067_v9 = vadd.f32 %v1066_v11, %v2208_v4  ;;  %v1350_v4 = vmul.f32 %v2256_v60, %v2256_v60  ;;  %v1217_v48 = vld [vmem:[%s2513_s7] sm:$0x1] }
 0x1e4   : > { %v1410_v53 = vadd.f32 %v1409_v31, %v1347_v38  ;;  %v1275_v58 = vadd.f32 %v1274_v32, %v2210_v3  ;;  %v1081_v11 = vld [vmem:[%s2512_s6] sm:$0x1] }
 0x1e5   : > { %v1203_v24 = vadd.f32 %v1202_v0, %v1140_v57  ;;  %v1068_v15 = vadd.f32 %v1067_v9, %v2242_v43  ;;  %v1351_v43 = vmul.f32 %v2289_v62, %v2289_v62  ;;  %v1289_v32 = vld [vmem:[%s2514_s8] sm:$0x1] }
 0x1e6   : > { %v1411_v25 = vadd.f32 %v1410_v53, %v1348_v8  ;;  %v1276_v16 = vadd.f32 %v1275_v58, %v2244_v46 }
 0x1e7   : > { %v1204_v29 = vadd.f32 %v1203_v24, %v1141_v10  ;;  %v1069_v19 = vadd.f32 %v1068_v15, %v2254_v27  ;;  %v1352_v27 = vmul.f32 %v2321_v54, %v2321_v54 }
 0x1e8   : > { %v1412_v3 = vadd.f32 %v1411_v25, %v1349_v33  ;;  %v1277_v34 = vadd.f32 %v1276_v16, %v2256_v60 }
 0x1e9   : > { %v1205_v40 = vadd.f32 %v1204_v29, %v1142_v28  ;;  %v1070_v42 = vadd.f32 %v1069_v19, %v2287_v14  ;;  %v1353_v14 = vmul.f32 %v2353_v56, %v2353_v56 }
 0x1ea   : > { %v1413_v46 = vadd.f32 %v1412_v3, %v1350_v4  ;;  %v1278_v44 = vadd.f32 %v1277_v34, %v2289_v62 }
 0x1eb   : > { %v1206_v41 = vadd.f32 %v1205_v40, %v1143_v39  ;;  %v1071_v22 = vadd.f32 %v1070_v42, %v2319_v37 }
 0x1ec   : > { %v1414_v60 = vadd.f32 %v1413_v46, %v1351_v43  ;;  %v1279_v36 = vadd.f32 %v1278_v44, %v2321_v54 }
 0x1ed   : > { %v1207_v30 = vadd.f32 %v1206_v41, %v1144_v45  ;;  %v1072_v1 = vadd.f32 %v1071_v22, %v2351_v12 }
 0x1ee   : > { %v1415_v62 = vadd.f32 %v1414_v60, %v1352_v27  ;;  %v1280_v23 = vadd.f32 %v1279_v36, %v2353_v56 }
 0x1ef   : > { %v1073_v2 = vrot.slane %v1072_v1, 4  ;;  %v1208_v47 = vadd.f32 %v1207_v30, %v1145_v55 }
 0x1f0   : > { %v1281_v5 = vrot.slane %v1280_v23, 4  ;;  %v1416_v26 = vadd.f32 %v1415_v62, %v1353_v14 }
 0x1f1   : > { %v1074_v6 = vadd.f32 %v1073_v2, %v1072_v1  ;;  %v1209_v37 = vrot.slane %v1208_v47, 4 }
 0x1f2   : > { %v1282_v61 = vadd.f32 %v1281_v5, %v1280_v23  ;;  %v1417_v54 = vrot.slane %v1416_v26, 4 }
 0x1f3   : > { %v1075_v17 = vrot.slane %v1074_v6, 2  ;;  %v1210_v49 = vadd.f32 %v1209_v37, %v1208_v47 }
 0x1f4   : > { %v1283_v18 = vrot.slane %v1282_v61, 2  ;;  %v1418_v50 = vadd.f32 %v1417_v54, %v1416_v26 }
 0x1f5   : > { %v1076_v51 = vadd.f32 %v1075_v17, %v1074_v6  ;;  %v1211_v59 = vrot.slane %v1210_v49, 2 }
 0x1f6   : > { %v1284_v20 = vadd.f32 %v1283_v18, %v1282_v61  ;;  %v1419_v21 = vrot.slane %v1418_v50, 2 }
 0x1f7   : > { %v1077_v13 = vrot.slane %v1076_v51, 1  ;;  %v1212_v12 = vadd.f32 %v1211_v59, %v1210_v49 }
 0x1f8   : > { %v1285_v52 = vrot.slane %v1284_v20, 1  ;;  %v1420_v56 = vadd.f32 %v1419_v21, %v1418_v50 }
 0x1f9   : > { %v1078_v35 = vadd.f32 %v1077_v13, %v1076_v51  ;;  %v1213_v38 = vrot.slane %v1212_v12, 1 }
 0x1fa   : > { %v1286_v7 = vadd.f32 %v1285_v52, %v1284_v20  ;;  %v1421_v31 = vrot.slane %v1420_v56, 1 }
 0x1fb   : > { %v1079_v57 = vadd.f32 %v1078_v35, %v1009_v63  ;;  %v1214_v8 = vadd.f32 %v1213_v38, %v1212_v12 }
 0x1fc   : > { %v1287_v0 = vadd.f32 %v1286_v7, %v1217_v48  ;;  %v1422_v53 = vadd.f32 %v1421_v31, %v1420_v56 }
 0x1fd   : > { %1080 = vst [vmem:[%s2511_s5] sm:$0x1] %v1079_v57  ;;  %v1215_v9 = vadd.f32 %v1214_v8, %v1081_v11 }
 0x1fe   : > { %v1423_v58 = vadd.f32 %v1422_v53, %v1289_v32  ;;  %1288 = vst [vmem:[%s2513_s7] sm:$0x1] %v1287_v0 }
 0x1ff   : > { %1216 = vst [vmem:[%s2512_s6] sm:$0x1] %v1215_v9 }
 0x200   : > { %1424 = vst [vmem:[%s2514_s8] sm:$0x1] %v1423_v58 }
 0x201 PF: > { %s19_s27 = sadd.s32 1, %s1664_s27  }
 0x202   : > { %p16_p5 = scmp.ge.s32.totalorder %s19_s27, 4  }
 0x204   :  { %18 = sbr.rel (!%p16_p5) target bundleno = 1 (0x1), region = 110 }

// kernel: res_block_101.8
= control target key start
LH: loop header
LB: loop body
LE: loop exit
PB: predicated region body
PF: predicated region fallthrough
CT: control target
= control target key end

     0   :  { %s1981_s27 = smov 0   ;;  %s2870_s0 = inlined_call_operand.vmem [shape: f32[1024,128], index: 0, kind: input, shape index: {}]   ;;  %s2871_s1 = inlined_call_operand.vmem [shape: f32[1,128], index: 1, kind: input, shape index: {}]   ;;  %s2872_s2 = inlined_call_operand.vmem [shape: f32[1,128], index: 2, kind: input, shape index: {}]   ;;  %s2873_s3 = inlined_call_operand.vmem [shape: f32[1,128], index: 3, kind: input, shape index: {}]   ;;  %s2874_s4 = inlined_call_operand.vmem [shape: f32[1,128], index: 4, kind: input, shape index: {}]   ;;  %s2875_s5 = inlined_call_operand.vmem [shape: bf16[128,128], index: 5, kind: input, shape index: {}]   ;;  %s2876_s6 = inlined_call_operand.vmem [shape: f32[1024,128], index: 6, kind: output, shape index: {0}]   ;;  %s2877_s7 = inlined_call_operand.vmem [shape: f32[1,128], index: 7, kind: output, shape index: {1}]   ;;  %s2878_s8 = inlined_call_operand.vmem [shape: f32[1,128], index: 8, kind: output, shape index: {2}]  }
   0x1 LB: > { %s1712_s28 = sadd.s32 4294967295, %s1933_s27   ;;  %p1716_p0 = scmp.ge.s32.totalorder %s1933_s27, 1  ;;  %s1933_s27 = sphi %s1981_s27, %s19_s27  }
   0x2   : > { %p258_p1 = scmp.lt.s32.totalorder %s1933_s27, 3 }
   0x4   : > { %p259_p2 = pnand %p1716_p0, %p258_p1 }
   0x5   : > { %s1717_s29 = sshll.u32 (!%p259_p2), %s1712_s28, 6  ;;  %p1721_p4 = scmp.ne.s32.totalorder (!%p259_p2), %s1712_s28, 0 }
   0x6   : > { %262 = sbr.rel (%p259_p2) target bundleno = 443 (0x1bb), region = 44  ;;  %p293_p3 = scmp.lt.s32.totalorder (!%p259_p2), %s1717_s29, 127 }
   0xb   : > { %s2880_s29 = smov (!%p293_p3, %s1717_s29), 127  ;;  %307 = sbr.rel (%p1721_p4) target bundleno = 19 (0x13), region = 48 }
   0xc   : > { %s1718_s30 = sshll.u32 %s2880_s29, 3 }
   0xd   : > { %s1992_s11 = scalar_lea.vmem %s2870_s0, %s1718_s30  ;;  %s1997_s14 = scalar_lea.vmem %s2876_s6, %s1718_s30 }
  0x10   : > { %v1935_v0 = vmov 0.0  }
  0x11   : > { %308 = vst [vmem:[%s2877_s7] sm:$0x1] %v1935_v0 }
  0x12   : > { %309 = vst [vmem:[%s2878_s8] sm:$0x1] %v1935_v0 }
  0x13 PF: > { %v1763_v1 = vld [vmem:[%s2875_s5 + $0x38] sm:$0xff]  ;;  %v1762_v2 = vld [vmem:[%s2875_s5 + $0x30] sm:$0xff]  ;;  %v310_v3 = vld [vmem:[%s2871_s1] sm:$0x1] }
  0x14   : > { %1203 = vmatpush.bf16.msra.mxu0 %v1763_v1  ;;  %1764 = vmatpush.bf16.msra.mxu1 %v1763_v1  ;;  %v311_v4 = vld [vmem:[%s2872_s2] sm:$0x1]  ;;  %v314_v5 = vmul.f32 0.0009765625, %v310_v3  ;;  %v1761_v7 = vld [vmem:[%s2875_s5 + $0x28] sm:$0xff]  ;;  %v1759_v13 = vld [vmem:[%s2875_s5 + $0x18] sm:$0xff] }
  0x15   : > { %1765 = vmatpush.bf16.msra.mxu2 %v1763_v1  ;;  %1766 = vmatpush.bf16.msra.mxu3 %v1763_v1  ;;  %v315_v6 = vmul.f32 0.0009765625, %v311_v4  ;;  %v1760_v10 = vld [vmem:[%s2875_s5 + $0x20] sm:$0xff]  ;;  %v1758_v14 = vld [vmem:[%s2875_s5 + $0x10] sm:$0xff]  ;;  %v1757_v17 = vld [vmem:[%s2875_s5 + $0x8] sm:$0xff] }
  0x16   : > { %v316_v8 = vmul.f32 %v314_v5, %v314_v5  ;;  %v1756_v20 = vld [vmem:[%s2875_s5] sm:$0xff]  ;;  %v334_v28 = vld [vmem:[%s1992_s11 + $0x8] sm:$0xff]  ;;  %v335_v29 = vld [vmem:[%s1992_s11 + $0x10] sm:$0xff] }
  0x17   : > { %v312_v22 = vld [vmem:[%s2873_s3] sm:$0x1]  ;;  %v336_v32 = vld [vmem:[%s1992_s11 + $0x18] sm:$0xff]  ;;  %v350_v34 = vld [vmem:[%s1992_s11 + $0x88] sm:$0xff] }
  0x18   : > { %1204 = vmatpush.bf16.msra.mxu0 %v1762_v2  ;;  %1767 = vmatpush.bf16.msra.mxu1 %v1762_v2  ;;  %v317_v9 = vsub.f32 %v315_v6, %v316_v8  ;;  %v313_v25 = vld [vmem:[%s2874_s4] sm:$0x1]  ;;  %v338_v44 = vld [vmem:[%s1992_s11 + $0x28] sm:$0xff] }
  0x19   : > { %1768 = vmatpush.bf16.msra.mxu2 %v1762_v2  ;;  %1769 = vmatpush.bf16.msra.mxu3 %v1762_v2  ;;  %v333_v27 = vld [vmem:[%s1992_s11] sm:$0xff] }
  0x1a   : > { %v318_v11 = vmax.f32 %v317_v9, 0.0  ;;  %v349_v33 = vld [vmem:[%s1992_s11 + $0x80] sm:$0xff] }
  0x1b   : > { %v337_v43 = vld [vmem:[%s1992_s11 + $0x20] sm:$0xff] }
  0x1c   : > { %1205 = vmatpush.bf16.msra.mxu0 %v1761_v7  ;;  %1770 = vmatpush.bf16.msra.mxu1 %v1761_v7  ;;  %v319_v12 = vadd.f32 1e-05, %v318_v11 }
  0x1d   : > { %1771 = vmatpush.bf16.msra.mxu2 %v1761_v7  ;;  %1772 = vmatpush.bf16.msra.mxu3 %v1761_v7 }
  0x1e   : > { %1797 = vrsqrt.f32 %v319_v12  ;;  %vm326_vm0 = vweird.f32 %v319_v12 }
  0x20   : > { %1206 = vmatpush.bf16.msra.mxu0 %v1760_v10  ;;  %1773 = vmatpush.bf16.msra.mxu1 %v1760_v10 }
  0x21   : > { %1774 = vmatpush.bf16.msra.mxu2 %v1760_v10  ;;  %1775 = vmatpush.bf16.msra.mxu3 %v1760_v10 }
  0x24   : > { %1207 = vmatpush.bf16.msra.mxu0 %v1759_v13  ;;  %1776 = vmatpush.bf16.msra.mxu1 %v1759_v13  ;;  %v1798_v15 = vpop.eup %1797 }
  0x25   : > { %1777 = vmatpush.bf16.msra.mxu2 %v1759_v13  ;;  %1778 = vmatpush.bf16.msra.mxu3 %v1759_v13  ;;  %v321_v16 = vmul.f32 %v1798_v15, %v319_v12  ;;  %vm327_vm1 = vweird.f32 %v1798_v15 }
  0x26   : > { %vm328_vm2 = vmor %vm326_vm0, %vm327_vm1 }
  0x27   : > { %v322_v18 = vmul.f32 %v1798_v15, %v321_v16 }
  0x28   : > { %1208 = vmatpush.bf16.msra.mxu0 %v1758_v14  ;;  %1779 = vmatpush.bf16.msra.mxu1 %v1758_v14 }
  0x29   : > { %1780 = vmatpush.bf16.msra.mxu2 %v1758_v14  ;;  %1781 = vmatpush.bf16.msra.mxu3 %v1758_v14  ;;  %v323_v19 = vmul.f32 0.5, %v322_v18 }
  0x2b   : > { %v324_v21 = vsub.f32 1.5, %v323_v19 }
  0x2c   : > { %1209 = vmatpush.bf16.msra.mxu0 %v1757_v17  ;;  %1782 = vmatpush.bf16.msra.mxu1 %v1757_v17 }
  0x2d   : > { %1783 = vmatpush.bf16.msra.mxu2 %v1757_v17  ;;  %1784 = vmatpush.bf16.msra.mxu3 %v1757_v17  ;;  %v325_v23 = vmul.f32 %v1798_v15, %v324_v21 }
  0x2f   : > { %v329_v24 = vsel %vm328_vm2, %v1798_v15, %v325_v23 }
  0x30   : > { %1210 = vmatpush.bf16.msra.mxu0 %v1756_v20  ;;  %1785 = vmatpush.bf16.msra.mxu1 %v1756_v20  ;;  %v330_v26 = vmul.f32 %v329_v24, %v312_v22 }
  0x31   : > { %1786 = vmatpush.bf16.msra.mxu2 %v1756_v20  ;;  %1787 = vmatpush.bf16.msra.mxu3 %v1756_v20 }
  0x32   : > { %v331_v30 = vmul.f32 %v330_v26, %v314_v5  ;;  %v2044_v31 = vperm.slane %v330_v26, 0 }
  0x34   : > { %v332_v35 = vsub.f32 %v313_v25, %v331_v30  ;;  %v400_v36 = vmul.f32 %v2044_v31, %v333_v27  ;;  %v401_v37 = vmul.f32 %v2044_v31, %v334_v28  ;;  %v402_v38 = vmul.f32 %v2044_v31, %v335_v29  ;;  %v351_v28 = vld [vmem:[%s1992_s11 + $0x90] sm:$0xff]  ;;  %v352_v29 = vld [vmem:[%s1992_s11 + $0x98] sm:$0xff] }
  0x35   : > { %v403_v39 = vmul.f32 %v2044_v31, %v336_v32  ;;  %v416_v40 = vmul.f32 %v2044_v31, %v349_v33  ;;  %v417_v41 = vmul.f32 %v2044_v31, %v350_v34  ;;  %v404_v45 = vmul.f32 %v2044_v31, %v337_v43 }
  0x36   : > { %v2055_v42 = vperm.slane %v332_v35, 0  ;;  %v405_v46 = vmul.f32 %v2044_v31, %v338_v44 }
  0x38   : > { %v467_v47 = vadd.f32 %v2055_v42, %v400_v36  ;;  %v468_v48 = vadd.f32 %v2055_v42, %v401_v37  ;;  %v469_v49 = vadd.f32 %v2055_v42, %v402_v38  ;;  %v470_v50 = vadd.f32 %v2055_v42, %v403_v39 }
  0x39   : > { %v483_v51 = vadd.f32 %v2055_v42, %v416_v40  ;;  %v484_v52 = vadd.f32 %v2055_v42, %v417_v41  ;;  %v2068_v53 = vadd.f32 %v2055_v42, %v404_v45  ;;  %v2071_v54 = vadd.f32 %v2055_v42, %v405_v46  ;;  %v339_v40 = vld [vmem:[%s1992_s11 + $0x30] sm:$0xff]  ;;  %v340_v41 = vld [vmem:[%s1992_s11 + $0x38] sm:$0xff] }
  0x3a   : > { %v595_v55 = vmul.f32 0.044715, %v467_v47  ;;  %v596_v56 = vmul.f32 0.044715, %v468_v48  ;;  %v2073_v57 = vmul.f32 0.5, %v467_v47  ;;  %v532_v20 = vmul.f32 0.5, %v468_v48 }
  0x3b   : > { %v597_v58 = vmul.f32 0.044715, %v469_v49  ;;  %v598_v59 = vmul.f32 0.044715, %v470_v50  ;;  %v611_v62 = vmul.f32 0.044715, %v483_v51  ;;  %v418_v38 = vmul.f32 %v2044_v31, %v351_v28 }
  0x3c   : > { %v659_v60 = vmul.f32 %v595_v55, %v467_v47  ;;  %v660_v61 = vmul.f32 %v596_v56, %v468_v48  ;;  %v612_v63 = vmul.f32 0.044715, %v484_v52  ;;  %v599_v2 = vmul.f32 0.044715, %v2068_v53  ;;  %v366_v56 = vld [vmem:[%s1992_s11 + $0x108] sm:$0xff] }
  0x3d   : > { %v661_v0 = vmul.f32 %v597_v58, %v469_v49  ;;  %v662_v1 = vmul.f32 %v598_v59, %v470_v50  ;;  %v600_v3 = vmul.f32 0.044715, %v2071_v54  ;;  %v675_v6 = vmul.f32 %v611_v62, %v483_v51 }
  0x3e   : > { %v723_v4 = vmul.f32 %v659_v60, %v467_v47  ;;  %v724_v5 = vmul.f32 %v660_v61, %v468_v48  ;;  %v676_v7 = vmul.f32 %v612_v63, %v484_v52  ;;  %v663_v10 = vmul.f32 %v599_v2, %v2068_v53 }
  0x3f   : > { %v725_v8 = vmul.f32 %v661_v0, %v469_v49  ;;  %v726_v9 = vmul.f32 %v662_v1, %v470_v50  ;;  %v664_v11 = vmul.f32 %v600_v3, %v2071_v54  ;;  %v739_v14 = vmul.f32 %v675_v6, %v483_v51 }
  0x40   : > { %v787_v12 = vadd.f32 %v723_v4, %v467_v47  ;;  %v788_v13 = vadd.f32 %v724_v5, %v468_v48  ;;  %v740_v15 = vmul.f32 %v676_v7, %v484_v52  ;;  %v727_v18 = vmul.f32 %v663_v10, %v2068_v53 }
  0x41   : > { %v789_v16 = vadd.f32 %v725_v8, %v469_v49  ;;  %v790_v17 = vadd.f32 %v726_v9, %v470_v50  ;;  %v728_v19 = vmul.f32 %v664_v11, %v2071_v54  ;;  %v533_v23 = vmul.f32 0.5, %v469_v49  ;;  %v365_v49 = vld [vmem:[%s1992_s11 + $0x100] sm:$0xff] }
  0x42   : > { %v851_v21 = vmul.f32 0.7978846, %v787_v12  ;;  %v852_v22 = vmul.f32 0.7978846, %v788_v13  ;;  %v803_v26 = vadd.f32 %v739_v14, %v483_v51  ;;  %v804_v27 = vadd.f32 %v740_v15, %v484_v52 }
  0x43   : > { %v853_v24 = vmul.f32 0.7978846, %v789_v16  ;;  %v854_v25 = vmul.f32 0.7978846, %v790_v17  ;;  %v534_v30 = vmul.f32 0.5, %v470_v50  ;;  %v547_v32 = vmul.f32 0.5, %v483_v51 }
  0x44   : > { %1799 = vtanh.f32 %v851_v21  ;;  %v791_v33 = vadd.f32 %v727_v18, %v2068_v53  ;;  %v867_v34 = vmul.f32 0.7978846, %v803_v26  ;;  %v868_v35 = vmul.f32 0.7978846, %v804_v27 }
  0x45   : > { %1801 = vtanh.f32 %v852_v22  ;;  %v792_v36 = vadd.f32 %v728_v19, %v2071_v54  ;;  %v419_v39 = vmul.f32 %v2044_v31, %v352_v29  ;;  %v406_v44 = vmul.f32 %v2044_v31, %v339_v40 }
  0x46   : > { %1803 = vtanh.f32 %v853_v24  ;;  %v855_v37 = vmul.f32 0.7978846, %v791_v33  ;;  %v407_v45 = vmul.f32 %v2044_v31, %v340_v41  ;;  %v548_v46 = vmul.f32 0.5, %v484_v52  ;;  %v354_v41 = vld [vmem:[%s1992_s11 + $0xa8] sm:$0xff] }
  0x47   : > { %1805 = vtanh.f32 %v854_v25  ;;  %v856_v43 = vmul.f32 0.7978846, %v792_v36  ;;  %v485_v47 = vadd.f32 %v2055_v42, %v418_v38  ;;  %v2093_v48 = vadd.f32 %v2055_v42, %v419_v39 }
  0x48   : > { %1807 = vtanh.f32 %v867_v34  ;;  %v535_v50 = vmul.f32 0.5, %v2068_v53  ;;  %v2098_v51 = vadd.f32 %v2055_v42, %v406_v44  ;;  %v2101_v55 = vadd.f32 %v2055_v42, %v407_v45 }
  0x49   : > { %1809 = vtanh.f32 %v868_v35  ;;  %v613_v52 = vmul.f32 0.044715, %v485_v47  ;;  %v614_v59 = vmul.f32 0.044715, %v2093_v48  ;;  %v432_v60 = vmul.f32 %v2044_v31, %v365_v49 }
  0x4a   : > { %v1800_v58 = vpop.eup %1799  ;;  %1811 = vtanh.f32 %v855_v37  ;;  %v601_v63 = vmul.f32 0.044715, %v2098_v51  ;;  %v602_v53 = vmul.f32 0.044715, %v2101_v55  ;;  %v433_v4 = vmul.f32 %v2044_v31, %v366_v56  ;;  %v341_v56 = vld [vmem:[%s1992_s11 + $0x40] sm:$0xff] }
  0x4b   : > { %v1802_v61 = vpop.eup %1801  ;;  %v979_v62 = vadd.f32 1.0, %v1800_v58  ;;  %1813 = vtanh.f32 %v856_v43  ;;  %v677_v2 = vmul.f32 %v613_v52, %v485_v47  ;;  %v678_v3 = vmul.f32 %v614_v59, %v2093_v48 }
  0x4c   : > { %v1804_v0 = vpop.eup %1803  ;;  %v980_v1 = vadd.f32 1.0, %v1802_v61  ;;  %v665_v8 = vmul.f32 %v601_v63, %v2098_v51  ;;  %v666_v9 = vmul.f32 %v602_v53, %v2101_v55  ;;  %v2123_v33 = vadd.f32 %v2055_v42, %v432_v60 }
  0x4d   : > { %v1806_v5 = vpop.eup %1805  ;;  %v1043_v6 = vmul.f32 %v979_v62, %v2073_v57  ;;  %v981_v7 = vadd.f32 1.0, %v1804_v0  ;;  %v741_v13 = vmul.f32 %v677_v2, %v485_v47  ;;  %v742_v14 = vmul.f32 %v678_v3, %v2093_v48  ;;  %v367_v62 = vld [vmem:[%s1992_s11 + $0x110] sm:$0xff] }
  0x4e   : > { %v1808_v10 = vpop.eup %1807  ;;  %v1044_v11 = vmul.f32 %v980_v1, %v532_v20  ;;  %v982_v12 = vadd.f32 1.0, %v1806_v5  ;;  %v729_v18 = vmul.f32 %v665_v8, %v2098_v51  ;;  %v730_v19 = vmul.f32 %v666_v9, %v2101_v55 }
  0x4f   : > { %v1810_v15 = vpop.eup %1809  ;;  %v2114_v16 = vmul.f32 %v981_v7, %v533_v23  ;;  %v995_v17 = vadd.f32 1.0, %v1808_v10  ;;  %v805_v25 = vadd.f32 %v741_v13, %v485_v47  ;;  %v806_v28 = vadd.f32 %v742_v14, %v2093_v48 }
  0x50   : > { %v1812_v57 = vpop.eup %1811  ;;  %v1107_v21 = vpack.c.bf16 %v1044_v11, %v1043_v6  ;;  %v2118_v22 = vmul.f32 %v982_v12, %v534_v30  ;;  %v996_v24 = vadd.f32 1.0, %v1810_v15  ;;  %v793_v23 = vadd.f32 %v729_v18, %v2098_v51 }
  0x51   : > { %v1814_v20 = vpop.eup %1813  ;;  %v1059_v26 = vmul.f32 %v995_v17, %v547_v32  ;;  %v983_v27 = vadd.f32 1.0, %v1812_v57  ;;  %v536_v30 = vmul.f32 0.5, %v2071_v54  ;;  %v869_v35 = vmul.f32 0.7978846, %v805_v25  ;;  %v353_v32 = vld [vmem:[%s1992_s11 + $0xa0] sm:$0xff] }
  0x52   : > { %1211 = vmatmul.bf16.vlgmr.msra.gmra.mxu0 %v1107_v21  ;;  %v1060_v29 = vmul.f32 %v996_v24, %v548_v46  ;;  %v1108_v34 = vpack.c.bf16 %v2118_v22, %v2114_v16  ;;  %v870_v36 = vmul.f32 0.7978846, %v806_v28  ;;  %v984_v38 = vadd.f32 1.0, %v1814_v20  ;;  %v368_v21 = vld [vmem:[%s1992_s11 + $0x118] sm:$0xff] }
  0x53   : > { %v2129_v39 = vmul.f32 %v983_v27, %v535_v50  ;;  %v549_v40 = vmul.f32 0.5, %v485_v47  ;;  %1815 = vtanh.f32 %v869_v35  ;;  %v794_v43 = vadd.f32 %v730_v19, %v2101_v55  ;;  %v342_v50 = vld [vmem:[%s1992_s11 + $0x48] sm:$0xff] }
  0x54   : > { %v1115_v37 = vpack.c.bf16 %v1060_v29, %v1059_v26  ;;  %v857_v44 = vmul.f32 0.7978846, %v793_v23  ;;  %v500_v45 = vadd.f32 %v2055_v42, %v433_v4  ;;  %v550_v54 = vmul.f32 0.5, %v2093_v48 }
  0x55   : > { %1817 = vtanh.f32 %v870_v36  ;;  %v627_v46 = vmul.f32 0.044715, %v2123_v33  ;;  %v420_v49 = vmul.f32 %v2044_v31, %v353_v32  ;;  %v858_v58 = vmul.f32 0.7978846, %v794_v43 }
  0x56   : > { %1251 = vmatmul.bf16.vlgmr.msra.gmra.mxu1 %v1115_v37  ;;  %1819 = vtanh.f32 %v857_v44  ;;  %v628_v47 = vmul.f32 0.044715, %v500_v45  ;;  %v421_v52 = vmul.f32 %v2044_v31, %v354_v41  ;;  %v408_v61 = vmul.f32 %v2044_v31, %v341_v56  ;;  %v355_v44 = vld [vmem:[%s1992_s11 + $0xb0] sm:$0xff] }
  0x57   : > { %v691_v59 = vmul.f32 %v627_v46, %v2123_v33  ;;  %v487_v60 = vadd.f32 %v2055_v42, %v420_v49  ;;  %v409_v48 = vmul.f32 %v2044_v31, %v342_v50  ;;  %v2145_v63 = vmul.f32 %v984_v38, %v536_v30 }
  0x58   : > { %1821 = vtanh.f32 %v858_v58  ;;  %v692_v53 = vmul.f32 %v628_v47, %v500_v45  ;;  %v488_v0 = vadd.f32 %v2055_v42, %v421_v52  ;;  %v2150_v3 = vadd.f32 %v2055_v42, %v408_v61 }
  0x59   : > { %v755_v1 = vmul.f32 %v691_v59, %v2123_v33  ;;  %v615_v2 = vmul.f32 0.044715, %v487_v60  ;;  %v2153_v4 = vadd.f32 %v2055_v42, %v409_v48  ;;  %v1816_v5 = vpop.eup %1815  ;;  %v537_v6 = vmul.f32 0.5, %v2098_v51  ;;  %v343_v48 = vld [vmem:[%s1992_s11 + $0x50] sm:$0xff] }
  0x5a   : > { %v756_v7 = vmul.f32 %v692_v53, %v500_v45  ;;  %v616_v8 = vmul.f32 0.044715, %v488_v0  ;;  %v434_v9 = vmul.f32 %v2044_v31, %v367_v62  ;;  %v997_v11 = vadd.f32 1.0, %v1816_v5 }
  0x5b   : > { %v1818_v10 = vpop.eup %1817  ;;  %v819_v12 = vadd.f32 %v755_v1, %v2123_v33  ;;  %v679_v13 = vmul.f32 %v615_v2, %v487_v60  ;;  %v603_v14 = vmul.f32 0.044715, %v2150_v3  ;;  %v604_v57 = vmul.f32 0.044715, %v2153_v4  ;;  %v344_v1 = vld [vmem:[%s1992_s11 + $0x58] sm:$0xff] }
  0x5c   : > { %v1820_v15 = vpop.eup %1819  ;;  %v998_v17 = vadd.f32 1.0, %v1818_v10  ;;  %v820_v18 = vadd.f32 %v756_v7, %v500_v45  ;;  %v680_v19 = vmul.f32 %v616_v8, %v488_v0  ;;  %v1109_v51 = vpack.c.bf16 %v2145_v63, %v2129_v39 }
  0x5d   : > { %v1061_v24 = vmul.f32 %v997_v11, %v549_v40  ;;  %v2164_v25 = vmul.f32 0.5, %v2101_v55  ;;  %v985_v20 = vadd.f32 1.0, %v1820_v15  ;;  %v883_v28 = vmul.f32 0.7978846, %v819_v12 }
  0x5e   : > { %v1822_v26 = vpop.eup %1821  ;;  %v1062_v27 = vmul.f32 %v998_v17, %v550_v54  ;;  %v884_v23 = vmul.f32 0.7978846, %v820_v18  ;;  %v743_v29 = vmul.f32 %v679_v13, %v487_v60  ;;  %v744_v30 = vmul.f32 %v680_v19, %v488_v0 }
  0x5f   : > { %v667_v35 = vmul.f32 %v603_v14, %v2150_v3  ;;  %v435_v36 = vmul.f32 %v2044_v31, %v368_v21  ;;  %v2169_v32 = vadd.f32 %v2055_v42, %v434_v9  ;;  %v563_v37 = vmul.f32 0.5, %v2123_v33  ;;  %v356_v33 = vld [vmem:[%s1992_s11 + $0xb8] sm:$0xff] }
  0x60   : > { %1823 = vtanh.f32 %v883_v28  ;;  %v807_v55 = vadd.f32 %v743_v29, %v487_v60  ;;  %v668_v38 = vmul.f32 %v604_v57, %v2153_v4  ;;  %v1116_v40 = vpack.c.bf16 %v1062_v27, %v1061_v24 }
  0x61   : > { %v986_v41 = vadd.f32 1.0, %v1822_v26  ;;  %v564_v43 = vmul.f32 0.5, %v500_v45  ;;  %1825 = vtanh.f32 %v884_v23  ;;  %v2177_v54 = vmul.f32 %v985_v20, %v537_v6 }
  0x62   : > { %1216 = vmatmul.bf16.gmra.mxu0 %v1108_v34  ;;  %v551_v46 = vmul.f32 0.5, %v487_v60  ;;  %v808_v49 = vadd.f32 %v744_v30, %v488_v0  ;;  %v871_v56 = vmul.f32 0.7978846, %v807_v55  ;;  %v552_v50 = vmul.f32 0.5, %v488_v0 }
  0x63   : > { %v731_v58 = vmul.f32 %v667_v35, %v2150_v3  ;;  %v732_v47 = vmul.f32 %v668_v38, %v2153_v4  ;;  %v2183_v16 = vadd.f32 %v2055_v42, %v435_v36  ;;  %v629_v34 = vmul.f32 0.044715, %v2169_v32  ;;  %v369_v36 = vld [vmem:[%s1992_s11 + $0x120] sm:$0xff] }
  0x64   : > { %v872_v22 = vmul.f32 0.7978846, %v808_v49  ;;  %1827 = vtanh.f32 %v871_v56  ;;  %v422_v45 = vmul.f32 %v2044_v31, %v355_v44  ;;  %v423_v61 = vmul.f32 %v2044_v31, %v356_v33 }
  0x65   : > { %v795_v52 = vadd.f32 %v731_v58, %v2150_v3  ;;  %v796_v59 = vadd.f32 %v732_v47, %v2153_v4  ;;  %v630_v60 = vmul.f32 0.044715, %v2183_v16  ;;  %v693_v53 = vmul.f32 %v629_v34, %v2169_v32 }
  0x66   : > { %1256 = vmatmul.bf16.gmra.mxu1 %v1116_v40  ;;  %v1824_v62 = vpop.eup %1823  ;;  %1829 = vtanh.f32 %v872_v22  ;;  %v489_v0 = vadd.f32 %v2055_v42, %v422_v45  ;;  %v410_v2 = vmul.f32 %v2044_v31, %v343_v48  ;;  %v490_v12 = vadd.f32 %v2055_v42, %v423_v61 }
  0x67   : > { %v1826_v5 = vpop.eup %1825  ;;  %v1011_v6 = vadd.f32 1.0, %v1824_v62  ;;  %v859_v7 = vmul.f32 0.7978846, %v795_v52  ;;  %v860_v8 = vmul.f32 0.7978846, %v796_v59  ;;  %v694_v9 = vmul.f32 %v630_v60, %v2183_v16  ;;  %v370_v59 = vld [vmem:[%s1992_s11 + $0x128] sm:$0xff] }
  0x68   : > { %v1012_v10 = vadd.f32 1.0, %v1826_v5  ;;  %v757_v11 = vmul.f32 %v693_v53, %v2169_v32  ;;  %v617_v13 = vmul.f32 0.044715, %v489_v0  ;;  %v411_v17 = vmul.f32 %v2044_v31, %v344_v1  ;;  %v381_v60 = vld [vmem:[%s1992_s11 + $0x180] sm:$0xff] }
  0x69   : > { %v1075_v14 = vmul.f32 %v1011_v6, %v563_v37  ;;  %1831 = vtanh.f32 %v859_v7  ;;  %v758_v15 = vmul.f32 %v694_v9, %v2183_v16  ;;  %v618_v21 = vmul.f32 0.044715, %v490_v12 }
  0x6a   : > { %v1828_v18 = vpop.eup %1827  ;;  %v1076_v19 = vmul.f32 %v1012_v10, %v564_v43  ;;  %1833 = vtanh.f32 %v860_v8  ;;  %v821_v57 = vadd.f32 %v757_v11, %v2169_v32  ;;  %v681_v26 = vmul.f32 %v617_v13, %v489_v0  ;;  %v357_v13 = vld [vmem:[%s1992_s11 + $0xc0] sm:$0xff] }
  0x6b   : > { %v999_v24 = vadd.f32 1.0, %v1828_v18  ;;  %v822_v20 = vadd.f32 %v758_v15, %v2183_v16  ;;  %v2204_v27 = vadd.f32 %v2055_v42, %v410_v2  ;;  %v682_v30 = vmul.f32 %v618_v21, %v490_v12 }
  0x6c   : > { %v1830_v28 = vpop.eup %1829  ;;  %v1123_v23 = vpack.c.bf16 %v1076_v19, %v1075_v14  ;;  %v885_v29 = vmul.f32 0.7978846, %v821_v57  ;;  %v2207_v35 = vadd.f32 %v2055_v42, %v411_v17  ;;  %v2211_v37 = vmul.f32 %v986_v41, %v2164_v25 }
  0x6d   : > { %v1000_v55 = vadd.f32 1.0, %v1830_v28  ;;  %v1063_v38 = vmul.f32 %v999_v24, %v551_v46  ;;  %v539_v40 = vmul.f32 0.5, %v2150_v3  ;;  %v886_v43 = vmul.f32 0.7978846, %v822_v20 }
  0x6e   : > { %1291 = vmatmul.bf16.vlgmr.msra.gmra.mxu2 %v1123_v23  ;;  %1835 = vtanh.f32 %v885_v29  ;;  %v745_v44 = vmul.f32 %v681_v26, %v489_v0  ;;  %v746_v49 = vmul.f32 %v682_v30, %v490_v12  ;;  %v605_v58 = vmul.f32 0.044715, %v2204_v27 }
  0x6f   : > { %v1832_v56 = vpop.eup %1831  ;;  %v1064_v33 = vmul.f32 %v1000_v55, %v552_v50  ;;  %v606_v47 = vmul.f32 0.044715, %v2207_v35  ;;  %v436_v25 = vmul.f32 %v2044_v31, %v369_v36  ;;  %1837 = vtanh.f32 %v886_v43 }
  0x70   : > { %v1834_v41 = vpop.eup %1833  ;;  %v987_v22 = vadd.f32 1.0, %v1832_v56  ;;  %v809_v46 = vadd.f32 %v745_v44, %v489_v0  ;;  %v810_v3 = vadd.f32 %v746_v49, %v490_v12  ;;  %v540_v45 = vmul.f32 0.5, %v2153_v4 }
  0x71   : > { %v1117_v34 = vpack.c.bf16 %v1064_v33, %v1063_v38  ;;  %v988_v50 = vadd.f32 1.0, %v1834_v41  ;;  %v565_v52 = vmul.f32 0.5, %v2169_v32  ;;  %v566_v61 = vmul.f32 0.5, %v2183_v16 }
  0x72   : > { %1221 = vmatmul.bf16.gmra.mxu0 %v1109_v51  ;;  %v553_v48 = vmul.f32 0.5, %v489_v0  ;;  %v873_v62 = vmul.f32 0.7978846, %v809_v46  ;;  %v874_v53 = vmul.f32 0.7978846, %v810_v3  ;;  %v2225_v1 = vmul.f32 %v987_v22, %v539_v40  ;;  %v382_v51 = vld [vmem:[%s1992_s11 + $0x188] sm:$0xff] }
  0x73   : > { %v554_v2 = vmul.f32 0.5, %v490_v12  ;;  %v669_v39 = vmul.f32 %v605_v58, %v2204_v27  ;;  %v670_v63 = vmul.f32 %v606_v47, %v2207_v35  ;;  %v437_v32 = vmul.f32 %v2044_v31, %v370_v59  ;;  %v345_v3 = vld [vmem:[%s1992_s11 + $0x60] sm:$0xff] }
  0x74   : > { %v1836_v4 = vpop.eup %1835  ;;  %1839 = vtanh.f32 %v873_v62  ;;  %v503_v5 = vadd.f32 %v2055_v42, %v436_v25  ;;  %v448_v16 = vmul.f32 %v2044_v31, %v381_v60  ;;  %v2233_v0 = vmul.f32 %v988_v50, %v540_v45  ;;  %v358_v25 = vld [vmem:[%s1992_s11 + $0xc8] sm:$0xff] }
  0x75   : > { %v1013_v6 = vadd.f32 1.0, %v1836_v4  ;;  %1841 = vtanh.f32 %v874_v53  ;;  %v733_v7 = vmul.f32 %v669_v39, %v2204_v27  ;;  %v1838_v8 = vpop.eup %1837  ;;  %v734_v9 = vmul.f32 %v670_v63, %v2207_v35 }
  0x76   : > { %1261 = vmatmul.bf16.gmra.mxu1 %v1117_v34  ;;  %v504_v10 = vadd.f32 %v2055_v42, %v437_v32  ;;  %v631_v11 = vmul.f32 0.044715, %v503_v5  ;;  %v449_v12 = vmul.f32 %v2044_v31, %v382_v51  ;;  %v1014_v14 = vadd.f32 1.0, %v1838_v8 }
  0x77   : > { %v1077_v15 = vmul.f32 %v1013_v6, %v565_v52  ;;  %v797_v17 = vadd.f32 %v733_v7, %v2204_v27  ;;  %v515_v18 = vadd.f32 %v2055_v42, %v448_v16  ;;  %v798_v19 = vadd.f32 %v734_v9, %v2207_v35 }
  0x78   : > { %v632_v57 = vmul.f32 0.044715, %v504_v10  ;;  %v695_v21 = vmul.f32 %v631_v11, %v503_v5  ;;  %v516_v24 = vadd.f32 %v2055_v42, %v449_v12  ;;  %v1078_v20 = vmul.f32 %v1014_v14, %v566_v61  ;;  %v346_v61 = vld [vmem:[%s1992_s11 + $0x68] sm:$0xff] }
  0x79   : > { %v861_v26 = vmul.f32 0.7978846, %v797_v17  ;;  %v643_v28 = vmul.f32 0.044715, %v515_v18  ;;  %v424_v23 = vmul.f32 %v2044_v31, %v357_v13  ;;  %v862_v30 = vmul.f32 0.7978846, %v798_v19 }
  0x7a   : > { %v1840_v29 = vpop.eup %1839  ;;  %v696_v36 = vmul.f32 %v632_v57, %v504_v10  ;;  %v759_v55 = vmul.f32 %v695_v21, %v503_v5  ;;  %v644_v38 = vmul.f32 0.044715, %v516_v24  ;;  %v1124_v43 = vpack.c.bf16 %v1078_v20, %v1077_v15  ;;  %v371_v20 = vld [vmem:[%s1992_s11 + $0x130] sm:$0xff] }
  0x7b   : > { %v1842_v40 = vpop.eup %1841  ;;  %v1001_v44 = vadd.f32 1.0, %v1840_v29  ;;  %1843 = vtanh.f32 %v861_v26  ;;  %v707_v49 = vmul.f32 %v643_v28, %v515_v18  ;;  %v1110_v56 = vpack.c.bf16 %v2211_v37, %v2177_v54 }
  0x7c   : > { %v1002_v33 = vadd.f32 1.0, %v1842_v40  ;;  %v760_v58 = vmul.f32 %v696_v36, %v504_v10  ;;  %v823_v47 = vadd.f32 %v759_v55, %v503_v5  ;;  %v541_v22 = vmul.f32 0.5, %v2204_v27  ;;  %v383_v40 = vld [vmem:[%s1992_s11 + $0x190] sm:$0xff] }
  0x7d   : > { %v1065_v41 = vmul.f32 %v1001_v44, %v553_v48  ;;  %v2250_v46 = vmul.f32 0.5, %v2207_v35  ;;  %1845 = vtanh.f32 %v862_v30  ;;  %v1111_v34 = vpack.c.bf16 %v2233_v0, %v2225_v1 }
  0x7e   : > { %1296 = vmatmul.bf16.gmra.mxu2 %v1124_v43  ;;  %v1066_v45 = vmul.f32 %v1002_v33, %v554_v2  ;;  %v824_v50 = vadd.f32 %v760_v58, %v504_v10  ;;  %v887_v54 = vmul.f32 0.7978846, %v823_v47  ;;  %v708_v37 = vmul.f32 %v644_v38, %v516_v24 }
  0x7f   : > { %v771_v52 = vmul.f32 %v707_v49, %v515_v18  ;;  %v425_v59 = vmul.f32 %v2044_v31, %v358_v25  ;;  %v491_v60 = vadd.f32 %v2055_v42, %v424_v23  ;;  %v567_v27 = vmul.f32 0.5, %v503_v5 }
  0x80   : > { %v888_v48 = vmul.f32 0.7978846, %v824_v50  ;;  %1847 = vtanh.f32 %v887_v54  ;;  %v412_v35 = vmul.f32 %v2044_v31, %v345_v3  ;;  %v1118_v53 = vpack.c.bf16 %v1066_v45, %v1065_v41 }
  0x81   : > { %v1844_v62 = vpop.eup %1843  ;;  %v772_v39 = vmul.f32 %v708_v37, %v516_v24  ;;  %v835_v63 = vadd.f32 %v771_v52, %v515_v18  ;;  %v492_v2 = vadd.f32 %v2055_v42, %v425_v59  ;;  %v568_v51 = vmul.f32 0.5, %v504_v10  ;;  %v384_v59 = vld [vmem:[%s1992_s11 + $0x198] sm:$0xff] }
  0x82   : > { %1226 = vmatmul.bf16.gmra.mxu0 %v1110_v56  ;;  %1849 = vtanh.f32 %v888_v48  ;;  %v619_v4 = vmul.f32 0.044715, %v491_v60  ;;  %v413_v32 = vmul.f32 %v2044_v31, %v346_v61  ;;  %v989_v6 = vadd.f32 1.0, %v1844_v62  ;;  %v359_v62 = vld [vmem:[%s1992_s11 + $0xd0] sm:$0xff] }
  0x83   : > { %v1846_v16 = vpop.eup %1845  ;;  %v579_v7 = vmul.f32 0.5, %v515_v18  ;;  %v836_v5 = vadd.f32 %v772_v39, %v516_v24  ;;  %v899_v8 = vmul.f32 0.7978846, %v835_v63  ;;  %v580_v9 = vmul.f32 0.5, %v516_v24  ;;  %v372_v24 = vld [vmem:[%s1992_s11 + $0x138] sm:$0xff] }
  0x84   : > { %v620_v11 = vmul.f32 0.044715, %v492_v2  ;;  %v683_v12 = vmul.f32 %v619_v4, %v491_v60  ;;  %v479_v13 = vadd.f32 %v2055_v42, %v412_v35  ;;  %v2262_v10 = vmul.f32 0.5, %v491_v60 }
  0x85   : > { %v900_v14 = vmul.f32 0.7978846, %v836_v5  ;;  %1851 = vtanh.f32 %v899_v8  ;;  %v2265_v15 = vadd.f32 %v2055_v42, %v413_v32  ;;  %v990_v18 = vadd.f32 1.0, %v1846_v16 }
  0x86   : > { %1266 = vmatmul.bf16.gmra.mxu1 %v1118_v53  ;;  %v1848_v17 = vpop.eup %1847  ;;  %v684_v19 = vmul.f32 %v620_v11, %v492_v2  ;;  %v747_v57 = vmul.f32 %v683_v12, %v491_v60  ;;  %v607_v21 = vmul.f32 0.044715, %v479_v13  ;;  %v2269_v26 = vmul.f32 %v989_v6, %v541_v22  ;;  %v360_v12 = vld [vmem:[%s1992_s11 + $0xd8] sm:$0xff] }
  0x87   : > { %v1015_v28 = vadd.f32 1.0, %v1848_v17  ;;  %1853 = vtanh.f32 %v900_v14  ;;  %v2271_v23 = vmul.f32 0.5, %v492_v2  ;;  %v608_v55 = vmul.f32 0.044715, %v2265_v15 }
  0x88   : > { %v1850_v29 = vpop.eup %1849  ;;  %v748_v30 = vmul.f32 %v684_v19, %v492_v2  ;;  %v811_v36 = vadd.f32 %v747_v57, %v491_v60  ;;  %v671_v38 = vmul.f32 %v607_v21, %v479_v13  ;;  %v438_v49 = vmul.f32 %v2044_v31, %v371_v20 }
  0x89   : > { %v1016_v43 = vadd.f32 1.0, %v1850_v29  ;;  %v1079_v44 = vmul.f32 %v1015_v28, %v567_v27  ;;  %v439_v56 = vmul.f32 %v2044_v31, %v372_v24  ;;  %v672_v47 = vmul.f32 %v608_v55, %v2265_v15 }
  0x8a   : > { %v812_v33 = vadd.f32 %v748_v30, %v492_v2  ;;  %v875_v58 = vmul.f32 0.7978846, %v811_v36  ;;  %v735_v25 = vmul.f32 %v671_v38, %v479_v13  ;;  %v505_v3 = vadd.f32 %v2055_v42, %v438_v49 }
  0x8b   : > { %v1852_v41 = vpop.eup %1851  ;;  %v1080_v22 = vmul.f32 %v1016_v43, %v568_v51  ;;  %v506_v45 = vadd.f32 %v2055_v42, %v439_v56  ;;  %v450_v50 = vmul.f32 %v2044_v31, %v383_v40  ;;  %v736_v52 = vmul.f32 %v672_v47, %v2265_v15 }
  0x8c   : > { %v1027_v54 = vadd.f32 1.0, %v1852_v41  ;;  %v876_v37 = vmul.f32 0.7978846, %v812_v33  ;;  %1855 = vtanh.f32 %v875_v58  ;;  %v2284_v61 = vmul.f32 %v990_v18, %v2250_v46 }
  0x8d   : > { %v1854_v60 = vpop.eup %1853  ;;  %v1125_v27 = vpack.c.bf16 %v1080_v22, %v1079_v44  ;;  %v2286_v48 = vmul.f32 0.5, %v479_v13  ;;  %v799_v35 = vadd.f32 %v735_v25, %v479_v13  ;;  %v800_v63 = vadd.f32 %v736_v52, %v2265_v15  ;;  %v347_v22 = vld [vmem:[%s1992_s11 + $0x70] sm:$0xff]  ;;  %v373_v52 = vld [vmem:[%s1992_s11 + $0x140] sm:$0xff] }
  0x8e   : > { %v1028_v53 = vadd.f32 1.0, %v1854_v60  ;;  %v1091_v39 = vmul.f32 %v1027_v54, %v579_v7  ;;  %1857 = vtanh.f32 %v876_v37  ;;  %v633_v51 = vmul.f32 0.044715, %v505_v3  ;;  %v348_v37 = vld [vmem:[%s1992_s11 + $0x78] sm:$0xff] }
  0x8f   : > { %1301 = vmatmul.bf16.gmra.mxu2 %v1125_v27  ;;  %v863_v2 = vmul.f32 0.7978846, %v799_v35  ;;  %v634_v4 = vmul.f32 0.044715, %v506_v45  ;;  %v451_v32 = vmul.f32 %v2044_v31, %v384_v59  ;;  %v864_v46 = vmul.f32 0.7978846, %v800_v63 }
  0x90   : > { %v1092_v16 = vmul.f32 %v1028_v53, %v580_v9  ;;  %v517_v6 = vadd.f32 %v2055_v42, %v450_v50  ;;  %v426_v5 = vmul.f32 %v2044_v31, %v359_v62  ;;  %v697_v7 = vmul.f32 %v633_v51, %v505_v3  ;;  %v374_v53 = vld [vmem:[%s1992_s11 + $0x148] sm:$0xff] }
  0x91   : > { %1859 = vtanh.f32 %v863_v2  ;;  %v698_v8 = vmul.f32 %v634_v4, %v506_v45  ;;  %v518_v11 = vadd.f32 %v2055_v42, %v451_v32  ;;  %v1112_v14 = vpack.c.bf16 %v2284_v61, %v2269_v26  ;;  %v385_v61 = vld [vmem:[%s1992_s11 + $0x1a0] sm:$0xff] }
  0x92   : > { %1231 = vmatmul.bf16.gmra.mxu0 %v1111_v34  ;;  %v1856_v13 = vpop.eup %1855  ;;  %v1131_v9 = vpack.c.bf16 %v1092_v16, %v1091_v39  ;;  %1861 = vtanh.f32 %v864_v46  ;;  %v645_v17 = vmul.f32 0.044715, %v517_v6  ;;  %v544_v19 = vmul.f32 0.5, %v2265_v15 }
  0x93   : > { %v1003_v18 = vadd.f32 1.0, %v1856_v13  ;;  %v761_v57 = vmul.f32 %v697_v7, %v505_v3  ;;  %v762_v21 = vmul.f32 %v698_v8, %v506_v45  ;;  %v646_v0 = vmul.f32 0.044715, %v518_v11 }
  0x94   : > { %v1858_v1 = vpop.eup %1857  ;;  %1331 = vmatmul.bf16.vlgmr.msra.gmra.mxu3 %v1131_v9  ;;  %v709_v34 = vmul.f32 %v645_v17, %v517_v6  ;;  %v427_v20 = vmul.f32 %v2044_v31, %v360_v12  ;;  %v493_v24 = vadd.f32 %v2055_v42, %v426_v5  ;;  %v569_v55 = vmul.f32 0.5, %v505_v3 }
  0x95   : > { %v1004_v28 = vadd.f32 1.0, %v1858_v1  ;;  %v1067_v29 = vmul.f32 %v1003_v18, %v2262_v10  ;;  %v825_v30 = vadd.f32 %v761_v57, %v505_v3  ;;  %v826_v36 = vadd.f32 %v762_v21, %v506_v45 }
  0x96   : > { %v710_v38 = vmul.f32 %v646_v0, %v518_v11  ;;  %v773_v40 = vmul.f32 %v709_v34, %v517_v6  ;;  %v494_v15 = vadd.f32 %v2055_v42, %v427_v20  ;;  %v621_v33 = vmul.f32 0.044715, %v493_v24 }
  0x97   : > { %v1860_v43 = vpop.eup %1859  ;;  %v1068_v44 = vmul.f32 %v1004_v28, %v2271_v23  ;;  %v889_v49 = vmul.f32 0.7978846, %v825_v30  ;;  %v890_v56 = vmul.f32 0.7978846, %v826_v36  ;;  %v570_v47 = vmul.f32 0.5, %v506_v45 }
  0x98   : > { %v1862_v58 = vpop.eup %1861  ;;  %v2306_v25 = vmul.f32 0.5, %v517_v6  ;;  %v774_v10 = vmul.f32 %v710_v38, %v518_v11  ;;  %v837_v41 = vadd.f32 %v773_v40, %v517_v6  ;;  %v991_v50 = vadd.f32 1.0, %v1860_v43 }
  0x99   : > { %v1119_v3 = vpack.c.bf16 %v1068_v44, %v1067_v29  ;;  %1863 = vtanh.f32 %v889_v49  ;;  %v622_v54 = vmul.f32 0.044715, %v494_v15  ;;  %v992_v59 = vadd.f32 1.0, %v1862_v58  ;;  %v386_v44 = vld [vmem:[%s1992_s11 + $0x1a8] sm:$0xff] }
  0x9a   : > { %1865 = vtanh.f32 %v890_v56  ;;  %v838_v23 = vadd.f32 %v774_v10, %v518_v11  ;;  %v901_v60 = vmul.f32 0.7978846, %v837_v41  ;;  %v582_v27 = vmul.f32 0.5, %v518_v11 }
  0x9b   : > { %1271 = vmatmul.bf16.gmra.mxu1 %v1119_v3  ;;  %v685_v35 = vmul.f32 %v621_v33, %v493_v24  ;;  %v686_v45 = vmul.f32 %v622_v54, %v494_v15  ;;  %v414_v62 = vmul.f32 %v2044_v31, %v347_v22  ;;  %v415_v63 = vmul.f32 %v2044_v31, %v348_v37  ;;  %v362_v22 = vld [vmem:[%s1992_s11 + $0xe8] sm:$0xff] }
  0x9c   : > { %v902_v39 = vmul.f32 0.7978846, %v838_v23  ;;  %1867 = vtanh.f32 %v901_v60  ;;  %v440_v2 = vmul.f32 %v2044_v31, %v373_v52  ;;  %v2316_v51 = vmul.f32 %v991_v50, %v2286_v48 }
  0x9d   : > { %v749_v4 = vmul.f32 %v685_v35, %v493_v24  ;;  %v750_v32 = vmul.f32 %v686_v45, %v494_v15  ;;  %v2319_v16 = vadd.f32 %v2055_v42, %v414_v62  ;;  %v2321_v46 = vmul.f32 %v992_v59, %v544_v19 }
  0x9e   : > { %1869 = vtanh.f32 %v902_v39  ;;  %v2324_v6 = vadd.f32 %v2055_v42, %v415_v63  ;;  %v441_v5 = vmul.f32 %v2044_v31, %v374_v53  ;;  %v2327_v8 = vmul.f32 0.5, %v493_v24 }
  0x9f   : > { %v1864_v7 = vpop.eup %1863  ;;  %v813_v11 = vadd.f32 %v749_v4, %v493_v24  ;;  %v814_v12 = vadd.f32 %v750_v32, %v494_v15  ;;  %v609_v48 = vmul.f32 0.044715, %v2319_v16  ;;  %v2332_v18 = vadd.f32 %v2055_v42, %v440_v2  ;;  %v375_v2 = vld [vmem:[%s1992_s11 + $0x150] sm:$0xff] }
  0xa0   : > { %v1866_v13 = vpop.eup %1865  ;;  %v1017_v9 = vadd.f32 1.0, %v1864_v7  ;;  %v610_v17 = vmul.f32 0.044715, %v2324_v6  ;;  %v2335_v19 = vadd.f32 %v2055_v42, %v441_v5  ;;  %v1113_v20 = vpack.c.bf16 %v2321_v46, %v2316_v51 }
  0xa1   : > { %v1018_v57 = vadd.f32 1.0, %v1866_v13  ;;  %v877_v21 = vmul.f32 0.7978846, %v813_v11  ;;  %v878_v1 = vmul.f32 0.7978846, %v814_v12  ;;  %v673_v0 = vmul.f32 %v609_v48, %v2319_v16  ;;  %v376_v11 = vld [vmem:[%s1992_s11 + $0x158] sm:$0xff] }
  0xa2   : > { %1236 = vmatmul.bf16.gmra.mxu0 %v1112_v14  ;;  %v1868_v34 = vpop.eup %1867  ;;  %v1081_v24 = vmul.f32 %v1017_v9, %v569_v55  ;;  %v558_v28 = vmul.f32 0.5, %v494_v15  ;;  %v674_v29 = vmul.f32 %v610_v17, %v2324_v6  ;;  %v635_v40 = vmul.f32 0.044715, %v2332_v18  ;;  %v361_v55 = vld [vmem:[%s1992_s11 + $0xe0] sm:$0xff] }
  0xa3   : > { %v1082_v30 = vmul.f32 %v1018_v57, %v570_v47  ;;  %v1029_v36 = vadd.f32 1.0, %v1868_v34  ;;  %1871 = vtanh.f32 %v877_v21  ;;  %v737_v26 = vmul.f32 %v673_v0, %v2319_v16 }
  0xa4   : > { %v1870_v14 = vpop.eup %1869  ;;  %1873 = vtanh.f32 %v878_v1  ;;  %v738_v38 = vmul.f32 %v674_v29, %v2324_v6  ;;  %v636_v43 = vmul.f32 0.044715, %v2335_v19  ;;  %v699_v47 = vmul.f32 %v635_v40, %v2332_v18 }
  0xa5   : > { %v1126_v15 = vpack.c.bf16 %v1082_v30, %v1081_v24  ;;  %v1030_v49 = vadd.f32 1.0, %v1870_v14  ;;  %v1093_v56 = vmul.f32 %v1029_v36, %v2306_v25  ;;  %v801_v33 = vadd.f32 %v737_v26, %v2319_v16 }
  0xa6   : > { %v802_v58 = vadd.f32 %v738_v38, %v2324_v6  ;;  %v700_v10 = vmul.f32 %v636_v43, %v2335_v19  ;;  %v452_v41 = vmul.f32 %v2044_v31, %v385_v61  ;;  %v453_v54 = vmul.f32 %v2044_v31, %v386_v44 }
  0xa7   : > { %1306 = vmatmul.bf16.gmra.mxu2 %v1126_v15  ;;  %v1094_v3 = vmul.f32 %v1030_v49, %v582_v27  ;;  %v865_v50 = vmul.f32 0.7978846, %v801_v33  ;;  %v428_v37 = vmul.f32 %v2044_v31, %v361_v55  ;;  %v763_v52 = vmul.f32 %v699_v47, %v2332_v18 }
  0xa8   : > { %v866_v25 = vmul.f32 0.7978846, %v802_v58  ;;  %v764_v59 = vmul.f32 %v700_v10, %v2335_v19  ;;  %v519_v23 = vadd.f32 %v2055_v42, %v452_v41  ;;  %v520_v45 = vadd.f32 %v2055_v42, %v453_v54  ;;  %v387_v10 = vld [vmem:[%s1992_s11 + $0x1b0] sm:$0xff]  ;;  %v388_v54 = vld [vmem:[%s1992_s11 + $0x1b8] sm:$0xff] }
  0xa9   : > { %v1872_v60 = vpop.eup %1871  ;;  %v1132_v35 = vpack.c.bf16 %v1094_v3, %v1093_v56  ;;  %1875 = vtanh.f32 %v865_v50  ;;  %v429_v27 = vmul.f32 %v2044_v31, %v362_v22  ;;  %v827_v39 = vadd.f32 %v763_v52, %v2332_v18 }
  0xaa   : > { %v1874_v62 = vpop.eup %1873  ;;  %v1005_v53 = vadd.f32 1.0, %v1872_v60  ;;  %1877 = vtanh.f32 %v866_v25  ;;  %v828_v63 = vadd.f32 %v764_v59, %v2335_v19  ;;  %v545_v32 = vmul.f32 0.5, %v2319_v16  ;;  %v363_v59 = vld [vmem:[%s1992_s11 + $0xf0] sm:$0xff] }
  0xab   : > { %1336 = vmatmul.bf16.gmra.mxu3 %v1132_v35  ;;  %v1006_v4 = vadd.f32 1.0, %v1874_v62  ;;  %v546_v5 = vmul.f32 0.5, %v2324_v6  ;;  %v647_v7 = vmul.f32 0.044715, %v519_v23  ;;  %v891_v48 = vmul.f32 0.7978846, %v827_v39 }
  0xac   : > { %v1069_v12 = vmul.f32 %v1005_v53, %v2327_v8  ;;  %v892_v13 = vmul.f32 0.7978846, %v828_v63  ;;  %v648_v9 = vmul.f32 0.044715, %v520_v45  ;;  %v495_v21 = vadd.f32 %v2055_v42, %v428_v37 }
  0xad   : > { %v1070_v17 = vmul.f32 %v1006_v4, %v558_v28  ;;  %v711_v57 = vmul.f32 %v647_v7, %v519_v23  ;;  %v2374_v1 = vadd.f32 %v2055_v42, %v429_v27  ;;  %1879 = vtanh.f32 %v891_v48 }
  0xae   : > { %v712_v0 = vmul.f32 %v648_v9, %v520_v45  ;;  %v442_v16 = vmul.f32 %v2044_v31, %v375_v2  ;;  %v443_v6 = vmul.f32 %v2044_v31, %v376_v11  ;;  %v571_v8 = vmul.f32 0.5, %v2332_v18 }
  0xaf   : > { %v1876_v34 = vpop.eup %1875  ;;  %v1120_v24 = vpack.c.bf16 %v1070_v17, %v1069_v12  ;;  %1881 = vtanh.f32 %v892_v13  ;;  %v775_v29 = vmul.f32 %v711_v57, %v519_v23  ;;  %v572_v36 = vmul.f32 0.5, %v2335_v19  ;;  %v364_v12 = vld [vmem:[%s1992_s11 + $0xf8] sm:$0xff] }
  0xb0   : > { %v1878_v30 = vpop.eup %1877  ;;  %v993_v28 = vadd.f32 1.0, %v1876_v34  ;;  %v776_v26 = vmul.f32 %v712_v0, %v520_v45  ;;  %v623_v61 = vmul.f32 0.044715, %v495_v21  ;;  %v624_v40 = vmul.f32 0.044715, %v2374_v1 }
  0xb1   : > { %1276 = vmatmul.bf16.gmra.mxu1 %v1120_v24  ;;  %v994_v14 = vadd.f32 1.0, %v1878_v30  ;;  %v839_v38 = vadd.f32 %v775_v29, %v519_v23  ;;  %v2385_v18 = vadd.f32 %v2055_v42, %v442_v16  ;;  %v583_v43 = vmul.f32 0.5, %v519_v23 }
  0xb2   : > { %1241 = vmatmul.bf16.gmra.mxu0 %v1113_v20  ;;  %v840_v44 = vadd.f32 %v776_v26, %v520_v45  ;;  %v687_v55 = vmul.f32 %v623_v61, %v495_v21  ;;  %v2388_v19 = vadd.f32 %v2055_v42, %v443_v6  ;;  %v584_v15 = vmul.f32 0.5, %v520_v45 }
  0xb3   : > { %v903_v49 = vmul.f32 0.7978846, %v839_v38  ;;  %v2390_v51 = vmul.f32 0.5, %v495_v21  ;;  %v688_v46 = vmul.f32 %v624_v40, %v2374_v1  ;;  %v1880_v20 = vpop.eup %1879  ;;  %v2393_v56 = vmul.f32 %v993_v28, %v545_v32 }
  0xb4   : > { %v904_v33 = vmul.f32 0.7978846, %v840_v44  ;;  %v751_v58 = vmul.f32 %v687_v55, %v495_v21  ;;  %v637_v47 = vmul.f32 0.044715, %v2385_v18  ;;  %v1058_v22 = vmul.f32 %v994_v14, %v546_v5  ;;  %v377_v55 = vld [vmem:[%s1992_s11 + $0x160] sm:$0xff] }
  0xb5   : > { %v1882_v41 = vpop.eup %1881  ;;  %v1019_v3 = vadd.f32 1.0, %v1880_v20  ;;  %1883 = vtanh.f32 %v903_v49  ;;  %v752_v50 = vmul.f32 %v688_v46, %v2374_v1  ;;  %v638_v52 = vmul.f32 0.044715, %v2388_v19  ;;  %v378_v49 = vld [vmem:[%s1992_s11 + $0x168] sm:$0xff] }
  0xb6   : > { %v1020_v37 = vadd.f32 1.0, %v1882_v41  ;;  %1885 = vtanh.f32 %v904_v33  ;;  %v815_v25 = vadd.f32 %v751_v58, %v495_v21  ;;  %v701_v35 = vmul.f32 %v637_v47, %v2385_v18  ;;  %v389_v41 = vld [vmem:[%s1992_s11 + $0x1c0] sm:$0xff] }
  0xb7   : > { %v1083_v23 = vmul.f32 %v1019_v3, %v571_v8  ;;  %v816_v60 = vadd.f32 %v752_v50, %v2374_v1  ;;  %v454_v45 = vmul.f32 %v2044_v31, %v387_v10  ;;  %v702_v53 = vmul.f32 %v638_v52, %v2388_v19 }
  0xb8   : > { %v1084_v27 = vmul.f32 %v1020_v37, %v572_v36  ;;  %v879_v62 = vmul.f32 0.7978846, %v815_v25  ;;  %v455_v39 = vmul.f32 %v2044_v31, %v388_v54  ;;  %v765_v2 = vmul.f32 %v701_v35, %v2385_v18 }
  0xb9   : > { %v880_v63 = vmul.f32 0.7978846, %v816_v60  ;;  %v2408_v4 = vadd.f32 %v2055_v42, %v454_v45  ;;  %v430_v32 = vmul.f32 %v2044_v31, %v363_v59  ;;  %v766_v7 = vmul.f32 %v702_v53, %v2388_v19  ;;  %v390_v53 = vld [vmem:[%s1992_s11 + $0x1c8] sm:$0xff] }
  0xba   : > { %v1127_v5 = vpack.c.bf16 %v1084_v27, %v1083_v23  ;;  %1887 = vtanh.f32 %v879_v62  ;;  %v2413_v11 = vadd.f32 %v2055_v42, %v455_v39  ;;  %v560_v13 = vmul.f32 0.5, %v2374_v1 }
  0xbb   : > { %v1884_v48 = vpop.eup %1883  ;;  %1889 = vtanh.f32 %v880_v63  ;;  %v829_v9 = vadd.f32 %v765_v2, %v2385_v18  ;;  %v649_v17 = vmul.f32 0.044715, %v2408_v4  ;;  %v1114_v21 = vpack.c.bf16 %v1058_v22, %v2393_v56 }
  0xbc   : > { %v1886_v57 = vpop.eup %1885  ;;  %1311 = vmatmul.bf16.gmra.mxu2 %v1127_v5  ;;  %v1031_v0 = vadd.f32 1.0, %v1884_v48  ;;  %v830_v16 = vadd.f32 %v766_v7, %v2388_v19  ;;  %v650_v6 = vmul.f32 0.044715, %v2413_v11  ;;  %v431_v1 = vmul.f32 %v2044_v31, %v364_v12  ;;  %v379_v48 = vld [vmem:[%s1992_s11 + $0x170] sm:$0xff] }
  0xbd   : > { %v1032_v34 = vadd.f32 1.0, %v1886_v57  ;;  %v893_v24 = vmul.f32 0.7978846, %v829_v9  ;;  %v713_v8 = vmul.f32 %v649_v17, %v2408_v4  ;;  %v2426_v36 = vadd.f32 %v2055_v42, %v430_v32 }
  0xbe   : > { %v1095_v29 = vmul.f32 %v1031_v0, %v583_v43  ;;  %v894_v30 = vmul.f32 0.7978846, %v830_v16  ;;  %v714_v28 = vmul.f32 %v650_v6, %v2413_v11  ;;  %v2430_v14 = vadd.f32 %v2055_v42, %v431_v1 }
  0xbf   : > { %v1096_v26 = vmul.f32 %v1032_v34, %v584_v15  ;;  %1891 = vtanh.f32 %v893_v24  ;;  %v777_v61 = vmul.f32 %v713_v8, %v2408_v4  ;;  %v573_v40 = vmul.f32 0.5, %v2385_v18  ;;  %v380_v8 = vld [vmem:[%s1992_s11 + $0x178] sm:$0xff] }
  0xc0   : > { %v1888_v38 = vpop.eup %1887  ;;  %1893 = vtanh.f32 %v894_v30  ;;  %v778_v43 = vmul.f32 %v714_v28, %v2413_v11  ;;  %v625_v44 = vmul.f32 0.044715, %v2426_v36  ;;  %v574_v56 = vmul.f32 0.5, %v2388_v19 }
  0xc1   : > { %v1890_v46 = vpop.eup %1889  ;;  %v1133_v15 = vpack.c.bf16 %v1096_v26, %v1095_v29  ;;  %v1007_v20 = vadd.f32 1.0, %v1888_v38  ;;  %v841_v33 = vadd.f32 %v777_v61, %v2408_v4  ;;  %v626_v18 = vmul.f32 0.044715, %v2430_v14 }
  0xc2   : > { %1246 = vmatmul.bf16.gmra.mxu0 %v1114_v21  ;;  %v1008_v58 = vadd.f32 1.0, %v1890_v46  ;;  %v842_v47 = vadd.f32 %v778_v43, %v2413_v11  ;;  %v689_v10 = vmul.f32 %v625_v44, %v2426_v36  ;;  %v444_v50 = vmul.f32 %v2044_v31, %v377_v55 }
  0xc3   : > { %1341 = vmatmul.bf16.gmra.mxu3 %v1133_v15  ;;  %v1071_v22 = vmul.f32 %v1007_v20, %v2390_v51  ;;  %v905_v3 = vmul.f32 0.7978846, %v841_v33  ;;  %v445_v54 = vmul.f32 %v2044_v31, %v378_v49  ;;  %v690_v25 = vmul.f32 %v626_v18, %v2430_v14  ;;  %v391_v33 = vld [vmem:[%s1992_s11 + $0x1d0] sm:$0xff] }
  0xc4   : > { %v1072_v19 = vmul.f32 %v1008_v58, %v560_v13  ;;  %v906_v37 = vmul.f32 0.7978846, %v842_v47  ;;  %v753_v52 = vmul.f32 %v689_v10, %v2426_v36  ;;  %v511_v23 = vadd.f32 %v2055_v42, %v444_v50 }
  0xc5   : > { %v1892_v59 = vpop.eup %1891  ;;  %1895 = vtanh.f32 %v905_v3  ;;  %v2450_v60 = vadd.f32 %v2055_v42, %v445_v54  ;;  %v456_v51 = vmul.f32 %v2044_v31, %v389_v41  ;;  %v754_v62 = vmul.f32 %v690_v25, %v2430_v14 }
  0xc6   : > { %v1894_v35 = vpop.eup %1893  ;;  %v1121_v45 = vpack.c.bf16 %v1072_v19, %v1071_v22  ;;  %v1021_v27 = vadd.f32 1.0, %v1892_v59  ;;  %1897 = vtanh.f32 %v906_v37  ;;  %v585_v63 = vmul.f32 0.5, %v2408_v4 }
  0xc7   : > { %v1022_v39 = vadd.f32 1.0, %v1894_v35  ;;  %v817_v2 = vadd.f32 %v753_v52, %v2426_v36  ;;  %v818_v5 = vadd.f32 %v754_v62, %v2430_v14  ;;  %v639_v7 = vmul.f32 0.044715, %v511_v23  ;;  %v392_v52 = vld [vmem:[%s1992_s11 + $0x1d8] sm:$0xff] }
  0xc8   : > { %1281 = vmatmul.bf16.gmra.mxu1 %v1121_v45  ;;  %v1085_v32 = vmul.f32 %v1021_v27, %v573_v40  ;;  %v640_v12 = vmul.f32 0.044715, %v2450_v60  ;;  %v457_v17 = vmul.f32 %v2044_v31, %v390_v53  ;;  %v2462_v57 = vadd.f32 %v2055_v42, %v456_v51 }
  0xc9   : > { %v1086_v13 = vmul.f32 %v1022_v39, %v574_v56  ;;  %v881_v9 = vmul.f32 0.7978846, %v817_v2  ;;  %v586_v4 = vmul.f32 0.5, %v2413_v11  ;;  %v882_v21 = vmul.f32 0.7978846, %v818_v5 }
  0xca   : > { %v703_v0 = vmul.f32 %v639_v7, %v511_v23  ;;  %v704_v16 = vmul.f32 %v640_v12, %v2450_v60  ;;  %v2467_v24 = vadd.f32 %v2055_v42, %v457_v17  ;;  %v446_v1 = vmul.f32 %v2044_v31, %v379_v48 }
  0xcb   : > { %v1896_v6 = vpop.eup %1895  ;;  %v1128_v34 = vpack.c.bf16 %v1086_v13, %v1085_v32  ;;  %1899 = vtanh.f32 %v881_v9  ;;  %v651_v61 = vmul.f32 0.044715, %v2462_v57  ;;  %v447_v49 = vmul.f32 %v2044_v31, %v380_v8  ;;  %v393_v13 = vld [vmem:[%s1992_s11 + $0x1e0] sm:$0xff] }
  0xcc   : > { %v1898_v29 = vpop.eup %1897  ;;  %v1033_v30 = vadd.f32 1.0, %v1896_v6  ;;  %1901 = vtanh.f32 %v882_v21  ;;  %v767_v28 = vmul.f32 %v703_v0, %v511_v23  ;;  %v768_v11 = vmul.f32 %v704_v16, %v2450_v60 }
  0xcd   : > { %1316 = vmatmul.bf16.gmra.mxu2 %v1128_v34  ;;  %v1034_v26 = vadd.f32 1.0, %v1898_v29  ;;  %v652_v38 = vmul.f32 0.044715, %v2467_v24  ;;  %v561_v15 = vmul.f32 0.5, %v2426_v36  ;;  %v715_v20 = vmul.f32 %v651_v61, %v2462_v57  ;;  %v394_v29 = vld [vmem:[%s1992_s11 + $0x1e8] sm:$0xff] }
  0xce   : > { %v1097_v43 = vmul.f32 %v1033_v30, %v585_v63  ;;  %v831_v44 = vadd.f32 %v767_v28, %v511_v23  ;;  %v832_v55 = vadd.f32 %v768_v11, %v2450_v60  ;;  %v2482_v18 = vadd.f32 %v2055_v42, %v446_v1 }
  0xcf   : > { %v1212_v40 = vpop.f32.mrf.mxu0  ;;  %v1098_v46 = vmul.f32 %v1034_v26, %v586_v4  ;;  %v716_v56 = vmul.f32 %v652_v38, %v2467_v24  ;;  %v2485_v10 = vadd.f32 %v2055_v42, %v447_v49  ;;  %v562_v3 = vmul.f32 0.5, %v2430_v14 }
  0xd0   : > { %1372 = vst [vmem:[%s1997_s14] sm:$0xff] %v1212_v40  ;;  %v895_v58 = vmul.f32 0.7978846, %v831_v44  ;;  %v896_v47 = vmul.f32 0.7978846, %v832_v55  ;;  %v779_v36 = vmul.f32 %v715_v20, %v2462_v57  ;;  %v575_v37 = vmul.f32 0.5, %v511_v23 }
  0xd1   : > { %v1900_v41 = vpop.eup %1899  ;;  %v1134_v22 = vpack.c.bf16 %v1098_v46, %v1097_v43  ;;  %v780_v50 = vmul.f32 %v716_v56, %v2467_v24  ;;  %v458_v59 = vmul.f32 %v2044_v31, %v391_v33  ;;  %v576_v23 = vmul.f32 0.5, %v2450_v60 }
  0xd2   : > { %v1902_v54 = vpop.eup %1901  ;;  %v1009_v19 = vadd.f32 1.0, %v1900_v41  ;;  %1903 = vtanh.f32 %v895_v58  ;;  %v843_v35 = vadd.f32 %v779_v36, %v2462_v57  ;;  %v641_v27 = vmul.f32 0.044715, %v2482_v18 }
  0xd3   : > { %v2490_v25 = vpop.f32.mrf.mxu1  ;;  %1346 = vmatmul.bf16.gmra.mxu3 %v1134_v22  ;;  %v1010_v51 = vadd.f32 1.0, %v1902_v54  ;;  %1905 = vtanh.f32 %v896_v47  ;;  %v844_v14 = vadd.f32 %v780_v50, %v2467_v24  ;;  %v642_v62 = vmul.f32 0.044715, %v2485_v10 }
  0xd4   : > { %1388 = vst [vmem:[%s1997_s14 + $0x80] sm:$0xff] %v2490_v25  ;;  %v1073_v45 = vmul.f32 %v1009_v19, %v561_v15  ;;  %v907_v39 = vmul.f32 0.7978846, %v843_v35  ;;  %v459_v2 = vmul.f32 %v2044_v31, %v392_v52  ;;  %v1509_v32 = vmul.f32 %v1212_v40, %v1212_v40  ;;  %v395_v19 = vld [vmem:[%s1992_s11 + $0x1f0] sm:$0xff] }
  0xd5   : > { %v1074_v53 = vmul.f32 %v1010_v51, %v562_v3  ;;  %v908_v63 = vmul.f32 0.7978846, %v844_v14  ;;  %v705_v7 = vmul.f32 %v641_v27, %v2482_v18  ;;  %v706_v12 = vmul.f32 %v642_v62, %v2485_v10 }
  0xd6   : > { %v2505_v48 = vadd.f32 %v2055_v42, %v458_v59  ;;  %1907 = vtanh.f32 %v907_v39  ;;  %v2512_v16 = vadd.f32 %v2055_v42, %v459_v2  ;;  %v460_v30 = vmul.f32 %v2044_v31, %v393_v13 }
  0xd7   : > { %v1214_v5 = vpop.f32.mrf.mxu0  ;;  %v1122_v17 = vpack.c.bf16 %v1074_v53, %v1073_v45  ;;  %1909 = vtanh.f32 %v908_v63  ;;  %v769_v21 = vmul.f32 %v705_v7, %v2482_v18  ;;  %v770_v0 = vmul.f32 %v706_v12, %v2485_v10  ;;  %v396_v45 = vld [vmem:[%s1992_s11 + $0x1f8] sm:$0xff] }
  0xd8   : > { %1373 = vst [vmem:[%s1997_s14 + $0x8] sm:$0xff] %v1214_v5  ;;  %v1437_v60 = vadd.f32 %v1214_v5, %v1212_v40  ;;  %v1510_v9 = vmul.f32 %v1214_v5, %v1214_v5  ;;  %v1904_v4 = vpop.eup %1903  ;;  %v653_v1 = vmul.f32 0.044715, %v2505_v48  ;;  %v587_v40 = vmul.f32 0.5, %v2462_v57 }
  0xd9   : > { %v1906_v6 = vpop.eup %1905  ;;  %1286 = vmatmul.bf16.gmra.mxu1 %v1122_v17  ;;  %v1023_v8 = vadd.f32 1.0, %v1904_v4  ;;  %v833_v26 = vadd.f32 %v769_v21, %v2482_v18  ;;  %v834_v61 = vadd.f32 %v770_v0, %v2485_v10  ;;  %v654_v43 = vmul.f32 0.044715, %v2512_v16 }
  0xda   : > { %v1573_v34 = vadd.f32 %v1510_v9, %v1509_v32  ;;  %v1024_v28 = vadd.f32 1.0, %v1906_v6  ;;  %v717_v44 = vmul.f32 %v653_v1, %v2505_v48  ;;  %v461_v15 = vmul.f32 %v2044_v31, %v394_v29 }
  0xdb   : > { %v2517_v11 = vpop.f32.mrf.mxu1  ;;  %v1087_v38 = vmul.f32 %v1023_v8, %v575_v37  ;;  %v897_v49 = vmul.f32 0.7978846, %v833_v26  ;;  %v898_v46 = vmul.f32 0.7978846, %v834_v61  ;;  %v588_v56 = vmul.f32 0.5, %v2467_v24 }
  0xdc   : > { %1389 = vst [vmem:[%s1997_s14 + $0x88] sm:$0xff] %v2517_v11  ;;  %v1088_v55 = vmul.f32 %v1024_v28, %v576_v23  ;;  %v1908_v20 = vpop.eup %1907  ;;  %v718_v33 = vmul.f32 %v654_v43, %v2512_v16  ;;  %v781_v57 = vmul.f32 %v717_v44, %v2505_v48  ;;  %v2531_v58 = vadd.f32 %v2055_v42, %v460_v30 }
  0xdd   : > { %v1910_v47 = vpop.eup %1909  ;;  %v1035_v3 = vadd.f32 1.0, %v1908_v20  ;;  %1911 = vtanh.f32 %v897_v49  ;;  %v2534_v36 = vadd.f32 %v2055_v42, %v461_v15  ;;  %v462_v39 = vmul.f32 %v2044_v31, %v395_v19 }
  0xde   : > { %v1129_v22 = vpack.c.bf16 %v1088_v55, %v1087_v38  ;;  %v1036_v24 = vadd.f32 1.0, %v1910_v47  ;;  %1913 = vtanh.f32 %v898_v46  ;;  %v782_v52 = vmul.f32 %v718_v33, %v2512_v16 }
  0xdf   : > { %v1217_v41 = vpop.f32.mrf.mxu0  ;;  %v1099_v37 = vmul.f32 %v1035_v3, %v587_v40  ;;  %v845_v59 = vadd.f32 %v781_v57, %v2505_v48  ;;  %v655_v14 = vmul.f32 0.044715, %v2531_v58  ;;  %v656_v53 = vmul.f32 0.044715, %v2534_v36 }
  0xe0   : > { %1374 = vst [vmem:[%s1997_s14 + $0x10] sm:$0xff] %v1217_v41  ;;  %v1438_v50 = vadd.f32 %v1437_v60, %v1217_v41  ;;  %v1511_v54 = vmul.f32 %v1217_v41, %v1217_v41  ;;  %1321 = vmatmul.bf16.gmra.mxu2 %v1129_v22  ;;  %v1100_v35 = vmul.f32 %v1036_v24, %v588_v56  ;;  %v577_v2 = vmul.f32 0.5, %v2482_v18 }
  0xe1   : > { %v846_v23 = vadd.f32 %v782_v52, %v2512_v16  ;;  %v909_v27 = vmul.f32 0.7978846, %v845_v59  ;;  %v578_v32 = vmul.f32 0.5, %v2485_v10  ;;  %v719_v5 = vmul.f32 %v655_v14, %v2531_v58 }
  0xe2   : > { %v1574_v51 = vadd.f32 %v1573_v34, %v1511_v54  ;;  %v1135_v63 = vpack.c.bf16 %v1100_v35, %v1099_v37  ;;  %v720_v13 = vmul.f32 %v656_v53, %v2534_v36  ;;  %v463_v60 = vmul.f32 %v2044_v31, %v396_v45 }
  0xe3   : > { %v2543_v62 = vpop.f32.mrf.mxu1  ;;  %v1912_v7 = vpop.eup %1911  ;;  %v910_v12 = vmul.f32 0.7978846, %v846_v23  ;;  %1915 = vtanh.f32 %v909_v27  ;;  %v783_v4 = vmul.f32 %v719_v5, %v2531_v58  ;;  %v2557_v0 = vadd.f32 %v2055_v42, %v462_v39 }
  0xe4   : > { %1390 = vst [vmem:[%s1997_s14 + $0x90] sm:$0xff] %v2543_v62  ;;  %v1914_v9 = vpop.eup %1913  ;;  %1351 = vmatmul.bf16.gmra.mxu3 %v1135_v63  ;;  %v1025_v17 = vadd.f32 1.0, %v1912_v7  ;;  %v784_v10 = vmul.f32 %v720_v13, %v2534_v36  ;;  %v2563_v30 = vadd.f32 %v2055_v42, %v463_v60  ;;  %v589_v26 = vmul.f32 0.5, %v2505_v48 }
  0xe5   : > { %v1026_v21 = vadd.f32 1.0, %v1914_v9  ;;  %1917 = vtanh.f32 %v910_v12  ;;  %v847_v8 = vadd.f32 %v783_v4, %v2531_v58  ;;  %v657_v40 = vmul.f32 0.044715, %v2557_v0 }
  0xe6   : > { %v1089_v31 = vmul.f32 %v1025_v17, %v577_v2  ;;  %v848_v29 = vadd.f32 %v784_v10, %v2534_v36  ;;  %v590_v43 = vmul.f32 0.5, %v2512_v16  ;;  %v658_v42 = vmul.f32 0.044715, %v2563_v30 }
  0xe7   : > { %v1219_v18 = vpop.f32.mrf.mxu0  ;;  %v1090_v1 = vmul.f32 %v1026_v21, %v578_v32  ;;  %v911_v55 = vmul.f32 0.7978846, %v847_v8  ;;  %v721_v33 = vmul.f32 %v657_v40, %v2557_v0  ;;  %v591_v14 = vmul.f32 0.5, %v2531_v58 }
  0xe8   : > { %1375 = vst [vmem:[%s1997_s14 + $0x18] sm:$0xff] %v1219_v18  ;;  %v1439_v6 = vadd.f32 %v1438_v50, %v1219_v18  ;;  %v1512_v34 = vmul.f32 %v1219_v18, %v1219_v18  ;;  %v912_v15 = vmul.f32 0.7978846, %v848_v29  ;;  %v722_v41 = vmul.f32 %v658_v42, %v2563_v30 }
  0xe9   : > { %v1916_v61 = vpop.eup %1915  ;;  %v1130_v46 = vpack.c.bf16 %v1090_v1, %v1089_v31  ;;  %1919 = vtanh.f32 %v911_v55  ;;  %v785_v24 = vmul.f32 %v721_v33, %v2557_v0  ;;  %v592_v45 = vmul.f32 0.5, %v2534_v36 }
  0xea   : > { %v1575_v28 = vadd.f32 %v1574_v51, %v1512_v34  ;;  %v1037_v44 = vadd.f32 1.0, %v1916_v61  ;;  %1921 = vtanh.f32 %v912_v15  ;;  %v786_v19 = vmul.f32 %v722_v41, %v2563_v30 }
  0xeb   : > { %v2566_v38 = vpop.f32.mrf.mxu1  ;;  %v1918_v49 = vpop.eup %1917  ;;  %v849_v51 = vadd.f32 %v785_v24, %v2557_v0  ;;  %v593_v17 = vmul.f32 0.5, %v2557_v0  ;;  %v594_v4 = vmul.f32 0.5, %v2563_v30 }
  0xec   : > { %1391 = vst [vmem:[%s1997_s14 + $0x98] sm:$0xff] %v2566_v38  ;;  %v1038_v20 = vadd.f32 1.0, %v1918_v49  ;;  %v1101_v48 = vmul.f32 %v1037_v44, %v589_v26  ;;  %v850_v35 = vadd.f32 %v786_v19, %v2563_v30 }
  0xed   : > { %v913_v63 = vmul.f32 0.7978846, %v849_v51 }
  0xee   : > { %v1102_v47 = vmul.f32 %v1038_v20, %v590_v43  ;;  %v914_v2 = vmul.f32 0.7978846, %v850_v35 }
  0xef   : > { %v1222_v56 = vpop.f32.mrf.mxu0  ;;  %v1920_v37 = vpop.eup %1919  ;;  %1923 = vtanh.f32 %v913_v63 }
  0xf0   : > { %1376 = vst [vmem:[%s1997_s14 + $0x20] sm:$0xff] %v1222_v56  ;;  %v2575_v57 = vadd.f32 %v1439_v6, %v1222_v56  ;;  %v1513_v16 = vmul.f32 %v1222_v56, %v1222_v56  ;;  %1326 = vmatmul.bf16.gmra.mxu2 %v1130_v46  ;;  %v1136_v3 = vpack.c.bf16 %v1102_v47, %v1101_v48  ;;  %v1922_v52 = vpop.eup %1921  ;;  %v1039_v23 = vadd.f32 1.0, %v1920_v37 }
  0xf1   : > { %v2580_v50 = vpop.f32.mrf.mxu2  ;;  %v1040_v27 = vadd.f32 1.0, %v1922_v52  ;;  %1925 = vtanh.f32 %v914_v2 }
  0xf2   : > { %v2578_v22 = vadd.f32 %v1575_v28, %v1513_v16  ;;  %1404 = vst [vmem:[%s1997_s14 + $0x100] sm:$0xff] %v2580_v50  ;;  %v1103_v32 = vmul.f32 %v1039_v23, %v591_v14 }
  0xf3   : > { %v2582_v54 = vpop.f32.mrf.mxu1  ;;  %v1104_v5 = vmul.f32 %v1040_v27, %v592_v45 }
  0xf4   : > { %1392 = vst [vmem:[%s1997_s14 + $0xa0] sm:$0xff] %v2582_v54  ;;  %1356 = vmatmul.bf16.gmra.mxu3 %v1136_v3 }
  0xf5   : > { %v1137_v36 = vpack.c.bf16 %v1104_v5, %v1103_v32  ;;  %v1924_v13 = vpop.eup %1923 }
  0xf6   : > { %v1041_v18 = vadd.f32 1.0, %v1924_v13 }
  0xf7   : > { %v2590_v59 = vpop.f32.mrf.mxu0  ;;  %v1926_v60 = vpop.eup %1925 }
  0xf8   : > { %1377 = vst [vmem:[%s1997_s14 + $0x28] sm:$0xff] %v2590_v59  ;;  %v1042_v21 = vadd.f32 1.0, %v1926_v60  ;;  %v1105_v34 = vmul.f32 %v1041_v18, %v593_v17  ;;  %v1514_v42 = vmul.f32 %v2590_v59, %v2590_v59  ;;  %v1441_v48 = vadd.f32 %v2575_v57, %v2590_v59 }
  0xf9   : > { %v2598_v53 = vpop.f32.mrf.mxu2 }
  0xfa   : > { %1405 = vst [vmem:[%s1997_s14 + $0x108] sm:$0xff] %v2598_v53  ;;  %v1106_v8 = vmul.f32 %v1042_v21, %v594_v4  ;;  %v1577_v33 = vadd.f32 %v2578_v22, %v1514_v42 }
  0xfb   : > { %v2600_v39 = vpop.f32.mrf.mxu1 }
  0xfc   : > { %1393 = vst [vmem:[%s1997_s14 + $0xa8] sm:$0xff] %v2600_v39  ;;  %v1138_v31 = vpack.c.bf16 %v1106_v8, %v1105_v34 }
  0xff   : > { %v1227_v58 = vpop.f32.mrf.mxu0 }
 0x100   : > { %1378 = vst [vmem:[%s1997_s14 + $0x30] sm:$0xff] %v1227_v58  ;;  %v1515_v56 = vmul.f32 %v1227_v58, %v1227_v58  ;;  %v1442_v16 = vadd.f32 %v1441_v48, %v1227_v58 }
 0x101   : > { %v2607_v7 = vpop.f32.mrf.mxu2 }
 0x102   : > { %1406 = vst [vmem:[%s1997_s14 + $0x110] sm:$0xff] %v2607_v7  ;;  %v1578_v24 = vadd.f32 %v1577_v33, %v1515_v56  ;;  %v1526_v56 = vmul.f32 %v2517_v11, %v2517_v11 }
 0x103   : > { %v2609_v12 = vpop.f32.mrf.mxu1 }
 0x104   : > { %1394 = vst [vmem:[%s1997_s14 + $0xb0] sm:$0xff] %v2609_v12  ;;  %1361 = vmatmul.bf16.gmra.mxu3 %v1137_v36 }
 0x107   : > { %v1229_v9 = vpop.f32.mrf.mxu0 }
 0x108   : > { %1379 = vst [vmem:[%s1997_s14 + $0x38] sm:$0xff] %v1229_v9  ;;  %v1516_v47 = vmul.f32 %v1229_v9, %v1229_v9  ;;  %v1443_v19 = vadd.f32 %v1442_v16, %v1229_v9 }
 0x109   : > { %v2618_v10 = vpop.f32.mrf.mxu2 }
 0x10a   : > { %1407 = vst [vmem:[%s1997_s14 + $0x118] sm:$0xff] %v2618_v10  ;;  %v1579_v57 = vadd.f32 %v1578_v24, %v1516_v47  ;;  %v1527_v47 = vmul.f32 %v2543_v62, %v2543_v62 }
 0x10b   : > { %v2620_v6 = vpop.f32.mrf.mxu1 }
 0x10c   : > { %1395 = vst [vmem:[%s1997_s14 + $0xb8] sm:$0xff] %v2620_v6 }
 0x10f   : > { %v1232_v0 = vpop.f32.mrf.mxu0 }
 0x110   : > { %1380 = vst [vmem:[%s1997_s14 + $0x40] sm:$0xff] %v1232_v0  ;;  %v1517_v37 = vmul.f32 %v1232_v0, %v1232_v0  ;;  %v1444_v59 = vadd.f32 %v1443_v19, %v1232_v0 }
 0x112   : > { %v2627_v1 = vpop.f32.mrf.mxu2  ;;  %v1580_v22 = vadd.f32 %v1579_v57, %v1517_v37 }
 0x113   : > { %1408 = vst [vmem:[%s1997_s14 + $0x120] sm:$0xff] %v2627_v1 }
 0x114   : > { %1366 = vmatmul.bf16.gmra.mxu3 %v1138_v31 }
 0x117   : > { %v1234_v29 = vpop.f32.mrf.mxu0  ;;  %v2632_v30 = vpop.f32.mrf.mxu3 }
 0x118   : > { %1381 = vst [vmem:[%s1997_s14 + $0x48] sm:$0xff] %v1234_v29  ;;  %v2634_v28 = vpop.f32.mrf.mxu1  ;;  %v1518_v51 = vmul.f32 %v1234_v29, %v1234_v29  ;;  %v1445_v35 = vadd.f32 %v1444_v59, %v1234_v29 }
 0x119   : > { %1420 = vst [vmem:[%s1997_s14 + $0x180] sm:$0xff] %v2632_v30 }
 0x11a   : > { %1396 = vst [vmem:[%s1997_s14 + $0xc0] sm:$0xff] %v2634_v28  ;;  %v2640_v26 = vpop.f32.mrf.mxu2  ;;  %v1581_v45 = vadd.f32 %v1580_v22, %v1518_v51  ;;  %v1529_v51 = vmul.f32 %v2582_v54, %v2582_v54 }
 0x11b   : > { %1409 = vst [vmem:[%s1997_s14 + $0x128] sm:$0xff] %v2640_v26 }
 0x11f   : > { %v1237_v61 = vpop.f32.mrf.mxu0  ;;  %v2645_v40 = vpop.f32.mrf.mxu3 }
 0x120   : > { %1382 = vst [vmem:[%s1997_s14 + $0x50] sm:$0xff] %v1237_v61  ;;  %v2647_v43 = vpop.f32.mrf.mxu1  ;;  %v1519_v14 = vmul.f32 %v1237_v61, %v1237_v61  ;;  %v1446_v23 = vadd.f32 %v1445_v35, %v1237_v61  ;;  %v1530_v35 = vmul.f32 %v2600_v39, %v2600_v39 }
 0x121   : > { %1421 = vst [vmem:[%s1997_s14 + $0x188] sm:$0xff] %v2645_v40 }
 0x122   : > { %1397 = vst [vmem:[%s1997_s14 + $0xc8] sm:$0xff] %v2647_v43  ;;  %v1582_v2 = vadd.f32 %v1581_v45, %v1519_v14  ;;  %v1531_v45 = vmul.f32 %v2609_v12, %v2609_v12 }
 0x127   : > { %v1239_v44 = vpop.f32.mrf.mxu0 }
 0x128   : > { %1383 = vst [vmem:[%s1997_s14 + $0x58] sm:$0xff] %v1239_v44  ;;  %v1520_v27 = vmul.f32 %v1239_v44, %v1239_v44  ;;  %v1447_v32 = vadd.f32 %v1446_v23, %v1239_v44 }
 0x12a   : > { %v2654_v55 = vpop.f32.mrf.mxu2  ;;  %v1583_v36 = vadd.f32 %v1582_v2, %v1520_v27 }
 0x12b   : > { %1410 = vst [vmem:[%s1997_s14 + $0x130] sm:$0xff] %v2654_v55 }
 0x12e   : > { %v2658_v46 = vpop.f32.mrf.mxu1  ;;  %v2661_v15 = vpop.f32.mrf.mxu3 }
 0x12f   : > { %v1242_v49 = vpop.f32.mrf.mxu0  ;;  %1398 = vst [vmem:[%s1997_s14 + $0xd0] sm:$0xff] %v2658_v46 }
 0x130   : > { %1384 = vst [vmem:[%s1997_s14 + $0x60] sm:$0xff] %v1242_v49  ;;  %v1521_v5 = vmul.f32 %v1242_v49, %v1242_v49  ;;  %v1448_v13 = vadd.f32 %v1447_v32, %v1242_v49  ;;  %v1525_v49 = vmul.f32 %v2490_v25, %v2490_v25 }
 0x131   : > { %1422 = vst [vmem:[%s1997_s14 + $0x190] sm:$0xff] %v2661_v15 }
 0x132   : > { %v2669_v20 = vpop.f32.mrf.mxu2  ;;  %v1584_v9 = vadd.f32 %v1583_v36, %v1521_v5  ;;  %v1533_v36 = vmul.f32 %v2634_v28, %v2634_v28 }
 0x133   : > { %1411 = vst [vmem:[%s1997_s14 + $0x138] sm:$0xff] %v2669_v20 }
 0x136   : > { %v2676_v3 = vpop.f32.mrf.mxu1  ;;  %v2679_v52 = vpop.f32.mrf.mxu3 }
 0x137   : > { %v1244_v41 = vpop.f32.mrf.mxu0  ;;  %1399 = vst [vmem:[%s1997_s14 + $0xd8] sm:$0xff] %v2676_v3 }
 0x138   : > { %1385 = vst [vmem:[%s1997_s14 + $0x68] sm:$0xff] %v1244_v41  ;;  %v1522_v60 = vmul.f32 %v1244_v41, %v1244_v41  ;;  %v1449_v17 = vadd.f32 %v1448_v13, %v1244_v41 }
 0x139   : > { %1423 = vst [vmem:[%s1997_s14 + $0x198] sm:$0xff] %v2679_v52 }
 0x13a   : > { %v1585_v18 = vadd.f32 %v1584_v9, %v1522_v60  ;;  %v1534_v60 = vmul.f32 %v2647_v43, %v2647_v43 }
 0x13f   : > { %v1247_v63 = vpop.f32.mrf.mxu0  ;;  %v2686_v58 = vpop.f32.mrf.mxu2 }
 0x140   : > { %1386 = vst [vmem:[%s1997_s14 + $0x70] sm:$0xff] %v1247_v63  ;;  %v1523_v4 = vmul.f32 %v1247_v63, %v1247_v63  ;;  %v1450_v21 = vadd.f32 %v1449_v17, %v1247_v63  ;;  %v1535_v17 = vmul.f32 %v2658_v46, %v2658_v46 }
 0x141   : > { %1412 = vst [vmem:[%s1997_s14 + $0x140] sm:$0xff] %v2686_v58 }
 0x142   : > { %v1586_v31 = vadd.f32 %v1585_v18, %v1523_v4 }
 0x145   : > { %v2690_v34 = vpop.f32.mrf.mxu1 }
 0x146   : > { %1400 = vst [vmem:[%s1997_s14 + $0xe0] sm:$0xff] %v2690_v34  ;;  %v2694_v0 = vpop.f32.mrf.mxu3 }
 0x147   : > { %v1249_v8 = vpop.f32.mrf.mxu0  ;;  %v2697_v44 = vpop.f32.mrf.mxu2  ;;  %1424 = vst [vmem:[%s1997_s14 + $0x1a0] sm:$0xff] %v2694_v0 }
 0x148   : > { %1387 = vst [vmem:[%s1997_s14 + $0x78] sm:$0xff] %v1249_v8  ;;  %v1451_v29 = vadd.f32 %v1450_v21, %v1249_v8  ;;  %v1524_v61 = vmul.f32 %v1249_v8, %v1249_v8 }
 0x149   : > { %1413 = vst [vmem:[%s1997_s14 + $0x148] sm:$0xff] %v2697_v44 }
 0x14a   : > { %v1452_v42 = vadd.f32 %v1451_v29, %v2490_v25  ;;  %v1587_v48 = vadd.f32 %v1586_v31, %v1524_v61  ;;  %v1528_v25 = vmul.f32 %v2566_v38, %v2566_v38  ;;  %v1537_v61 = vmul.f32 %v2690_v34, %v2690_v34 }
 0x14c   : > { %v1453_v33 = vadd.f32 %v1452_v42, %v2517_v11  ;;  %v1588_v16 = vadd.f32 %v1587_v48, %v1525_v49 }
 0x14d   : > { %v1284_v19 = vpop.f32.mrf.mxu1 }
 0x14e   : > { %v1454_v41 = vadd.f32 %v1453_v33, %v2543_v62  ;;  %v1589_v24 = vadd.f32 %v1588_v16, %v1526_v56  ;;  %1401 = vst [vmem:[%s1997_s14 + $0xe8] sm:$0xff] %v1284_v19  ;;  %v2713_v37 = vpop.f32.mrf.mxu3  ;;  %v1538_v48 = vmul.f32 %v1284_v19, %v1284_v19 }
 0x14f   : > { %1425 = vst [vmem:[%s1997_s14 + $0x1a8] sm:$0xff] %v2713_v37 }
 0x150   : > { %v1455_v57 = vadd.f32 %v1454_v41, %v2566_v38  ;;  %v1590_v59 = vadd.f32 %v1589_v24, %v1527_v47  ;;  %v2720_v11 = vpop.f32.mrf.mxu2 }
 0x151   : > { %1414 = vst [vmem:[%s1997_s14 + $0x150] sm:$0xff] %v2720_v11 }
 0x152   : > { %v1456_v62 = vadd.f32 %v1455_v57, %v2582_v54  ;;  %v1591_v22 = vadd.f32 %v1590_v59, %v1528_v25  ;;  %v1532_v54 = vmul.f32 %v2620_v6, %v2620_v6  ;;  %v1541_v57 = vmul.f32 %v2580_v50, %v2580_v50 }
 0x154   : > { %v1457_v38 = vadd.f32 %v1456_v62, %v2600_v39  ;;  %v1592_v14 = vadd.f32 %v1591_v22, %v1529_v51 }
 0x156   : > { %v1593_v23 = vadd.f32 %v1592_v14, %v1530_v35  ;;  %v1458_v27 = vadd.f32 %v1457_v38, %v2609_v12  ;;  %v1287_v63 = vpop.f32.mrf.mxu1  ;;  %v2733_v2 = vpop.f32.mrf.mxu3  ;;  %v1543_v35 = vmul.f32 %v2607_v7, %v2607_v7 }
 0x157   : > { %1402 = vst [vmem:[%s1997_s14 + $0xf0] sm:$0xff] %v1287_v63 }
 0x158   : > { %v1459_v32 = vadd.f32 %v1458_v27, %v2620_v6  ;;  %v1594_v5 = vadd.f32 %v1593_v23, %v1531_v45  ;;  %1426 = vst [vmem:[%s1997_s14 + $0x1b0] sm:$0xff] %v2733_v2  ;;  %v2741_v39 = vpop.f32.mrf.mxu2 }
 0x159   : > { %1415 = vst [vmem:[%s1997_s14 + $0x158] sm:$0xff] %v2741_v39 }
 0x15a   : > { %v1460_v12 = vadd.f32 %v1459_v32, %v2634_v28  ;;  %v1595_v13 = vadd.f32 %v1594_v5, %v1532_v54  ;;  %v1536_v28 = vmul.f32 %v2676_v3, %v2676_v3 }
 0x15c   : > { %v1461_v6 = vadd.f32 %v1460_v12, %v2647_v43  ;;  %v1596_v9 = vadd.f32 %v1595_v13, %v1533_v36 }
 0x15e   : > { %v1462_v4 = vadd.f32 %v1461_v6, %v2658_v46  ;;  %v1597_v18 = vadd.f32 %v1596_v9, %v1534_v60  ;;  %v1289_v21 = vpop.f32.mrf.mxu1  ;;  %v2754_v8 = vpop.f32.mrf.mxu3 }
 0x15f   : > { %1403 = vst [vmem:[%s1997_s14 + $0xf8] sm:$0xff] %v1289_v21  ;;  %v1540_v24 = vmul.f32 %v1289_v21, %v1289_v21 }
 0x160   : > { %v1463_v31 = vadd.f32 %v1462_v4, %v2676_v3  ;;  %v1598_v29 = vadd.f32 %v1597_v18, %v1535_v17  ;;  %1427 = vst [vmem:[%s1997_s14 + $0x1b8] sm:$0xff] %v2754_v8  ;;  %v1539_v3 = vmul.f32 %v1287_v63, %v1287_v63 }
 0x162   : > { %v1464_v43 = vadd.f32 %v1463_v31, %v2690_v34  ;;  %v1599_v46 = vadd.f32 %v1598_v29, %v1536_v28 }
 0x163   : > { %v1322_v56 = vpop.f32.mrf.mxu2 }
 0x164   : > { %v1600_v49 = vadd.f32 %v1599_v46, %v1537_v61  ;;  %v1465_v42 = vadd.f32 %v1464_v43, %v1284_v19  ;;  %1416 = vst [vmem:[%s1997_s14 + $0x160] sm:$0xff] %v1322_v56  ;;  %v1542_v19 = vmul.f32 %v2598_v53, %v2598_v53  ;;  %v1552_v43 = vmul.f32 %v2741_v39, %v2741_v39 }
 0x166   : > { %v1601_v33 = vadd.f32 %v1600_v49, %v1538_v48  ;;  %v1466_v16 = vadd.f32 %v1465_v42, %v1287_v63 }
 0x167   : > { %v2766_v25 = vpop.f32.mrf.mxu3 }
 0x168   : > { %v1602_v47 = vadd.f32 %v1601_v33, %v1539_v3  ;;  %v1467_v41 = vadd.f32 %v1466_v16, %v1289_v21  ;;  %1428 = vst [vmem:[%s1997_s14 + $0x1c0] sm:$0xff] %v2766_v25 }
 0x16a   : > { %v1468_v34 = vadd.f32 %v1467_v41, %v2580_v50  ;;  %v1603_v59 = vadd.f32 %v1602_v47, %v1540_v24  ;;  %v1544_v50 = vmul.f32 %v2618_v10, %v2618_v10 }
 0x16b   : > { %v1324_v22 = vpop.f32.mrf.mxu2 }
 0x16c   : > { %v1469_v51 = vadd.f32 %v1468_v34, %v2598_v53  ;;  %v1604_v62 = vadd.f32 %v1603_v59, %v1541_v57  ;;  %1417 = vst [vmem:[%s1997_s14 + $0x168] sm:$0xff] %v1324_v22  ;;  %v1545_v53 = vmul.f32 %v2627_v1, %v2627_v1  ;;  %v1554_v16 = vmul.f32 %v1324_v22, %v1324_v22 }
 0x16e   : > { %v1470_v38 = vadd.f32 %v1469_v51, %v2607_v7  ;;  %v1605_v14 = vadd.f32 %v1604_v62, %v1542_v19  ;;  %v1546_v7 = vmul.f32 %v2640_v26, %v2640_v26 }
 0x16f   : > { %v2783_v27 = vpop.f32.mrf.mxu3 }
 0x170   : > { %v1471_v45 = vadd.f32 %v1470_v38, %v2618_v10  ;;  %v1606_v23 = vadd.f32 %v1605_v14, %v1543_v35  ;;  %1429 = vst [vmem:[%s1997_s14 + $0x1c8] sm:$0xff] %v2783_v27  ;;  %v1547_v10 = vmul.f32 %v2654_v55, %v2654_v55  ;;  %v1560_v14 = vmul.f32 %v2679_v52, %v2679_v52 }
 0x172   : > { %v1472_v63 = vadd.f32 %v1471_v45, %v2627_v1  ;;  %v1607_v54 = vadd.f32 %v1606_v23, %v1544_v50  ;;  %v1548_v1 = vmul.f32 %v2669_v20, %v2669_v20  ;;  %v1561_v23 = vmul.f32 %v2694_v0, %v2694_v0 }
 0x173   : > { %v1327_v36 = vpop.f32.mrf.mxu2 }
 0x174   : > { %v1473_v32 = vadd.f32 %v1472_v63, %v2640_v26  ;;  %v1608_v5 = vadd.f32 %v1607_v54, %v1545_v53  ;;  %1418 = vst [vmem:[%s1997_s14 + $0x170] sm:$0xff] %v1327_v36  ;;  %v1549_v26 = vmul.f32 %v2686_v58, %v2686_v58  ;;  %v1555_v41 = vmul.f32 %v1327_v36, %v1327_v36 }
 0x175   : > { %v1562_v63 = vmul.f32 %v2713_v37, %v2713_v37 }
 0x176   : > { %v1609_v12 = vadd.f32 %v1608_v5, %v1546_v7  ;;  %v1474_v13 = vadd.f32 %v1473_v32, %v2654_v55  ;;  %v1550_v55 = vmul.f32 %v2697_v44, %v2697_v44  ;;  %v1563_v7 = vmul.f32 %v2733_v2, %v2733_v2 }
 0x177   : > { %v2800_v9 = vpop.f32.mrf.mxu3  ;;  %v1564_v5 = vmul.f32 %v2754_v8, %v2754_v8 }
 0x178   : > { %v1475_v60 = vadd.f32 %v1474_v13, %v2669_v20  ;;  %v1610_v6 = vadd.f32 %v1609_v12, %v1547_v10  ;;  %1430 = vst [vmem:[%s1997_s14 + $0x1d0] sm:$0xff] %v2800_v9  ;;  %v1551_v20 = vmul.f32 %v2720_v11, %v2720_v11  ;;  %v1565_v12 = vmul.f32 %v2766_v25, %v2766_v25 }
 0x17a   : > { %v1476_v17 = vadd.f32 %v1475_v60, %v2686_v58  ;;  %v1611_v4 = vadd.f32 %v1610_v6, %v1548_v1  ;;  %v1566_v1 = vmul.f32 %v2783_v27, %v2783_v27  ;;  %v1567_v6 = vmul.f32 %v2800_v9, %v2800_v9 }
 0x17b   : > { %v1329_v28 = vpop.f32.mrf.mxu2 }
 0x17c   : > { %v1477_v18 = vadd.f32 %v1476_v17, %v2697_v44  ;;  %v1612_v21 = vadd.f32 %v1611_v4, %v1549_v26  ;;  %1419 = vst [vmem:[%s1997_s14 + $0x178] sm:$0xff] %v1329_v28  ;;  %v1553_v44 = vmul.f32 %v1322_v56, %v1322_v56  ;;  %v1556_v57 = vmul.f32 %v1329_v28, %v1329_v28 }
 0x17e   : > { %v1478_v31 = vadd.f32 %v1477_v18, %v2720_v11  ;;  %v1613_v29 = vadd.f32 %v1612_v21, %v1550_v55 }
 0x17f   : > { %v1359_v46 = vpop.f32.mrf.mxu3 }
 0x180   : > { %v1479_v58 = vadd.f32 %v1478_v31, %v2741_v39  ;;  %v1614_v61 = vadd.f32 %v1613_v29, %v1551_v20  ;;  %1431 = vst [vmem:[%s1997_s14 + $0x1d8] sm:$0xff] %v1359_v46  ;;  %v1557_v39 = vmul.f32 %v2632_v30, %v2632_v30  ;;  %v1568_v4 = vmul.f32 %v1359_v46, %v1359_v46 }
 0x182   : > { %v1615_v49 = vadd.f32 %v1614_v61, %v1552_v43  ;;  %v1480_v42 = vadd.f32 %v1479_v58, %v1322_v56  ;;  %v1558_v56 = vmul.f32 %v2645_v40, %v2645_v40 }
 0x184   : > { %v1616_v48 = vadd.f32 %v1615_v49, %v1553_v44  ;;  %v1481_v33 = vadd.f32 %v1480_v42, %v1324_v22  ;;  %v1559_v22 = vmul.f32 %v2661_v15, %v2661_v15 }
 0x186   : > { %v1617_v3 = vadd.f32 %v1616_v48, %v1554_v16  ;;  %v1482_v47 = vadd.f32 %v1481_v33, %v1327_v36 }
 0x187   : > { %v1362_v34 = vpop.f32.mrf.mxu3 }
 0x188   : > { %v1618_v11 = vadd.f32 %v1617_v3, %v1555_v41  ;;  %v1483_v24 = vadd.f32 %v1482_v47, %v1329_v28  ;;  %1432 = vst [vmem:[%s1997_s14 + $0x1e0] sm:$0xff] %v1362_v34  ;;  %v1569_v28 = vmul.f32 %v1362_v34, %v1362_v34 }
 0x18a   : > { %v1484_v59 = vadd.f32 %v1483_v24, %v2632_v30  ;;  %v1619_v19 = vadd.f32 %v1618_v11, %v1556_v57  ;;  %v1436_v24 = vld [vmem:[%s2877_s7] sm:$0x1] }
 0x18c   : > { %v1485_v51 = vadd.f32 %v1484_v59, %v2645_v40  ;;  %v1620_v62 = vadd.f32 %v1619_v19, %v1557_v39  ;;  %v1508_v39 = vld [vmem:[%s2878_s8] sm:$0x1] }
 0x18e   : > { %v1486_v35 = vadd.f32 %v1485_v51, %v2661_v15  ;;  %v1621_v38 = vadd.f32 %v1620_v62, %v1558_v56 }
 0x18f   : > { %v1364_v45 = vpop.f32.mrf.mxu3 }
 0x190   : > { %v1487_v30 = vadd.f32 %v1486_v35, %v2679_v52  ;;  %v1622_v50 = vadd.f32 %v1621_v38, %v1559_v22  ;;  %1433 = vst [vmem:[%s1997_s14 + $0x1e8] sm:$0xff] %v1364_v45  ;;  %v1570_v29 = vmul.f32 %v1364_v45, %v1364_v45 }
 0x192   : > { %v1488_v53 = vadd.f32 %v1487_v30, %v2694_v0  ;;  %v1623_v40 = vadd.f32 %v1622_v50, %v1560_v14 }
 0x194   : > { %v1489_v15 = vadd.f32 %v1488_v53, %v2713_v37  ;;  %v1624_v54 = vadd.f32 %v1623_v40, %v1561_v23 }
 0x196   : > { %v1625_v52 = vadd.f32 %v1624_v54, %v1562_v63  ;;  %v1490_v32 = vadd.f32 %v1489_v15, %v2733_v2 }
 0x197   : > { %v1367_v10 = vpop.f32.mrf.mxu3 }
 0x198   : > { %v1491_v0 = vadd.f32 %v1490_v32, %v2754_v8  ;;  %v1626_v36 = vadd.f32 %v1625_v52, %v1563_v7  ;;  %1434 = vst [vmem:[%s1997_s14 + $0x1f0] sm:$0xff] %v1367_v10  ;;  %v1571_v43 = vmul.f32 %v1367_v10, %v1367_v10 }
 0x19a   : > { %v1492_v13 = vadd.f32 %v1491_v0, %v2766_v25  ;;  %v1627_v37 = vadd.f32 %v1626_v36, %v1564_v5 }
 0x19c   : > { %v1493_v2 = vadd.f32 %v1492_v13, %v2783_v27  ;;  %v1628_v60 = vadd.f32 %v1627_v37, %v1565_v12 }
 0x19e   : > { %v1494_v8 = vadd.f32 %v1493_v2, %v2800_v9  ;;  %v1629_v26 = vadd.f32 %v1628_v60, %v1566_v1 }
 0x19f   : > { %v1369_v18 = vpop.f32.mrf.mxu3 }
 0x1a0   : > { %v1495_v17 = vadd.f32 %v1494_v8, %v1359_v46  ;;  %v1630_v55 = vadd.f32 %v1629_v26, %v1567_v6  ;;  %1435 = vst [vmem:[%s1997_s14 + $0x1f8] sm:$0xff] %v1369_v18  ;;  %v1572_v42 = vmul.f32 %v1369_v18, %v1369_v18 }
 0x1a2   : > { %v1631_v25 = vadd.f32 %v1630_v55, %v1568_v4  ;;  %v1496_v21 = vadd.f32 %v1495_v17, %v1362_v34 }
 0x1a4   : > { %v1632_v20 = vadd.f32 %v1631_v25, %v1569_v28  ;;  %v1497_v31 = vadd.f32 %v1496_v21, %v1364_v45 }
 0x1a6   : > { %v1633_v58 = vadd.f32 %v1632_v20, %v1570_v29  ;;  %v1498_v27 = vadd.f32 %v1497_v31, %v1367_v10 }
 0x1a8   : > { %v1634_v61 = vadd.f32 %v1633_v58, %v1571_v43  ;;  %v1499_v49 = vadd.f32 %v1498_v27, %v1369_v18 }
 0x1aa   : > { %v1500_v44 = vrot.slane %v1499_v49, 4  ;;  %v1635_v9 = vadd.f32 %v1634_v61, %v1572_v42 }
 0x1ac   : > { %v1501_v48 = vadd.f32 %v1500_v44, %v1499_v49  ;;  %v1636_v33 = vrot.slane %v1635_v9, 4 }
 0x1ae   : > { %v1502_v46 = vrot.slane %v1501_v48, 2  ;;  %v1637_v16 = vadd.f32 %v1636_v33, %v1635_v9 }
 0x1b0   : > { %v1503_v3 = vadd.f32 %v1502_v46, %v1501_v48  ;;  %v1638_v47 = vrot.slane %v1637_v16, 2 }
 0x1b2   : > { %v1504_v41 = vrot.slane %v1503_v3, 1  ;;  %v1639_v11 = vadd.f32 %v1638_v47, %v1637_v16 }
 0x1b4   : > { %v1505_v57 = vadd.f32 %v1504_v41, %v1503_v3  ;;  %v1640_v34 = vrot.slane %v1639_v11, 1 }
 0x1b6   : > { %v1506_v59 = vadd.f32 %v1505_v57, %v1436_v24  ;;  %v1641_v19 = vadd.f32 %v1640_v34, %v1639_v11 }
 0x1b8   : > { %1507 = vst [vmem:[%s2877_s7] sm:$0x1] %v1506_v59  ;;  %v1642_v56 = vadd.f32 %v1641_v19, %v1508_v39 }
 0x1ba   : > { %1643 = vst [vmem:[%s2878_s8] sm:$0x1] %v1642_v56 }
 0x1bb PF: > { %s19_s27 = sadd.s32 1, %s1933_s27  }
 0x1bc   : > { %p16_p5 = scmp.ge.s32.totalorder %s19_s27, 4  }
 0x1be   :  { %18 = sbr.rel (!%p16_p5) target bundleno = 1 (0x1), region = 94 }

// kernel: res_block_101.9
= control target key start
LH: loop header
LB: loop body
LE: loop exit
PB: predicated region body
PF: predicated region fallthrough
CT: control target
= control target key end

     0   :  { %15 = vsyncpa [#allocation3], 0  ;;  %s2744_s0 = inlined_call_operand.vmem [shape: f32[1024,128], index: 0, kind: input, shape index: {}]   ;;  %s2745_s1 = inlined_call_operand.vmem [shape: f32[1024,128], index: 1, kind: input, shape index: {}]   ;;  %s2746_s2 = inlined_call_operand.vmem [shape: f32[1,128], index: 2, kind: input, shape index: {}]   ;;  %s2747_s3 = inlined_call_operand.vmem [shape: f32[1,128], index: 3, kind: input, shape index: {}]   ;;  %s2748_s4 = inlined_call_operand.vmem [shape: f32[1,128], index: 4, kind: input, shape index: {}]   ;;  %s2749_s5 = inlined_call_operand.vmem [shape: f32[1,128], index: 5, kind: input, shape index: {}]   ;;  %s2750_s6 = inlined_call_operand.vmem [shape: f32[1,128], index: 6, kind: input, shape index: {}]   ;;  %s2751_s7 = inlined_call_operand.vmem [shape: f32[1,128], index: 7, kind: input, shape index: {}]   ;;  %s2752_s8 = inlined_call_operand.vmem [shape: f32[1,128], index: 8, kind: input, shape index: {}]   ;;  %s2753_s9 = inlined_call_operand.vmem [shape: f32[1,128], index: 9, kind: input, shape index: {}]   ;;  %s2754_s10 = inlined_call_operand.hbm [shape: f32[1024,128], index: 10, kind: output, shape index: {}]  }
   0x1   :  { %17 = vsyncpa [#allocation3 + $0x1], 0  ;;  %s1928_s13 = smov 0   ;;  %s1930_s14 = smov 0  }
   0x2   :  { %s1932_s15 = smov 0   ;;  %s1934_s16 = smov 0  }
   0x3 LB: > { %s1949_s17 = sadd.s32 4294967295, %s1869_s16   ;;  %s1619_s18 = sadd.s32 4294967294, %s1869_s16   ;;  %s1869_s16 = sphi %s1934_s16, %s2760_s16   ;;  %s1865_s15 = sphi %s1932_s15, %s2759_s15   ;;  %s1861_s14 = sphi %s1930_s14, %s2758_s14   ;;  %s1857_s13 = sphi %s1928_s13, %s2757_s13  }
   0x4   : > { %s1953_s19 = sadd.s32 1, %s1869_s16   ;;  %s250_s20 = sadd.s32 1, %s1865_s15 }
   0x5   : > { %s247_s21 = ssub.s32 %s1869_s16, %s1953_s19  ;;  %p260_p0 = scmp.ne.s32.totalorder %s1865_s15, %s1861_s14 }
   0x6   : > { %p248_p1 = scmp.eq.s32.totalorder %s247_s21, 0  ;;  %p261_p2 = scmp.eq.s32.totalorder %s1949_s17, 1 }
   0x7   : > { %p266_p3 = scmp.ne.s32.totalorder %s1861_s14, %s1857_s13  ;;  %p267_p4 = scmp.eq.s32.totalorder %s1619_s18, 1 }
   0x8   : > { %s1964_s22 = scalar_select %p248_p1, %s1865_s15, %s250_s20  }
   0x9   : > { %p1966_p5 = por %p261_p2, %p260_p0  ;;  %p1970_p6 = por %p267_p4, %p266_p3 }
   0xa   : > { %p1622_p7 = scmp.ge.s32.totalorder %s1869_s16, 1  ;;  %p327_p8 = scmp.lt.s32.totalorder %s1869_s16, 3 }
   0xc   : > { %p328_p9 = pnand %p1622_p7, %p327_p8 }
   0xd   : > { %s1624_s18 = sshll.u32 (!%p328_p9), %s1949_s17, 6  ;;  %s1827_s11 = scalar_lea.hbm (!%p328_p9), %s2754_s10, 1024 }
   0xe   : > { %331 = sbr.rel (%p328_p9) target bundleno = 295 (0x127), region = 60  ;;  %p371_p10 = scmp.lt.s32.totalorder (!%p328_p9), %s1624_s18, 127 }
  0x13   : > { %v383_v0 = vld [vmem:[%s2746_s2] sm:$0x1]  ;;  %s2762_s18 = smov (!%p371_p10, %s1624_s18), 127 }
  0x14   : > { %v384_v1 = vld [vmem:[%s2747_s3] sm:$0x1]  ;;  %v387_v2 = vmul.f32 0.0009765625, %v383_v0  ;;  %s1625_s20 = sshll.u32 %s2762_s18, 3 }
  0x15   : > { %v388_v3 = vmul.f32 0.0009765625, %v384_v1  ;;  %v406_v4 = vld [vmem:[%s2750_s6] sm:$0x1]  ;;  %s1995_s28 = scalar_lea.vmem %s2744_s0, %s1625_s20  ;;  %s2003_s18 = scalar_lea.vmem %s2745_s1, %s1625_s20 }
  0x16   : > { %v407_v5 = vld [vmem:[%s2751_s7] sm:$0x1]  ;;  %v410_v6 = vmul.f32 0.0009765625, %v406_v4  ;;  %v389_v7 = vmul.f32 %v387_v2, %v387_v2  ;;  %v430_v37 = vld [vmem:[%s1995_s28 + $0x8] sm:$0xff]  ;;  %v431_v38 = vld [vmem:[%s1995_s28 + $0x10] sm:$0xff]  ;;  %s367_s20 = sand.u32 1, %s1861_s14  }
  0x17   : > { %v411_v8 = vmul.f32 0.0009765625, %v407_v5  ;;  %v385_v26 = vld [vmem:[%s2748_s4] sm:$0x1]  ;;  %v628_v42 = vld [vmem:[%s2003_s18 + $0x8] sm:$0xff]  ;;  %v629_v43 = vld [vmem:[%s2003_s18 + $0x10] sm:$0xff]  ;;  %s2104_s29 = sshll.u32 %s367_s20, 9 }
  0x18   : > { %v412_v9 = vmul.f32 %v410_v6, %v410_v6  ;;  %v390_v10 = vsub.f32 %v388_v3, %v389_v7  ;;  %v408_v28 = vld [vmem:[%s2752_s8] sm:$0x1]  ;;  %v432_v46 = vld [vmem:[%s1995_s28 + $0x18] sm:$0xff]  ;;  %v434_v54 = vld [vmem:[%s1995_s28 + $0x28] sm:$0xff]  ;;  %s2128_s30 = scalar_lea.vmem [#allocation2], %s2104_s29 }
  0x19   : > { %v386_v31 = vld [vmem:[%s2749_s5] sm:$0x1]  ;;  %v630_v47 = vld [vmem:[%s2003_s18 + $0x18] sm:$0xff]  ;;  %v632_v55 = vld [vmem:[%s2003_s18 + $0x28] sm:$0xff]  ;;  %s1542_s21 = sshll.u32 %s2128_s30, 4  ;;  %s1543_s21 = int_to_ptr.vmem [resolvable:$true] %s1542_s21 }
  0x1a   : > { %v413_v11 = vsub.f32 %v411_v8, %v412_v9  ;;  %v391_v12 = vmax.f32 %v390_v10, 0.0  ;;  %v409_v33 = vld [vmem:[%s2753_s9] sm:$0x1] }
  0x1b   : > { %v429_v36 = vld [vmem:[%s1995_s28] sm:$0xff] }
  0x1c   : > { %v414_v13 = vmax.f32 %v413_v11, 0.0  ;;  %v392_v14 = vadd.f32 1e-05, %v391_v12  ;;  %v627_v41 = vld [vmem:[%s2003_s18] sm:$0xff] }
  0x1d   : > { %v433_v48 = vld [vmem:[%s1995_s28 + $0x20] sm:$0xff] }
  0x1e   : > { %v415_v15 = vadd.f32 1e-05, %v414_v13  ;;  %1675 = vrsqrt.f32 %v392_v14  ;;  %vm399_vm0 = vweird.f32 %v392_v14  ;;  %v631_v53 = vld [vmem:[%s2003_s18 + $0x20] sm:$0xff] }
  0x20   : > { %1677 = vrsqrt.f32 %v415_v15  ;;  %vm422_vm2 = vweird.f32 %v415_v15 }
  0x24   : > { %v1676_v16 = vpop.eup %1675 }
  0x25   : > { %v394_v18 = vmul.f32 %v1676_v16, %v392_v14  ;;  %vm400_vm1 = vweird.f32 %v1676_v16 }
  0x26   : > { %v1678_v17 = vpop.eup %1677  ;;  %vm401_vm4 = vmor %vm399_vm0, %vm400_vm1 }
  0x27   : > { %v417_v19 = vmul.f32 %v1678_v17, %v415_v15  ;;  %v395_v20 = vmul.f32 %v1676_v16, %v394_v18  ;;  %vm423_vm3 = vweird.f32 %v1678_v17 }
  0x28   : > { %vm424_vm5 = vmor %vm422_vm2, %vm423_vm3 }
  0x29   : > { %v418_v21 = vmul.f32 %v1678_v17, %v417_v19  ;;  %v396_v22 = vmul.f32 0.5, %v395_v20 }
  0x2b   : > { %v419_v23 = vmul.f32 0.5, %v418_v21  ;;  %v397_v24 = vsub.f32 1.5, %v396_v22  ;;  %v633_v21 = vld [vmem:[%s2003_s18 + $0x30] sm:$0xff] }
  0x2d   : > { %v420_v25 = vsub.f32 1.5, %v419_v23  ;;  %v398_v27 = vmul.f32 %v1676_v16, %v397_v24 }
  0x2f   : > { %v421_v29 = vmul.f32 %v1678_v17, %v420_v25  ;;  %v402_v30 = vsel %vm401_vm4, %v1676_v16, %v398_v27  ;;  %v435_v16 = vld [vmem:[%s1995_s28 + $0x30] sm:$0xff] }
  0x30   : > { %v403_v32 = vmul.f32 %v402_v30, %v385_v26 }
  0x31   : > { %v425_v34 = vsel %vm424_vm5, %v1678_v17, %v421_v29 }
  0x32   : > { %v426_v35 = vmul.f32 %v425_v34, %v408_v28  ;;  %v404_v39 = vmul.f32 %v403_v32, %v387_v2  ;;  %v2014_v40 = vperm.slane %v403_v32, 0 }
  0x34   : > { %v427_v44 = vmul.f32 %v426_v35, %v410_v6  ;;  %v2019_v45 = vperm.slane %v426_v35, 0  ;;  %v405_v49 = vsub.f32 %v386_v31, %v404_v39  ;;  %v496_v50 = vmul.f32 %v2014_v40, %v429_v36  ;;  %v436_v39 = vld [vmem:[%s1995_s28 + $0x38] sm:$0xff] }
  0x35   : > { %v497_v51 = vmul.f32 %v2014_v40, %v430_v37  ;;  %v498_v52 = vmul.f32 %v2014_v40, %v431_v38  ;;  %v499_v61 = vmul.f32 %v2014_v40, %v432_v46  ;;  %v500_v63 = vmul.f32 %v2014_v40, %v433_v48 }
  0x36   : > { %v428_v56 = vsub.f32 %v409_v33, %v427_v44  ;;  %v694_v57 = vmul.f32 %v2019_v45, %v627_v41  ;;  %v695_v58 = vmul.f32 %v2019_v45, %v628_v42  ;;  %v696_v59 = vmul.f32 %v2019_v45, %v629_v43 }
  0x37   : > { %v2033_v60 = vperm.slane %v405_v49, 0  ;;  %v697_v62 = vmul.f32 %v2019_v45, %v630_v47  ;;  %v698_v1 = vmul.f32 %v2019_v45, %v631_v53  ;;  %v501_v2 = vmul.f32 %v2014_v40, %v434_v54 }
  0x38   : > { %v2038_v0 = vperm.slane %v428_v56, 0  ;;  %v699_v3 = vmul.f32 %v2019_v45, %v632_v55  ;;  %v502_v26 = vmul.f32 %v2014_v40, %v435_v16  ;;  %v700_v30 = vmul.f32 %v2019_v45, %v633_v21 }
  0x39   : > { %v563_v4 = vadd.f32 %v2033_v60, %v496_v50  ;;  %v564_v5 = vadd.f32 %v2033_v60, %v497_v51  ;;  %v565_v6 = vadd.f32 %v2033_v60, %v498_v52  ;;  %v566_v7 = vadd.f32 %v2033_v60, %v499_v61 }
  0x3a   : > { %v761_v8 = vadd.f32 %v2038_v0, %v694_v57  ;;  %v762_v9 = vadd.f32 %v2038_v0, %v695_v58  ;;  %v763_v10 = vadd.f32 %v2038_v0, %v696_v59  ;;  %v764_v11 = vadd.f32 %v2038_v0, %v697_v62  ;;  %v634_v58 = vld [vmem:[%s2003_s18 + $0x38] sm:$0xff]  ;;  %v437_v59 = vld [vmem:[%s1995_s28 + $0x40] sm:$0xff] }
  0x3b   : > { %v567_v12 = vadd.f32 %v2033_v60, %v500_v63  ;;  %v765_v13 = vadd.f32 %v2038_v0, %v698_v1  ;;  %v568_v14 = vadd.f32 %v2033_v60, %v501_v2  ;;  %v766_v15 = vadd.f32 %v2038_v0, %v699_v3  ;;  %v635_v2 = vld [vmem:[%s2003_s18 + $0x40] sm:$0xff] }
  0x3c   : > { %v825_v17 = vadd.f32 %v761_v8, %v563_v4  ;;  %v826_v18 = vadd.f32 %v762_v9, %v564_v5  ;;  %v827_v19 = vadd.f32 %v763_v10, %v565_v6  ;;  %v828_v20 = vadd.f32 %v764_v11, %v566_v7  ;;  %v438_v7 = vld [vmem:[%s1995_s28 + $0x48] sm:$0xff] }
  0x3d   : > { %v2057_v22 = vadd.f32 %v765_v13, %v567_v12  ;;  %v2059_v23 = vadd.f32 %v766_v15, %v568_v14  ;;  %v569_v44 = vadd.f32 %v2033_v60, %v502_v26  ;;  %v767_v49 = vadd.f32 %v2038_v0, %v700_v30  ;;  %v636_v11 = vld [vmem:[%s2003_s18 + $0x48] sm:$0xff] }
  0x3e   : > { %v953_v24 = vmul.f32 0.044715, %v825_v17  ;;  %v954_v25 = vmul.f32 0.044715, %v826_v18  ;;  %v2062_v27 = vmul.f32 0.5, %v825_v17  ;;  %v2065_v32 = vmul.f32 0.5, %v826_v18 }
  0x3f   : > { %v955_v28 = vmul.f32 0.044715, %v827_v19  ;;  %v956_v29 = vmul.f32 0.044715, %v828_v20  ;;  %v957_v34 = vmul.f32 0.044715, %v2057_v22  ;;  %v503_v53 = vmul.f32 %v2014_v40, %v436_v39 }
  0x40   : > { %v1017_v31 = vmul.f32 %v953_v24, %v825_v17  ;;  %v1018_v33 = vmul.f32 %v954_v25, %v826_v18  ;;  %v2068_v35 = vmul.f32 0.5, %v827_v19  ;;  %v958_v38 = vmul.f32 0.044715, %v2059_v23 }
  0x41   : > { %v1019_v36 = vmul.f32 %v955_v28, %v827_v19  ;;  %v1020_v37 = vmul.f32 %v956_v29, %v828_v20  ;;  %v1021_v43 = vmul.f32 %v957_v34, %v2057_v22  ;;  %v831_v57 = vadd.f32 %v767_v49, %v569_v44 }
  0x42   : > { %v1081_v41 = vmul.f32 %v1017_v31, %v825_v17  ;;  %v1082_v42 = vmul.f32 %v1018_v33, %v826_v18  ;;  %v1022_v48 = vmul.f32 %v958_v38, %v2059_v23  ;;  %v2081_v63 = vmul.f32 0.5, %v828_v20  ;;  %v637_v31 = vld [vmem:[%s2003_s18 + $0x50] sm:$0xff] }
  0x43   : > { %v1083_v46 = vmul.f32 %v1019_v36, %v827_v19  ;;  %v1084_v47 = vmul.f32 %v1020_v37, %v828_v20  ;;  %v1085_v52 = vmul.f32 %v1021_v43, %v2057_v22  ;;  %v570_v6 = vadd.f32 %v2033_v60, %v503_v53 }
  0x44   : > { %v1145_v50 = vadd.f32 %v1081_v41, %v825_v17  ;;  %v1146_v51 = vadd.f32 %v1082_v42, %v826_v18  ;;  %v1086_v56 = vmul.f32 %v1022_v48, %v2059_v23  ;;  %v959_v9 = vmul.f32 0.044715, %v831_v57  ;;  %v439_v18 = vld [vmem:[%s1995_s28 + $0x50] sm:$0xff] }
  0x45   : > { %v1147_v54 = vadd.f32 %v1083_v46, %v827_v19  ;;  %v1148_v55 = vadd.f32 %v1084_v47, %v828_v20  ;;  %v1149_v1 = vadd.f32 %v1085_v52, %v2057_v22  ;;  %v701_v10 = vmul.f32 %v2019_v45, %v634_v58  ;;  %v440_v58 = vld [vmem:[%s1995_s28 + $0x58] sm:$0xff] }
  0x46   : > { %v1209_v61 = vmul.f32 0.7978846, %v1145_v50  ;;  %v1210_v62 = vmul.f32 0.7978846, %v1146_v51  ;;  %v1150_v5 = vadd.f32 %v1086_v56, %v2059_v23  ;;  %v504_v13 = vmul.f32 %v2014_v40, %v437_v59 }
  0x47   : > { %v1211_v3 = vmul.f32 0.7978846, %v1147_v54  ;;  %v1212_v4 = vmul.f32 0.7978846, %v1148_v55  ;;  %v1213_v8 = vmul.f32 0.7978846, %v1149_v1  ;;  %v702_v14 = vmul.f32 %v2019_v45, %v635_v2 }
  0x48   : > { %1679 = vtanh.f32 %v1209_v61  ;;  %v1214_v12 = vmul.f32 0.7978846, %v1150_v5  ;;  %v1023_v15 = vmul.f32 %v959_v9, %v831_v57  ;;  %v768_v16 = vadd.f32 %v2038_v0, %v701_v10  ;;  %v638_v1 = vld [vmem:[%s2003_s18 + $0x58] sm:$0xff] }
  0x49   : > { %1681 = vtanh.f32 %v1210_v62  ;;  %v505_v17 = vmul.f32 %v2014_v40, %v438_v7  ;;  %v571_v19 = vadd.f32 %v2033_v60, %v504_v13  ;;  %v769_v20 = vadd.f32 %v2038_v0, %v702_v14 }
  0x4a   : > { %1683 = vtanh.f32 %v1211_v3  ;;  %v703_v21 = vmul.f32 %v2019_v45, %v636_v11  ;;  %v1087_v24 = vmul.f32 %v1023_v15, %v831_v57  ;;  %v2099_v25 = vadd.f32 %v768_v16, %v570_v6  ;;  %v441_v6 = vld [vmem:[%s1995_s28 + $0x60] sm:$0xff] }
  0x4b   : > { %1685 = vtanh.f32 %v1212_v4  ;;  %v572_v26 = vadd.f32 %v2033_v60, %v505_v17  ;;  %v2106_v28 = vadd.f32 %v769_v20, %v571_v19  ;;  %v506_v30 = vmul.f32 %v2014_v40, %v439_v18  ;;  %v639_v17 = vld [vmem:[%s2003_s18 + $0x60] sm:$0xff]  ;;  %v442_v18 = vld [vmem:[%s1995_s28 + $0x68] sm:$0xff] }
  0x4c   : > { %1687 = vtanh.f32 %v1213_v8  ;;  %v770_v29 = vadd.f32 %v2038_v0, %v703_v21  ;;  %v893_v34 = vmul.f32 0.5, %v2057_v22  ;;  %v894_v36 = vmul.f32 0.5, %v2059_v23 }
  0x4d   : > { %1689 = vtanh.f32 %v1214_v12  ;;  %v1151_v37 = vadd.f32 %v1087_v24, %v831_v57  ;;  %v960_v38 = vmul.f32 0.044715, %v2099_v25  ;;  %v2114_v42 = vmul.f32 0.5, %v831_v57 }
  0x4e   : > { %v1680_v33 = vpop.eup %1679  ;;  %v961_v43 = vmul.f32 0.044715, %v2106_v28  ;;  %v2117_v44 = vadd.f32 %v770_v29, %v572_v26  ;;  %v704_v23 = vmul.f32 %v2019_v45, %v637_v31  ;;  %v573_v53 = vadd.f32 %v2033_v60, %v506_v30  ;;  %v640_v26 = vld [vmem:[%s2003_s18 + $0x68] sm:$0xff] }
  0x4f   : > { %v1682_v39 = vpop.eup %1681  ;;  %v1337_v41 = vadd.f32 1.0, %v1680_v33  ;;  %v1215_v48 = vmul.f32 0.7978846, %v1151_v37  ;;  %v1024_v22 = vmul.f32 %v960_v38, %v2099_v25  ;;  %v507_v9 = vmul.f32 %v2014_v40, %v440_v58  ;;  %v443_v33 = vld [vmem:[%s1995_s28 + $0x70] sm:$0xff] }
  0x50   : > { %v1684_v46 = vpop.eup %1683  ;;  %v1338_v47 = vadd.f32 1.0, %v1682_v39  ;;  %v1025_v52 = vmul.f32 %v961_v43, %v2106_v28  ;;  %v771_v5 = vadd.f32 %v2038_v0, %v704_v23  ;;  %v705_v12 = vmul.f32 %v2019_v45, %v638_v1 }
  0x51   : > { %v1686_v49 = vpop.eup %1685  ;;  %v1401_v50 = vmul.f32 %v1337_v41, %v2062_v27  ;;  %v1339_v51 = vadd.f32 1.0, %v1684_v46  ;;  %1691 = vtanh.f32 %v1215_v48  ;;  %v1088_v57 = vmul.f32 %v1024_v22, %v2099_v25  ;;  %v641_v46 = vld [vmem:[%s2003_s18 + $0x70] sm:$0xff] }
  0x52   : > { %v1688_v54 = vpop.eup %1687  ;;  %v1402_v55 = vmul.f32 %v1338_v47, %v2065_v32  ;;  %v1340_v56 = vadd.f32 1.0, %v1686_v49  ;;  %v1089_v62 = vmul.f32 %v1025_v52, %v2106_v28  ;;  %v962_v32 = vmul.f32 0.044715, %v2117_v44  ;;  %v444_v49 = vld [vmem:[%s1995_s28 + $0x78] sm:$0xff] }
  0x53   : > { %v1690_v59 = vpop.eup %1689  ;;  %1465 = vst [vmem:[%s2128_s30] sm:$0xff] %v1401_v50  ;;  %v1403_v27 = vmul.f32 %v1339_v51, %v2068_v35  ;;  %v1341_v61 = vadd.f32 1.0, %v1688_v54  ;;  %v1152_v4 = vadd.f32 %v1088_v57, %v2099_v25  ;;  %v835_v11 = vadd.f32 %v771_v5, %v573_v53  ;;  %v642_v50 = vld [vmem:[%s2003_s18 + $0x78] sm:$0xff] }
  0x54   : > { %1466 = vst [vmem:[%s2128_s30 + $0x8] sm:$0xff] %v1402_v55  ;;  %v1404_v2 = vmul.f32 %v1340_v56, %v2081_v63  ;;  %v1342_v3 = vadd.f32 1.0, %v1690_v59  ;;  %v1153_v7 = vadd.f32 %v1089_v62, %v2106_v28  ;;  %v1026_v8 = vmul.f32 %v962_v32, %v2117_v44 }
  0x55   : > { %1467 = vst [vmem:[%s2128_s30 + $0x10] sm:$0xff] %v1403_v27  ;;  %v1405_v35 = vmul.f32 %v1341_v61, %v893_v34  ;;  %v1216_v63 = vmul.f32 0.7978846, %v1152_v4  ;;  %v574_v15 = vadd.f32 %v2033_v60, %v507_v9  ;;  %v508_v16 = vmul.f32 %v2014_v40, %v441_v6  ;;  %v445_v6 = vld [vmem:[%s1995_s28 + $0x80] sm:$0xff] }
  0x56   : > { %1468 = vst [vmem:[%s2128_s30 + $0x18] sm:$0xff] %v1404_v2  ;;  %v1406_v10 = vmul.f32 %v1342_v3, %v894_v36  ;;  %v1217_v13 = vmul.f32 0.7978846, %v1153_v7  ;;  %v1090_v14 = vmul.f32 %v1026_v8, %v2117_v44  ;;  %v896_v20 = vmul.f32 0.5, %v2099_v25  ;;  %v643_v9 = vld [vmem:[%s2003_s18 + $0x80] sm:$0xff] }
  0x57   : > { %1469 = vst [vmem:[%s2128_s30 + $0x20] sm:$0xff] %v1405_v35  ;;  %v1692_v19 = vpop.eup %1691  ;;  %1693 = vtanh.f32 %v1216_v63  ;;  %v963_v21 = vmul.f32 0.044715, %v835_v11  ;;  %v772_v24 = vadd.f32 %v2038_v0, %v705_v12  ;;  %v575_v31 = vadd.f32 %v2033_v60, %v508_v16 }
  0x58   : > { %1470 = vst [vmem:[%s2128_s30 + $0x28] sm:$0xff] %v1406_v10  ;;  %v1343_v29 = vadd.f32 1.0, %v1692_v19  ;;  %1695 = vtanh.f32 %v1217_v13  ;;  %v1154_v30 = vadd.f32 %v1090_v14, %v2117_v44  ;;  %v706_v25 = vmul.f32 %v2019_v45, %v639_v17 }
  0x59   : > { %v1027_v34 = vmul.f32 %v963_v21, %v835_v11  ;;  %v836_v36 = vadd.f32 %v772_v24, %v574_v15  ;;  %v509_v37 = vmul.f32 %v2014_v40, %v442_v18  ;;  %v897_v39 = vmul.f32 0.5, %v2106_v28  ;;  %v446_v24 = vld [vmem:[%s1995_s28 + $0x88] sm:$0xff] }
  0x5a   : > { %v1407_v38 = vmul.f32 %v1343_v29, %v2114_v42  ;;  %v1218_v41 = vmul.f32 0.7978846, %v1154_v30  ;;  %v707_v43 = vmul.f32 %v2019_v45, %v640_v26  ;;  %v773_v22 = vadd.f32 %v2038_v0, %v706_v25 }
  0x5b   : > { %v1091_v47 = vmul.f32 %v1027_v34, %v835_v11  ;;  %v964_v48 = vmul.f32 0.044715, %v836_v36  ;;  %v510_v23 = vmul.f32 %v2014_v40, %v443_v33  ;;  %v898_v51 = vmul.f32 0.5, %v2117_v44 }
  0x5c   : > { %1471 = vst [vmem:[%s2128_s30 + $0x30] sm:$0xff] %v1407_v38  ;;  %1697 = vtanh.f32 %v1218_v41  ;;  %v576_v42 = vadd.f32 %v2033_v60, %v509_v37  ;;  %v774_v28 = vadd.f32 %v2038_v0, %v707_v43  ;;  %v837_v55 = vadd.f32 %v773_v22, %v575_v31  ;;  %v644_v37 = vld [vmem:[%s2003_s18 + $0x88] sm:$0xff] }
  0x5d   : > { %v1694_v52 = vpop.eup %1693  ;;  %v1155_v53 = vadd.f32 %v1091_v47, %v835_v11  ;;  %v1028_v54 = vmul.f32 %v964_v48, %v836_v36  ;;  %v708_v56 = vmul.f32 %v2019_v45, %v641_v46  ;;  %v511_v27 = vmul.f32 %v2014_v40, %v444_v49  ;;  %v447_v46 = vld [vmem:[%s1995_s28 + $0x90] sm:$0xff] }
  0x5e   : > { %v1696_v57 = vpop.eup %1695  ;;  %v1344_v58 = vadd.f32 1.0, %v1694_v52  ;;  %v2174_v59 = vadd.f32 %v774_v28, %v576_v42  ;;  %v709_v44 = vmul.f32 %v2019_v45, %v642_v50  ;;  %v577_v1 = vadd.f32 %v2033_v60, %v510_v23 }
  0x5f   : > { %v1345_v61 = vadd.f32 1.0, %v1696_v57  ;;  %v1219_v62 = vmul.f32 0.7978846, %v1155_v53  ;;  %v1092_v32 = vmul.f32 %v1028_v54, %v836_v36  ;;  %v899_v3 = vmul.f32 0.5, %v835_v11  ;;  %v645_v54 = vld [vmem:[%s2003_s18 + $0x90] sm:$0xff] }
  0x60   : > { %v1408_v2 = vmul.f32 %v1344_v58, %v896_v20  ;;  %v965_v4 = vmul.f32 0.044715, %v837_v55  ;;  %v966_v5 = vmul.f32 0.044715, %v2174_v59  ;;  %v775_v8 = vadd.f32 %v2038_v0, %v708_v56 }
  0x61   : > { %v1409_v35 = vmul.f32 %v1345_v61, %v897_v39  ;;  %1699 = vtanh.f32 %v1219_v62  ;;  %v1156_v7 = vadd.f32 %v1092_v32, %v836_v36  ;;  %v578_v13 = vadd.f32 %v2033_v60, %v511_v27 }
  0x62   : > { %v1698_v10 = vpop.eup %1697  ;;  %1472 = vst [vmem:[%s2128_s30 + $0x38] sm:$0xff] %v1408_v2  ;;  %v1029_v63 = vmul.f32 %v965_v4, %v837_v55  ;;  %v1030_v12 = vmul.f32 %v966_v5, %v2174_v59  ;;  %v776_v11 = vadd.f32 %v2038_v0, %v709_v44  ;;  %v2188_v16 = vadd.f32 %v775_v8, %v577_v1  ;;  %v646_v44 = vld [vmem:[%s2003_s18 + $0x98] sm:$0xff]  ;;  %v449_v8 = vld [vmem:[%s1995_s28 + $0xa0] sm:$0xff] }
  0x63   : > { %1473 = vst [vmem:[%s2128_s30 + $0x40] sm:$0xff] %v1409_v35  ;;  %v1346_v14 = vadd.f32 1.0, %v1698_v10  ;;  %v1220_v15 = vmul.f32 0.7978846, %v1156_v7  ;;  %v512_v17 = vmul.f32 %v2014_v40, %v445_v6  ;;  %v710_v21 = vmul.f32 %v2019_v45, %v643_v9 }
  0x64   : > { %v1093_v18 = vmul.f32 %v1029_v63, %v837_v55  ;;  %v1094_v19 = vmul.f32 %v1030_v12, %v2174_v59  ;;  %v2192_v20 = vadd.f32 %v776_v11, %v578_v13  ;;  %v900_v29 = vmul.f32 0.5, %v836_v36  ;;  %v647_v12 = vld [vmem:[%s2003_s18 + $0xa0] sm:$0xff] }
  0x65   : > { %v1410_v26 = vmul.f32 %v1346_v14, %v898_v51  ;;  %1701 = vtanh.f32 %v1220_v15  ;;  %v967_v30 = vmul.f32 0.044715, %v2188_v16  ;;  %v2197_v31 = vmul.f32 0.5, %v837_v55 }
  0x66   : > { %v1157_v33 = vadd.f32 %v1093_v18, %v837_v55  ;;  %v1158_v34 = vadd.f32 %v1094_v19, %v2174_v59  ;;  %v968_v25 = vmul.f32 0.044715, %v2192_v20  ;;  %v579_v41 = vadd.f32 %v2033_v60, %v512_v17  ;;  %v448_v55 = vld [vmem:[%s1995_s28 + $0x98] sm:$0xff] }
  0x67   : > { %v1700_v38 = vpop.eup %1699  ;;  %1474 = vst [vmem:[%s2128_s30 + $0x48] sm:$0xff] %v1410_v26  ;;  %v1031_v39 = vmul.f32 %v967_v30, %v2188_v16  ;;  %v777_v36 = vadd.f32 %v2038_v0, %v710_v21  ;;  %v513_v43 = vmul.f32 %v2014_v40, %v446_v24  ;;  %v711_v42 = vmul.f32 %v2019_v45, %v644_v37 }
  0x68   : > { %v1347_v47 = vadd.f32 1.0, %v1700_v38  ;;  %v1221_v48 = vmul.f32 0.7978846, %v1157_v33  ;;  %v1222_v22 = vmul.f32 0.7978846, %v1158_v34  ;;  %v1032_v23 = vmul.f32 %v968_v25, %v2192_v20  ;;  %v450_v38 = vld [vmem:[%s1995_s28 + $0xa8] sm:$0xff] }
  0x69   : > { %v1095_v49 = vmul.f32 %v1031_v39, %v2188_v16  ;;  %v841_v50 = vadd.f32 %v777_v36, %v579_v41  ;;  %v580_v51 = vadd.f32 %v2033_v60, %v513_v43  ;;  %v514_v53 = vmul.f32 %v2014_v40, %v447_v46  ;;  %v648_v46 = vld [vmem:[%s2003_s18 + $0xa8] sm:$0xff] }
  0x6a   : > { %v1411_v28 = vmul.f32 %v1347_v47, %v899_v3  ;;  %1703 = vtanh.f32 %v1221_v48  ;;  %v1096_v52 = vmul.f32 %v1032_v23, %v2192_v20  ;;  %v902_v57 = vmul.f32 0.5, %v2174_v59 }
  0x6b   : > { %v1702_v56 = vpop.eup %1701  ;;  %1705 = vtanh.f32 %v1222_v22  ;;  %v1159_v58 = vadd.f32 %v1095_v49, %v2188_v16  ;;  %v969_v27 = vmul.f32 0.044715, %v841_v50  ;;  %v778_v32 = vadd.f32 %v2038_v0, %v711_v42 }
  0x6c   : > { %1475 = vst [vmem:[%s2128_s30 + $0x50] sm:$0xff] %v1411_v28  ;;  %v1348_v61 = vadd.f32 1.0, %v1702_v56  ;;  %v1160_v62 = vadd.f32 %v1096_v52, %v2192_v20  ;;  %v581_v1 = vadd.f32 %v2033_v60, %v514_v53  ;;  %v712_v59 = vmul.f32 %v2019_v45, %v645_v54  ;;  %v451_v54 = vld [vmem:[%s1995_s28 + $0xb0] sm:$0xff] }
  0x6d   : > { %v1223_v2 = vmul.f32 0.7978846, %v1159_v58  ;;  %v1033_v3 = vmul.f32 %v969_v27, %v841_v50  ;;  %v515_v4 = vmul.f32 %v2014_v40, %v448_v55  ;;  %v842_v35 = vadd.f32 %v778_v32, %v580_v51  ;;  %v649_v27 = vld [vmem:[%s2003_s18 + $0xb0] sm:$0xff] }
  0x6e   : > { %v1412_v5 = vmul.f32 %v1348_v61, %v900_v29  ;;  %v1224_v6 = vmul.f32 0.7978846, %v1160_v62  ;;  %v713_v7 = vmul.f32 %v2019_v45, %v646_v44  ;;  %v779_v10 = vadd.f32 %v2038_v0, %v712_v59  ;;  %v452_v44 = vld [vmem:[%s1995_s28 + $0xb8] sm:$0xff] }
  0x6f   : > { %1707 = vtanh.f32 %v1223_v2  ;;  %v1097_v9 = vmul.f32 %v1033_v3, %v841_v50  ;;  %v582_v63 = vadd.f32 %v2033_v60, %v515_v4  ;;  %v903_v11 = vmul.f32 0.5, %v2188_v16 }
  0x70   : > { %v1704_v13 = vpop.eup %1703  ;;  %1476 = vst [vmem:[%s2128_s30 + $0x58] sm:$0xff] %v1412_v5  ;;  %1709 = vtanh.f32 %v1224_v6  ;;  %v970_v14 = vmul.f32 0.044715, %v842_v35  ;;  %v780_v15 = vadd.f32 %v2038_v0, %v713_v7  ;;  %v843_v21 = vadd.f32 %v779_v10, %v581_v1 }
  0x71   : > { %v1706_v17 = vpop.eup %1705  ;;  %v1349_v18 = vadd.f32 1.0, %v1704_v13  ;;  %v1161_v19 = vadd.f32 %v1097_v9, %v841_v50  ;;  %v516_v24 = vmul.f32 %v2014_v40, %v449_v8  ;;  %v714_v33 = vmul.f32 %v2019_v45, %v647_v12  ;;  %v650_v12 = vld [vmem:[%s2003_s18 + $0xb8] sm:$0xff]  ;;  %v453_v13 = vld [vmem:[%s1995_s28 + $0xc0] sm:$0xff] }
  0x72   : > { %v1350_v26 = vadd.f32 1.0, %v1706_v17  ;;  %v1034_v29 = vmul.f32 %v970_v14, %v842_v35  ;;  %v2234_v30 = vadd.f32 %v780_v15, %v582_v63  ;;  %v904_v34 = vmul.f32 0.5, %v2192_v20  ;;  %v651_v17 = vld [vmem:[%s2003_s18 + $0xc0] sm:$0xff] }
  0x73   : > { %v1413_v16 = vmul.f32 %v1349_v18, %v2197_v31  ;;  %v1225_v25 = vmul.f32 0.7978846, %v1161_v19  ;;  %v971_v37 = vmul.f32 0.044715, %v843_v21  ;;  %v905_v41 = vmul.f32 0.5, %v841_v50  ;;  %v454_v18 = vld [vmem:[%s1995_s28 + $0xc8] sm:$0xff] }
  0x74   : > { %v1414_v39 = vmul.f32 %v1350_v26, %v902_v57  ;;  %v1098_v36 = vmul.f32 %v1034_v29, %v842_v35  ;;  %v972_v43 = vmul.f32 0.044715, %v2234_v30  ;;  %v583_v22 = vadd.f32 %v2033_v60, %v516_v24  ;;  %v652_v29 = vld [vmem:[%s2003_s18 + $0xc8] sm:$0xff] }
  0x75   : > { %v1708_v47 = vpop.eup %1707  ;;  %1477 = vst [vmem:[%s2128_s30 + $0x60] sm:$0xff] %v1413_v16  ;;  %1711 = vtanh.f32 %v1225_v25  ;;  %v1035_v48 = vmul.f32 %v971_v37, %v843_v21  ;;  %v781_v31 = vadd.f32 %v2038_v0, %v714_v33  ;;  %v517_v51 = vmul.f32 %v2014_v40, %v450_v38 }
  0x76   : > { %v1710_v20 = vpop.eup %1709  ;;  %1478 = vst [vmem:[%s2128_s30 + $0x68] sm:$0xff] %v1414_v39  ;;  %v1351_v23 = vadd.f32 1.0, %v1708_v47  ;;  %v1162_v49 = vadd.f32 %v1098_v36, %v842_v35  ;;  %v1036_v50 = vmul.f32 %v972_v43, %v2234_v30  ;;  %v715_v53 = vmul.f32 %v2019_v45, %v648_v46 }
  0x77   : > { %v1352_v42 = vadd.f32 1.0, %v1710_v20  ;;  %v1099_v28 = vmul.f32 %v1035_v48, %v843_v21  ;;  %v2248_v52 = vadd.f32 %v781_v31, %v583_v22  ;;  %v584_v58 = vadd.f32 %v2033_v60, %v517_v51  ;;  %v455_v20 = vld [vmem:[%s1995_s28 + $0xd0] sm:$0xff] }
  0x78   : > { %v1415_v55 = vmul.f32 %v1351_v23, %v903_v11  ;;  %v1226_v56 = vmul.f32 0.7978846, %v1162_v49  ;;  %v1100_v57 = vmul.f32 %v1036_v50, %v2234_v30  ;;  %v906_v62 = vmul.f32 0.5, %v842_v35 }
  0x79   : > { %v1416_v61 = vmul.f32 %v1352_v42, %v904_v34  ;;  %v1163_v32 = vadd.f32 %v1099_v28, %v843_v21  ;;  %v973_v1 = vmul.f32 0.044715, %v2248_v52  ;;  %v782_v3 = vadd.f32 %v2038_v0, %v715_v53 }
  0x7a   : > { %1479 = vst [vmem:[%s2128_s30 + $0x70] sm:$0xff] %v1415_v55  ;;  %1713 = vtanh.f32 %v1226_v56  ;;  %v1164_v2 = vadd.f32 %v1100_v57, %v2234_v30  ;;  %v518_v59 = vmul.f32 %v2014_v40, %v451_v54  ;;  %v716_v35 = vmul.f32 %v2019_v45, %v649_v27 }
  0x7b   : > { %v1712_v4 = vpop.eup %1711  ;;  %1480 = vst [vmem:[%s2128_s30 + $0x78] sm:$0xff] %v1416_v61  ;;  %v1227_v5 = vmul.f32 0.7978846, %v1163_v32  ;;  %v1037_v6 = vmul.f32 %v973_v1, %v2248_v52  ;;  %v519_v7 = vmul.f32 %v2014_v40, %v452_v44  ;;  %v846_v10 = vadd.f32 %v782_v3, %v584_v58  ;;  %v653_v44 = vld [vmem:[%s2003_s18 + $0xd0] sm:$0xff] }
  0x7c   : > { %v1353_v8 = vadd.f32 1.0, %v1712_v4  ;;  %v1228_v9 = vmul.f32 0.7978846, %v1164_v2  ;;  %v585_v63 = vadd.f32 %v2033_v60, %v518_v59  ;;  %v907_v11 = vmul.f32 0.5, %v843_v21  ;;  %v456_v2 = vld [vmem:[%s1995_s28 + $0xd8] sm:$0xff] }
  0x7d   : > { %1715 = vtanh.f32 %v1227_v5  ;;  %v1101_v14 = vmul.f32 %v1037_v6, %v2248_v52  ;;  %v783_v15 = vadd.f32 %v2038_v0, %v716_v35  ;;  %v908_v24 = vmul.f32 0.5, %v2234_v30 }
  0x7e   : > { %v1417_v19 = vmul.f32 %v1353_v8, %v905_v41  ;;  %1717 = vtanh.f32 %v1228_v9  ;;  %v974_v26 = vmul.f32 0.044715, %v846_v10  ;;  %v717_v34 = vmul.f32 %v2019_v45, %v650_v12  ;;  %v654_v12 = vld [vmem:[%s2003_s18 + $0xd8] sm:$0xff] }
  0x7f   : > { %v1165_v33 = vadd.f32 %v1101_v14, %v2248_v52  ;;  %v847_v16 = vadd.f32 %v783_v15, %v585_v63  ;;  %v520_v21 = vmul.f32 %v2014_v40, %v453_v13  ;;  %v586_v38 = vadd.f32 %v2033_v60, %v519_v7 }
  0x80   : > { %v1714_v25 = vpop.eup %1713  ;;  %1481 = vst [vmem:[%s2128_s30 + $0x80] sm:$0xff] %v1417_v19  ;;  %v1038_v37 = vmul.f32 %v974_v26, %v846_v10  ;;  %v718_v39 = vmul.f32 %v2019_v45, %v651_v17  ;;  %v521_v30 = vmul.f32 %v2014_v40, %v454_v18  ;;  %v719_v46 = vmul.f32 %v2019_v45, %v652_v29  ;;  %v457_v17 = vld [vmem:[%s1995_s28 + $0xe0] sm:$0xff] }
  0x81   : > { %v1354_v41 = vadd.f32 1.0, %v1714_v25  ;;  %v1229_v36 = vmul.f32 0.7978846, %v1165_v33  ;;  %v975_v43 = vmul.f32 0.044715, %v847_v16  ;;  %v784_v48 = vadd.f32 %v2038_v0, %v717_v34  ;;  %v655_v18 = vld [vmem:[%s2003_s18 + $0xe0] sm:$0xff] }
  0x82   : > { %v1102_v47 = vmul.f32 %v1038_v37, %v846_v10  ;;  %v587_v22 = vadd.f32 %v2033_v60, %v520_v21  ;;  %v785_v31 = vadd.f32 %v2038_v0, %v718_v39  ;;  %v588_v51 = vadd.f32 %v2033_v60, %v521_v30 }
  0x83   : > { %v1716_v23 = vpop.eup %1715  ;;  %v1418_v49 = vmul.f32 %v1354_v41, %v906_v62  ;;  %1719 = vtanh.f32 %v1229_v36  ;;  %v1039_v50 = vmul.f32 %v975_v43, %v847_v16  ;;  %v848_v54 = vadd.f32 %v784_v48, %v586_v38 }
  0x84   : > { %v1718_v42 = vpop.eup %1717  ;;  %v1355_v28 = vadd.f32 1.0, %v1716_v23  ;;  %v1166_v53 = vadd.f32 %v1102_v47, %v846_v10  ;;  %v2287_v55 = vadd.f32 %v785_v31, %v587_v22  ;;  %v786_v58 = vadd.f32 %v2038_v0, %v719_v46 }
  0x85   : > { %1482 = vst [vmem:[%s2128_s30 + $0x88] sm:$0xff] %v1418_v49  ;;  %v1356_v56 = vadd.f32 1.0, %v1718_v42  ;;  %v1103_v57 = vmul.f32 %v1039_v50, %v847_v16  ;;  %v522_v27 = vmul.f32 %v2014_v40, %v455_v20  ;;  %v909_v62 = vmul.f32 0.5, %v2248_v52  ;;  %v656_v50 = vld [vmem:[%s2003_s18 + $0xe8] sm:$0xff] }
  0x86   : > { %v1419_v61 = vmul.f32 %v1355_v28, %v907_v11  ;;  %v1230_v32 = vmul.f32 0.7978846, %v1166_v53  ;;  %v976_v1 = vmul.f32 0.044715, %v848_v54  ;;  %v910_v59 = vmul.f32 0.5, %v846_v10 }
  0x87   : > { %v1420_v3 = vmul.f32 %v1356_v56, %v908_v24  ;;  %v1167_v4 = vadd.f32 %v1103_v57, %v847_v16  ;;  %v977_v5 = vmul.f32 0.044715, %v2287_v55  ;;  %v2297_v35 = vadd.f32 %v786_v58, %v588_v51 }
  0x88   : > { %1483 = vst [vmem:[%s2128_s30 + $0x90] sm:$0xff] %v1419_v61  ;;  %1721 = vtanh.f32 %v1230_v32  ;;  %v1040_v6 = vmul.f32 %v976_v1, %v848_v54  ;;  %v589_v7 = vadd.f32 %v2033_v60, %v522_v27  ;;  %v720_v63 = vmul.f32 %v2019_v45, %v653_v44  ;;  %v657_v1 = vld [vmem:[%s2003_s18 + $0xf0] sm:$0xff] }
  0x89   : > { %v1720_v8 = vpop.eup %1719  ;;  %1484 = vst [vmem:[%s2128_s30 + $0x98] sm:$0xff] %v1420_v3  ;;  %v1231_v52 = vmul.f32 0.7978846, %v1167_v4  ;;  %v1041_v9 = vmul.f32 %v977_v5, %v2287_v55  ;;  %v523_v10 = vmul.f32 %v2014_v40, %v456_v2  ;;  %v911_v11 = vmul.f32 0.5, %v847_v16  ;;  %v458_v16 = vld [vmem:[%s1995_s28 + $0xe8] sm:$0xff]  ;;  %v460_v2 = vld [vmem:[%s1995_s28 + $0xf8] sm:$0xff] }
  0x8a   : > { %v1357_v13 = vadd.f32 1.0, %v1720_v8  ;;  %v1104_v14 = vmul.f32 %v1040_v6, %v848_v54  ;;  %v978_v15 = vmul.f32 0.044715, %v2297_v35  ;;  %v787_v24 = vadd.f32 %v2038_v0, %v720_v63 }
  0x8b   : > { %1723 = vtanh.f32 %v1231_v52  ;;  %v1105_v19 = vmul.f32 %v1041_v9, %v2287_v55  ;;  %v590_v26 = vadd.f32 %v2033_v60, %v523_v10  ;;  %v721_v21 = vmul.f32 %v2019_v45, %v654_v12 }
  0x8c   : > { %v1421_v29 = vmul.f32 %v1357_v13, %v909_v62  ;;  %v1168_v33 = vadd.f32 %v1104_v14, %v848_v54  ;;  %v1042_v34 = vmul.f32 %v978_v15, %v2297_v35  ;;  %v851_v37 = vadd.f32 %v787_v24, %v589_v7  ;;  %v658_v24 = vld [vmem:[%s2003_s18 + $0xf8] sm:$0xff] }
  0x8d   : > { %v1169_v25 = vadd.f32 %v1105_v19, %v2287_v55  ;;  %v524_v38 = vmul.f32 %v2014_v40, %v457_v17  ;;  %v722_v39 = vmul.f32 %v2019_v45, %v655_v18  ;;  %v912_v41 = vmul.f32 0.5, %v848_v54  ;;  %v459_v54 = vld [vmem:[%s1995_s28 + $0xf0] sm:$0xff] }
  0x8e   : > { %v1722_v30 = vpop.eup %1721  ;;  %1485 = vst [vmem:[%s2128_s30 + $0xa0] sm:$0xff] %v1421_v29  ;;  %v1232_v36 = vmul.f32 0.7978846, %v1168_v33  ;;  %v1106_v43 = vmul.f32 %v1042_v34, %v2297_v35  ;;  %v788_v46 = vadd.f32 %v2038_v0, %v721_v21  ;;  %v979_v22 = vmul.f32 0.044715, %v851_v37 }
  0x8f   : > { %v1358_v47 = vadd.f32 1.0, %v1722_v30  ;;  %v1233_v48 = vmul.f32 0.7978846, %v1169_v25  ;;  %v525_v31 = vmul.f32 %v2014_v40, %v458_v16  ;;  %v591_v49 = vadd.f32 %v2033_v60, %v524_v38 }
  0x90   : > { %1725 = vtanh.f32 %v1232_v36  ;;  %v1170_v20 = vadd.f32 %v1106_v43, %v2297_v35  ;;  %v852_v23 = vadd.f32 %v788_v46, %v590_v26  ;;  %v1043_v28 = vmul.f32 %v979_v22, %v851_v37  ;;  %v461_v26 = vld [vmem:[%s1995_s28 + $0x100] sm:$0xff] }
  0x91   : > { %v1724_v51 = vpop.eup %1723  ;;  %v1422_v42 = vmul.f32 %v1358_v47, %v910_v59  ;;  %1727 = vtanh.f32 %v1233_v48  ;;  %v789_v53 = vadd.f32 %v2038_v0, %v722_v39  ;;  %v913_v57 = vmul.f32 0.5, %v2287_v55  ;;  %v659_v46 = vld [vmem:[%s2003_s18 + $0x100] sm:$0xff] }
  0x92   : > { %v1359_v56 = vadd.f32 1.0, %v1724_v51  ;;  %v1234_v58 = vmul.f32 0.7978846, %v1170_v20  ;;  %v980_v27 = vmul.f32 0.044715, %v852_v23  ;;  %v1107_v44 = vmul.f32 %v1043_v28, %v851_v37 }
  0x93   : > { %1486 = vst [vmem:[%s2128_s30 + $0xa8] sm:$0xff] %v1422_v42  ;;  %v853_v61 = vadd.f32 %v789_v53, %v591_v49  ;;  %v592_v62 = vadd.f32 %v2033_v60, %v525_v31  ;;  %v723_v32 = vmul.f32 %v2019_v45, %v656_v50  ;;  %v526_v4 = vmul.f32 %v2014_v40, %v459_v54  ;;  %v660_v31 = vld [vmem:[%s2003_s18 + $0x108] sm:$0xff] }
  0x94   : > { %v1423_v3 = vmul.f32 %v1359_v56, %v911_v11  ;;  %1729 = vtanh.f32 %v1234_v58  ;;  %v1044_v59 = vmul.f32 %v980_v27, %v852_v23  ;;  %v914_v5 = vmul.f32 0.5, %v2297_v35  ;;  %v463_v56 = vld [vmem:[%s1995_s28 + $0x110] sm:$0xff] }
  0x95   : > { %v1171_v55 = vadd.f32 %v1107_v44, %v851_v37  ;;  %v981_v6 = vmul.f32 0.044715, %v853_v61  ;;  %v790_v7 = vadd.f32 %v2038_v0, %v723_v32  ;;  %v593_v9 = vadd.f32 %v2033_v60, %v526_v4 }
  0x96   : > { %v1726_v8 = vpop.eup %1725  ;;  %1487 = vst [vmem:[%s2128_s30 + $0xb0] sm:$0xff] %v1423_v3  ;;  %v1108_v52 = vmul.f32 %v1044_v59, %v852_v23  ;;  %v724_v63 = vmul.f32 %v2019_v45, %v657_v1  ;;  %v527_v10 = vmul.f32 %v2014_v40, %v460_v2  ;;  %v915_v17 = vmul.f32 0.5, %v851_v37 }
  0x97   : > { %v1728_v12 = vpop.eup %1727  ;;  %v1360_v13 = vadd.f32 1.0, %v1726_v8  ;;  %v1235_v11 = vmul.f32 0.7978846, %v1171_v55  ;;  %v1045_v14 = vmul.f32 %v981_v6, %v853_v61  ;;  %v854_v35 = vadd.f32 %v790_v7, %v592_v62 }
  0x98   : > { %v1361_v15 = vadd.f32 1.0, %v1728_v12  ;;  %v1172_v18 = vadd.f32 %v1108_v52, %v852_v23  ;;  %v791_v19 = vadd.f32 %v2038_v0, %v724_v63  ;;  %v594_v34 = vadd.f32 %v2033_v60, %v527_v10  ;;  %v661_v10 = vld [vmem:[%s2003_s18 + $0x110] sm:$0xff]  ;;  %v464_v12 = vld [vmem:[%s1995_s28 + $0x118] sm:$0xff] }
  0x99   : > { %v1424_v29 = vmul.f32 %v1360_v13, %v912_v41  ;;  %1731 = vtanh.f32 %v1235_v11  ;;  %v1109_v33 = vmul.f32 %v1045_v14, %v853_v61  ;;  %v982_v38 = vmul.f32 0.044715, %v854_v35  ;;  %v462_v41 = vld [vmem:[%s1995_s28 + $0x108] sm:$0xff]  ;;  %v662_v13 = vld [vmem:[%s2003_s18 + $0x118] sm:$0xff] }
  0x9a   : > { %v1730_v21 = vpop.eup %1729  ;;  %v1425_v16 = vmul.f32 %v1361_v15, %v913_v57  ;;  %v1236_v25 = vmul.f32 0.7978846, %v1172_v18  ;;  %v855_v39 = vadd.f32 %v791_v19, %v593_v9  ;;  %v725_v36 = vmul.f32 %v2019_v45, %v658_v24 }
  0x9b   : > { %1488 = vst [vmem:[%s2128_s30 + $0xb8] sm:$0xff] %v1424_v29  ;;  %v1362_v37 = vadd.f32 1.0, %v1730_v21  ;;  %v1173_v30 = vadd.f32 %v1109_v33, %v853_v61  ;;  %v528_v43 = vmul.f32 %v2014_v40, %v461_v26  ;;  %v916_v47 = vmul.f32 0.5, %v852_v23  ;;  %v465_v26 = vld [vmem:[%s1995_s28 + $0x120] sm:$0xff] }
  0x9c   : > { %1489 = vst [vmem:[%s2128_s30 + $0xc0] sm:$0xff] %v1425_v16  ;;  %1733 = vtanh.f32 %v1236_v25  ;;  %v1046_v48 = vmul.f32 %v982_v38, %v854_v35  ;;  %v983_v22 = vmul.f32 0.044715, %v855_v39  ;;  %v792_v50 = vadd.f32 %v2038_v0, %v725_v36 }
  0x9d   : > { %v1426_v20 = vmul.f32 %v1362_v37, %v914_v5  ;;  %v1237_v49 = vmul.f32 0.7978846, %v1173_v30  ;;  %v595_v51 = vadd.f32 %v2033_v60, %v528_v43  ;;  %v726_v53 = vmul.f32 %v2019_v45, %v659_v46 }
  0x9e   : > { %v1110_v42 = vmul.f32 %v1046_v48, %v854_v35  ;;  %v1047_v28 = vmul.f32 %v983_v22, %v855_v39  ;;  %v529_v54 = vmul.f32 %v2014_v40, %v462_v41  ;;  %v917_v23 = vmul.f32 0.5, %v853_v61 }
  0x9f   : > { %v1732_v57 = vpop.eup %1731  ;;  %1490 = vst [vmem:[%s2128_s30 + $0xc8] sm:$0xff] %v1426_v20  ;;  %1735 = vtanh.f32 %v1237_v49  ;;  %v856_v58 = vadd.f32 %v792_v50, %v594_v34  ;;  %v727_v27 = vmul.f32 %v2019_v45, %v660_v31  ;;  %v793_v1 = vadd.f32 %v2038_v0, %v726_v53  ;;  %v466_v53 = vld [vmem:[%s1995_s28 + $0x128] sm:$0xff] }
  0xa0   : > { %v1363_v44 = vadd.f32 1.0, %v1732_v57  ;;  %v1174_v62 = vadd.f32 %v1110_v42, %v854_v35  ;;  %v1111_v32 = vmul.f32 %v1047_v28, %v855_v39  ;;  %v596_v3 = vadd.f32 %v2033_v60, %v529_v54 }
  0xa1   : > { %v984_v2 = vmul.f32 0.044715, %v856_v58  ;;  %v794_v59 = vadd.f32 %v2038_v0, %v727_v27  ;;  %v530_v61 = vmul.f32 %v2014_v40, %v463_v56  ;;  %v857_v7 = vadd.f32 %v793_v1, %v595_v51 }
  0xa2   : > { %v1734_v4 = vpop.eup %1733  ;;  %v1427_v5 = vmul.f32 %v1363_v44, %v915_v17  ;;  %v1238_v55 = vmul.f32 0.7978846, %v1174_v62  ;;  %v1175_v6 = vadd.f32 %v1111_v32, %v855_v39  ;;  %v918_v52 = vmul.f32 0.5, %v854_v35  ;;  %v664_v44 = vld [vmem:[%s2003_s18 + $0x128] sm:$0xff] }
  0xa3   : > { %v1364_v8 = vadd.f32 1.0, %v1734_v4  ;;  %v1048_v9 = vmul.f32 %v984_v2, %v856_v58  ;;  %v2361_v63 = vadd.f32 %v794_v59, %v596_v3  ;;  %v919_v11 = vmul.f32 0.5, %v855_v39  ;;  %v663_v39 = vld [vmem:[%s2003_s18 + $0x120] sm:$0xff]  ;;  %v467_v4 = vld [vmem:[%s1995_s28 + $0x130] sm:$0xff] }
  0xa4   : > { %1491 = vst [vmem:[%s2128_s30 + $0xd0] sm:$0xff] %v1427_v5  ;;  %1737 = vtanh.f32 %v1238_v55  ;;  %v1239_v14 = vmul.f32 0.7978846, %v1175_v6  ;;  %v985_v15 = vmul.f32 0.044715, %v857_v7  ;;  %v597_v35 = vadd.f32 %v2033_v60, %v530_v61  ;;  %v665_v5 = vld [vmem:[%s2003_s18 + $0x130] sm:$0xff] }
  0xa5   : > { %v1736_v17 = vpop.eup %1735  ;;  %v1428_v18 = vmul.f32 %v1364_v8, %v916_v47  ;;  %v1112_v19 = vmul.f32 %v1048_v9, %v856_v58  ;;  %v986_v24 = vmul.f32 0.044715, %v2361_v63  ;;  %v728_v34 = vmul.f32 %v2019_v45, %v661_v10  ;;  %v468_v10 = vld [vmem:[%s1995_s28 + $0x138] sm:$0xff] }
  0xa6   : > { %v1365_v29 = vadd.f32 1.0, %v1736_v17  ;;  %1739 = vtanh.f32 %v1239_v14  ;;  %v1049_v33 = vmul.f32 %v985_v15, %v857_v7  ;;  %v531_v25 = vmul.f32 %v2014_v40, %v464_v12 }
  0xa7   : > { %1492 = vst [vmem:[%s2128_s30 + $0xd8] sm:$0xff] %v1428_v18  ;;  %v1176_v21 = vadd.f32 %v1112_v19, %v856_v58  ;;  %v1050_v16 = vmul.f32 %v986_v24, %v2361_v63  ;;  %v729_v38 = vmul.f32 %v2019_v45, %v662_v13  ;;  %v795_v36 = vadd.f32 %v2038_v0, %v728_v34 }
  0xa8   : > { %v1429_v37 = vmul.f32 %v1365_v29, %v917_v23  ;;  %v1113_v30 = vmul.f32 %v1049_v33, %v857_v7  ;;  %v532_v43 = vmul.f32 %v2014_v40, %v465_v26  ;;  %v598_v47 = vadd.f32 %v2033_v60, %v531_v25 }
  0xa9   : > { %v1240_v46 = vmul.f32 0.7978846, %v1176_v21  ;;  %v1114_v41 = vmul.f32 %v1050_v16, %v2361_v63  ;;  %v796_v48 = vadd.f32 %v2038_v0, %v729_v38  ;;  %v859_v20 = vadd.f32 %v795_v36, %v597_v35 }
  0xaa   : > { %v1738_v22 = vpop.eup %1737  ;;  %1493 = vst [vmem:[%s2128_s30 + $0xe0] sm:$0xff] %v1429_v37  ;;  %v1177_v31 = vadd.f32 %v1113_v30, %v857_v7  ;;  %v599_v49 = vadd.f32 %v2033_v60, %v532_v43  ;;  %v730_v50 = vmul.f32 %v2019_v45, %v663_v39  ;;  %v920_v56 = vmul.f32 0.5, %v856_v58 }
  0xab   : > { %v1366_v51 = vadd.f32 1.0, %v1738_v22  ;;  %1741 = vtanh.f32 %v1240_v46  ;;  %v1178_v42 = vadd.f32 %v1114_v41, %v2361_v63  ;;  %v860_v28 = vadd.f32 %v796_v48, %v598_v47  ;;  %v666_v47 = vld [vmem:[%s2003_s18 + $0x138] sm:$0xff]  ;;  %v469_v48 = vld [vmem:[%s1995_s28 + $0x140] sm:$0xff] }
  0xac   : > { %v1740_v54 = vpop.eup %1739  ;;  %v1241_v57 = vmul.f32 0.7978846, %v1177_v31  ;;  %v987_v23 = vmul.f32 0.044715, %v859_v20  ;;  %v797_v27 = vadd.f32 %v2038_v0, %v730_v50  ;;  %v921_v1 = vmul.f32 0.5, %v857_v7  ;;  %v667_v50 = vld [vmem:[%s2003_s18 + $0x140] sm:$0xff] }
  0xad   : > { %v1430_v62 = vmul.f32 %v1366_v51, %v918_v52  ;;  %v1367_v32 = vadd.f32 1.0, %v1740_v54  ;;  %v1242_v2 = vmul.f32 0.7978846, %v1178_v42  ;;  %v988_v59 = vmul.f32 0.044715, %v860_v28  ;;  %v470_v51 = vld [vmem:[%s1995_s28 + $0x148] sm:$0xff] }
  0xae   : > { %1743 = vtanh.f32 %v1241_v57  ;;  %v1051_v3 = vmul.f32 %v987_v23, %v859_v20  ;;  %v2388_v61 = vadd.f32 %v797_v27, %v599_v49  ;;  %v533_v55 = vmul.f32 %v2014_v40, %v466_v53  ;;  %v668_v42 = vld [vmem:[%s2003_s18 + $0x148] sm:$0xff] }
  0xaf   : > { %1494 = vst [vmem:[%s2128_s30 + $0xe8] sm:$0xff] %v1430_v62  ;;  %v1431_v58 = vmul.f32 %v1367_v32, %v919_v11  ;;  %1745 = vtanh.f32 %v1242_v2  ;;  %v731_v6 = vmul.f32 %v2019_v45, %v664_v44  ;;  %v922_v8 = vmul.f32 0.5, %v2361_v63  ;;  %v471_v44 = vld [vmem:[%s1995_s28 + $0x150] sm:$0xff] }
  0xb0   : > { %v1115_v7 = vmul.f32 %v1051_v3, %v859_v20  ;;  %v1052_v52 = vmul.f32 %v988_v59, %v860_v28  ;;  %v989_v9 = vmul.f32 0.044715, %v2388_v61  ;;  %v600_v13 = vadd.f32 %v2033_v60, %v533_v55 }
  0xb1   : > { %v1742_v12 = vpop.eup %1741  ;;  %1495 = vst [vmem:[%s2128_s30 + $0xf0] sm:$0xff] %v1431_v58  ;;  %v798_v14 = vadd.f32 %v2038_v0, %v731_v6  ;;  %v534_v11 = vmul.f32 %v2014_v40, %v467_v4  ;;  %v732_v15 = vmul.f32 %v2019_v45, %v665_v5  ;;  %v535_v29 = vmul.f32 %v2014_v40, %v468_v10  ;;  %v669_v5 = vld [vmem:[%s2003_s18 + $0x150] sm:$0xff] }
  0xb2   : > { %v1368_v17 = vadd.f32 1.0, %v1742_v12  ;;  %v1179_v18 = vadd.f32 %v1115_v7, %v859_v20  ;;  %v1116_v19 = vmul.f32 %v1052_v52, %v860_v28  ;;  %v1053_v63 = vmul.f32 %v989_v9, %v2388_v61 }
  0xb3   : > { %v2404_v24 = vadd.f32 %v798_v14, %v600_v13  ;;  %v601_v35 = vadd.f32 %v2033_v60, %v534_v11  ;;  %v799_v26 = vadd.f32 %v2038_v0, %v732_v15  ;;  %v923_v37 = vmul.f32 0.5, %v859_v20 }
  0xb4   : > { %v1744_v33 = vpop.eup %1743  ;;  %v1432_v34 = vmul.f32 %v1368_v17, %v920_v56  ;;  %v1243_v21 = vmul.f32 0.7978846, %v1179_v18  ;;  %v1180_v16 = vadd.f32 %v1116_v19, %v860_v28  ;;  %v1117_v25 = vmul.f32 %v1053_v63, %v2388_v61 }
  0xb5   : > { %v1746_v38 = vpop.eup %1745  ;;  %v1369_v39 = vadd.f32 1.0, %v1744_v33  ;;  %v990_v30 = vmul.f32 0.044715, %v2404_v24  ;;  %v2411_v36 = vadd.f32 %v799_v26, %v601_v35  ;;  %v924_v31 = vmul.f32 0.5, %v860_v28  ;;  %v472_v35 = vld [vmem:[%s1995_s28 + $0x158] sm:$0xff] }
  0xb6   : > { %1496 = vst [vmem:[%s2128_s30 + $0xf8] sm:$0xff] %v1432_v34  ;;  %v1370_v43 = vadd.f32 1.0, %v1746_v38  ;;  %1747 = vtanh.f32 %v1243_v21  ;;  %v1244_v46 = vmul.f32 0.7978846, %v1180_v16  ;;  %v1181_v41 = vadd.f32 %v1117_v25, %v2388_v61  ;;  %v670_v26 = vld [vmem:[%s2003_s18 + $0x158] sm:$0xff]  ;;  %v473_v16 = vld [vmem:[%s1995_s28 + $0x160] sm:$0xff] }
  0xb7   : > { %v1433_v22 = vmul.f32 %v1369_v39, %v921_v1  ;;  %v1054_v20 = vmul.f32 %v990_v30, %v2404_v24  ;;  %v991_v49 = vmul.f32 0.044715, %v2411_v36  ;;  %v602_v56 = vadd.f32 %v2033_v60, %v535_v29 }
  0xb8   : > { %v1434_v53 = vmul.f32 %v1370_v43, %v922_v8  ;;  %1749 = vtanh.f32 %v1244_v46  ;;  %v1245_v54 = vmul.f32 0.7978846, %v1181_v41  ;;  %v733_v28 = vmul.f32 %v2019_v45, %v666_v47  ;;  %v671_v41 = vld [vmem:[%s2003_s18 + $0x160] sm:$0xff] }
  0xb9   : > { %1497 = vst [vmem:[%s2128_s30 + $0x100] sm:$0xff] %v1433_v22  ;;  %v1118_v57 = vmul.f32 %v1054_v20, %v2404_v24  ;;  %v1055_v23 = vmul.f32 %v991_v49, %v2411_v36  ;;  %v536_v27 = vmul.f32 %v2014_v40, %v469_v48  ;;  %v734_v62 = vmul.f32 %v2019_v45, %v667_v50 }
  0xba   : > { %1498 = vst [vmem:[%s2128_s30 + $0x108] sm:$0xff] %v1434_v53  ;;  %1751 = vtanh.f32 %v1245_v54  ;;  %v537_v32 = vmul.f32 %v2014_v40, %v470_v51  ;;  %v735_v1 = vmul.f32 %v2019_v45, %v668_v42  ;;  %v800_v59 = vadd.f32 %v2038_v0, %v733_v28 }
  0xbb   : > { %v1182_v2 = vadd.f32 %v1118_v57, %v2404_v24  ;;  %v1119_v3 = vmul.f32 %v1055_v23, %v2411_v36  ;;  %v603_v4 = vadd.f32 %v2033_v60, %v536_v27  ;;  %v801_v55 = vadd.f32 %v2038_v0, %v734_v62 }
  0xbc   : > { %v1748_v58 = vpop.eup %1747  ;;  %v604_v6 = vadd.f32 %v2033_v60, %v537_v32  ;;  %v802_v8 = vadd.f32 %v2038_v0, %v735_v1  ;;  %v538_v7 = vmul.f32 %v2014_v40, %v471_v44  ;;  %v864_v12 = vadd.f32 %v800_v59, %v602_v56 }
  0xbd   : > { %v1371_v52 = vadd.f32 1.0, %v1748_v58  ;;  %v1246_v9 = vmul.f32 0.7978846, %v1182_v2  ;;  %v1183_v10 = vadd.f32 %v1119_v3, %v2411_v36  ;;  %v925_v14 = vmul.f32 0.5, %v2388_v61  ;;  %v474_v2 = vld [vmem:[%s1995_s28 + $0x168] sm:$0xff] }
  0xbe   : > { %v1750_v13 = vpop.eup %1749  ;;  %v865_v11 = vadd.f32 %v801_v55, %v603_v4  ;;  %v2444_v15 = vadd.f32 %v802_v8, %v604_v6  ;;  %v736_v17 = vmul.f32 %v2019_v45, %v669_v5  ;;  %v926_v33 = vmul.f32 0.5, %v2404_v24 }
  0xbf   : > { %v1435_v18 = vmul.f32 %v1371_v52, %v923_v37  ;;  %v1372_v19 = vadd.f32 1.0, %v1750_v13  ;;  %1753 = vtanh.f32 %v1246_v9  ;;  %v1247_v63 = vmul.f32 0.7978846, %v1183_v10 }
  0xc0   : > { %v1752_v29 = vpop.eup %1751  ;;  %v992_v34 = vmul.f32 0.044715, %v864_v12  ;;  %v993_v21 = vmul.f32 0.044715, %v865_v11  ;;  %v605_v61 = vadd.f32 %v2033_v60, %v538_v7  ;;  %v927_v39 = vmul.f32 0.5, %v2411_v36  ;;  %v672_v7 = vld [vmem:[%s2003_s18 + $0x168] sm:$0xff] }
  0xc1   : > { %1499 = vst [vmem:[%s2128_s30 + $0x110] sm:$0xff] %v1435_v18  ;;  %v1436_v25 = vmul.f32 %v1372_v19, %v924_v31  ;;  %v1373_v38 = vadd.f32 1.0, %v1752_v29  ;;  %1755 = vtanh.f32 %v1247_v63  ;;  %v994_v43 = vmul.f32 0.044715, %v2444_v15  ;;  %v476_v18 = vld [vmem:[%s1995_s28 + $0x178] sm:$0xff] }
  0xc2   : > { %v1056_v37 = vmul.f32 %v992_v34, %v864_v12  ;;  %v1057_v30 = vmul.f32 %v993_v21, %v865_v11  ;;  %v803_v46 = vadd.f32 %v2038_v0, %v736_v17  ;;  %v539_v47 = vmul.f32 %v2014_v40, %v472_v35  ;;  %v673_v17 = vld [vmem:[%s2003_s18 + $0x170] sm:$0xff]  ;;  %v674_v29 = vld [vmem:[%s2003_s18 + $0x178] sm:$0xff] }
  0xc3   : > { %1500 = vst [vmem:[%s2128_s30 + $0x118] sm:$0xff] %v1436_v25  ;;  %v1437_v24 = vmul.f32 %v1373_v38, %v925_v14  ;;  %v737_v48 = vmul.f32 %v2019_v45, %v670_v26  ;;  %v540_v22 = vmul.f32 %v2014_v40, %v473_v16  ;;  %v1058_v36 = vmul.f32 %v994_v43, %v2444_v15 }
  0xc4   : > { %v1120_v31 = vmul.f32 %v1056_v37, %v864_v12  ;;  %v1121_v20 = vmul.f32 %v1057_v30, %v865_v11  ;;  %v2462_v49 = vadd.f32 %v803_v46, %v605_v61  ;;  %v606_v51 = vadd.f32 %v2033_v60, %v539_v47 }
  0xc5   : > { %v1754_v50 = vpop.eup %1753  ;;  %1501 = vst [vmem:[%s2128_s30 + $0x120] sm:$0xff] %v1437_v24  ;;  %v804_v42 = vadd.f32 %v2038_v0, %v737_v48  ;;  %v607_v53 = vadd.f32 %v2033_v60, %v540_v22  ;;  %v738_v54 = vmul.f32 %v2019_v45, %v671_v41  ;;  %v1122_v28 = vmul.f32 %v1058_v36, %v2444_v15 }
  0xc6   : > { %v1374_v56 = vadd.f32 1.0, %v1754_v50  ;;  %v1184_v57 = vadd.f32 %v1120_v31, %v864_v12  ;;  %v1185_v23 = vadd.f32 %v1121_v20, %v865_v11  ;;  %v928_v44 = vmul.f32 0.5, %v864_v12  ;;  %v475_v12 = vld [vmem:[%s1995_s28 + $0x170] sm:$0xff] }
  0xc7   : > { %v1756_v27 = vpop.eup %1755  ;;  %v995_v62 = vmul.f32 0.044715, %v2462_v49  ;;  %v2471_v32 = vadd.f32 %v804_v42, %v606_v51  ;;  %v805_v1 = vadd.f32 %v2038_v0, %v738_v54  ;;  %v929_v58 = vmul.f32 0.5, %v865_v11 }
  0xc8   : > { %v1438_v3 = vmul.f32 %v1374_v56, %v926_v33  ;;  %v1375_v59 = vadd.f32 1.0, %v1756_v27  ;;  %v1248_v4 = vmul.f32 0.7978846, %v1184_v57  ;;  %v1249_v5 = vmul.f32 0.7978846, %v1185_v23 }
  0xc9   : > { %v1186_v55 = vadd.f32 %v1122_v28, %v2444_v15  ;;  %v1059_v6 = vmul.f32 %v995_v62, %v2462_v49  ;;  %v996_v8 = vmul.f32 0.044715, %v2471_v32  ;;  %v869_v9 = vadd.f32 %v805_v1, %v607_v53  ;;  %v477_v53 = vld [vmem:[%s1995_s28 + $0x180] sm:$0xff] }
  0xca   : > { %1502 = vst [vmem:[%s2128_s30 + $0x128] sm:$0xff] %v1438_v3  ;;  %v1439_v52 = vmul.f32 %v1375_v59, %v927_v39  ;;  %1757 = vtanh.f32 %v1248_v4  ;;  %v541_v10 = vmul.f32 %v2014_v40, %v474_v2  ;;  %v930_v19 = vmul.f32 0.5, %v2444_v15  ;;  %v478_v2 = vld [vmem:[%s1995_s28 + $0x188] sm:$0xff] }
  0xcb   : > { %1759 = vtanh.f32 %v1249_v5  ;;  %v1250_v13 = vmul.f32 0.7978846, %v1186_v55  ;;  %v1123_v14 = vmul.f32 %v1059_v6, %v2462_v49  ;;  %v1060_v11 = vmul.f32 %v996_v8, %v2471_v32  ;;  %v676_v5 = vld [vmem:[%s2003_s18 + $0x188] sm:$0xff]  ;;  %v479_v8 = vld [vmem:[%s1995_s28 + $0x190] sm:$0xff] }
  0xcc   : > { %1503 = vst [vmem:[%s2128_s30 + $0x130] sm:$0xff] %v1439_v52  ;;  %v997_v63 = vmul.f32 0.044715, %v869_v9  ;;  %v608_v35 = vadd.f32 %v2033_v60, %v541_v10  ;;  %v739_v26 = vmul.f32 %v2019_v45, %v672_v7  ;;  %v542_v21 = vmul.f32 %v2014_v40, %v475_v12 }
  0xcd   : > { %1761 = vtanh.f32 %v1250_v13  ;;  %v1187_v33 = vadd.f32 %v1123_v14, %v2462_v49  ;;  %v1124_v34 = vmul.f32 %v1060_v11, %v2471_v32  ;;  %v740_v25 = vmul.f32 %v2019_v45, %v673_v17 }
  0xce   : > { %v1061_v61 = vmul.f32 %v997_v63, %v869_v9  ;;  %v806_v16 = vadd.f32 %v2038_v0, %v739_v26  ;;  %v543_v15 = vmul.f32 %v2014_v40, %v476_v18  ;;  %v609_v37 = vadd.f32 %v2033_v60, %v542_v21  ;;  %v677_v26 = vld [vmem:[%s2003_s18 + $0x190] sm:$0xff] }
  0xcf   : > { %v1251_v38 = vmul.f32 0.7978846, %v1187_v33  ;;  %v1188_v39 = vadd.f32 %v1124_v34, %v2471_v32  ;;  %v741_v30 = vmul.f32 %v2019_v45, %v674_v29  ;;  %v807_v24 = vadd.f32 %v2038_v0, %v740_v25 }
  0xd0   : > { %v1758_v43 = vpop.eup %1757  ;;  %v1125_v46 = vmul.f32 %v1061_v61, %v869_v9  ;;  %v2500_v41 = vadd.f32 %v806_v16, %v608_v35  ;;  %v610_v47 = vadd.f32 %v2033_v60, %v543_v15  ;;  %v931_v50 = vmul.f32 0.5, %v2462_v49  ;;  %v675_v49 = vld [vmem:[%s2003_s18 + $0x180] sm:$0xff] }
  0xd1   : > { %v1760_v48 = vpop.eup %1759  ;;  %v1376_v22 = vadd.f32 1.0, %v1758_v43  ;;  %1763 = vtanh.f32 %v1251_v38  ;;  %v1252_v31 = vmul.f32 0.7978846, %v1188_v39  ;;  %v808_v20 = vadd.f32 %v2038_v0, %v741_v30  ;;  %v480_v38 = vld [vmem:[%s1995_s28 + $0x198] sm:$0xff] }
  0xd2   : > { %v1377_v36 = vadd.f32 1.0, %v1760_v48  ;;  %v1189_v51 = vadd.f32 %v1125_v46, %v869_v9  ;;  %v998_v42 = vmul.f32 0.044715, %v2500_v41  ;;  %v2508_v57 = vadd.f32 %v807_v24, %v609_v37  ;;  %v678_v46 = vld [vmem:[%s2003_s18 + $0x198] sm:$0xff] }
  0xd3   : > { %v1762_v54 = vpop.eup %1761  ;;  %v1440_v56 = vmul.f32 %v1376_v22, %v928_v44  ;;  %1765 = vtanh.f32 %v1252_v31  ;;  %v2510_v23 = vadd.f32 %v808_v20, %v610_v47  ;;  %v932_v3 = vmul.f32 0.5, %v2471_v32 }
  0xd4   : > { %v1441_v28 = vmul.f32 %v1377_v36, %v929_v58  ;;  %v1378_v27 = vadd.f32 1.0, %v1762_v54  ;;  %v1253_v62 = vmul.f32 0.7978846, %v1189_v51  ;;  %v1062_v1 = vmul.f32 %v998_v42, %v2500_v41  ;;  %v481_v51 = vld [vmem:[%s1995_s28 + $0x1a0] sm:$0xff] }
  0xd5   : > { %1504 = vst [vmem:[%s2128_s30 + $0x138] sm:$0xff] %v1440_v56  ;;  %v933_v59 = vmul.f32 0.5, %v869_v9  ;;  %v999_v44 = vmul.f32 0.044715, %v2508_v57  ;;  %v544_v4 = vmul.f32 %v2014_v40, %v477_v53  ;;  %v1000_v6 = vmul.f32 0.044715, %v2510_v23 }
  0xd6   : > { %1505 = vst [vmem:[%s2128_s30 + $0x140] sm:$0xff] %v1441_v28  ;;  %v1442_v55 = vmul.f32 %v1378_v27, %v930_v19  ;;  %1767 = vtanh.f32 %v1253_v62  ;;  %v1126_v58 = vmul.f32 %v1062_v1, %v2500_v41  ;;  %v742_v9 = vmul.f32 %v2019_v45, %v675_v49  ;;  %v679_v56 = vld [vmem:[%s2003_s18 + $0x1a0] sm:$0xff] }
  0xd7   : > { %v1764_v7 = vpop.eup %1763  ;;  %v1063_v52 = vmul.f32 %v999_v44, %v2508_v57  ;;  %v611_v32 = vadd.f32 %v2033_v60, %v544_v4  ;;  %v545_v10 = vmul.f32 %v2014_v40, %v478_v2  ;;  %v1064_v14 = vmul.f32 %v1000_v6, %v2510_v23 }
  0xd8   : > { %1506 = vst [vmem:[%s2128_s30 + $0x148] sm:$0xff] %v1442_v55  ;;  %v1379_v12 = vadd.f32 1.0, %v1764_v7  ;;  %v1190_v13 = vadd.f32 %v1126_v58, %v2500_v41  ;;  %v743_v11 = vmul.f32 %v2019_v45, %v676_v5  ;;  %v809_v19 = vadd.f32 %v2038_v0, %v742_v9 }
  0xd9   : > { %v1766_v17 = vpop.eup %1765  ;;  %v1127_v18 = vmul.f32 %v1063_v52, %v2508_v57  ;;  %v612_v63 = vadd.f32 %v2033_v60, %v545_v10  ;;  %v546_v35 = vmul.f32 %v2014_v40, %v479_v8  ;;  %v1128_v21 = vmul.f32 %v1064_v14, %v2510_v23 }
  0xda   : > { %v1443_v29 = vmul.f32 %v1379_v12, %v931_v50  ;;  %v1380_v33 = vadd.f32 1.0, %v1766_v17  ;;  %v1254_v34 = vmul.f32 0.7978846, %v1190_v13  ;;  %v873_v16 = vadd.f32 %v809_v19, %v611_v32 }
  0xdb   : > { %v1191_v61 = vadd.f32 %v1127_v18, %v2508_v57  ;;  %v810_v25 = vadd.f32 %v2038_v0, %v743_v11  ;;  %v613_v15 = vadd.f32 %v2033_v60, %v546_v35  ;;  %v1192_v30 = vadd.f32 %v1128_v21, %v2510_v23  ;;  %v680_v35 = vld [vmem:[%s2003_s18 + $0x1a8] sm:$0xff]  ;;  %v681_v21 = vld [vmem:[%s2003_s18 + $0x1b0] sm:$0xff] }
  0xdc   : > { %v1768_v39 = vpop.eup %1767  ;;  %1507 = vst [vmem:[%s2128_s30 + $0x150] sm:$0xff] %v1443_v29  ;;  %v1444_v37 = vmul.f32 %v1380_v33, %v932_v3  ;;  %1769 = vtanh.f32 %v1254_v34  ;;  %v744_v43 = vmul.f32 %v2019_v45, %v677_v26  ;;  %v934_v47 = vmul.f32 0.5, %v2500_v41  ;;  %v482_v3 = vld [vmem:[%s1995_s28 + $0x1a8] sm:$0xff]  ;;  %v483_v34 = vld [vmem:[%s1995_s28 + $0x1b0] sm:$0xff] }
  0xdd   : > { %v1381_v24 = vadd.f32 1.0, %v1768_v39  ;;  %v1255_v48 = vmul.f32 0.7978846, %v1191_v61  ;;  %v1001_v22 = vmul.f32 0.044715, %v873_v16  ;;  %v874_v20 = vadd.f32 %v810_v25, %v612_v63 }
  0xde   : > { %1508 = vst [vmem:[%s2128_s30 + $0x158] sm:$0xff] %v1444_v37  ;;  %v1256_v31 = vmul.f32 0.7978846, %v1192_v30  ;;  %v811_v36 = vadd.f32 %v2038_v0, %v744_v43  ;;  %v547_v50 = vmul.f32 %v2014_v40, %v480_v38  ;;  %v745_v54 = vmul.f32 %v2019_v45, %v678_v46  ;;  %v484_v38 = vld [vmem:[%s1995_s28 + $0x1b8] sm:$0xff] }
  0xdf   : > { %v1445_v42 = vmul.f32 %v1381_v24, %v933_v59  ;;  %1771 = vtanh.f32 %v1255_v48  ;;  %v1065_v53 = vmul.f32 %v1001_v22, %v873_v16  ;;  %v935_v41 = vmul.f32 0.5, %v2508_v57  ;;  %v682_v46 = vld [vmem:[%s2003_s18 + $0x1b8] sm:$0xff] }
  0xe0   : > { %1773 = vtanh.f32 %v1256_v31  ;;  %v1002_v28 = vmul.f32 0.044715, %v874_v20  ;;  %v2554_v27 = vadd.f32 %v811_v36, %v613_v15  ;;  %v614_v1 = vadd.f32 %v2033_v60, %v547_v50  ;;  %v485_v50 = vld [vmem:[%s1995_s28 + $0x1c0] sm:$0xff] }
  0xe1   : > { %1509 = vst [vmem:[%s2128_s30 + $0x160] sm:$0xff] %v1445_v42  ;;  %v1129_v62 = vmul.f32 %v1065_v53, %v873_v16  ;;  %v812_v49 = vadd.f32 %v2038_v0, %v745_v54  ;;  %v548_v2 = vmul.f32 %v2014_v40, %v481_v51  ;;  %v936_v44 = vmul.f32 0.5, %v2510_v23 }
  0xe2   : > { %v1770_v59 = vpop.eup %1769  ;;  %v1066_v4 = vmul.f32 %v1002_v28, %v874_v20  ;;  %v1003_v5 = vmul.f32 0.044715, %v2554_v27  ;;  %v746_v57 = vmul.f32 %v2019_v45, %v679_v56  ;;  %v549_v23 = vmul.f32 %v2014_v40, %v482_v3 }
  0xe3   : > { %v1382_v55 = vadd.f32 1.0, %v1770_v59  ;;  %v1193_v58 = vadd.f32 %v1129_v62, %v873_v16  ;;  %v2564_v6 = vadd.f32 %v812_v49, %v614_v1  ;;  %v615_v8 = vadd.f32 %v2033_v60, %v548_v2 }
  0xe4   : > { %v1130_v7 = vmul.f32 %v1066_v4, %v874_v20  ;;  %v1067_v52 = vmul.f32 %v1003_v5, %v2554_v27  ;;  %v813_v32 = vadd.f32 %v2038_v0, %v746_v57  ;;  %v937_v12 = vmul.f32 0.5, %v873_v16  ;;  %v683_v5 = vld [vmem:[%s2003_s18 + $0x1c0] sm:$0xff] }
  0xe5   : > { %v1772_v9 = vpop.eup %1771  ;;  %v1446_v10 = vmul.f32 %v1382_v55, %v934_v47  ;;  %v1257_v13 = vmul.f32 0.7978846, %v1193_v58  ;;  %v1004_v14 = vmul.f32 0.044715, %v2564_v6  ;;  %v938_v29 = vmul.f32 0.5, %v874_v20 }
  0xe6   : > { %v1774_v11 = vpop.eup %1773  ;;  %v1383_v17 = vadd.f32 1.0, %v1772_v9  ;;  %v1194_v18 = vadd.f32 %v1130_v7, %v874_v20  ;;  %v1131_v19 = vmul.f32 %v1067_v52, %v2554_v27  ;;  %v877_v63 = vadd.f32 %v813_v32, %v615_v8 }
  0xe7   : > { %1510 = vst [vmem:[%s2128_s30 + $0x168] sm:$0xff] %v1446_v10  ;;  %v1384_v26 = vadd.f32 1.0, %v1774_v11  ;;  %1775 = vtanh.f32 %v1257_v13  ;;  %v1068_v33 = vmul.f32 %v1004_v14, %v2564_v6  ;;  %v616_v15 = vadd.f32 %v2033_v60, %v549_v23  ;;  %v684_v11 = vld [vmem:[%s2003_s18 + $0x1c8] sm:$0xff] }
  0xe8   : > { %v1447_v61 = vmul.f32 %v1383_v17, %v935_v41  ;;  %v1258_v16 = vmul.f32 0.7978846, %v1194_v18  ;;  %v1195_v25 = vadd.f32 %v1131_v19, %v2554_v27  ;;  %v1005_v30 = vmul.f32 0.044715, %v877_v63  ;;  %v487_v17 = vld [vmem:[%s1995_s28 + $0x1d0] sm:$0xff] }
  0xe9   : > { %v1448_v39 = vmul.f32 %v1384_v26, %v936_v44  ;;  %v1132_v37 = vmul.f32 %v1068_v33, %v2564_v6  ;;  %v747_v43 = vmul.f32 %v2019_v45, %v680_v35  ;;  %v550_v47 = vmul.f32 %v2014_v40, %v483_v34 }
  0xea   : > { %1511 = vst [vmem:[%s2128_s30 + $0x170] sm:$0xff] %v1447_v61  ;;  %1777 = vtanh.f32 %v1258_v16  ;;  %v1259_v24 = vmul.f32 0.7978846, %v1195_v25  ;;  %v748_v48 = vmul.f32 %v2019_v45, %v681_v21  ;;  %v1069_v31 = vmul.f32 %v1005_v30, %v877_v63  ;;  %v685_v30 = vld [vmem:[%s2003_s18 + $0x1d0] sm:$0xff] }
  0xeb   : > { %1512 = vst [vmem:[%s2128_s30 + $0x178] sm:$0xff] %v1448_v39  ;;  %v1196_v22 = vadd.f32 %v1132_v37, %v2564_v6  ;;  %v814_v20 = vadd.f32 %v2038_v0, %v747_v43  ;;  %v551_v36 = vmul.f32 %v2014_v40, %v484_v38  ;;  %v617_v51 = vadd.f32 %v2033_v60, %v550_v47 }
  0xec   : > { %1779 = vtanh.f32 %v1259_v24  ;;  %v815_v42 = vadd.f32 %v2038_v0, %v748_v48  ;;  %v749_v53 = vmul.f32 %v2019_v45, %v682_v46  ;;  %v1133_v41 = vmul.f32 %v1069_v31, %v877_v63  ;;  %v488_v48 = vld [vmem:[%s1995_s28 + $0x1d8] sm:$0xff] }
  0xed   : > { %v1776_v54 = vpop.eup %1775  ;;  %v1260_v56 = vmul.f32 0.7978846, %v1196_v22  ;;  %v878_v28 = vadd.f32 %v814_v20, %v616_v15  ;;  %v618_v62 = vadd.f32 %v2033_v60, %v551_v36  ;;  %v552_v3 = vmul.f32 %v2014_v40, %v485_v50 }
  0xee   : > { %v1385_v1 = vadd.f32 1.0, %v1776_v54  ;;  %v2595_v49 = vadd.f32 %v815_v42, %v617_v51  ;;  %v816_v2 = vadd.f32 %v2038_v0, %v749_v53  ;;  %v939_v59 = vmul.f32 0.5, %v2554_v27  ;;  %v486_v27 = vld [vmem:[%s1995_s28 + $0x1c8] sm:$0xff]  ;;  %v686_v54 = vld [vmem:[%s2003_s18 + $0x1d8] sm:$0xff] }
  0xef   : > { %1781 = vtanh.f32 %v1260_v56  ;;  %v1197_v44 = vadd.f32 %v1133_v41, %v877_v63  ;;  %v1006_v4 = vmul.f32 0.044715, %v878_v28  ;;  %v940_v58 = vmul.f32 0.5, %v2564_v6 }
  0xf0   : > { %v1778_v57 = vpop.eup %1777  ;;  %v1449_v55 = vmul.f32 %v1385_v1, %v937_v12  ;;  %v1007_v8 = vmul.f32 0.044715, %v2595_v49  ;;  %v2603_v7 = vadd.f32 %v816_v2, %v618_v62  ;;  %v941_v32 = vmul.f32 0.5, %v877_v63  ;;  %v489_v62 = vld [vmem:[%s1995_s28 + $0x1e0] sm:$0xff] }
  0xf1   : > { %v1386_v52 = vadd.f32 1.0, %v1778_v57  ;;  %v1261_v23 = vmul.f32 0.7978846, %v1197_v44  ;;  %v1070_v9 = vmul.f32 %v1006_v4, %v878_v28  ;;  %v619_v12 = vadd.f32 %v2033_v60, %v552_v3  ;;  %v687_v44 = vld [vmem:[%s2003_s18 + $0x1e0] sm:$0xff]  ;;  %v490_v4 = vld [vmem:[%s1995_s28 + $0x1e8] sm:$0xff] }
  0xf2   : > { %v1780_v10 = vpop.eup %1779  ;;  %1513 = vst [vmem:[%s2128_s30 + $0x180] sm:$0xff] %v1449_v55  ;;  %v1071_v13 = vmul.f32 %v1007_v8, %v2595_v49  ;;  %v1008_v14 = vmul.f32 0.044715, %v2603_v7  ;;  %v750_v6 = vmul.f32 %v2019_v45, %v683_v5  ;;  %v553_v34 = vmul.f32 %v2014_v40, %v486_v27 }
  0xf3   : > { %v1450_v18 = vmul.f32 %v1386_v52, %v938_v29  ;;  %v1387_v19 = vadd.f32 1.0, %v1780_v10  ;;  %1783 = vtanh.f32 %v1261_v23  ;;  %v1134_v63 = vmul.f32 %v1070_v9, %v878_v28 }
  0xf4   : > { %v1135_v35 = vmul.f32 %v1071_v13, %v2595_v49  ;;  %v1072_v26 = vmul.f32 %v1008_v14, %v2603_v7  ;;  %v817_v33 = vadd.f32 %v2038_v0, %v750_v6  ;;  %v751_v29 = vmul.f32 %v2019_v45, %v684_v11 }
  0xf5   : > { %v1782_v21 = vpop.eup %1781  ;;  %1514 = vst [vmem:[%s2128_s30 + $0x188] sm:$0xff] %v1450_v18  ;;  %v1451_v61 = vmul.f32 %v1387_v19, %v939_v59  ;;  %v1198_v16 = vadd.f32 %v1134_v63, %v878_v28  ;;  %v554_v25 = vmul.f32 %v2014_v40, %v487_v17  ;;  %v942_v43 = vmul.f32 0.5, %v878_v28 }
  0xf6   : > { %v1388_v15 = vadd.f32 1.0, %v1782_v21  ;;  %v1199_v38 = vadd.f32 %v1135_v35, %v2595_v49  ;;  %v1136_v39 = vmul.f32 %v1072_v26, %v2603_v7  ;;  %v2622_v37 = vadd.f32 %v817_v33, %v619_v12 }
  0xf7   : > { %1515 = vst [vmem:[%s2128_s30 + $0x190] sm:$0xff] %v1451_v61  ;;  %v1262_v46 = vmul.f32 0.7978846, %v1198_v16  ;;  %v620_v24 = vadd.f32 %v2033_v60, %v553_v34  ;;  %v818_v47 = vadd.f32 %v2038_v0, %v751_v29  ;;  %v621_v36 = vadd.f32 %v2033_v60, %v554_v25 }
  0xf8   : > { %v1452_v22 = vmul.f32 %v1388_v15, %v940_v58  ;;  %v1263_v31 = vmul.f32 0.7978846, %v1199_v38  ;;  %v1200_v20 = vadd.f32 %v1136_v39, %v2603_v7  ;;  %v1009_v51 = vmul.f32 0.044715, %v2622_v37  ;;  %v688_v58 = vld [vmem:[%s2003_s18 + $0x1e8] sm:$0xff]  ;;  %v491_v39 = vld [vmem:[%s1995_s28 + $0x1f0] sm:$0xff] }
  0xf9   : > { %v1784_v50 = vpop.eup %1783  ;;  %1785 = vtanh.f32 %v1262_v46  ;;  %v2632_v42 = vadd.f32 %v818_v47, %v620_v24  ;;  %v752_v53 = vmul.f32 %v2019_v45, %v685_v30  ;;  %v555_v28 = vmul.f32 %v2014_v40, %v488_v48  ;;  %v689_v30 = vld [vmem:[%s2003_s18 + $0x1f0] sm:$0xff]  ;;  %v492_v48 = vld [vmem:[%s1995_s28 + $0x1f8] sm:$0xff]  ;;  %s1633_s28 = sshll.u32 %s1949_s17, 9  ;;  %s1530_s17 = scalar_lea.sflag [#allocation3], %s367_s20 }
  0xfa   : > { %1516 = vst [vmem:[%s2128_s30 + $0x198] sm:$0xff] %v1452_v22  ;;  %v1389_v56 = vadd.f32 1.0, %v1784_v50  ;;  %1787 = vtanh.f32 %v1263_v31  ;;  %v1264_v41 = vmul.f32 0.7978846, %v1200_v20  ;;  %v943_v1 = vmul.f32 0.5, %v2595_v49  ;;  %v690_v22 = vld [vmem:[%s2003_s18 + $0x1f8] sm:$0xff]  ;;  %s1541_s18 = scalar_lea.hbm %s2754_s10, %s1633_s28 }
  0xfb   : > { %v1073_v2 = vmul.f32 %v1009_v51, %v2622_v37  ;;  %v1010_v3 = vmul.f32 0.044715, %v2632_v42  ;;  %v819_v59 = vadd.f32 %v2038_v0, %v752_v53  ;;  %v622_v57 = vadd.f32 %v2033_v60, %v555_v28  ;;  %s1544_s25 = sshll.u32 %s1541_s18, 4  ;;  %s1545_s25 = int_to_ptr.hbm [resolvable:$true] %s1544_s25 }
  0xfc   : > { %v1453_v5 = vmul.f32 %v1389_v56, %v941_v32  ;;  %1789 = vtanh.f32 %v1264_v41  ;;  %v753_v55 = vmul.f32 %v2019_v45, %v686_v54  ;;  %v556_v23 = vmul.f32 %v2014_v40, %v489_v62  ;;  %s1821_s26 = sshra.s32 %s1545_s25, 4  ;;  %s1822_s26 = int_to_ptr.hbm [resolvable:$true] %s1821_s26 }
  0xfd   : > { %v1137_v8 = vmul.f32 %v1073_v2, %v2622_v37  ;;  %v1074_v52 = vmul.f32 %v1010_v3, %v2632_v42  ;;  %v2650_v49 = vadd.f32 %v819_v59, %v621_v36  ;;  %v944_v9 = vmul.f32 0.5, %v2603_v7  ;;  %s1823_s27 = scalar_lea.hbm %s1822_s26, 512  ;;  %p1828_p0 = scmp.lt.s32.totalorder %s1822_s26, %s2754_s10 }
  0xfe   : > { %1517 = vst [vmem:[%s2128_s30 + $0x1a0] sm:$0xff] %v1453_v5  ;;  %v820_v27 = vadd.f32 %v2038_v0, %v753_v55  ;;  %v754_v32 = vmul.f32 %v2019_v45, %v687_v44  ;;  %v557_v10 = vmul.f32 %v2014_v40, %v490_v4  ;;  %v755_v11 = vmul.f32 %v2019_v45, %v688_v58  ;;  %p1824_p11 = scmp.ne.s32.totalorder %s1822_s26, %s1823_s27  ;;  %p1829_p1 = scmp.lt.s32.totalorder %s1827_s11, %s1823_s27 }
  0xff   : > { %v1786_v13 = vpop.eup %1785  ;;  %v1201_v14 = vadd.f32 %v1137_v8, %v2622_v37  ;;  %v1138_v12 = vmul.f32 %v1074_v52, %v2632_v42  ;;  %v1011_v6 = vmul.f32 0.044715, %v2650_v49  ;;  %v623_v7 = vadd.f32 %v2033_v60, %v556_v23 }
 0x100   : > { %v1788_v17 = vpop.eup %1787  ;;  %v1390_v18 = vadd.f32 1.0, %v1786_v13  ;;  %v2662_v19 = vadd.f32 %v820_v27, %v622_v57  ;;  %v821_v63 = vadd.f32 %v2038_v0, %v754_v32  ;;  %v945_v46 = vmul.f32 0.5, %v2622_v37  ;;  %p1825_p12 = pnand %p1824_p11, %p1966_p5  ;;  %p1830_p2 = por %p1829_p1, %p1828_p0 }
 0x101   : > { %v1391_v35 = vadd.f32 1.0, %v1788_v17  ;;  %v1265_v26 = vmul.f32 0.7978846, %v1201_v14  ;;  %v1202_v33 = vadd.f32 %v1138_v12, %v2632_v42  ;;  %v1075_v34 = vmul.f32 %v1011_v6, %v2650_v49 }
 0x102   : > { %v1790_v21 = vpop.eup %1789  ;;  %v1454_v61 = vmul.f32 %v1390_v18, %v942_v43  ;;  %v1012_v16 = vmul.f32 0.044715, %v2662_v19  ;;  %v2669_v29 = vadd.f32 %v821_v63, %v623_v7  ;;  %v624_v20 = vadd.f32 %v2033_v60, %v557_v10  ;;  %p1826_p13 = pneg %p1825_p12 }
 0x103   : > { %v1455_v25 = vmul.f32 %v1391_v35, %v943_v1  ;;  %v1392_v15 = vadd.f32 1.0, %v1790_v21  ;;  %1791 = vtanh.f32 %v1265_v26  ;;  %v1266_v38 = vmul.f32 0.7978846, %v1202_v33 }
 0x104   : > { %1518 = vst [vmem:[%s2128_s30 + $0x1a8] sm:$0xff] %v1454_v61  ;;  %v1139_v24 = vmul.f32 %v1075_v34, %v2650_v49  ;;  %v1076_v47 = vmul.f32 %v1012_v16, %v2662_v19  ;;  %v1013_v43 = vmul.f32 0.044715, %v2669_v29  ;;  %v822_v36 = vadd.f32 %v2038_v0, %v755_v11  ;;  %p1831_p3 = pnand %p1830_p2, %p1826_p13 }
 0x105   : > { %1519 = vst [vmem:[%s2128_s30 + $0x1b0] sm:$0xff] %v1455_v25  ;;  %v1456_v31 = vmul.f32 %v1392_v15, %v944_v9  ;;  %1793 = vtanh.f32 %v1266_v38  ;;  %v558_v53 = vmul.f32 %v2014_v40, %v491_v39  ;;  %v756_v56 = vmul.f32 %v2019_v45, %v689_v30 }
 0x106   : > { %v1203_v50 = vadd.f32 %v1139_v24, %v2650_v49  ;;  %v1140_v51 = vmul.f32 %v1076_v47, %v2662_v19  ;;  %v1077_v37 = vmul.f32 %v1013_v43, %v2669_v29  ;;  %v886_v54 = vadd.f32 %v822_v36, %v624_v20 }
 0x107   : > { %1520 = vst [vmem:[%s2128_s30 + $0x1b8] sm:$0xff] %v1456_v31  ;;  %v559_v41 = vmul.f32 %v2014_v40, %v492_v48  ;;  %v757_v28 = vmul.f32 %v2019_v45, %v690_v22  ;;  %v625_v3 = vadd.f32 %v2033_v60, %v558_v53  ;;  %v946_v44 = vmul.f32 0.5, %v2632_v42 }
 0x108   : > { %v1267_v62 = vmul.f32 0.7978846, %v1203_v50  ;;  %v1204_v1 = vadd.f32 %v1140_v51, %v2662_v19  ;;  %v1141_v2 = vmul.f32 %v1077_v37, %v2669_v29  ;;  %v1014_v4 = vmul.f32 0.044715, %v886_v54 }
 0x109   : > { %v1792_v59 = vpop.eup %1791  ;;  %v823_v5 = vadd.f32 %v2038_v0, %v756_v56  ;;  %v626_v57 = vadd.f32 %v2033_v60, %v559_v41  ;;  %v824_v23 = vadd.f32 %v2038_v0, %v757_v28  ;;  %v947_v14 = vmul.f32 0.5, %v2650_v49 }
 0x10a   : > { %v1393_v55 = vadd.f32 1.0, %v1792_v59  ;;  %1795 = vtanh.f32 %v1267_v62  ;;  %v1268_v40 = vmul.f32 0.7978846, %v1204_v1  ;;  %v1205_v45 = vadd.f32 %v1141_v2, %v2669_v29 }
 0x10b   : > { %v1794_v58 = vpop.eup %1793  ;;  %v1078_v8 = vmul.f32 %v1014_v4, %v886_v54  ;;  %v887_v52 = vadd.f32 %v823_v5, %v625_v3  ;;  %v888_v13 = vadd.f32 %v824_v23, %v626_v57  ;;  %v948_v0 = vmul.f32 0.5, %v2662_v19 }
 0x10c   : > { %v1457_v9 = vmul.f32 %v1393_v55, %v945_v46  ;;  %v1394_v27 = vadd.f32 1.0, %v1794_v58  ;;  %1797 = vtanh.f32 %v1268_v40  ;;  %v1269_v42 = vmul.f32 0.7978846, %v1205_v45 }
 0x10d   : > { %v1142_v32 = vmul.f32 %v1078_v8, %v886_v54  ;;  %v1015_v10 = vmul.f32 0.044715, %v887_v52  ;;  %v1016_v11 = vmul.f32 0.044715, %v888_v13  ;;  %v949_v33 = vmul.f32 0.5, %v2669_v29 }
 0x10e   : > { %1521 = vst [vmem:[%s2128_s30 + $0x1c0] sm:$0xff] %v1457_v9  ;;  %v1458_v60 = vmul.f32 %v1394_v27, %v946_v44  ;;  %1799 = vtanh.f32 %v1269_v42  ;;  %v950_v30 = vmul.f32 0.5, %v886_v54  ;;  %v951_v43 = vmul.f32 0.5, %v887_v52 }
 0x10f   : > { %v1206_v12 = vadd.f32 %v1142_v32, %v886_v54  ;;  %v1079_v6 = vmul.f32 %v1015_v10, %v887_v52  ;;  %v1080_v35 = vmul.f32 %v1016_v11, %v888_v13  ;;  %v952_v31 = vmul.f32 0.5, %v888_v13 }
 0x110   : > { %v1796_v17 = vpop.eup %1795  ;;  %1522 = vst [vmem:[%s2128_s30 + $0x1c8] sm:$0xff] %v1458_v60 }
 0x111   : > { %v1395_v18 = vadd.f32 1.0, %v1796_v17  ;;  %v1270_v7 = vmul.f32 0.7978846, %v1206_v12  ;;  %v1143_v63 = vmul.f32 %v1079_v6, %v887_v52  ;;  %v1144_v16 = vmul.f32 %v1080_v35, %v888_v13 }
 0x112   : > { %v1798_v26 = vpop.eup %1797 }
 0x113   : > { %v1459_v34 = vmul.f32 %v1395_v18, %v947_v14  ;;  %v1396_v21 = vadd.f32 1.0, %v1798_v26  ;;  %1801 = vtanh.f32 %v1270_v7  ;;  %v1207_v49 = vadd.f32 %v1143_v63, %v887_v52 }
 0x114   : > { %v1800_v61 = vpop.eup %1799  ;;  %v1208_v38 = vadd.f32 %v1144_v16, %v888_v13 }
 0x115   : > { %1523 = vst [vmem:[%s2128_s30 + $0x1d0] sm:$0xff] %v1459_v34  ;;  %v1460_v25 = vmul.f32 %v1396_v21, %v948_v0  ;;  %v1397_v15 = vadd.f32 1.0, %v1800_v61  ;;  %v1271_v19 = vmul.f32 0.7978846, %v1207_v49 }
 0x116   : > { %v1272_v29 = vmul.f32 0.7978846, %v1208_v38 }
 0x117   : > { %1524 = vst [vmem:[%s2128_s30 + $0x1d8] sm:$0xff] %v1460_v25  ;;  %v1461_v39 = vmul.f32 %v1397_v15, %v949_v33  ;;  %1803 = vtanh.f32 %v1271_v19 }
 0x118   : > { %1805 = vtanh.f32 %v1272_v29 }
 0x119   : > { %v1802_v46 = vpop.eup %1801  ;;  %1525 = vst [vmem:[%s2128_s30 + $0x1e0] sm:$0xff] %v1461_v39 }
 0x11a   : > { %v1398_v24 = vadd.f32 1.0, %v1802_v46 }
 0x11c   : > { %v1462_v47 = vmul.f32 %v1398_v24, %v950_v30 }
 0x11d   : > { %v1804_v48 = vpop.eup %1803 }
 0x11e   : > { %1526 = vst [vmem:[%s2128_s30 + $0x1e8] sm:$0xff] %v1462_v47  ;;  %v1399_v22 = vadd.f32 1.0, %v1804_v48  ;;  %v1806_v20 = vpop.eup %1805 }
 0x11f   : > { %v1400_v50 = vadd.f32 1.0, %v1806_v20 }
 0x120   : > { %v1463_v36 = vmul.f32 %v1399_v22, %v951_v43 }
 0x121   : > { %v1464_v51 = vmul.f32 %v1400_v50, %v952_v31 }
 0x122   : > { %1527 = vst [vmem:[%s2128_s30 + $0x1f0] sm:$0xff] %v1463_v36 }
 0x123   : > { %1528 = vst [vmem:[%s2128_s30 + $0x1f8] sm:$0xff] %v1464_v51 }
 0x124   : > { %1834 = shalt.err (!%p1831_p3)
}
 0x125   : > { %s1871_s20 = smov 128   ;;  %s1872_s30 = smov 8  }
 0x126   : > { %1634 = dma.vmem_to_hbm [thread:$0]  (%p1966_p5), %s1543_s21, 8192, %s1545_s25, %s1530_s17, %s1871_s20, %s1871_s20, %s1872_s30  }
 0x127 PF: > { %p1640_p4 = scmp.ge.s32.totalorder %s1869_s16, 2  ;;  %s1559_s29 = sand.u32 1, %s1857_s13  }
 0x128   : > { %s1560_s28 = scalar_lea.sflag [#allocation3], %s1559_s29 }
 0x129   : > { %p1637_p7 = pnand %p1640_p4, %p1970_p6 }
 0x12b   : > { %p1638_p8 = pneg %p1637_p7 }
 0x12d   : > { %1852 = dma.done.wait (%p1638_p8), %s1560_s28, 8192  }
 0x12e   : > { %1854 = vsyncadd (%p1638_p8), %s1560_s28, 4294959104  ;;  %p20_p9 = scmp.ge.s32.totalorder %s1953_s19, 4   ;;  %s2757_s13 = smov %s1861_s14 }
 0x12f   : > { %s2758_s14 = smov %s1865_s15  ;;  %s2759_s15 = smov %s1964_s22 }
 0x130   : > { %s2760_s16 = smov %s1953_s19  ;;  %22 = sbr.rel (!%p20_p9) target bundleno = 3 (0x3), region = 98 }
 0x135   :  { %1566 = vsyncpa [#allocation3], 1 }
 0x136   :  { %1568 = vsyncpa [#allocation3 + $0x1], 1 }

// kernel: res_block_101.7
= control target key start
LH: loop header
LB: loop body
LE: loop exit
PB: predicated region body
PF: predicated region fallthrough
CT: control target
= control target key end

     0   :  { %s7051_s21 = smov 0   ;;  %s7053_s22 = smov 0   ;;  %s9107_s0 = inlined_call_operand.vmem [shape: bf16[2,10,100,128], index: 0, kind: input, shape index: {}, may-alias: {0,1,2}]   ;;  %s9108_s1 = inlined_call_operand.vmem [shape: bf16[2,10,100,128], index: 1, kind: input, shape index: {}, may-alias: {0,1,2}]   ;;  %s9109_s2 = inlined_call_operand.vmem [shape: bf16[2,10,100,128], index: 2, kind: input, shape index: {}, may-alias: {0,1,2}]   ;;  %s9110_s3 = inlined_call_operand.vmem [shape: bf16[27,128,128], index: 3, kind: input, shape index: {}]   ;;  %s9111_s4 = inlined_call_operand.vmem [shape: f32[2,8,78,128], index: 4, kind: output, shape index: {0}]   ;;  %s9112_s5 = inlined_call_operand.vmem [shape: f32[1,128], index: 5, kind: output, shape index: {1}]   ;;  %s9113_s6 = inlined_call_operand.vmem [shape: f32[1,128], index: 6, kind: output, shape index: {2}]  }
   0x1   :  { %s7055_s23 = smov 0   ;;  %s7057_s24 = smov 0  }
   0x2   :  { %s7059_s25 = smov 0  }
   0x3 LB: > { %9115 = sst [smem:[#allocation2_spill]] %s7007_s24  ;;  %s26_s26 = sadd.s32 1, %s7003_s23  ;;  %s7011_s25 = sphi %s7059_s25, %s17_s25   ;;  %s7007_s24 = sphi %s7057_s24, %s9150_s24   ;;  %s7003_s23 = sphi %s7055_s23, %s9152_s23   ;;  %s6999_s22 = sphi %s7053_s22, %s9148_s22   ;;  %s6995_s21 = sphi %s7051_s21, %s9151_s21  }
   0x4   : > { %s29_s27 = sadd.s32 1, %s7007_s24  ;;  %p27_p0 = scmp.ge.s32.totalorder %s26_s26, 8 }
   0x5   : > { %p5118_p1 = scmp.ge.s32.totalorder %s7011_s25, 1  ;;  %p267_p2 = scmp.lt.s32.totalorder %s7011_s25, 17 }
   0x6   : > { %s9154_s26 = smov (%p27_p0, %s26_s26), 0  ;;  %s9156_s27 = smov (!%p27_p0, %s29_s27), %s7007_s24 }
   0x7   : > { %9116 = sst [smem:[#allocation3_spill]] %s9154_s26  ;;  %p268_p3 = pnand %p5118_p1, %p267_p2 }
   0x8   : > { %p31_p4 = scmp.ge.s32.totalorder %s9156_s27, 2  ;;  %p325_p5 = scmp.lt.s32.totalorder (!%p268_p3), %s6999_s22, 1 }
   0x9   : > { %271 = sbr.rel (%p268_p3) target bundleno = 777 (0x309), region = 36  ;;  %p327_p6 = scmp.lt.s32.totalorder (!%p268_p3), %s6995_s21, 9 }
   0xa   : > { %s9158_s27 = smov (%p31_p4, %s9156_s27), 0  ;;  %s334_s28 = sadd.s32 (!%p268_p3), 1, %s6995_s21 }
   0xb   : > { %9117 = sst [smem:[#allocation4_spill]] %s9158_s27  ;;  %s345_s29 = sadd.s32 (!%p268_p3), 2, %s6995_s21 }
   0xc   : > { %p337_p7 = scmp.lt.s32.totalorder (!%p268_p3), %s334_s28, 9  ;;  %p348_p8 = scmp.lt.s32.totalorder (!%p268_p3), %s345_s29, 9 }
   0xd   : > { %p358_p9 = scmp.lt.s32.totalorder (!%p268_p3), %s6995_s21, 7  ;;  %s365_s17 = sadd.s32 (!%p268_p3), %s6995_s21, %s6999_s22 }
   0xe   : > { %s326_s30 = scalar_select %p325_p5, %s6999_s22, 1 }
   0xf   : > { %s328_s7 = scalar_select %p327_p6, %s6995_s21, 9 }
  0x10   : > { %s6910_s8 = smul.u32 130, %s326_s30  ;;  %s9160_s28 = smov (!%p337_p7, %s334_s28), 9 }
  0x11   : > { %s6909_s9 = smul.u32 13, %s328_s7  ;;  %s9162_s29 = smov (!%p348_p8, %s345_s29), 9 }
  0x12   : > { %s6911_s12 = smul.u32 13, %s9160_s28  ;;  %s9164_s21 = smov (!%p358_p9, %s6995_s21), 7 }
  0x13   : > { %s331_s10 = sadd.s32 %s6910_s8, %s6909_s9  ;;  %s6914_s7 = smul.u32 80, %s326_s30 }
  0x14   : > { %s5119_s11 = sshll.u32 %s331_s10, 2  ;;  %s341_s16 = sadd.s32 %s6911_s12, %s6910_s8 }
  0x15   : > { %s7094_s15 = scalar_lea.vmem %s9107_s0, %s5119_s11  ;;  %s5120_s18 = sshll.u32 %s341_s16, 2 }
  0x16   : > { %s7102_s27 = scalar_lea.vmem %s9108_s1, %s5120_s18  ;;  %s6912_s9 = smul.u32 13, %s9162_s29 }
  0x17   : > { %s6913_s10 = smul.u32 10, %s9164_s21  ;;  %p5123_p10 = scmp.ne.s32.totalorder %s365_s17, 0 }
  0x18   : > { %s352_s28 = sadd.s32 %s6912_s9, %s6910_s8 }
  0x19   : > { %s5121_s26 = sshll.u32 %s352_s28, 2  ;;  %s362_s24 = sadd.s32 %s6914_s7, %s6913_s10 }
  0x1a   : > { %s7108_s14 = scalar_lea.vmem %s9109_s2, %s5121_s26  ;;  %s5122_s22 = sshll.u32 %s362_s24, 3 }
  0x1b   : > { %s7113_s19 = scalar_lea.vmem %s9111_s4, %s5122_s22  ;;  %369 = sbr.rel (%p5123_p10) target bundleno = 35 (0x23), region = 40 }
  0x20   : > { %v7013_v0 = vmov 0.0  }
  0x21   : > { %370 = vst [vmem:[%s9112_s5] sm:$0x1] %v7013_v0 }
  0x22   : > { %371 = vst [vmem:[%s9113_s6] sm:$0x1] %v7013_v0 }
  0x23 PF: > { %v6626_v1 = vld [vmem:[%s9110_s3 + $0x78] sm:$0xff]  ;;  %v6625_v4 = vld [vmem:[%s9110_s3 + $0x70] sm:$0xff]  ;;  %v6624_v7 = vld [vmem:[%s9110_s3 + $0x68] sm:$0xff]  ;;  %vm441_vm0 = vsmask.f32 7424  ;;  %vm679_vm1 = vcmask 1046528  }
  0x24   : > { %v6618_v2 = vld [vmem:[%s9110_s3 + $0x38] sm:$0xff]  ;;  %534 = vmatpush.bf16.msra.mxu0 %v6626_v1  ;;  %6893 = vmatpush.bf16.msra.mxu3 %v6626_v1  ;;  %v6617_v5 = vld [vmem:[%s9110_s3 + $0x30] sm:$0xff]  ;;  %v6616_v8 = vld [vmem:[%s9110_s3 + $0x28] sm:$0xff]  ;;  %vm1000_vm2 = vsmask.f32 6400  ;;  %vm1168_vm3 = vcmask 1045504  }
  0x25   : > { %v6634_v3 = vld [vmem:[%s9110_s3 + $0xb8] sm:$0xff]  ;;  %624 = vmatpush.bf16.msra.mxu1 %v6618_v2  ;;  %v6633_v6 = vld [vmem:[%s9110_s3 + $0xb0] sm:$0xff]  ;;  %v6632_v9 = vld [vmem:[%s9110_s3 + $0xa8] sm:$0xff]  ;;  %vm1634_vm4 = vcmask 1044480   ;;  %vm1462_vm5 = vsmask.f32 5376 }
  0x26   : > { %742 = vmatpush.bf16.msra.mxu2 %v6634_v3  ;;  %v6623_v10 = vld [vmem:[%s9110_s3 + $0x60] sm:$0xff]  ;;  %v6622_v13 = vld [vmem:[%s9110_s3 + $0x58] sm:$0xff]  ;;  %v7161_v14 = vld [vmem:[%s7094_s15 + $0x10] sm:$0xff] }
  0x27   : > { %v6615_v11 = vld [vmem:[%s9110_s3 + $0x20] sm:$0xff]  ;;  %v6614_v15 = vld [vmem:[%s9110_s3 + $0x18] sm:$0xff]  ;;  %v7171_v18 = vld [vmem:[%s7094_s15 + $0x8] sm:$0xff]  ;;  %v458_v22 = vshll.u32 %v7161_v14, 16  ;;  %v462_v32 = vshrl.u32 %v7161_v14, 16 }
  0x28   : > { %535 = vmatpush.bf16.msra.mxu0 %v6625_v4  ;;  %6894 = vmatpush.bf16.msra.mxu3 %v6625_v4  ;;  %v6631_v12 = vld [vmem:[%s9110_s3 + $0xa0] sm:$0xff]  ;;  %v6630_v16 = vld [vmem:[%s9110_s3 + $0x98] sm:$0xff]  ;;  %v6621_v19 = vld [vmem:[%s9110_s3 + $0x50] sm:$0xff]  ;;  %v450_v28 = vshll.u32 %v7171_v18, 16  ;;  %v681_v45 = vrot.slane %v7171_v18, 1  ;;  %v454_v61 = vshrl.u32 %v7171_v18, 16 }
  0x29   : > { %625 = vmatpush.bf16.msra.mxu1 %v6617_v5  ;;  %v6873_v17 = vld [vmem:[%s7094_s15] sm:$0xff]   ;;  %v7177_v21 = vld [vmem:[%s7094_s15 + $0x18] sm:$0xff]  ;;  %v6613_v23 = vld [vmem:[%s9110_s3 + $0x10] sm:$0xff]  ;;  %v7192_v31 = vrot.slane %v458_v22, 1 }
  0x2a   : > { %743 = vmatpush.bf16.msra.mxu2 %v6633_v6  ;;  %v445_v20 = vshll.u32 %v6873_v17, 16  ;;  %v6629_v24 = vld [vmem:[%s9110_s3 + $0x90] sm:$0xff]  ;;  %v6884_v25 = vld [vmem:[%s7094_s15] sm:$0xf0]  ;;  %v6885_v26 = vld [vmem:[%s7094_s15] sm:$0xe] }
  0x2b   : > { %v443_v27 = vshrl.u32 %v6873_v17, 16  ;;  %v6620_v29 = vld [vmem:[%s9110_s3 + $0x48] sm:$0xff]  ;;  %v466_v33 = vshll.u32 %v7177_v21, 16  ;;  %v6886_v36 = vor.u32 %v6885_v26, %v6884_v25  ;;  %v6619_v37 = vld [vmem:[%s9110_s3 + $0x40] sm:$0xff]  ;;  %v452_v39 = vrot.slane %v450_v28, 1  ;;  %v6679_v48 = vld [vmem:[%s9110_s3 + $0x1b8] sm:$0xff] }
  0x2c   : > { %536 = vmatpush.bf16.msra.mxu0 %v6624_v7  ;;  %6895 = vmatpush.bf16.msra.mxu3 %v6624_v7  ;;  %v447_v30 = vrot.slane %v445_v20, 1  ;;  %v6612_v34 = vld [vmem:[%s9110_s3 + $0x8] sm:$0xff]  ;;  %v464_v40 = vor.u32 %v462_v32, %v7192_v31  ;;  %v6611_v42 = vld [vmem:[%s9110_s3] sm:$0xff]  ;;  %v6659_v49 = vld [vmem:[%s9110_s3 + $0x138] sm:$0xff]  ;;  %v470_v62 = vshrl.u32 %v7177_v21, 16 }
  0x2d   : > { %626 = vmatpush.bf16.msra.mxu1 %v6616_v8  ;;  %v6628_v35 = vld [vmem:[%s9110_s3 + $0x88] sm:$0xff]  ;;  %v468_v41 = vrot.slane %v466_v33, 1  ;;  %v6627_v43 = vld [vmem:[%s9110_s3 + $0x80] sm:$0xff]  ;;  %v680_v44 = vrot.slane %v6886_v36, 1  ;;  %v6647_v53 = vld [vmem:[%s9110_s3 + $0xf8] sm:$0xff]  ;;  %v456_v6 = vor.u32 %v454_v61, %v452_v39 }
  0x2e   : > { %744 = vmatpush.bf16.msra.mxu2 %v6632_v9  ;;  %v448_v38 = vor.u32 %v447_v30, %v443_v27  ;;  %v7214_v46 = vld [vmem:[%s7094_s15 + $0x20] sm:$0xff]   ;;  %v6667_v54 = vld [vmem:[%s9110_s3 + $0x178] sm:$0xff]  ;;  %v6658_v55 = vld [vmem:[%s9110_s3 + $0x130] sm:$0xff] }
  0x2f   : > { %v7217_v47 = vld [vmem:[%s7094_s15 + $0x20] sm:$0xf]   ;;  %v469_v51 = vsel %vm441_vm0, %v464_v40, %v468_v41  ;;  %v682_v52 = vsel %vm679_vm1, %v680_v44, %v681_v45  ;;  %v6678_v56 = vld [vmem:[%s9110_s3 + $0x1b0] sm:$0xff]  ;;  %v6657_v59 = vld [vmem:[%s9110_s3 + $0x128] sm:$0xff]  ;;  %v474_v63 = vshll.u32 %v7214_v46, 16  ;;  %v472_v7 = vor.u32 %v470_v62, %v468_v41 }
  0x30   : > { %537 = vmatpush.bf16.msra.mxu0 %v6623_v10  ;;  %6896 = vmatpush.bf16.msra.mxu3 %v6623_v10  ;;  %v453_v50 = vsel %vm441_vm0, %v448_v38, %v452_v39  ;;  %v6646_v57 = vld [vmem:[%s9110_s3 + $0xf0] sm:$0xff]  ;;  %v6677_v60 = vld [vmem:[%s9110_s3 + $0x1a8] sm:$0xff]  ;;  %v944_v1 = vld [vmem:[%s7094_s15 + $0x4] sm:$0xe]  ;;  %v478_v40 = vshrl.u32 %v7214_v46, 16  ;;  %v685_v44 = vrot.slane %v7177_v21, 1 }
  0x31   : > { %627 = vmatpush.bf16.msra.mxu1 %v6615_v11  ;;  %v6666_v58 = vld [vmem:[%s9110_s3 + $0x170] sm:$0xff]  ;;  %v6645_v0 = vld [vmem:[%s9110_s3 + $0xe8] sm:$0xff]  ;;  %v6656_v4 = vld [vmem:[%s9110_s3 + $0x120] sm:$0xff]  ;;  %v476_v8 = vrot.slane %v474_v63, 1  ;;  %v983_v9 = vunpack.c.l.b16 %v944_v1  ;;  %v683_v11 = vrot.slane %v7161_v14, 1 }
  0x32   : > { %745 = vmatpush.bf16.msra.mxu2 %v6631_v12  ;;  %v7260_v2 = vld [vmem:[%s7094_s15 + $0x8] sm:$0xff]   ;;  %v6676_v5 = vld [vmem:[%s9110_s3 + $0x1a0] sm:$0xff]  ;;  %v6674_v30 = vld [vmem:[%s9110_s3 + $0x190] sm:$0xff] }
  0x33   : > { %v6665_v3 = vld [vmem:[%s9110_s3 + $0x168] sm:$0xff]  ;;  %v984_v10 = vunpack.c.l.b16 %v7260_v2  ;;  %v6644_v12 = vld [vmem:[%s9110_s3 + $0xe0] sm:$0xff]  ;;  %v684_v22 = vsel %vm679_vm1, %v681_v45, %v683_v11  ;;  %v6663_v32 = vld [vmem:[%s9110_s3 + $0x158] sm:$0xff] }
  0x34   : > { %538 = vmatpush.bf16.msra.mxu0 %v6622_v13  ;;  %6897 = vmatpush.bf16.msra.mxu3 %v6622_v13  ;;  %v6655_v13 = vld [vmem:[%s9110_s3 + $0x118] sm:$0xff]  ;;  %v6673_v33 = vld [vmem:[%s9110_s3 + $0x188] sm:$0xff]  ;;  %v6652_v39 = vld [vmem:[%s9110_s3 + $0x100] sm:$0xff] }
  0x35   : > { %628 = vmatpush.bf16.msra.mxu1 %v6614_v15  ;;  %v6675_v15 = vld [vmem:[%s9110_s3 + $0x198] sm:$0xff]  ;;  %v994_v20 = vpack.c.b16 %v984_v10, %v983_v9  ;;  %v6641_v38 = vld [vmem:[%s9110_s3 + $0xc8] sm:$0xff]  ;;  %v6640_v45 = vld [vmem:[%s9110_s3 + $0xc0] sm:$0xff] }
  0x36   : > { %746 = vmatpush.bf16.msra.mxu2 %v6630_v16  ;;  %v461_v16 = vsel %vm441_vm0, %v456_v6, %v7192_v31  ;;  %v6653_v31 = vld [vmem:[%s9110_s3 + $0x108] sm:$0xff]  ;;  %v6695_v41 = vld [vmem:[%s9110_s3 + $0x238] sm:$0xff]  ;;  %v6660_v1 = vld [vmem:[%s9110_s3 + $0x140] sm:$0xff]  ;;  %v687_v6 = vrot.slane %v7214_v46, 1 }
  0x37   : > { %v1002_v25 = vshrl.u32 %v994_v20, 16  ;;  %v1005_v26 = vshll.u32 %v994_v20, 16  ;;  %v6636_v61 = vld [vmem:[%s7094_s15 + $0xc] sm:$0xff]  ;;  %v7368_v9 = vld [vmem:[%s7094_s15 + $0x1c] sm:$0xff] }
  0x38   : > { %539 = vmatpush.bf16.msra.mxu0 %v6621_v19  ;;  %6898 = vmatpush.bf16.msra.mxu3 %v6621_v19  ;;  %v7286_v19 = vld [vmem:[%s7094_s15 + $0xc] sm:$0xff]  ;;  %v1031_v46 = vshll.u32 %v7368_v9, 16 }
  0x39   : > { %629 = vmatpush.bf16.msra.mxu1 %v6613_v23  ;;  %v6643_v23 = vld [vmem:[%s9110_s3 + $0xd8] sm:$0xff]  ;;  %v1010_v27 = vshrl.u32 %v7286_v19, 16  ;;  %v1013_v28 = vshll.u32 %v7286_v19, 16  ;;  %v6685_v20 = vld [vmem:[%s9110_s3 + $0x1e8] sm:$0xff] }
  0x3a   : > { %747 = vmatpush.bf16.msra.mxu2 %v6629_v24  ;;  %v6654_v24 = vld [vmem:[%s9110_s3 + $0x110] sm:$0xff] }
  0x3b   : > { %v1012_v36 = vrot.slane %v1010_v27, 1 }
  0x3c   : > { %540 = vmatpush.bf16.msra.mxu0 %v6620_v29  ;;  %6899 = vmatpush.bf16.msra.mxu3 %v6620_v29  ;;  %v6664_v29 = vld [vmem:[%s9110_s3 + $0x160] sm:$0xff] }
  0x3d   : > { %630 = vmatpush.bf16.msra.mxu1 %v6612_v34  ;;  %v1004_v34 = vrot.slane %v1002_v25, 1  ;;  %v6986_v25 = vld [vmem:[%s7094_s15 + $0x20] sm:$0x70] }
  0x3e   : > { %748 = vmatpush.bf16.msra.mxu2 %v6628_v35  ;;  %v1007_v35 = vrot.slane %v1005_v26, 2 }
  0x40   : > { %541 = vmatpush.bf16.msra.mxu0 %v6619_v37  ;;  %6900 = vmatpush.bf16.msra.mxu3 %v6619_v37  ;;  %v1015_v37 = vrot.slane %v1013_v28, 2  ;;  %v6961_v28 = vor.u32 %v6986_v25, %v7217_v47  ;;  %v6706_v47 = vld [vmem:[%s9110_s3 + $0x278] sm:$0xff] }
  0x41   : > { %631 = vmatpush.bf16.msra.mxu1 %v6611_v42  ;;  %v1008_v42 = vor.u32 %v1007_v35, %v1004_v34  ;;  %v6712_v35 = vld [vmem:[%s9110_s3 + $0x2a8] sm:$0xff] }
  0x42   : > { %749 = vmatpush.bf16.msra.mxu2 %v6627_v43  ;;  %v1016_v43 = vor.u32 %v1015_v37, %v1012_v36  ;;  %v6690_v36 = vld [vmem:[%s9110_s3 + $0x210] sm:$0xff] }
  0x43   : > { %542 = vmatmul.bf16.vlgmr.msra.gmra.mxu0 %v453_v50  ;;  %552 = vmatmul.bf16.vlgmr.msra.gmra.mxu3 %v469_v51  ;;  %v7334_v50 = vld [vmem:[%s7094_s15 + $0x14] sm:$0xff]  ;;  %v686_v51 = vsel %vm679_vm1, %v683_v11, %v685_v44  ;;  %v688_v11 = vsel %vm679_vm1, %v685_v44, %v687_v6  ;;  %v6638_v44 = vld [vmem:[%s7094_s15 + $0x1c] sm:$0xff] }
  0x44   : > { %1103 = vmatpush.bf16.msrb.mxu0 %v6659_v49  ;;  %632 = vmatmul.bf16.vlgmr.msra.gmra.mxu1 %v6873_v17  ;;  %v477_v17 = vsel %vm441_vm0, %v472_v7, %v476_v8  ;;  %v1017_v49 = vsel %vm1000_vm2, %v1008_v42, %v1016_v43  ;;  %v6711_v42 = vld [vmem:[%s9110_s3 + $0x2a0] sm:$0xff] }
  0x45   : > { %750 = vmatmul.bf16.vlgmr.msra.gmra.mxu2 %v682_v52  ;;  %900 = vmatpush.bf16.msrb.mxu3 %v6647_v53  ;;  %v6694_v52 = vld [vmem:[%s9110_s3 + $0x230] sm:$0xff]  ;;  %v5282_v53 = vld [vmem:[%s7094_s15 + $0x4] sm:$0xe] }
  0x46   : > { %1397 = vmatpush.bf16.msrb.mxu2 %v6679_v48  ;;  %1233 = vmatpush.bf16.msrb.mxu1 %v6667_v54  ;;  %v480_v48 = vor.u32 %v478_v40, %v476_v8  ;;  %v1019_v54 = vshrl.u32 %v7334_v50, 16  ;;  %v6684_v40 = vld [vmem:[%s9110_s3 + $0x1e0] sm:$0xff] }
  0x48   : > { %1104 = vmatpush.bf16.msrb.mxu0 %v6658_v55  ;;  %v1022_v55 = vshll.u32 %v7334_v50, 16  ;;  %v1021_v63 = vrot.slane %v1019_v54, 1  ;;  %v843_v54 = vrot.slane %v6638_v44, 1  ;;  %v7516_v44 = vld [vmem:[%s7094_s15 + $0x28] sm:$0xff] }
  0x49   : > { %901 = vmatpush.bf16.msrb.mxu3 %v6646_v57  ;;  %v6672_v57 = vld [vmem:[%s9110_s3 + $0x180] sm:$0xff] }
  0x4a   : > { %1398 = vmatpush.bf16.msrb.mxu2 %v6678_v56  ;;  %1234 = vmatpush.bf16.msrb.mxu1 %v6666_v58  ;;  %v6662_v56 = vld [vmem:[%s9110_s3 + $0x150] sm:$0xff]  ;;  %v6635_v58 = vld [vmem:[%s7094_s15 + $0x4] sm:$0xf0] }
  0x4b   : > { %v5283_v62 = vor.u32 %v6635_v58, %v5282_v53  ;;  %v6688_v53 = vld [vmem:[%s9110_s3 + $0x200] sm:$0xff] }
  0x4c   : > { %1105 = vmatpush.bf16.msrb.mxu0 %v6657_v59  ;;  %v6687_v59 = vld [vmem:[%s9110_s3 + $0x1f8] sm:$0xff] }
  0x4d   : > { %902 = vmatpush.bf16.msrb.mxu3 %v6645_v0  ;;  %v1024_v0 = vrot.slane %v1022_v55, 2 }
  0x4e   : > { %1399 = vmatpush.bf16.msrb.mxu2 %v6677_v60  ;;  %1235 = vmatpush.bf16.msrb.mxu1 %v6665_v3  ;;  %v6661_v60 = vld [vmem:[%s9110_s3 + $0x148] sm:$0xff]  ;;  %v838_v3 = vrot.slane %v5283_v62, 1 }
  0x50   : > { %1106 = vmatpush.bf16.msrb.mxu0 %v6656_v4  ;;  %v839_v4 = vrot.slane %v6636_v61, 1 }
  0x51   : > { %903 = vmatpush.bf16.msrb.mxu3 %v6644_v12  ;;  %v1028_v12 = vshrl.u32 %v7368_v9, 16 }
  0x52   : > { %1400 = vmatpush.bf16.msrb.mxu2 %v6676_v5  ;;  %1236 = vmatpush.bf16.msrb.mxu1 %v6664_v29  ;;  %v1025_v5 = vor.u32 %v1024_v0, %v1021_v63  ;;  %v840_v7 = vsel %vm679_vm1, %v838_v3, %v839_v4  ;;  %v6710_v3 = vld [vmem:[%s9110_s3 + $0x298] sm:$0xff] }
  0x53   : > { %547 = vmatmul.bf16.gmra.mxu0 %v461_v16  ;;  %557 = vmatmul.bf16.gmra.mxu3 %v477_v17  ;;  %v6686_v16 = vld [vmem:[%s9110_s3 + $0x1f0] sm:$0xff]  ;;  %v6691_v17 = vld [vmem:[%s9110_s3 + $0x218] sm:$0xff] }
  0x54   : > { %1107 = vmatpush.bf16.msrb.mxu0 %v6655_v13  ;;  %637 = vmatmul.bf16.gmra.mxu1 %v7171_v18  ;;  %v6642_v18 = vld [vmem:[%s9110_s3 + $0xd0] sm:$0xff]  ;;  %v1026_v8 = vsel %vm1000_vm2, %v1016_v43, %v1025_v5  ;;  %v6714_v13 = vld [vmem:[%s9110_s3 + $0x2b8] sm:$0xff]  ;;  %v6689_v43 = vld [vmem:[%s9110_s3 + $0x208] sm:$0xff] }
  0x55   : > { %755 = vmatmul.bf16.gmra.mxu2 %v684_v22  ;;  %904 = vmatpush.bf16.msrb.mxu3 %v6643_v23  ;;  %v6637_v22 = vld [vmem:[%s7094_s15 + $0x14] sm:$0xff]  ;;  %v1030_v23 = vrot.slane %v1028_v12, 1 }
  0x56   : > { %1401 = vmatpush.bf16.msrb.mxu2 %v6675_v15  ;;  %1237 = vmatpush.bf16.msrb.mxu1 %v6663_v32  ;;  %v6692_v15 = vld [vmem:[%s9110_s3 + $0x220] sm:$0xff]  ;;  %v841_v26 = vrot.slane %v6637_v22, 1  ;;  %v1277_v32 = vld [vmem:[%s7094_s15 + $0x8] sm:$0xc] }
  0x57   : > { %v1613_v22 = vld [vmem:[%s7094_s15 + $0x8] sm:$0x8] }
  0x58   : > { %1108 = vmatpush.bf16.msrb.mxu0 %v6654_v24  ;;  %v1033_v24 = vrot.slane %v1031_v46, 2  ;;  %v842_v29 = vsel %vm679_vm1, %v839_v4, %v841_v26  ;;  %v6682_v4 = vld [vmem:[%s9110_s3 + $0x1d0] sm:$0xff]  ;;  %v1172_v46 = vrot.slane %v7334_v50, 2  ;;  %v1632_v50 = vunpack.c.l.b16 %v1613_v22 }
  0x59   : > { %905 = vmatpush.bf16.msrb.mxu3 %v6642_v18  ;;  %v7398_v18 = vld [vmem:[%s7094_s15 + $0x24] sm:$0xff] }
  0x5a   : > { %1402 = vmatpush.bf16.msrb.mxu2 %v6674_v30  ;;  %1238 = vmatpush.bf16.msrb.mxu1 %v6662_v56  ;;  %v1034_v27 = vor.u32 %v1033_v24, %v1030_v23  ;;  %v1040_v34 = vshll.u32 %v7398_v18, 16  ;;  %v6703_v23 = vld [vmem:[%s9110_s3 + $0x260] sm:$0xff]  ;;  %v6709_v24 = vld [vmem:[%s9110_s3 + $0x290] sm:$0xff] }
  0x5c   : > { %1109 = vmatpush.bf16.msrb.mxu0 %v6653_v31  ;;  %v1035_v30 = vsel %vm1000_vm2, %v1025_v5, %v1034_v27  ;;  %v1147_v31 = vld [vmem:[%s7094_s15 + $0x4] sm:$0xc] }
  0x5d   : > { %906 = vmatpush.bf16.msrb.mxu3 %v6641_v38  ;;  %v1166_v37 = vunpack.c.l.b16 %v1147_v31  ;;  %v1316_v38 = vunpack.c.l.b16 %v1277_v32  ;;  %v6639_v5 = vld [vmem:[%s7094_s15 + $0x24] sm:$0xff] }
  0x5e   : > { %1403 = vmatpush.bf16.msrb.mxu2 %v6673_v33  ;;  %1239 = vmatpush.bf16.msrb.mxu1 %v6661_v60  ;;  %v1037_v33 = vshrl.u32 %v7398_v18, 16 }
  0x60   : > { %1110 = vmatpush.bf16.msrb.mxu0 %v6652_v39  ;;  %v1317_v39 = vunpack.c.h.b16 %v7260_v2  ;;  %v6702_v2 = vld [vmem:[%s9110_s3 + $0x258] sm:$0xff] }
  0x61   : > { %907 = vmatpush.bf16.msrb.mxu3 %v6640_v45  ;;  %v1039_v45 = vrot.slane %v1037_v33, 1  ;;  %v6708_v33 = vld [vmem:[%s9110_s3 + $0x288] sm:$0xff] }
  0x62   : > { %1404 = vmatpush.bf16.msrb.mxu2 %v6672_v57  ;;  %1240 = vmatpush.bf16.msrb.mxu1 %v6660_v1  ;;  %v1170_v57 = vrot.slane %v7286_v19, 2  ;;  %v6683_v19 = vld [vmem:[%s9110_s3 + $0x1d8] sm:$0xff]  ;;  %v6704_v1 = vld [vmem:[%s9110_s3 + $0x268] sm:$0xff]  ;;  %v1633_v25 = vpack.c.b16 %v1317_v39, %v1632_v50 }
  0x63   : > { %562 = vmatmul.bf16.gmra.mxu3 %v480_v48  ;;  %1111 = vmatmul.bf16.vlgmr.msrb.gmra.mxu0 %v1017_v49  ;;  %v1042_v48 = vrot.slane %v1040_v34, 2  ;;  %v1167_v49 = vpack.c.b16 %v984_v10, %v1166_v37 }
  0x64   : > { %1699 = vmatpush.bf16.msra.mxu0 %v6695_v41  ;;  %642 = vmatmul.bf16.gmra.mxu1 %v7161_v14  ;;  %v6693_v14 = vld [vmem:[%s9110_s3 + $0x228] sm:$0xff]  ;;  %v6705_v41 = vld [vmem:[%s9110_s3 + $0x270] sm:$0xff] }
  0x65   : > { %760 = vmatmul.bf16.gmra.mxu2 %v686_v51  ;;  %1569 = vmatpush.bf16.msra.mxu3 %v6687_v59  ;;  %v7430_v51 = vld [vmem:[%s7094_s15 + $0x10] sm:$0xff]  ;;  %v1043_v55 = vor.u32 %v1042_v48, %v1039_v45  ;;  %v1169_v56 = vrot.slane %v1167_v49, 2  ;;  %v844_v59 = vsel %vm679_vm1, %v841_v26, %v843_v54  ;;  %v7488_v26 = vld [vmem:[%s7094_s15 + $0x20] sm:$0xff]  ;;  %v6700_v48 = vld [vmem:[%s9110_s3 + $0x248] sm:$0xff] }
  0x66   : > { %2005 = vmatpush.bf16.msra.mxu2 %v6714_v13  ;;  %1848 = vmatpush.bf16.msra.mxu1 %v6706_v47  ;;  %v1334_v58 = vrot.slane %v7430_v51, 2  ;;  %v1338_v31 = vrot.slane %v7488_v26, 2  ;;  %v1472_v37 = vshrl.u32 %v7430_v51, 16  ;;  %v6707_v45 = vld [vmem:[%s9110_s3 + $0x280] sm:$0xff]  ;;  %v6733_v49 = vld [vmem:[%s9110_s3 + $0x328] sm:$0xff] }
  0x67   : > { %v1044_v60 = vsel %vm1000_vm2, %v1034_v27, %v1043_v55  ;;  %v1171_v62 = vsel %vm1168_vm3, %v1169_v56, %v1170_v57  ;;  %v6735_v27 = vld [vmem:[%s9110_s3 + $0x338] sm:$0xff]  ;;  %v1340_v56 = vrot.slane %v7516_v44, 2 }
  0x68   : > { %1700 = vmatpush.bf16.msra.mxu0 %v6694_v52  ;;  %v7434_v52 = vpack.c.b16 %v1317_v39, %v1316_v38  ;;  %v1475_v38 = vshll.u32 %v7430_v51, 16  ;;  %v6701_v39 = vld [vmem:[%s9110_s3 + $0x250] sm:$0xff] }
  0x69   : > { %1570 = vmatpush.bf16.msra.mxu3 %v6686_v16 }
  0x6a   : > { %1849 = vmatpush.bf16.msra.mxu1 %v6705_v41  ;;  %v1333_v10 = vrot.slane %v7434_v52, 2 }
  0x6c   : > { %1701 = vmatpush.bf16.msra.mxu0 %v6693_v14  ;;  %v954_v14 = vld [vmem:[%s7094_s15 + $0x2c] sm:$0x1]  ;;  %v1335_v63 = vsel %vm1168_vm3, %v1333_v10, %v1334_v58 }
  0x6d   : > { %1571 = vmatpush.bf16.msra.mxu3 %v6685_v20  ;;  %v993_v61 = vunpack.c.l.b16 %v954_v14 }
  0x6e   : > { %1850 = vmatpush.bf16.msra.mxu1 %v6704_v1  ;;  %v6755_v1 = vld [vmem:[%s9110_s3 + $0x3b8] sm:$0xff] }
  0x6f   : > { %v7450_v0 = vpack.c.b16 %v993_v61, %v993_v61  ;;  %v1341_v61 = vsel %vm1168_vm3, %v1338_v31, %v1340_v56 }
  0x70   : > { %1702 = vmatpush.bf16.msra.mxu0 %v6692_v15  ;;  %v6680_v15 = vld [vmem:[%s9110_s3 + $0x1c0] sm:$0xff] }
  0x71   : > { %1572 = vmatpush.bf16.msra.mxu3 %v6684_v40  ;;  %v1178_v22 = vrot.slane %v7450_v0, 2 }
  0x72   : > { %1851 = vmatpush.bf16.msra.mxu1 %v6703_v23 }
  0x73   : > { %908 = vmatmul.bf16.vlgmr.msrb.gmra.mxu3 %v840_v7  ;;  %1116 = vmatmul.bf16.gmra.mxu0 %v1026_v8  ;;  %v7464_v7 = vld [vmem:[%s7094_s15 + $0x18] sm:$0xff]  ;;  %v6681_v8 = vld [vmem:[%s9110_s3 + $0x1c8] sm:$0xff] }
  0x74   : > { %647 = vmatmul.bf16.gmra.mxu1 %v7177_v21  ;;  %v6713_v21 = vld [vmem:[%s9110_s3 + $0x2b0] sm:$0xff]  ;;  %1703 = vmatpush.bf16.msra.mxu0 %v6691_v17  ;;  %v1336_v13 = vrot.slane %v7464_v7, 2  ;;  %v1173_v17 = vsel %vm1168_vm3, %v1170_v57, %v1172_v46  ;;  %v6699_v57 = vld [vmem:[%s9110_s3 + $0x240] sm:$0xff] }
  0x75   : > { %765 = vmatmul.bf16.gmra.mxu2 %v688_v11  ;;  %1573 = vmatpush.bf16.msra.mxu3 %v6683_v19  ;;  %v845_v11 = vrot.slane %v6639_v5, 1  ;;  %v1484_v19 = vshll.u32 %v7464_v7, 16 }
  0x76   : > { %2006 = vmatpush.bf16.msra.mxu2 %v6713_v21  ;;  %v1337_v20 = vsel %vm1168_vm3, %v1334_v58, %v1336_v13  ;;  %v1339_v47 = vsel %vm1168_vm3, %v1336_v13, %v1338_v31  ;;  %1852 = vmatpush.bf16.msra.mxu1 %v6702_v2 }
  0x77   : > { %v846_v16 = vsel %vm679_vm1, %v843_v54, %v845_v11  ;;  %v1638_v54 = vrot.slane %v7464_v7, 3 }
  0x78   : > { %1704 = vmatpush.bf16.msra.mxu0 %v6690_v36  ;;  %v1467_v36 = vshll.u32 %v7434_v52, 16 }
  0x79   : > { %1574 = vmatpush.bf16.msra.mxu3 %v6682_v4 }
  0x7a   : > { %2007 = vmatpush.bf16.msra.mxu2 %v6712_v35  ;;  %v1464_v35 = vshrl.u32 %v7434_v52, 16  ;;  %v1469_v41 = vrot.slane %v1467_v36, 3  ;;  %1853 = vmatpush.bf16.msra.mxu1 %v6701_v39  ;;  %v7579_v36 = vld [vmem:[%s7102_s27 + $0x8] sm:$0xff]  ;;  %v6730_v39 = vld [vmem:[%s9110_s3 + $0x310] sm:$0xff] }
  0x7c   : > { %1705 = vmatpush.bf16.msra.mxu0 %v6689_v43  ;;  %v1466_v40 = vrot.slane %v1464_v35, 2  ;;  %v1477_v43 = vrot.slane %v1475_v38, 3 }
  0x7d   : > { %1575 = vmatpush.bf16.msra.mxu3 %v6681_v8 }
  0x7e   : > { %2008 = vmatpush.bf16.msra.mxu2 %v6711_v42  ;;  %v1474_v42 = vrot.slane %v1472_v37, 2  ;;  %v1470_v52 = vor.u32 %v1469_v41, %v1466_v40  ;;  %1854 = vmatpush.bf16.msra.mxu1 %v6700_v48 }
  0x80   : > { %1706 = vmatpush.bf16.msra.mxu0 %v6688_v53  ;;  %v1478_v53 = vor.u32 %v1477_v43, %v1474_v42 }
  0x81   : > { %1576 = vmatpush.bf16.msra.mxu3 %v6680_v15 }
  0x82   : > { %2009 = vmatpush.bf16.msra.mxu2 %v6710_v3  ;;  %v1479_v58 = vsel %vm1462_vm5, %v1470_v52, %v1478_v53  ;;  %1855 = vmatpush.bf16.msra.mxu1 %v6699_v57  ;;  %v1921_v52 = vshll.u32 %v7579_v36, 16  ;;  %v1642_v57 = vrot.slane %v7516_v44, 3 }
  0x83   : > { %913 = vmatmul.bf16.gmra.mxu3 %v842_v29  ;;  %1121 = vmatmul.bf16.gmra.mxu0 %v1035_v30  ;;  %v1636_v29 = vrot.slane %v7430_v51, 3  ;;  %v1174_v30 = vrot.slane %v7368_v9, 2  ;;  %v6734_v9 = vld [vmem:[%s9110_s3 + $0x330] sm:$0xff]  ;;  %v6722_v51 = vld [vmem:[%s9110_s3 + $0x2f8] sm:$0xff] }
  0x84   : > { %652 = vmatmul.bf16.gmra.mxu1 %v6961_v28  ;;  %v1635_v28 = vrot.slane %v1633_v25, 3  ;;  %2290 = vmatpush.bf16.msrb.mxu0 %v6735_v27 }
  0x85   : > { %770 = vmatmul.bf16.gmra.mxu2 %v687_v6  ;;  %v1046_v6 = vshll.u32 %v7450_v0, 16  ;;  %v1175_v34 = vsel %vm1168_vm3, %v1172_v46, %v1174_v30  ;;  %2132 = vmatpush.bf16.msrb.mxu3 %v6722_v51  ;;  %v1639_v14 = vsel %vm1634_vm4, %v1636_v29, %v1638_v54  ;;  %v6732_v46 = vld [vmem:[%s9110_s3 + $0x320] sm:$0xff]  ;;  %v6731_v0 = vld [vmem:[%s9110_s3 + $0x318] sm:$0xff] }
  0x86   : > { %2010 = vmatpush.bf16.msra.mxu2 %v6709_v24  ;;  %v1637_v32 = vsel %vm1634_vm4, %v1635_v28, %v1636_v29 }
  0x87   : > { %v1048_v12 = vrot.slane %v1046_v6, 2 }
  0x88   : > { %2291 = vmatpush.bf16.msrb.mxu0 %v6734_v9  ;;  %v1493_v9 = vshll.u32 %v7488_v26, 16 }
  0x89   : > { %v1049_v21 = vsel %vm1000_vm2, %v1043_v55, %v1048_v12  ;;  %v1176_v55 = vrot.slane %v7398_v18, 2  ;;  %v1486_v12 = vrot.slane %v1484_v19, 3 }
  0x8a   : > { %2011 = vmatpush.bf16.msra.mxu2 %v6708_v33  ;;  %v6877_v33 = vld [vmem:[%s7102_s27] sm:$0xff]   ;;  %v1495_v43 = vrot.slane %v1493_v9, 3 }
  0x8b   : > { %v1179_v31 = vsel %vm1168_vm3, %v1176_v55, %v1178_v22  ;;  %v1916_v35 = vshll.u32 %v6877_v33, 16  ;;  %v6715_v9 = vld [vmem:[%s9110_s3 + $0x2c0] sm:$0xff] }
  0x8c   : > { %2292 = vmatpush.bf16.msrb.mxu0 %v6733_v49  ;;  %v1914_v49 = vshrl.u32 %v6877_v33, 16 }
  0x8d   : > { %v1918_v51 = vrot.slane %v1916_v35, 1 }
  0x8e   : > { %2012 = vmatpush.bf16.msra.mxu2 %v6707_v45  ;;  %v6753_v45 = vld [vmem:[%s9110_s3 + $0x3a8] sm:$0xff] }
  0x90   : > { %2293 = vmatpush.bf16.msrb.mxu0 %v6732_v46  ;;  %v1499_v46 = vshrl.u32 %v7516_v44, 16 }
  0x92   : > { %v1501_v22 = vrot.slane %v1499_v46, 2 }
  0x93   : > { %918 = vmatmul.bf16.gmra.mxu3 %v844_v59  ;;  %1126 = vmatmul.bf16.gmra.mxu0 %v1044_v60  ;;  %v1177_v60 = vsel %vm1168_vm3, %v1174_v30, %v1176_v55  ;;  %v6729_v55 = vld [vmem:[%s9110_s3 + $0x308] sm:$0xff] }
  0x94   : > { %1241 = vmatmul.bf16.vlgmr.msrb.gmra.mxu1 %v1171_v62  ;;  %v1287_v62 = vld [vmem:[%s7094_s15 + $0x30] sm:$0x1]  ;;  %2294 = vmatpush.bf16.msrb.mxu0 %v6731_v0 }
  0x95   : > { %1405 = vmatmul.bf16.vlgmr.msrb.gmra.mxu2 %v1335_v63  ;;  %v1481_v63 = vshrl.u32 %v7464_v7, 16  ;;  %v1326_v3 = vunpack.c.l.b16 %v1287_v62  ;;  %v6721_v7 = vld [vmem:[%s9110_s3 + $0x2f0] sm:$0xff] }
  0x96   : > { %2621 = vmatpush.bf16.msrb.mxu2 %v6755_v1  ;;  %2133 = vmatpush.bf16.msrb.mxu3 %v6721_v7 }
  0x97   : > { %v1332_v15 = vpack.c.b16 %v1326_v3, %v1326_v3  ;;  %v1441_v3 = vld [vmem:[%s7094_s15 + $0x30] sm:$0x3] }
  0x98   : > { %2295 = vmatpush.bf16.msrb.mxu0 %v6730_v39  ;;  %v1460_v7 = vunpack.c.l.b16 %v1441_v3 }
  0x99   : > { %v1342_v50 = vrot.slane %v1332_v15, 2 }
  0x9c   : > { %2296 = vmatpush.bf16.msrb.mxu0 %v6729_v55 }
  0xa3   : > { %923 = vmatmul.bf16.gmra.mxu3 %v846_v16  ;;  %1131 = vmatmul.bf16.gmra.mxu0 %v1049_v21  ;;  %v6754_v21 = vld [vmem:[%s9110_s3 + $0x3b0] sm:$0xff] }
  0xa4   : > { %1246 = vmatmul.bf16.gmra.mxu1 %v1173_v17  ;;  %2622 = vmatpush.bf16.msrb.mxu2 %v6754_v21  ;;  %v6717_v21 = vld [vmem:[%s9110_s3 + $0x2d0] sm:$0xff] }
  0xa5   : > { %1410 = vmatmul.bf16.gmra.mxu2 %v1337_v20  ;;  %v1640_v20 = vrot.slane %v7488_v26, 3 }
  0xa7   : > { %v1641_v29 = vsel %vm1634_vm4, %v1638_v54, %v1640_v20  ;;  %v6719_v54 = vld [vmem:[%s9110_s3 + $0x2e0] sm:$0xff] }
  0xa8   : > { %2623 = vmatpush.bf16.msrb.mxu2 %v6753_v45 }
  0xb3   : > { %928 = vmatmul.bf16.gmra.mxu3 %v845_v11  ;;  %1707 = vmatmul.bf16.vlgmr.msra.gmra.mxu0 %v1637_v32  ;;  %v1483_v11 = vrot.slane %v1481_v63, 2  ;;  %v1343_v32 = vsel %vm1168_vm3, %v1340_v56, %v1342_v50  ;;  %v1643_v63 = vsel %vm1634_vm4, %v1640_v20, %v1642_v57 }
  0xb4   : > { %1251 = vmatmul.bf16.gmra.mxu1 %v1175_v34  ;;  %v6720_v34 = vld [vmem:[%s9110_s3 + $0x2e8] sm:$0xff] }
  0xb5   : > { %1415 = vmatmul.bf16.gmra.mxu2 %v1339_v47  ;;  %v1487_v17 = vor.u32 %v1486_v12, %v1483_v11  ;;  %v1490_v47 = vshrl.u32 %v7488_v26, 16  ;;  %2134 = vmatpush.bf16.msrb.mxu3 %v6720_v34  ;;  %v6747_v26 = vld [vmem:[%s9110_s3 + $0x378] sm:$0xff]  ;;  %v6752_v11 = vld [vmem:[%s9110_s3 + $0x3a0] sm:$0xff] }
  0xb6   : > { %2492 = vmatpush.bf16.msrb.mxu1 %v6747_v26  ;;  %v6718_v12 = vld [vmem:[%s9110_s3 + $0x2d8] sm:$0xff]  ;;  %2624 = vmatpush.bf16.msrb.mxu2 %v6752_v11 }
  0xb7   : > { %v1488_v28 = vsel %vm1462_vm5, %v1478_v53, %v1487_v17  ;;  %v1492_v42 = vrot.slane %v1490_v47, 2 }
  0xb9   : > { %v1496_v56 = vor.u32 %v1495_v43, %v1492_v42  ;;  %2135 = vmatpush.bf16.msrb.mxu3 %v6719_v54 }
  0xbb   : > { %v1497_v62 = vsel %vm1462_vm5, %v1487_v17, %v1496_v56 }
  0xbd   : > { %2136 = vmatpush.bf16.msrb.mxu3 %v6718_v12 }
  0xc0   : > { %v543_v10 = vpop.f32.mrf.mxu0 }
  0xc1   : > { %v633_v59 = vpop.f32.mrf.mxu1  ;;  %2137 = vmatpush.bf16.msrb.mxu3 %v6717_v21  ;;  %v7698_v21 = vld [vmem:[%s7102_s27 + $0x20] sm:$0xf]  }
  0xc2   : > { %v634_v18 = vadd.f32 %v633_v59, %v543_v10  ;;  %v1919_v10 = vor.u32 %v1918_v51, %v1914_v49  ;;  %v6744_v49 = vld [vmem:[%s9110_s3 + $0x360] sm:$0xff]  ;;  %v6750_v51 = vld [vmem:[%s9110_s3 + $0x390] sm:$0xff] }
  0xc3   : > { %1577 = vmatmul.bf16.vlgmr.msra.gmra.mxu3 %v1479_v58  ;;  %1712 = vmatmul.bf16.gmra.mxu0 %v1639_v14  ;;  %v1923_v58 = vrot.slane %v1921_v52, 1  ;;  %v7672_v52 = vld [vmem:[%s7102_s27 + $0x18] sm:$0xff] }
  0xc4   : > { %1256 = vmatmul.bf16.gmra.mxu1 %v1177_v60  ;;  %v6728_v60 = vld [vmem:[%s9110_s3 + $0x300] sm:$0xff] }
  0xc5   : > { %1420 = vmatmul.bf16.gmra.mxu2 %v1341_v61  ;;  %v1924_v1 = vsel %vm441_vm0, %v1919_v10, %v1923_v58  ;;  %2297 = vmatpush.bf16.msrb.mxu0 %v6728_v60  ;;  %v7682_v60 = vld [vmem:[%s7102_s27 + $0xc] sm:$0xff] }
  0xc6   : > { %v7546_v4 = vpop.f32.mrf.mxu3  ;;  %v2229_v12 = vrot.slane %v7682_v60, 1  ;;  %v6794_v60 = vld [vmem:[%s9110_s3 + $0x4b8] sm:$0xff] }
  0xc8   : > { %v751_v5 = vpop.f32.mrf.mxu2  ;;  %v545_v8 = vpop.f32.mrf.mxu0 }
  0xc9   : > { %v7548_v6 = vadd.f32 %v751_v5, %v634_v18  ;;  %v635_v13 = vpop.f32.mrf.mxu1 }
  0xca   : > { %v636_v16 = vadd.f32 %v635_v13, %v545_v8  ;;  %v6746_v8 = vld [vmem:[%s9110_s3 + $0x370] sm:$0xff] }
  0xcb   : > { %v7628_v13 = vld [vmem:[%s7102_s27 + $0x10] sm:$0xff]  ;;  %2493 = vmatpush.bf16.msrb.mxu1 %v6746_v8 }
  0xce   : > { %v7561_v23 = vpop.f32.mrf.mxu3 }
  0xd0   : > { %v753_v24 = vpop.f32.mrf.mxu2  ;;  %v548_v27 = vpop.f32.mrf.mxu0 }
  0xd1   : > { %v7563_v25 = vadd.f32 %v753_v24, %v636_v16  ;;  %v638_v30 = vpop.f32.mrf.mxu1 }
  0xd2   : > { %v639_v2 = vadd.f32 %v638_v30, %v548_v27  ;;  %v1925_v27 = vshrl.u32 %v7579_v36, 16  ;;  %v6745_v30 = vld [vmem:[%s9110_s3 + $0x368] sm:$0xff] }
  0xd3   : > { %1582 = vmatmul.bf16.gmra.mxu3 %v1488_v28  ;;  %1717 = vmatmul.bf16.gmra.mxu0 %v1641_v29  ;;  %v1929_v28 = vshll.u32 %v7628_v13, 16 }
  0xd4   : > { %1261 = vmatmul.bf16.gmra.mxu1 %v1179_v31  ;;  %v6751_v31 = vld [vmem:[%s9110_s3 + $0x398] sm:$0xff]  ;;  %v1927_v0 = vor.u32 %v1925_v27, %v1923_v58 }
  0xd5   : > { %1425 = vmatmul.bf16.gmra.mxu2 %v1343_v32  ;;  %v6716_v32 = vld [vmem:[%s9110_s3 + $0x2c8] sm:$0xff]  ;;  %2494 = vmatpush.bf16.msrb.mxu1 %v6745_v30  ;;  %v1931_v34 = vrot.slane %v1929_v28, 1  ;;  %v6743_v27 = vld [vmem:[%s9110_s3 + $0x358] sm:$0xff] }
  0xd6   : > { %v7581_v37 = vpop.f32.mrf.mxu3  ;;  %2625 = vmatpush.bf16.msrb.mxu2 %v6751_v31  ;;  %2138 = vmatpush.bf16.msrb.mxu3 %v6716_v32  ;;  %v6774_v32 = vld [vmem:[%s9110_s3 + $0x430] sm:$0xff] }
  0xd7   : > { %v1932_v43 = vsel %vm441_vm0, %v1927_v0, %v1931_v34 }
  0xd8   : > { %v756_v38 = vpop.f32.mrf.mxu2  ;;  %v550_v41 = vpop.f32.mrf.mxu0 }
  0xd9   : > { %v7586_v40 = vadd.f32 %v756_v38, %v639_v2  ;;  %v640_v48 = vpop.f32.mrf.mxu1  ;;  %2495 = vmatpush.bf16.msrb.mxu1 %v6744_v49  ;;  %v6741_v49 = vld [vmem:[%s9110_s3 + $0x348] sm:$0xff] }
  0xda   : > { %v641_v53 = vadd.f32 %v640_v48, %v550_v41  ;;  %2139 = vmatpush.bf16.msrb.mxu3 %v6715_v9  ;;  %2626 = vmatpush.bf16.msrb.mxu2 %v6750_v51  ;;  %v6773_v51 = vld [vmem:[%s9110_s3 + $0x428] sm:$0xff] }
  0xdd   : > { %2496 = vmatpush.bf16.msrb.mxu1 %v6743_v27  ;;  %v7798_v27 = vld [vmem:[%s7102_s27 + $0x8] sm:$0xff]  }
  0xde   : > { %v7602_v14 = vpop.f32.mrf.mxu3 }
  0xe0   : > { %v758_v59 = vpop.f32.mrf.mxu2  ;;  %v7609_v18 = vpop.f32.mrf.mxu0 }
  0xe1   : > { %v7607_v61 = vadd.f32 %v758_v59, %v641_v53  ;;  %v643_v19 = vpop.f32.mrf.mxu1  ;;  %v6723_v53 = vld [vmem:[%s7102_s27 + $0x4] sm:$0xf0] }
  0xe2   : > { %v644_v5 = vadd.f32 %v643_v19, %v7546_v4  ;;  %v1502_v4 = vshll.u32 %v7516_v44, 16  ;;  %v1461_v44 = vpack.c.b16 %v1460_v7, %v1460_v7  ;;  %v1933_v19 = vshrl.u32 %v7628_v13, 16 }
  0xe3   : > { %1587 = vmatmul.bf16.gmra.mxu3 %v1497_v62  ;;  %1722 = vmatmul.bf16.gmra.mxu0 %v1643_v63 }
  0xe4   : > { %1856 = vmatmul.bf16.vlgmr.msra.gmra.mxu1 %v6877_v33  ;;  %v1504_v50 = vrot.slane %v1502_v4, 3  ;;  %v1644_v33 = vrot.slane %v1461_v44, 3  ;;  %v1508_v45 = vshrl.u32 %v1461_v44, 16  ;;  %v1511_v48 = vshll.u32 %v1461_v44, 16 }
  0xe5   : > { %2013 = vmatmul.bf16.vlgmr.msra.gmra.mxu2 %v1924_v1  ;;  %v1937_v1 = vshll.u32 %v7672_v52, 16  ;;  %v1935_v46 = vor.u32 %v1933_v19, %v1931_v34 }
  0xe6   : > { %v7630_v15 = vpop.f32.mrf.mxu3  ;;  %v1505_v2 = vor.u32 %v1504_v50, %v1501_v22  ;;  %v1645_v41 = vsel %vm1634_vm4, %v1642_v57, %v1644_v33  ;;  %v1510_v58 = vrot.slane %v1508_v45, 2  ;;  %v1513_v59 = vrot.slane %v1511_v48, 3  ;;  %v6888_v33 = vld [vmem:[%s7102_s27] sm:$0xe] }
  0xe7   : > { %v1939_v4 = vrot.slane %v1937_v1, 1  ;;  %v6748_v48 = vld [vmem:[%s9110_s3 + $0x380] sm:$0xff] }
  0xe8   : > { %v761_v16 = vpop.f32.mrf.mxu2  ;;  %v7637_v20 = vpop.f32.mrf.mxu0  ;;  %v1506_v39 = vsel %vm1462_vm5, %v1496_v56, %v1505_v2  ;;  %v1514_v8 = vor.u32 %v1513_v59, %v1510_v58 }
  0xe9   : > { %v7635_v17 = vadd.f32 %v761_v16, %v644_v5  ;;  %v645_v24 = vpop.f32.mrf.mxu1  ;;  %v6775_v5 = vld [vmem:[%s9110_s3 + $0x438] sm:$0xff]  ;;  %v7695_v16 = vld [vmem:[%s7102_s27 + $0x20] sm:$0xff]  }
  0xea   : > { %v646_v29 = vadd.f32 %v645_v24, %v7561_v23  ;;  %2956 = vmatpush.bf16.msra.mxu0 %v6775_v5  ;;  %v1515_v44 = vsel %vm1462_vm5, %v1505_v2, %v1514_v8  ;;  %v6887_v2 = vld [vmem:[%s7102_s27] sm:$0xf0] }
  0xee   : > { %v7651_v23 = vpop.f32.mrf.mxu3  ;;  %2957 = vmatpush.bf16.msra.mxu0 %v6774_v32 }
  0xf0   : > { %v763_v47 = vpop.f32.mrf.mxu2  ;;  %v7658_v38 = vpop.f32.mrf.mxu0 }
  0xf1   : > { %v7656_v35 = vadd.f32 %v763_v47, %v646_v29  ;;  %v648_v42 = vpop.f32.mrf.mxu1  ;;  %v1940_v29 = vsel %vm441_vm0, %v1935_v46, %v1939_v4  ;;  %v6987_v46 = vld [vmem:[%s7102_s27 + $0x20] sm:$0x70] }
  0xf2   : > { %v649_v26 = vadd.f32 %v648_v42, %v7581_v37  ;;  %v5778_v37 = vld [vmem:[%s7102_s27 + $0x4] sm:$0xe]  ;;  %2958 = vmatpush.bf16.msra.mxu0 %v6773_v51  ;;  %v6765_v51 = vld [vmem:[%s9110_s3 + $0x3e8] sm:$0xff] }
  0xf3   : > { %1592 = vmatmul.bf16.gmra.mxu3 %v1506_v39  ;;  %1727 = vmatmul.bf16.gmra.mxu0 %v1645_v41  ;;  %v5779_v62 = vor.u32 %v6723_v53, %v5778_v37  ;;  %v6889_v39 = vor.u32 %v6888_v33, %v6887_v2  ;;  %v7735_v41 = vld [vmem:[%s7102_s27 + $0x14] sm:$0xff]  ;;  %v2071_v53 = vrot.slane %v7579_v36, 1  ;;  %v2374_v2 = vunpack.c.l.b16 %v7798_v27 }
  0xf4   : > { %1861 = vmatmul.bf16.gmra.mxu1 %v7579_v36 }
  0xf5   : > { %2018 = vmatmul.bf16.gmra.mxu2 %v1932_v43  ;;  %v2228_v11 = vrot.slane %v5779_v62, 1  ;;  %v1941_v43 = vshrl.u32 %v7672_v52, 16  ;;  %v2070_v37 = vrot.slane %v6889_v39, 1  ;;  %v6740_v62 = vld [vmem:[%s9110_s3 + $0x340] sm:$0xff] }
  0xf6   : > { %v909_v54 = vpop.f32.mrf.mxu3 }
  0xf7   : > { %v934_v56 = vadd.f32 %v909_v54, %v7548_v6  ;;  %v2230_v24 = vsel %vm679_vm1, %v2228_v11, %v2229_v12  ;;  %v1943_v54 = vor.u32 %v1941_v43, %v1939_v4  ;;  %v2072_v36 = vsel %vm679_vm1, %v2070_v37, %v2071_v53 }
  0xf8   : > { %v766_v55 = vpop.f32.mrf.mxu2  ;;  %v7679_v10 = vpop.f32.mrf.mxu0 }
  0xf9   : > { %v7677_v57 = vadd.f32 %v766_v55, %v649_v26  ;;  %v650_v63 = vpop.f32.mrf.mxu1  ;;  %v7687_v3 = vadd.f32 %v7609_v18, %v934_v56  ;;  %v1945_v26 = vshll.u32 %v7695_v16, 16 }
  0xfa   : > { %v651_v6 = vadd.f32 %v650_v63, %v7602_v14 }
  0xfb   : > { %v1947_v55 = vrot.slane %v1945_v26, 1 }
  0xfd   : > { %v1948_v5 = vsel %vm441_vm0, %v1943_v54, %v1947_v55 }
  0xfe   : > { %v911_v7 = vpop.f32.mrf.mxu3 }
  0xff   : > { %v935_v22 = vadd.f32 %v911_v7, %v7563_v25  ;;  %v6749_v25 = vld [vmem:[%s9110_s3 + $0x388] sm:$0xff]  ;;  %v7785_v7 = vld [vmem:[%s7102_s27 + $0x1c] sm:$0xff] }
 0x100   : > { %v768_v18 = vpop.f32.mrf.mxu2  ;;  %v7703_v50 = vpop.f32.mrf.mxu0  ;;  %2627 = vmatpush.bf16.msrb.mxu2 %v6749_v25  ;;  %v2233_v32 = vrot.slane %v7785_v7, 1  ;;  %v6782_v7 = vld [vmem:[%s9110_s3 + $0x470] sm:$0xff] }
 0x101   : > { %v7701_v14 = vadd.f32 %v768_v18, %v651_v6  ;;  %v653_v28 = vpop.f32.mrf.mxu1  ;;  %v7717_v30 = vadd.f32 %v7637_v20, %v935_v22  ;;  %v6772_v18 = vld [vmem:[%s9110_s3 + $0x420] sm:$0xff]  ;;  %v6766_v22 = vld [vmem:[%s9110_s3 + $0x3f0] sm:$0xff] }
 0x102   : > { %v654_v31 = vadd.f32 %v653_v28, %v7630_v15  ;;  %v6742_v15 = vld [vmem:[%s9110_s3 + $0x350] sm:$0xff]  ;;  %2959 = vmatpush.bf16.msra.mxu0 %v6772_v18  ;;  %v6769_v18 = vld [vmem:[%s9110_s3 + $0x408] sm:$0xff] }
 0x103   : > { %1597 = vmatmul.bf16.gmra.mxu3 %v1515_v44  ;;  %2298 = vmatmul.bf16.vlgmr.msrb.gmra.mxu0 %v2230_v24  ;;  %v6793_v28 = vld [vmem:[%s9110_s3 + $0x4b0] sm:$0xff] }
 0x104   : > { %1866 = vmatmul.bf16.gmra.mxu1 %v7628_v13  ;;  %2628 = vmatpush.bf16.msrb.mxu2 %v6748_v48  ;;  %v2536_v48 = vld [vmem:[%s7102_s27 + $0x4] sm:$0xc] }
 0x105   : > { %2023 = vmatmul.bf16.gmra.mxu2 %v1940_v29  ;;  %2497 = vmatpush.bf16.msrb.mxu1 %v6742_v15  ;;  %v1949_v29 = vshrl.u32 %v7695_v16, 16 }
 0x106   : > { %v914_v0 = vpop.f32.mrf.mxu3 }
 0x107   : > { %v936_v34 = vadd.f32 %v914_v0, %v7586_v40 }
 0x108   : > { %v771_v20 = vpop.f32.mrf.mxu2  ;;  %v7732_v9 = vpop.f32.mrf.mxu0  ;;  %3234 = vmatpush.bf16.msra.mxu2 %v6794_v60 }
 0x109   : > { %v7730_v47 = vadd.f32 %v771_v20, %v654_v31  ;;  %v655_v42 = vpop.f32.mrf.mxu1  ;;  %v7740_v45 = vadd.f32 %v7658_v38, %v936_v34  ;;  %v6767_v38 = vld [vmem:[%s9110_s3 + $0x3f8] sm:$0xff]  ;;  %2498 = vmatpush.bf16.msrb.mxu1 %v6741_v49  ;;  %v2073_v31 = vrot.slane %v7628_v13, 1  ;;  %v6965_v20 = vor.u32 %v6987_v46, %v7698_v21  ;;  %v6764_v46 = vld [vmem:[%s9110_s3 + $0x3e0] sm:$0xff] }
 0x10a   : > { %v656_v40 = vadd.f32 %v655_v42, %v7651_v23  ;;  %v2231_v23 = vrot.slane %v7735_v41, 1  ;;  %2785 = vmatpush.bf16.msra.mxu3 %v6767_v38  ;;  %v1951_v34 = vor.u32 %v1949_v29, %v1947_v55  ;;  %v6771_v49 = vld [vmem:[%s9110_s3 + $0x418] sm:$0xff] }
 0x10b   : > { %v2074_v41 = vsel %vm679_vm1, %v2071_v53, %v2073_v31  ;;  %v2555_v53 = vunpack.c.l.b16 %v2536_v48  ;;  %2960 = vmatpush.bf16.msra.mxu0 %v6771_v49  ;;  %v6762_v49 = vld [vmem:[%s9110_s3 + $0x3d0] sm:$0xff] }
 0x10c   : > { %v2232_v1 = vsel %vm679_vm1, %v2229_v12, %v2231_v23  ;;  %3235 = vmatpush.bf16.msra.mxu2 %v6793_v28  ;;  %v2234_v42 = vsel %vm679_vm1, %v2231_v23, %v2233_v32 }
 0x10d   : > { %2499 = vmatpush.bf16.msrb.mxu1 %v6740_v62  ;;  %v7845_v62 = vld [vmem:[%s7102_s27 + $0x24] sm:$0xff] }
 0x10e   : > { %v916_v56 = vpop.f32.mrf.mxu3  ;;  %2786 = vmatpush.bf16.msra.mxu3 %v6766_v22  ;;  %v2075_v22 = vrot.slane %v7672_v52, 1 }
 0x10f   : > { %v937_v59 = vadd.f32 %v916_v56, %v7607_v61  ;;  %v6770_v56 = vld [vmem:[%s9110_s3 + $0x410] sm:$0xff] }
 0x110   : > { %v773_v58 = vpop.f32.mrf.mxu2  ;;  %v7763_v19 = vpop.f32.mrf.mxu0  ;;  %2961 = vmatpush.bf16.msra.mxu0 %v6770_v56  ;;  %v6761_v56 = vld [vmem:[%s9110_s3 + $0x3c8] sm:$0xff] }
 0x111   : > { %v7761_v63 = vadd.f32 %v773_v58, %v656_v40  ;;  %v1242_v6 = vpop.f32.mrf.mxu1  ;;  %v7771_v61 = vadd.f32 %v7679_v10, %v937_v59  ;;  %v7821_v40 = vld [vmem:[%s7102_s27 + $0xc] sm:$0xff] }
 0x112   : > { %v1267_v8 = vadd.f32 %v1242_v6, %v7687_v3  ;;  %2787 = vmatpush.bf16.msra.mxu3 %v6765_v51  ;;  %v6783_v6 = vld [vmem:[%s9110_s3 + $0x478] sm:$0xff] }
 0x113   : > { %2140 = vmatmul.bf16.vlgmr.msrb.gmra.mxu3 %v2072_v36  ;;  %2303 = vmatmul.bf16.gmra.mxu0 %v2232_v1 }
 0x114   : > { %1871 = vmatmul.bf16.gmra.mxu1 %v7672_v52  ;;  %2962 = vmatpush.bf16.msra.mxu0 %v6769_v18 }
 0x115   : > { %2028 = vmatmul.bf16.gmra.mxu2 %v1948_v5  ;;  %3085 = vmatpush.bf16.msra.mxu1 %v6783_v6 }
 0x116   : > { %v919_v11 = vpop.f32.mrf.mxu3  ;;  %2788 = vmatpush.bf16.msra.mxu3 %v6764_v46 }
 0x117   : > { %v938_v12 = vadd.f32 %v919_v11, %v7635_v17  ;;  %v2334_v17 = vld [vmem:[%s7102_s27 + $0x4] sm:$0xe]  ;;  %v2556_v11 = vpack.c.b16 %v2374_v2, %v2555_v53 }
 0x118   : > { %v1406_v10 = vpop.f32.mrf.mxu2  ;;  %v7782_v3 = vpop.f32.mrf.mxu0 }
 0x119   : > { %v7780_v4 = vadd.f32 %v1406_v10, %v1267_v8  ;;  %v1244_v44 = vpop.f32.mrf.mxu1  ;;  %v7794_v24 = vadd.f32 %v7703_v50, %v938_v12  ;;  %v2373_v50 = vunpack.c.l.b16 %v2334_v17  ;;  %3086 = vmatpush.bf16.msra.mxu1 %v6782_v7 }
 0x11a   : > { %v1268_v25 = vadd.f32 %v1244_v44, %v7717_v30  ;;  %v2235_v44 = vrot.slane %v7845_v62, 1 }
 0x11b   : > { %v2384_v43 = vpack.c.b16 %v2374_v2, %v2373_v50  ;;  %v6768_v2 = vld [vmem:[%s9110_s3 + $0x400] sm:$0xff] }
 0x11c   : > { %2963 = vmatpush.bf16.msra.mxu0 %v6768_v2 }
 0x11d   : > { %v2391_v38 = vshrl.u32 %v2384_v43, 16  ;;  %v2394_v37 = vshll.u32 %v2384_v43, 16  ;;  %v6763_v43 = vld [vmem:[%s9110_s3 + $0x3d8] sm:$0xff] }
 0x11e   : > { %v921_v33 = vpop.f32.mrf.mxu3  ;;  %2789 = vmatpush.bf16.msra.mxu3 %v6763_v43 }
 0x11f   : > { %v939_v30 = vadd.f32 %v921_v33, %v7656_v35  ;;  %v2393_v36 = vrot.slane %v2391_v38, 1  ;;  %v2396_v1 = vrot.slane %v2394_v37, 2  ;;  %v2665_v37 = vld [vmem:[%s7102_s27 + $0x8] sm:$0xc] }
 0x120   : > { %v1408_v0 = vpop.f32.mrf.mxu2  ;;  %v7812_v39 = vpop.f32.mrf.mxu0 }
 0x121   : > { %v7810_v15 = vadd.f32 %v1408_v0, %v1268_v25  ;;  %v1247_v26 = vpop.f32.mrf.mxu1  ;;  %v7824_v35 = vadd.f32 %v7732_v9, %v939_v30  ;;  %v2399_v9 = vshrl.u32 %v7821_v40, 16  ;;  %v2558_v25 = vrot.slane %v7821_v40, 2 }
 0x122   : > { %v1269_v21 = vadd.f32 %v1247_v26, %v7740_v45  ;;  %v2402_v45 = vshll.u32 %v7821_v40, 16  ;;  %v2076_v0 = vsel %vm679_vm1, %v2073_v31, %v2075_v22  ;;  %2790 = vmatpush.bf16.msra.mxu3 %v6762_v49 }
 0x123   : > { %2145 = vmatmul.bf16.gmra.mxu3 %v2074_v41  ;;  %2308 = vmatmul.bf16.gmra.mxu0 %v2234_v42  ;;  %v2401_v8 = vrot.slane %v2399_v9, 1  ;;  %v7892_v42 = vld [vmem:[%s7102_s27 + $0x14] sm:$0xff] }
 0x124   : > { %1876 = vmatmul.bf16.gmra.mxu1 %v6965_v20  ;;  %v2404_v60 = vrot.slane %v2402_v45, 2  ;;  %v2560_v6 = vrot.slane %v7892_v42, 2 }
 0x125   : > { %2033 = vmatmul.bf16.gmra.mxu2 %v1951_v34 }
 0x126   : > { %v924_v23 = vpop.f32.mrf.mxu3  ;;  %v7865_v17 = vor.u32 %v2404_v60, %v2401_v8  ;;  %2791 = vmatpush.bf16.msra.mxu3 %v6761_v56  ;;  %v6779_v56 = vld [vmem:[%s9110_s3 + $0x458] sm:$0xff] }
 0x127   : > { %v940_v54 = vadd.f32 %v924_v23, %v7677_v57  ;;  %v6792_v57 = vld [vmem:[%s9110_s3 + $0x4a8] sm:$0xff] }
 0x128   : > { %v1411_v55 = vpop.f32.mrf.mxu2  ;;  %v7842_v59 = vpop.f32.mrf.mxu0  ;;  %3236 = vmatpush.bf16.msra.mxu2 %v6792_v57 }
 0x129   : > { %v7840_v58 = vadd.f32 %v1411_v55, %v1269_v21  ;;  %v1249_v5 = vpop.f32.mrf.mxu1  ;;  %v7854_v12 = vadd.f32 %v7763_v19, %v940_v54  ;;  %v2397_v19 = vor.u32 %v2396_v1, %v2393_v36  ;;  %v6790_v55 = vld [vmem:[%s9110_s3 + $0x498] sm:$0xff]  ;;  %v2704_v36 = vunpack.c.l.b16 %v2665_v37 }
 0x12a   : > { %v1270_v10 = vadd.f32 %v1249_v5, %v7771_v61  ;;  %v2557_v61 = vrot.slane %v2556_v11, 2  ;;  %v2077_v1 = vrot.slane %v7695_v16, 1  ;;  %v6760_v11 = vld [vmem:[%s9110_s3 + $0x3c0] sm:$0xff]  ;;  %v6778_v16 = vld [vmem:[%s9110_s3 + $0x450] sm:$0xff] }
 0x12b   : > { %v2406_v34 = vsel %vm1000_vm2, %v2397_v19, %v7865_v17  ;;  %2792 = vmatpush.bf16.msra.mxu3 %v6760_v11 }
 0x12c   : > { %v2559_v41 = vsel %vm1168_vm3, %v2557_v61, %v2558_v25  ;;  %v2078_v18 = vsel %vm679_vm1, %v2075_v22, %v2077_v1 }
 0x12e   : > { %v926_v28 = vpop.f32.mrf.mxu3 }
 0x12f   : > { %v941_v29 = vadd.f32 %v926_v28, %v7701_v14  ;;  %v2236_v14 = vsel %vm679_vm1, %v2233_v32, %v2235_v44  ;;  %v6791_v32 = vld [vmem:[%s9110_s3 + $0x4a0] sm:$0xff]  ;;  %v2561_v28 = vsel %vm1168_vm3, %v2558_v25, %v2560_v6 }
 0x130   : > { %v1413_v50 = vpop.f32.mrf.mxu2  ;;  %v7874_v30 = vpop.f32.mrf.mxu0  ;;  %3237 = vmatpush.bf16.msra.mxu2 %v6791_v32 }
 0x131   : > { %v7872_v33 = vadd.f32 %v1413_v50, %v1270_v10  ;;  %v1252_v20 = vpop.f32.mrf.mxu1  ;;  %v7895_v13 = vadd.f32 %v7782_v3, %v941_v29  ;;  %v2408_v3 = vshrl.u32 %v7892_v42, 16  ;;  %v7965_v29 = vld [vmem:[%s7102_s27 + $0x1c] sm:$0xff] }
 0x132   : > { %v1271_v31 = vadd.f32 %v1252_v20, %v7794_v24  ;;  %v2411_v24 = vshll.u32 %v7892_v42, 16  ;;  %v2417_v62 = vshrl.u32 %v7965_v29, 16 }
 0x133   : > { %2150 = vmatmul.bf16.gmra.mxu3 %v2076_v0  ;;  %2313 = vmatmul.bf16.gmra.mxu0 %v2236_v14  ;;  %v2410_v45 = vrot.slane %v2408_v3, 1 }
 0x134   : > { %2500 = vmatmul.bf16.vlgmr.msrb.gmra.mxu1 %v2406_v34  ;;  %v2413_v53 = vrot.slane %v2411_v24, 2  ;;  %3238 = vmatpush.bf16.msra.mxu2 %v6790_v55  ;;  %v2419_v3 = vrot.slane %v2417_v62, 1  ;;  %v8010_v55 = vld [vmem:[%s7102_s27 + $0x18] sm:$0xff]  ;;  %v6787_v62 = vld [vmem:[%s9110_s3 + $0x480] sm:$0xff] }
 0x135   : > { %2629 = vmatmul.bf16.vlgmr.msrb.gmra.mxu2 %v2559_v41  ;;  %v2868_v42 = vshrl.u32 %v8010_v55, 16 }
 0x136   : > { %v929_v26 = vpop.f32.mrf.mxu3 }
 0x137   : > { %v942_v21 = vadd.f32 %v929_v26, %v7730_v47  ;;  %v6781_v47 = vld [vmem:[%s9110_s3 + $0x468] sm:$0xff] }
 0x138   : > { %v1416_v48 = vpop.f32.mrf.mxu2  ;;  %v7915_v38 = vpop.f32.mrf.mxu0  ;;  %3087 = vmatpush.bf16.msra.mxu1 %v6781_v47 }
 0x139   : > { %v7913_v51 = vadd.f32 %v1416_v48, %v1271_v31  ;;  %v1254_v9 = vpop.f32.mrf.mxu1  ;;  %v7919_v23 = vadd.f32 %v7812_v39, %v942_v21  ;;  %v2705_v39 = vunpack.c.h.b16 %v7798_v27 }
 0x13a   : > { %v1272_v54 = vadd.f32 %v1254_v9, %v7824_v35  ;;  %v7933_v35 = vor.u32 %v2413_v53, %v2410_v45  ;;  %v2562_v9 = vrot.slane %v7965_v29, 2 }
 0x13b   : > { %v7939_v60 = vpack.c.b16 %v2705_v39, %v2704_v36  ;;  %v6788_v36 = vld [vmem:[%s9110_s3 + $0x488] sm:$0xff] }
 0x13c   : > { %v2415_v61 = vsel %vm1000_vm2, %v7865_v17, %v7933_v35 }
 0x13d   : > { %v2851_v22 = vshrl.u32 %v7939_v60, 16  ;;  %v2854_v40 = vshll.u32 %v7939_v60, 16 }
 0x13e   : > { %v931_v57 = vpop.f32.mrf.mxu3 }
 0x13f   : > { %v943_v5 = vadd.f32 %v931_v57, %v7761_v63  ;;  %v7954_v63 = vld [vmem:[%s7102_s27 + $0x10] sm:$0xff]  ;;  %v2853_v20 = vrot.slane %v2851_v22, 2  ;;  %v2856_v31 = vrot.slane %v2854_v40, 3  ;;  %v2870_v22 = vrot.slane %v2868_v42, 2 }
 0x140   : > { %v1418_v8 = vpop.f32.mrf.mxu2  ;;  %v7946_v46 = vpop.f32.mrf.mxu0  ;;  %v2859_v17 = vshrl.u32 %v7954_v63, 16  ;;  %v2862_v25 = vshll.u32 %v7954_v63, 16  ;;  %v6801_v42 = vld [vmem:[%s9110_s3 + $0x4f0] sm:$0xff] }
 0x141   : > { %v7944_v10 = vadd.f32 %v1418_v8, %v1272_v54  ;;  %v1257_v19 = vpop.f32.mrf.mxu1  ;;  %v7968_v50 = vadd.f32 %v7842_v59, %v943_v5  ;;  %v6780_v59 = vld [vmem:[%s9110_s3 + $0x460] sm:$0xff]  ;;  %v2857_v48 = vor.u32 %v2856_v31, %v2853_v20  ;;  %v2563_v5 = vsel %vm1168_vm3, %v2560_v6, %v2562_v9 }
 0x142   : > { %v1273_v52 = vadd.f32 %v1257_v19, %v7854_v12  ;;  %v6789_v12 = vld [vmem:[%s9110_s3 + $0x490] sm:$0xff]  ;;  %3088 = vmatpush.bf16.msra.mxu1 %v6780_v59  ;;  %v2861_v7 = vrot.slane %v2859_v17, 2  ;;  %v2864_v32 = vrot.slane %v2862_v25, 3  ;;  %v8027_v8 = vld [vmem:[%s7102_s27 + $0x24] sm:$0xff] }
 0x143   : > { %2155 = vmatmul.bf16.gmra.mxu3 %v2078_v18  ;;  %2318 = vmatmul.bf16.gmra.mxu0 %v2235_v44  ;;  %v2420_v44 = vshll.u32 %v7965_v29, 16  ;;  %v6809_v19 = vld [vmem:[%s9110_s3 + $0x530] sm:$0xff]  ;;  %v2564_v31 = vrot.slane %v8027_v8, 2  ;;  %v6835_v29 = vld [vmem:[%s9110_s3 + $0x5b8] sm:$0xff] }
 0x144   : > { %2505 = vmatmul.bf16.gmra.mxu1 %v2415_v61  ;;  %3239 = vmatpush.bf16.msra.mxu2 %v6789_v12  ;;  %v7997_v49 = vor.u32 %v2864_v32, %v2861_v7  ;;  %v2344_v32 = vld [vmem:[%s7102_s27 + $0x2c] sm:$0x1] }
 0x145   : > { %2634 = vmatmul.bf16.gmra.mxu2 %v2561_v28  ;;  %v2422_v24 = vrot.slane %v2420_v44, 2  ;;  %v6777_v44 = vld [vmem:[%s9110_s3 + $0x448] sm:$0xff] }
 0x146   : > { %v1578_v2 = vpop.f32.mrf.mxu3  ;;  %v2866_v47 = vsel %vm1462_vm5, %v2857_v48, %v7997_v49  ;;  %3089 = vmatpush.bf16.msra.mxu1 %v6779_v56 }
 0x147   : > { %v1603_v14 = vadd.f32 %v1578_v2, %v7780_v4  ;;  %v6810_v4 = vld [vmem:[%s9110_s3 + $0x538] sm:$0xff]  ;;  %v7999_v37 = vor.u32 %v2422_v24, %v2419_v3  ;;  %v6808_v2 = vld [vmem:[%s9110_s3 + $0x528] sm:$0xff] }
 0x148   : > { %v1421_v0 = vpop.f32.mrf.mxu2  ;;  %v7988_v41 = vpop.f32.mrf.mxu0  ;;  %3518 = vmatpush.bf16.msrb.mxu0 %v6810_v4  ;;  %3240 = vmatpush.bf16.msra.mxu2 %v6788_v36 }
 0x149   : > { %v7986_v34 = vadd.f32 %v1421_v0, %v1273_v52  ;;  %v1259_v43 = vpop.f32.mrf.mxu1  ;;  %v7991_v26 = vadd.f32 %v7874_v30, %v1603_v14  ;;  %v2721_v0 = vrot.slane %v7939_v60, 2  ;;  %v6776_v60 = vld [vmem:[%s9110_s3 + $0x440] sm:$0xff] }
 0x14a   : > { %v1274_v21 = vadd.f32 %v1259_v43, %v7895_v13  ;;  %3090 = vmatpush.bf16.msra.mxu1 %v6778_v16 }
 0x14c   : > { %3519 = vmatpush.bf16.msrb.mxu0 %v6809_v19  ;;  %3241 = vmatpush.bf16.msra.mxu2 %v6787_v62  ;;  %v6807_v19 = vld [vmem:[%s9110_s3 + $0x520] sm:$0xff]  ;;  %v8130_v62 = vld [vmem:[%s7102_s27 + $0x28] sm:$0xff] }
 0x14e   : > { %v1580_v45 = vpop.f32.mrf.mxu3  ;;  %3091 = vmatpush.bf16.msra.mxu1 %v6777_v44 }
 0x14f   : > { %v1604_v30 = vadd.f32 %v1580_v45, %v7810_v15  ;;  %v2424_v15 = vsel %vm1000_vm2, %v7933_v35, %v7999_v37  ;;  %v2871_v35 = vshll.u32 %v8010_v55, 16  ;;  %v8082_v45 = vld [vmem:[%s7102_s27 + $0x20] sm:$0xff] }
 0x150   : > { %v1423_v53 = vpop.f32.mrf.mxu2  ;;  %v8005_v13 = vpop.f32.mrf.mxu0  ;;  %3520 = vmatpush.bf16.msrb.mxu0 %v6808_v2  ;;  %3878 = vmatpush.bf16.msrb.mxu2 %v6835_v29  ;;  %v6799_v29 = vld [vmem:[%s9110_s3 + $0x4e0] sm:$0xff]  ;;  %v2726_v27 = vrot.slane %v8082_v45, 2 }
 0x151   : > { %v8003_v54 = vadd.f32 %v1423_v53, %v1274_v21  ;;  %v1262_v57 = vpop.f32.mrf.mxu1  ;;  %v8030_v11 = vadd.f32 %v7915_v38, %v1604_v30  ;;  %v2426_v38 = vshrl.u32 %v8027_v8, 16  ;;  %v2873_v40 = vrot.slane %v2871_v35, 3 }
 0x152   : > { %v1275_v18 = vadd.f32 %v1262_v57, %v7919_v23  ;;  %v2429_v23 = vshll.u32 %v8027_v8, 16  ;;  %3092 = vmatpush.bf16.msra.mxu1 %v6776_v60  ;;  %v2880_v57 = vshll.u32 %v8082_v45, 16 }
 0x153   : > { %2160 = vmatmul.bf16.gmra.mxu3 %v2077_v1  ;;  %2964 = vmatmul.bf16.vlgmr.msra.gmra.mxu0 %v2866_v47  ;;  %v2428_v25 = vrot.slane %v2426_v38, 1  ;;  %v2874_v14 = vor.u32 %v2873_v40, %v2870_v22  ;;  %v2383_v47 = vunpack.c.l.b16 %v2344_v32 }
 0x154   : > { %2510 = vmatmul.bf16.gmra.mxu1 %v2424_v15  ;;  %v2431_v59 = vrot.slane %v2429_v23, 2  ;;  %3521 = vmatpush.bf16.msrb.mxu0 %v6807_v19 }
 0x155   : > { %2639 = vmatmul.bf16.gmra.mxu2 %v2563_v5  ;;  %v2875_v48 = vsel %vm1462_vm5, %v7997_v49, %v2874_v14  ;;  %v2877_v49 = vshrl.u32 %v8082_v45, 16 }
 0x156   : > { %v1583_v6 = vpop.f32.mrf.mxu3  ;;  %v2432_v20 = vor.u32 %v2431_v59, %v2428_v25 }
 0x157   : > { %v1605_v28 = vadd.f32 %v1583_v6, %v7840_v58  ;;  %v2879_v8 = vrot.slane %v2877_v49, 2  ;;  %v6834_v6 = vld [vmem:[%s9110_s3 + $0x5b0] sm:$0xff] }
 0x158   : > { %v1426_v61 = vpop.f32.mrf.mxu2  ;;  %v8048_v52 = vpop.f32.mrf.mxu0  ;;  %v2433_v30 = vsel %vm1000_vm2, %v7999_v37, %v2432_v20  ;;  %v2389_v37 = vpack.c.b16 %v2383_v47, %v2383_v47  ;;  %3879 = vmatpush.bf16.msrb.mxu2 %v6834_v6  ;;  %v2829_v49 = vld [vmem:[%s7102_s27 + $0x30] sm:$0x3]  ;;  %v8193_v6 = vld [vmem:[%s7108_s14] sm:$0xff]  }
 0x159   : > { %v8046_v1 = vadd.f32 %v1426_v61, %v1275_v18  ;;  %v1264_v17 = vpop.f32.mrf.mxu1  ;;  %v8051_v12 = vadd.f32 %v7946_v46, %v1605_v28  ;;  %v6802_v46 = vld [vmem:[%s9110_s3 + $0x4f8] sm:$0xff]  ;;  %v2882_v18 = vrot.slane %v2880_v57, 3  ;;  %v2724_v61 = vrot.slane %v8010_v55, 2 }
 0x15a   : > { %v1276_v58 = vadd.f32 %v1264_v17, %v7968_v50  ;;  %v2722_v50 = vrot.slane %v7954_v63, 2  ;;  %3391 = vmatpush.bf16.msrb.mxu3 %v6802_v46  ;;  %v2435_v38 = vshll.u32 %v2389_v37, 16  ;;  %v2566_v22 = vrot.slane %v2389_v37, 2  ;;  %v6804_v37 = vld [vmem:[%s9110_s3 + $0x508] sm:$0xff] }
 0x15b   : > { %v8117_v28 = vor.u32 %v2882_v18, %v2879_v8  ;;  %v6803_v18 = vld [vmem:[%s9110_s3 + $0x500] sm:$0xff] }
 0x15c   : > { %v2723_v4 = vsel %vm1168_vm3, %v2721_v0, %v2722_v50  ;;  %v2437_v16 = vrot.slane %v2435_v38, 2  ;;  %v2725_v59 = vsel %vm1168_vm3, %v2722_v50, %v2724_v61  ;;  %v2567_v46 = vsel %vm1168_vm3, %v2564_v31, %v2566_v22  ;;  %v6806_v50 = vld [vmem:[%s9110_s3 + $0x518] sm:$0xff] }
 0x15d   : > { %3522 = vmatpush.bf16.msrb.mxu0 %v6806_v50 }
 0x15e   : > { %v1585_v7 = vpop.f32.mrf.mxu3  ;;  %3392 = vmatpush.bf16.msrb.mxu3 %v6801_v42  ;;  %v2438_v2 = vsel %vm1000_vm2, %v2432_v20, %v2437_v16  ;;  %v2886_v20 = vshrl.u32 %v8130_v62, 16 }
 0x15f   : > { %v1606_v3 = vadd.f32 %v1585_v7, %v7872_v33  ;;  %v2565_v33 = vsel %vm1168_vm3, %v2562_v9, %v2564_v31  ;;  %v3000_v7 = vld [vmem:[%s7102_s27 + $0x8] sm:$0x8] }
 0x160   : > { %v1428_v43 = vpop.f32.mrf.mxu2  ;;  %v8076_v21 = vpop.f32.mrf.mxu0  ;;  %v3019_v31 = vunpack.c.l.b16 %v3000_v7 }
 0x161   : > { %v8074_v24 = vadd.f32 %v1428_v43, %v1276_v58  ;;  %v1857_v53 = vpop.f32.mrf.mxu1  ;;  %v8090_v56 = vadd.f32 %v7988_v41, %v1606_v3  ;;  %v2884_v58 = vsel %vm1462_vm5, %v2874_v14, %v8117_v28  ;;  %v6800_v14 = vld [vmem:[%s9110_s3 + $0x4e8] sm:$0xff]  ;;  %v6805_v3 = vld [vmem:[%s9110_s3 + $0x510] sm:$0xff] }
 0x162   : > { %v1882_v36 = vadd.f32 %v1857_v53, %v7991_v26  ;;  %3393 = vmatpush.bf16.msrb.mxu3 %v6800_v14  ;;  %v3020_v47 = vpack.c.b16 %v2705_v39, %v3019_v31  ;;  %3523 = vmatpush.bf16.msrb.mxu0 %v6805_v3  ;;  %v2728_v31 = vrot.slane %v8130_v62, 2  ;;  %v6795_v3 = vld [vmem:[%s9110_s3 + $0x4c0] sm:$0xff] }
 0x163   : > { %2793 = vmatmul.bf16.vlgmr.msra.gmra.mxu3 %v2723_v4  ;;  %2969 = vmatmul.bf16.gmra.mxu0 %v2875_v48  ;;  %v2888_v48 = vrot.slane %v2886_v20, 2  ;;  %v6831_v20 = vld [vmem:[%s9110_s3 + $0x598] sm:$0xff] }
 0x164   : > { %2515 = vmatmul.bf16.gmra.mxu1 %v2433_v30  ;;  %v6823_v30 = vld [vmem:[%s9110_s3 + $0x578] sm:$0xff] }
 0x165   : > { %2644 = vmatmul.bf16.gmra.mxu2 %v2565_v33  ;;  %v6833_v33 = vld [vmem:[%s9110_s3 + $0x5a8] sm:$0xff]  ;;  %3676 = vmatpush.bf16.msrb.mxu1 %v6823_v30  ;;  %v2729_v30 = vsel %vm1168_vm3, %v2726_v27, %v2728_v31 }
 0x166   : > { %v1588_v9 = vpop.f32.mrf.mxu3  ;;  %3880 = vmatpush.bf16.msrb.mxu2 %v6833_v33  ;;  %3394 = vmatpush.bf16.msrb.mxu3 %v6799_v29 }
 0x167   : > { %v1607_v41 = vadd.f32 %v1588_v9, %v7913_v51  ;;  %v2848_v9 = vunpack.c.l.b16 %v2829_v49  ;;  %3524 = vmatpush.bf16.msrb.mxu0 %v6804_v37  ;;  %v6820_v37 = vld [vmem:[%s9110_s3 + $0x560] sm:$0xff] }
 0x168   : > { %v2014_v15 = vpop.f32.mrf.mxu2  ;;  %v8101_v26 = vpop.f32.mrf.mxu0 }
 0x169   : > { %v8099_v5 = vadd.f32 %v2014_v15, %v1882_v36  ;;  %v1859_v35 = vpop.f32.mrf.mxu1  ;;  %v8110_v23 = vadd.f32 %v8005_v13, %v1607_v41  ;;  %v3022_v41 = vrot.slane %v7954_v63, 3  ;;  %v8189_v38 = vpack.c.b16 %v2848_v9, %v2848_v9 }
 0x16a   : > { %v1883_v51 = vadd.f32 %v1859_v35, %v8030_v11  ;;  %v2727_v35 = vsel %vm1168_vm3, %v2724_v61, %v2726_v27  ;;  %v6822_v61 = vld [vmem:[%s9110_s3 + $0x570] sm:$0xff] }
 0x16b   : > { %3525 = vmatpush.bf16.msrb.mxu0 %v6803_v18  ;;  %3677 = vmatpush.bf16.msrb.mxu1 %v6822_v61  ;;  %v6830_v27 = vld [vmem:[%s9110_s3 + $0x590] sm:$0xff]  ;;  %v3026_v61 = vrot.slane %v8082_v45, 3  ;;  %v6829_v45 = vld [vmem:[%s9110_s3 + $0x588] sm:$0xff] }
 0x16e   : > { %v1590_v40 = vpop.f32.mrf.mxu3 }
 0x16f   : > { %v1608_v13 = vadd.f32 %v1590_v40, %v7944_v10  ;;  %v6798_v40 = vld [vmem:[%s9110_s3 + $0x4d8] sm:$0xff] }
 0x170   : > { %v2016_v17 = vpop.f32.mrf.mxu2  ;;  %v8122_v25 = vpop.f32.mrf.mxu0  ;;  %3395 = vmatpush.bf16.msrb.mxu3 %v6798_v40 }
 0x171   : > { %v8120_v11 = vadd.f32 %v2016_v17, %v1883_v51  ;;  %v1862_v44 = vpop.f32.mrf.mxu1  ;;  %v8135_v10 = vadd.f32 %v8048_v52, %v1608_v13  ;;  %v2889_v52 = vshll.u32 %v8130_v62, 16 }
 0x172   : > { %v1884_v0 = vadd.f32 %v1862_v44, %v8051_v12 }
 0x173   : > { %2798 = vmatmul.bf16.gmra.mxu3 %v2725_v59  ;;  %2974 = vmatmul.bf16.gmra.mxu0 %v2884_v58  ;;  %v2891_v53 = vrot.slane %v2889_v52, 3  ;;  %v6797_v58 = vld [vmem:[%s9110_s3 + $0x4d0] sm:$0xff]  ;;  %v6796_v52 = vld [vmem:[%s9110_s3 + $0x4c8] sm:$0xff] }
 0x174   : > { %2520 = vmatmul.bf16.gmra.mxu1 %v2438_v2  ;;  %3396 = vmatpush.bf16.msrb.mxu3 %v6797_v58 }
 0x175   : > { %2649 = vmatmul.bf16.gmra.mxu2 %v2567_v46  ;;  %v2892_v39 = vor.u32 %v2891_v53, %v2888_v48 }
 0x176   : > { %v1593_v12 = vpop.f32.mrf.mxu3 }
 0x177   : > { %v1609_v32 = vadd.f32 %v1593_v12, %v7986_v34  ;;  %v2893_v63 = vsel %vm1462_vm5, %v8117_v28, %v2892_v39  ;;  %v6832_v28 = vld [vmem:[%s9110_s3 + $0x5a0] sm:$0xff] }
 0x178   : > { %v2019_v43 = vpop.f32.mrf.mxu2  ;;  %v8153_v4 = vpop.f32.mrf.mxu0  ;;  %3881 = vmatpush.bf16.msrb.mxu2 %v6832_v28  ;;  %3397 = vmatpush.bf16.msrb.mxu3 %v6796_v52  ;;  %v3300_v52 = vshrl.u32 %v8193_v6, 16 }
 0x179   : > { %v8151_v60 = vadd.f32 %v2019_v43, %v1884_v0  ;;  %v1864_v34 = vpop.f32.mrf.mxu1  ;;  %v8164_v36 = vadd.f32 %v8076_v21, %v1609_v32  ;;  %v3021_v21 = vrot.slane %v3020_v47, 3  ;;  %v2675_v47 = vld [vmem:[%s7102_s27 + $0x30] sm:$0x1] }
 0x17a   : > { %v1885_v57 = vadd.f32 %v1864_v34, %v8090_v56  ;;  %v2714_v29 = vunpack.c.l.b16 %v2675_v47  ;;  %v3028_v47 = vrot.slane %v8130_v62, 3 }
 0x17c   : > { %3882 = vmatpush.bf16.msrb.mxu2 %v6831_v20  ;;  %3398 = vmatpush.bf16.msrb.mxu3 %v6795_v3  ;;  %v6828_v3 = vld [vmem:[%s9110_s3 + $0x580] sm:$0xff] }
 0x17e   : > { %v1595_v56 = vpop.f32.mrf.mxu3 }
 0x17f   : > { %v1610_v15 = vadd.f32 %v1595_v56, %v8003_v54  ;;  %v3023_v54 = vsel %vm1634_vm4, %v3021_v21, %v3022_v41 }
 0x180   : > { %v2021_v8 = vpop.f32.mrf.mxu2  ;;  %v8182_v42 = vpop.f32.mrf.mxu0  ;;  %3883 = vmatpush.bf16.msrb.mxu2 %v6830_v27 }
 0x181   : > { %v8180_v19 = vadd.f32 %v2021_v8, %v1885_v57  ;;  %v1867_v51 = vpop.f32.mrf.mxu1  ;;  %v8196_v16 = vadd.f32 %v8101_v26, %v1610_v15  ;;  %v2895_v26 = vshrl.u32 %v8189_v38, 16  ;;  %v2720_v15 = vpack.c.b16 %v2714_v29, %v2714_v29 }
 0x182   : > { %v1886_v22 = vadd.f32 %v1867_v51, %v8110_v23  ;;  %v2898_v23 = vshll.u32 %v8189_v38, 16  ;;  %v6855_v51 = vld [vmem:[%s9110_s3 + $0x638] sm:$0xff] }
 0x183   : > { %2803 = vmatmul.bf16.gmra.mxu3 %v2727_v35  ;;  %2979 = vmatmul.bf16.gmra.mxu0 %v2893_v63  ;;  %v2897_v46 = vrot.slane %v2895_v26, 2 }
 0x184   : > { %3093 = vmatmul.bf16.vlgmr.msra.gmra.mxu1 %v3023_v54  ;;  %v2900_v0 = vrot.slane %v2898_v23, 3  ;;  %v2730_v54 = vrot.slane %v2720_v15, 2  ;;  %4171 = vmatpush.bf16.msra.mxu0 %v6855_v51  ;;  %v8354_v51 = vld [vmem:[%s7108_s14 + $0x20] sm:$0xff]  }
 0x185   : > { %3242 = vmatmul.bf16.vlgmr.msra.gmra.mxu2 %v8193_v6 }
 0x186   : > { %v1598_v13 = vpop.f32.mrf.mxu3  ;;  %3884 = vmatpush.bf16.msrb.mxu2 %v6829_v45  ;;  %v6870_v45 = vld [vmem:[%s9110_s3 + $0x6b0] sm:$0xff] }
 0x187   : > { %v1611_v17 = vadd.f32 %v1598_v13, %v8046_v1  ;;  %v6821_v1 = vld [vmem:[%s9110_s3 + $0x568] sm:$0xff]  ;;  %v8283_v13 = vld [vmem:[%s7108_s14 + $0x10] sm:$0xff] }
 0x188   : > { %v2024_v59 = vpop.f32.mrf.mxu2  ;;  %v8217_v2 = vpop.f32.mrf.mxu0  ;;  %3678 = vmatpush.bf16.msrb.mxu1 %v6821_v1 }
 0x189   : > { %v8215_v44 = vadd.f32 %v2024_v59, %v1886_v22  ;;  %v1869_v7 = vpop.f32.mrf.mxu1  ;;  %v8220_v50 = vadd.f32 %v8122_v25, %v1611_v17  ;;  %v2901_v25 = vor.u32 %v2900_v0, %v2897_v46  ;;  %v6819_v59 = vld [vmem:[%s9110_s3 + $0x558] sm:$0xff] }
 0x18a   : > { %v1887_v14 = vadd.f32 %v1869_v7, %v8135_v10  ;;  %v3024_v10 = vrot.slane %v8010_v55, 3  ;;  %v8245_v55 = vld [vmem:[%s7108_s14 + $0x8] sm:$0xff]  ;;  %v6854_v7 = vld [vmem:[%s9110_s3 + $0x630] sm:$0xff]  ;;  %3885 = vmatpush.bf16.msrb.mxu2 %v6828_v3 }
 0x18b   : > { %v2902_v33 = vsel %vm1462_vm5, %v2892_v39, %v2901_v25  ;;  %v6890_v39 = vld [vmem:[%s7108_s14] sm:$0xf0]  ;;  %4172 = vmatpush.bf16.msra.mxu0 %v6854_v7 }
 0x18c   : > { %3679 = vmatpush.bf16.msrb.mxu1 %v6820_v37  ;;  %v6816_v37 = vld [vmem:[%s9110_s3 + $0x540] sm:$0xff] }
 0x18e   : > { %v1600_v12 = vpop.f32.mrf.mxu3 }
 0x18f   : > { %v1612_v32 = vadd.f32 %v1600_v12, %v8074_v24  ;;  %v3025_v24 = vsel %vm1634_vm4, %v3022_v41, %v3024_v10  ;;  %v3307_v12 = vshll.u32 %v8245_v55, 16 }
 0x190   : > { %v2026_v43 = vpop.f32.mrf.mxu2  ;;  %v8240_v53 = vpop.f32.mrf.mxu0  ;;  %3680 = vmatpush.bf16.msrb.mxu1 %v6819_v59 }
 0x191   : > { %v8238_v48 = vadd.f32 %v2026_v43, %v1887_v14  ;;  %v1872_v34 = vpop.f32.mrf.mxu1  ;;  %v8250_v49 = vadd.f32 %v8153_v4, %v1612_v32  ;;  %v6891_v4 = vld [vmem:[%s7108_s14] sm:$0xe]  ;;  %v3302_v14 = vshll.u32 %v8193_v6, 16  ;;  %v6817_v6 = vld [vmem:[%s9110_s3 + $0x548] sm:$0xff] }
 0x192   : > { %v1888_v57 = vadd.f32 %v1872_v34, %v8164_v36  ;;  %v6892_v8 = vor.u32 %v6891_v4, %v6890_v39  ;;  %v3309_v34 = vrot.slane %v3307_v12, 1  ;;  %v8339_v4 = vld [vmem:[%s7108_s14 + $0x18] sm:$0xff] }
 0x193   : > { %2808 = vmatmul.bf16.gmra.mxu3 %v2729_v30  ;;  %2984 = vmatmul.bf16.gmra.mxu0 %v2902_v33  ;;  %v6853_v30 = vld [vmem:[%s9110_s3 + $0x628] sm:$0xff] }
 0x194   : > { %3098 = vmatmul.bf16.gmra.mxu1 %v3025_v24  ;;  %v3456_v22 = vrot.slane %v6892_v8, 1  ;;  %v3459_v24 = vrot.slane %v8283_v13, 1  ;;  %4173 = vmatpush.bf16.msra.mxu0 %v6853_v30  ;;  %v6871_v8 = vld [vmem:[%s9110_s3 + $0x6b8] sm:$0xff] }
 0x195   : > { %3247 = vmatmul.bf16.gmra.mxu2 %v8245_v55  ;;  %v6851_v30 = vld [vmem:[%s9110_s3 + $0x618] sm:$0xff] }
 0x196   : > { %v2141_v9 = vpop.f32.mrf.mxu3  ;;  %4471 = vmatpush.bf16.msra.mxu2 %v6871_v8 }
 0x197   : > { %v2166_v21 = vadd.f32 %v2141_v9, %v8099_v5  ;;  %v3457_v5 = vrot.slane %v8245_v55, 1 }
 0x198   : > { %v2029_v36 = vpop.f32.mrf.mxu2  ;;  %v8265_v56 = vpop.f32.mrf.mxu0 }
 0x199   : > { %v8263_v41 = vadd.f32 %v2029_v36, %v1888_v57  ;;  %v1874_v18 = vpop.f32.mrf.mxu1  ;;  %v8268_v35 = vadd.f32 %v8182_v42, %v2166_v21  ;;  %v3458_v17 = vsel %vm679_vm1, %v3456_v22, %v3457_v5  ;;  %v3460_v62 = vsel %vm679_vm1, %v3457_v5, %v3459_v24 }
 0x19a   : > { %v1889_v63 = vadd.f32 %v1874_v18, %v8196_v16  ;;  %v2731_v16 = vsel %vm1168_vm3, %v2728_v31, %v2730_v54  ;;  %v3304_v31 = vrot.slane %v3302_v14, 1  ;;  %v3029_v21 = vsel %vm1634_vm4, %v3026_v61, %v3028_v47  ;;  %v6990_v54 = vld [vmem:[%s7108_s14 + $0x20] sm:$0xf]   ;;  %4472 = vmatpush.bf16.msra.mxu2 %v6870_v45 }
 0x19b   : > { %v3030_v14 = vrot.slane %v8189_v38, 3 }
 0x19c   : > { %v3305_v33 = vor.u32 %v3304_v31, %v3300_v52 }
 0x19e   : > { %v2143_v28 = vpop.f32.mrf.mxu3  ;;  %v3310_v9 = vsel %vm441_vm0, %v3305_v33, %v3309_v34 }
 0x19f   : > { %v2167_v26 = vadd.f32 %v2143_v28, %v8120_v11  ;;  %v3027_v11 = vsel %vm1634_vm4, %v3024_v10, %v3026_v61  ;;  %v6992_v61 = vld [vmem:[%s7108_s14 + $0x20] sm:$0x70]  ;;  %v3315_v28 = vshll.u32 %v8283_v13, 16 }
 0x1a0   : > { %v2031_v40 = vpop.f32.mrf.mxu2  ;;  %v8279_v42 = vpop.f32.mrf.mxu0 }
 0x1a1   : > { %v8277_v23 = vadd.f32 %v2031_v40, %v1889_v63  ;;  %v1877_v58 = vpop.f32.mrf.mxu1  ;;  %v8294_v46 = vadd.f32 %v8217_v2, %v2167_v26  ;;  %v6852_v40 = vld [vmem:[%s9110_s3 + $0x620] sm:$0xff] }
 0x1a2   : > { %v1890_v0 = vadd.f32 %v1877_v58, %v8220_v50  ;;  %v6818_v50 = vld [vmem:[%s9110_s3 + $0x550] sm:$0xff]  ;;  %4174 = vmatpush.bf16.msra.mxu0 %v6852_v40  ;;  %v6840_v40 = vld [vmem:[%s9110_s3 + $0x5e0] sm:$0xff] }
 0x1a3   : > { %2813 = vmatmul.bf16.gmra.mxu3 %v2731_v16  ;;  %3526 = vmatmul.bf16.vlgmr.msrb.gmra.mxu0 %v3458_v17  ;;  %v8375_v17 = vld [vmem:[%s7108_s14 + $0x8] sm:$0xff]  }
 0x1a4   : > { %3103 = vmatmul.bf16.gmra.mxu1 %v3027_v11  ;;  %v3317_v11 = vrot.slane %v3315_v28, 1 }
 0x1a5   : > { %3252 = vmatmul.bf16.gmra.mxu2 %v8283_v13  ;;  %3681 = vmatpush.bf16.msrb.mxu1 %v6818_v50 }
 0x1a6   : > { %v2146_v1 = vpop.f32.mrf.mxu3  ;;  %4175 = vmatpush.bf16.msra.mxu0 %v6851_v30  ;;  %v6868_v30 = vld [vmem:[%s9110_s3 + $0x6a0] sm:$0xff] }
 0x1a7   : > { %v2168_v2 = vadd.f32 %v2146_v1, %v8151_v60 }
 0x1a8   : > { %v2034_v20 = vpop.f32.mrf.mxu2  ;;  %v8309_v10 = vpop.f32.mrf.mxu0 }
 0x1a9   : > { %v8307_v25 = vadd.f32 %v2034_v20, %v1890_v0  ;;  %v1879_v32 = vpop.f32.mrf.mxu1  ;;  %v8313_v43 = vadd.f32 %v8240_v53, %v2168_v2  ;;  %v6843_v53 = vld [vmem:[%s9110_s3 + $0x5f8] sm:$0xff]  ;;  %3682 = vmatpush.bf16.msrb.mxu1 %v6817_v6  ;;  %v3461_v0 = vrot.slane %v8339_v4, 1  ;;  %v6991_v2 = vor.u32 %v6992_v61, %v6990_v54 }
 0x1aa   : > { %v1891_v60 = vadd.f32 %v1879_v32, %v8250_v49  ;;  %4007 = vmatpush.bf16.msra.mxu3 %v6843_v53  ;;  %v6841_v53 = vld [vmem:[%s9110_s3 + $0x5e8] sm:$0xff] }
 0x1ab   : > { %v3462_v12 = vsel %vm679_vm1, %v3459_v24, %v3461_v0  ;;  %v6274_v24 = vld [vmem:[%s7108_s14 + $0x4] sm:$0xe] }
 0x1ad   : > { %3683 = vmatpush.bf16.msrb.mxu1 %v6816_v37  ;;  %v3319_v37 = vshrl.u32 %v8283_v13, 16 }
 0x1ae   : > { %v2148_v49 = vpop.f32.mrf.mxu3 }
 0x1af   : > { %v2169_v29 = vadd.f32 %v2148_v49, %v8180_v19 }
 0x1b0   : > { %v2036_v57 = vpop.f32.mrf.mxu2  ;;  %v8336_v39 = vpop.f32.mrf.mxu0 }
 0x1b1   : > { %v8334_v27 = vadd.f32 %v2036_v57, %v1891_v60  ;;  %v2501_v36 = vpop.f32.mrf.mxu1  ;;  %v8345_v19 = vadd.f32 %v8265_v56, %v2169_v29  ;;  %v8397_v60 = vld [vmem:[%s7108_s14 + $0xc] sm:$0xff] }
 0x1b2   : > { %v2526_v15 = vadd.f32 %v2501_v36, %v8268_v35  ;;  %v3311_v35 = vshrl.u32 %v8245_v55, 16  ;;  %v3720_v55 = vld [vmem:[%s7108_s14 + $0x4] sm:$0xe] }
 0x1b3   : > { %3399 = vmatmul.bf16.vlgmr.msrb.gmra.mxu3 %v3310_v9  ;;  %3531 = vmatmul.bf16.gmra.mxu0 %v3460_v62  ;;  %v3759_v7 = vunpack.c.l.b16 %v3720_v55  ;;  %v6850_v9 = vld [vmem:[%s9110_s3 + $0x610] sm:$0xff] }
 0x1b4   : > { %3108 = vmatmul.bf16.gmra.mxu1 %v3029_v21  ;;  %v3313_v58 = vor.u32 %v3311_v35, %v3309_v34  ;;  %v3323_v21 = vshll.u32 %v8339_v4, 16  ;;  %4176 = vmatpush.bf16.msra.mxu0 %v6850_v9 }
 0x1b5   : > { %3257 = vmatmul.bf16.gmra.mxu2 %v8339_v4 }
 0x1b6   : > { %v2151_v18 = vpop.f32.mrf.mxu3  ;;  %v3318_v31 = vsel %vm441_vm0, %v3313_v58, %v3317_v11  ;;  %v3325_v55 = vrot.slane %v3323_v21, 1 }
 0x1b7   : > { %v2170_v56 = vadd.f32 %v2151_v18, %v8215_v44  ;;  %v6842_v44 = vld [vmem:[%s9110_s3 + $0x5f0] sm:$0xff]  ;;  %v6863_v18 = vld [vmem:[%s9110_s3 + $0x678] sm:$0xff] }
 0x1b8   : > { %v2630_v63 = vpop.f32.mrf.mxu2  ;;  %v8360_v5 = vpop.f32.mrf.mxu0  ;;  %4008 = vmatpush.bf16.msra.mxu3 %v6842_v44  ;;  %6901 = vmatpush.bf16.msra.mxu1 %v6863_v18  ;;  %v6849_v44 = vld [vmem:[%s9110_s3 + $0x608] sm:$0xff] }
 0x1b9   : > { %v8358_v22 = vadd.f32 %v2630_v63, %v2526_v15  ;;  %v2503_v26 = vpop.f32.mrf.mxu1  ;;  %v8371_v16 = vadd.f32 %v8279_v42, %v2170_v56  ;;  %v3760_v42 = vunpack.c.l.b16 %v8375_v17  ;;  %v8430_v56 = vld [vmem:[%s7108_s14 + $0xc] sm:$0xff]  ;;  %4177 = vmatpush.bf16.msra.mxu0 %v6849_v44 }
 0x1ba   : > { %v2527_v59 = vadd.f32 %v2503_v26, %v8294_v46  ;;  %v3321_v26 = vor.u32 %v3319_v37, %v3317_v11  ;;  %v3615_v45 = vrot.slane %v8430_v56, 1  ;;  %v6848_v11 = vld [vmem:[%s9110_s3 + $0x600] sm:$0xff]  ;;  %v8494_v37 = vld [vmem:[%s7108_s14 + $0x14] sm:$0xff] }
 0x1bb   : > { %v3770_v38 = vpack.c.b16 %v3760_v42, %v3759_v7 }
 0x1bc   : > { %4009 = vmatpush.bf16.msra.mxu3 %v6841_v53  ;;  %v6839_v53 = vld [vmem:[%s9110_s3 + $0x5d8] sm:$0xff] }
 0x1bd   : > { %v3777_v33 = vshrl.u32 %v3770_v38, 16  ;;  %v3780_v34 = vshll.u32 %v3770_v38, 16  ;;  %4178 = vmatpush.bf16.msra.mxu0 %v6848_v11 }
 0x1be   : > { %v2153_v1 = vpop.f32.mrf.mxu3 }
 0x1bf   : > { %v2171_v46 = vadd.f32 %v2153_v1, %v8238_v48  ;;  %v3031_v48 = vsel %vm1634_vm4, %v3028_v47, %v3030_v14  ;;  %v6811_v47 = vld [vmem:[%s7108_s14 + $0x4] sm:$0xf0]  ;;  %v3779_v8 = vrot.slane %v3777_v33, 1  ;;  %v3782_v63 = vrot.slane %v3780_v34, 2 }
 0x1c0   : > { %v2632_v20 = vpop.f32.mrf.mxu2  ;;  %v8387_v52 = vpop.f32.mrf.mxu0  ;;  %v6275_v15 = vor.u32 %v6811_v47, %v6274_v24  ;;  %4010 = vmatpush.bf16.msra.mxu3 %v6840_v40  ;;  %v6838_v47 = vld [vmem:[%s9110_s3 + $0x5d0] sm:$0xff] }
 0x1c1   : > { %v8385_v50 = vadd.f32 %v2632_v20, %v2527_v59  ;;  %v2506_v32 = vpop.f32.mrf.mxu1  ;;  %v8400_v3 = vadd.f32 %v8309_v10, %v2171_v46  ;;  %v3785_v10 = vshrl.u32 %v8397_v60, 16  ;;  %v3463_v59 = vrot.slane %v8354_v51, 1  ;;  %4342 = vmatpush.bf16.msrb.mxu0 %v6863_v18  ;;  %v6837_v18 = vld [vmem:[%s9110_s3 + $0x5c8] sm:$0xff] }
 0x1c2   : > { %v2528_v6 = vadd.f32 %v2506_v32, %v8313_v43  ;;  %v3788_v43 = vshll.u32 %v8397_v60, 16  ;;  %v8466_v32 = vld [vmem:[%s7108_s14 + $0x14] sm:$0xff] }
 0x1c3   : > { %3404 = vmatmul.bf16.gmra.mxu3 %v3318_v31  ;;  %3536 = vmatmul.bf16.gmra.mxu0 %v3462_v12  ;;  %v3787_v54 = vrot.slane %v3785_v10, 1  ;;  %v3464_v31 = vsel %vm679_vm1, %v3461_v0, %v3463_v59  ;;  %v6862_v0 = vld [vmem:[%s9110_s3 + $0x670] sm:$0xff] }
 0x1c4   : > { %3113 = vmatmul.bf16.gmra.mxu1 %v3031_v48  ;;  %v3790_v35 = vrot.slane %v3788_v43, 2  ;;  %4011 = vmatpush.bf16.msra.mxu3 %v6839_v53 }
 0x1c5   : > { %3262 = vmatmul.bf16.gmra.mxu2 %v6991_v2  ;;  %v3326_v2 = vsel %vm441_vm0, %v3321_v26, %v3325_v55  ;;  %6902 = vmatpush.bf16.msra.mxu1 %v6862_v0 }
 0x1c6   : > { %v2156_v49 = vpop.f32.mrf.mxu3  ;;  %v8444_v58 = vor.u32 %v3790_v35, %v3787_v54  ;;  %4343 = vmatpush.bf16.msrb.mxu0 %v6862_v0 }
 0x1c7   : > { %v2172_v57 = vadd.f32 %v2156_v49, %v8263_v41  ;;  %v6869_v41 = vld [vmem:[%s9110_s3 + $0x6a8] sm:$0xff]  ;;  %v3327_v49 = vshrl.u32 %v8339_v4, 16  ;;  %v6867_v4 = vld [vmem:[%s9110_s3 + $0x698] sm:$0xff] }
 0x1c8   : > { %v2635_v29 = vpop.f32.mrf.mxu2  ;;  %v8420_v36 = vpop.f32.mrf.mxu0  ;;  %4473 = vmatpush.bf16.msra.mxu2 %v6869_v41  ;;  %4012 = vmatpush.bf16.msra.mxu3 %v6838_v47 }
 0x1c9   : > { %v8418_v62 = vadd.f32 %v2635_v29, %v2528_v6  ;;  %v2508_v13 = vpop.f32.mrf.mxu1  ;;  %v8433_v61 = vadd.f32 %v8336_v39, %v2172_v57  ;;  %v3614_v39 = vrot.slane %v6275_v15, 1  ;;  %v3331_v57 = vshll.u32 %v8354_v51, 16 }
 0x1ca   : > { %v2529_v28 = vadd.f32 %v2508_v13, %v8345_v19  ;;  %v3783_v19 = vor.u32 %v3782_v63, %v3779_v8  ;;  %v6861_v8 = vld [vmem:[%s9110_s3 + $0x668] sm:$0xff]  ;;  %v3329_v41 = vor.u32 %v3327_v49, %v3325_v55 }
 0x1cb   : > { %v3333_v13 = vrot.slane %v3331_v57, 1  ;;  %6903 = vmatpush.bf16.msra.mxu1 %v6861_v8  ;;  %4344 = vmatpush.bf16.msrb.mxu0 %v6861_v8 }
 0x1cc   : > { %v3792_v38 = vsel %vm1000_vm2, %v3783_v19, %v8444_v58  ;;  %4474 = vmatpush.bf16.msra.mxu2 %v6868_v30  ;;  %4013 = vmatpush.bf16.msra.mxu3 %v6837_v18  ;;  %v8556_v30 = vld [vmem:[%s7108_s14 + $0x1c] sm:$0xff]  ;;  %v8588_v18 = vld [vmem:[%s7108_s14 + $0x24] sm:$0xff] }
 0x1cd   : > { %v3334_v26 = vsel %vm441_vm0, %v3329_v41, %v3333_v13  ;;  %v3619_v47 = vrot.slane %v8556_v30, 1  ;;  %v3922_v41 = vld [vmem:[%s7108_s14 + $0x4] sm:$0xc] }
 0x1ce   : > { %v2158_v7 = vpop.f32.mrf.mxu3 }
 0x1cf   : > { %v2173_v14 = vadd.f32 %v2158_v7, %v8277_v23  ;;  %v3616_v23 = vsel %vm679_vm1, %v3614_v39, %v3615_v45  ;;  %v4051_v7 = vld [vmem:[%s7108_s14 + $0x8] sm:$0xc] }
 0x1d0   : > { %v2637_v1 = vpop.f32.mrf.mxu2  ;;  %v8452_v20 = vpop.f32.mrf.mxu0  ;;  %4475 = vmatpush.bf16.msra.mxu2 %v6867_v4  ;;  %v4090_v56 = vunpack.c.l.b16 %v4051_v7 }
 0x1d1   : > { %v8450_v46 = vadd.f32 %v2637_v1, %v2529_v28  ;;  %v2511_v12 = vpop.f32.mrf.mxu1  ;;  %v8469_v48 = vadd.f32 %v8360_v5, %v2173_v14  ;;  %v3794_v5 = vshrl.u32 %v8466_v32, 16  ;;  %v6836_v28 = vld [vmem:[%s9110_s3 + $0x5c0] sm:$0xff] }
 0x1d2   : > { %v2530_v6 = vadd.f32 %v2511_v12, %v8371_v16  ;;  %v3797_v16 = vshll.u32 %v8466_v32, 16  ;;  %4014 = vmatpush.bf16.msra.mxu3 %v6836_v28 }
 0x1d3   : > { %3409 = vmatmul.bf16.gmra.mxu3 %v3326_v2  ;;  %3541 = vmatmul.bf16.gmra.mxu0 %v3464_v31  ;;  %v3796_v9 = vrot.slane %v3794_v5, 1 }
 0x1d4   : > { %3684 = vmatmul.bf16.vlgmr.msrb.gmra.mxu1 %v3616_v23  ;;  %v3799_v21 = vrot.slane %v3797_v16, 2 }
 0x1d5   : > { %3886 = vmatmul.bf16.vlgmr.msrb.gmra.mxu2 %v3792_v38  ;;  %v8549_v38 = vld [vmem:[%s7108_s14 + $0x10] sm:$0xff] }
 0x1d6   : > { %v2161_v33 = vpop.f32.mrf.mxu3 }
 0x1d7   : > { %v2174_v34 = vadd.f32 %v2161_v33, %v8307_v25  ;;  %v3335_v33 = vshrl.u32 %v8354_v51, 16 }
 0x1d8   : > { %v2640_v24 = vpop.f32.mrf.mxu2  ;;  %v8489_v43 = vpop.f32.mrf.mxu0 }
 0x1d9   : > { %v8487_v10 = vadd.f32 %v2640_v24, %v2530_v6  ;;  %v2513_v29 = vpop.f32.mrf.mxu1  ;;  %v8497_v25 = vadd.f32 %v8387_v52, %v2174_v34  ;;  %v3617_v52 = vrot.slane %v8494_v37, 1  ;;  %v4108_v24 = vrot.slane %v8549_v38, 2 }
 0x1da   : > { %v2531_v15 = vadd.f32 %v2513_v29, %v8400_v3  ;;  %v3800_v3 = vor.u32 %v3799_v21, %v3796_v9  ;;  %v6859_v21 = vld [vmem:[%s9110_s3 + $0x658] sm:$0xff] }
 0x1db   : > { %v3618_v39 = vsel %vm679_vm1, %v3615_v45, %v3617_v52  ;;  %v4091_v45 = vunpack.c.h.b16 %v8375_v17 }
 0x1dc   : > { %v3801_v19 = vsel %vm1000_vm2, %v8444_v58, %v3800_v3  ;;  %v6860_v58 = vld [vmem:[%s9110_s3 + $0x660] sm:$0xff] }
 0x1dd   : > { %6904 = vmatpush.bf16.msra.mxu1 %v6860_v58  ;;  %4345 = vmatpush.bf16.msrb.mxu0 %v6860_v58  ;;  %v8553_v6 = vpack.c.b16 %v4091_v45, %v4090_v56 }
 0x1de   : > { %v2163_v63 = vpop.f32.mrf.mxu3 }
 0x1df   : > { %v2175_v54 = vadd.f32 %v2163_v63, %v8334_v27  ;;  %v8525_v27 = vld [vmem:[%s7108_s14 + $0x1c] sm:$0xff]  ;;  %v4107_v34 = vrot.slane %v8553_v6, 2 }
 0x1e0   : > { %v2642_v35 = vpop.f32.mrf.mxu2  ;;  %v8516_v44 = vpop.f32.mrf.mxu0  ;;  %v3806_v11 = vshll.u32 %v8525_v27, 16 }
 0x1e1   : > { %v8514_v40 = vadd.f32 %v2642_v35, %v2531_v15  ;;  %v2516_v55 = vpop.f32.mrf.mxu1  ;;  %v8529_v14 = vadd.f32 %v8420_v36, %v2175_v54  ;;  %v6866_v36 = vld [vmem:[%s9110_s3 + $0x690] sm:$0xff]  ;;  %v4109_v51 = vsel %vm1168_vm3, %v4107_v34, %v4108_v24  ;;  %v6865_v15 = vld [vmem:[%s9110_s3 + $0x688] sm:$0xff]  ;;  %6905 = vmatpush.bf16.msra.mxu1 %v6859_v21  ;;  %v3812_v54 = vshrl.u32 %v8588_v18, 16  ;;  %4346 = vmatpush.bf16.msrb.mxu0 %v6859_v21 }
 0x1e2   : > { %v2532_v1 = vadd.f32 %v2516_v55, %v8433_v61  ;;  %v3803_v61 = vshrl.u32 %v8525_v27, 16  ;;  %4476 = vmatpush.bf16.msra.mxu2 %v6866_v36  ;;  %v3808_v5 = vrot.slane %v3806_v11, 2 }
 0x1e3   : > { %3414 = vmatmul.bf16.gmra.mxu3 %v3334_v26  ;;  %3546 = vmatmul.bf16.gmra.mxu0 %v3463_v59  ;;  %v3814_v56 = vrot.slane %v3812_v54, 1 }
 0x1e4   : > { %3689 = vmatmul.bf16.gmra.mxu1 %v3618_v39  ;;  %v3805_v53 = vrot.slane %v3803_v61, 1  ;;  %v6864_v61 = vld [vmem:[%s9110_s3 + $0x680] sm:$0xff] }
 0x1e5   : > { %3891 = vmatmul.bf16.gmra.mxu2 %v3801_v19  ;;  %v8608_v19 = vld [vmem:[%s7108_s14 + $0x18] sm:$0xff] }
 0x1e6   : > { %v2794_v59 = vpop.f32.mrf.mxu3  ;;  %v8566_v49 = vor.u32 %v3808_v5, %v3805_v53  ;;  %4477 = vmatpush.bf16.msra.mxu2 %v6865_v15 }
 0x1e7   : > { %v2819_v31 = vadd.f32 %v2794_v59, %v8358_v22  ;;  %v3944_v59 = vrot.slane %v8397_v60, 2 }
 0x1e8   : > { %v2645_v2 = vpop.f32.mrf.mxu2  ;;  %v8546_v23 = vpop.f32.mrf.mxu0  ;;  %v3810_v4 = vsel %vm1000_vm2, %v3800_v3, %v8566_v49  ;;  %v3815_v3 = vshll.u32 %v8588_v18, 16 }
 0x1e9   : > { %v8544_v12 = vadd.f32 %v2645_v2, %v2532_v1  ;;  %v2518_v0 = vpop.f32.mrf.mxu1  ;;  %v8559_v16 = vadd.f32 %v8452_v20, %v2819_v31  ;;  %v3337_v20 = vor.u32 %v3335_v33, %v3333_v13  ;;  %v8611_v1 = vld [vmem:[%s7108_s14 + $0x24] sm:$0xff]  ;;  %v4110_v2 = vrot.slane %v8608_v19, 2 }
 0x1ea   : > { %v2533_v22 = vadd.f32 %v2518_v0, %v8469_v48  ;;  %v3817_v58 = vrot.slane %v3815_v3, 2  ;;  %4478 = vmatpush.bf16.msra.mxu2 %v6864_v61  ;;  %v3730_v0 = vld [vmem:[%s7108_s14 + $0x2c] sm:$0x1] }
 0x1ec   : > { %v3818_v31 = vor.u32 %v3817_v58, %v3814_v56  ;;  %v4248_v56 = vshll.u32 %v8549_v38, 16  ;;  %v4254_v58 = vshrl.u32 %v8608_v19, 16 }
 0x1ee   : > { %v2796_v57 = vpop.f32.mrf.mxu3 }
 0x1ef   : > { %v2820_v37 = vadd.f32 %v2796_v57, %v8385_v50  ;;  %v3620_v50 = vsel %vm679_vm1, %v3617_v52, %v3619_v47  ;;  %v3941_v52 = vunpack.c.l.b16 %v3922_v41  ;;  %v4111_v57 = vsel %vm1168_vm3, %v4108_v24, %v4110_v2 }
 0x1f0   : > { %v2647_v29 = vpop.f32.mrf.mxu2  ;;  %v8571_v48 = vpop.f32.mrf.mxu0 }
 0x1f1   : > { %v8569_v9 = vadd.f32 %v2647_v29, %v2533_v22  ;;  %v2521_v8 = vpop.f32.mrf.mxu1  ;;  %v8592_v13 = vadd.f32 %v8489_v43, %v2820_v37  ;;  %v3942_v39 = vpack.c.b16 %v3760_v42, %v3941_v52  ;;  %v6857_v42 = vld [vmem:[%s9110_s3 + $0x648] sm:$0xff]  ;;  %v6856_v22 = vld [vmem:[%s9110_s3 + $0x640] sm:$0xff] }
 0x1f2   : > { %v2534_v63 = vadd.f32 %v2521_v8, %v8497_v25  ;;  %v6858_v25 = vld [vmem:[%s9110_s3 + $0x650] sm:$0xff] }
 0x1f3   : > { %3419 = vmatmul.bf16.gmra.mxu3 %v3337_v20  ;;  %4179 = vmatmul.bf16.vlgmr.msra.gmra.mxu0 %v4109_v51  ;;  %v3943_v11 = vrot.slane %v3942_v39, 2  ;;  %v3769_v20 = vunpack.c.l.b16 %v3730_v0  ;;  %v4256_v0 = vrot.slane %v4254_v58, 2  ;;  %v4410_v58 = vrot.slane %v8608_v19, 3 }
 0x1f4   : > { %3694 = vmatmul.bf16.gmra.mxu1 %v3620_v50  ;;  %4347 = vmatpush.bf16.msrb.mxu0 %v6858_v25  ;;  %v8648_v50 = vld [vmem:[%s7108_s14 + $0x20] sm:$0xff] }
 0x1f5   : > { %3896 = vmatmul.bf16.gmra.mxu2 %v3810_v4  ;;  %6906 = vmatpush.bf16.msra.mxu1 %v6858_v25  ;;  %v3945_v34 = vsel %vm1168_vm3, %v3943_v11, %v3944_v59  ;;  %v8642_v24 = vpack.c.b16 %v3769_v20, %v3769_v20  ;;  %v4112_v52 = vrot.slane %v8648_v50, 2  ;;  %v4408_v20 = vrot.slane %v8549_v38, 3 }
 0x1f6   : > { %v2799_v35 = vpop.f32.mrf.mxu3 }
 0x1f7   : > { %v2821_v43 = vadd.f32 %v2799_v35, %v8418_v62  ;;  %v3821_v4 = vshll.u32 %v8642_v24, 16 }
 0x1f8   : > { %v2650_v28 = vpop.f32.mrf.mxu2  ;;  %v8603_v55 = vpop.f32.mrf.mxu0  ;;  %4348 = vmatpush.bf16.msrb.mxu0 %v6857_v42 }
 0x1f9   : > { %v8601_v26 = vadd.f32 %v2650_v28, %v2534_v63  ;;  %v2523_v7 = vpop.f32.mrf.mxu1  ;;  %v2992_v62 = vadd.f32 %v8516_v44, %v2821_v43  ;;  %v3621_v44 = vrot.slane %v8611_v1, 1  ;;  %6907 = vmatpush.bf16.msra.mxu1 %v6857_v42  ;;  %v3946_v63 = vrot.slane %v8466_v32, 2  ;;  %v4386_v1 = vld [vmem:[%s7108_s14 + $0x8] sm:$0x8] }
 0x1fa   : > { %v2535_v36 = vadd.f32 %v2523_v7, %v8529_v14  ;;  %v3823_v54 = vrot.slane %v3821_v4, 2  ;;  %v4405_v61 = vunpack.c.l.b16 %v4386_v1  ;;  %v4061_v4 = vld [vmem:[%s7108_s14 + $0x30] sm:$0x1]  ;;  %v3950_v1 = vrot.slane %v8588_v18, 2 }
 0x1fb   : > { %v3622_v37 = vsel %vm679_vm1, %v3619_v47, %v3621_v44  ;;  %v3947_v25 = vsel %vm1168_vm3, %v3944_v59, %v3946_v63  ;;  %v4411_v18 = vsel %vm1634_vm4, %v4408_v20, %v4410_v58 }
 0x1fc   : > { %4349 = vmatpush.bf16.msrb.mxu0 %v6856_v22 }
 0x1fd   : > { %6908 = vmatpush.bf16.msra.mxu1 %v6856_v22 }
 0x1fe   : > { %v2801_v14 = vpop.f32.mrf.mxu3 }
 0x1ff   : > { %v2822_v5 = vadd.f32 %v2801_v14, %v8450_v46  ;;  %v3819_v46 = vsel %vm1000_vm2, %v8566_v49, %v3818_v31 }
 0x200   : > { %v2652_v53 = vpop.f32.mrf.mxu2  ;;  %v2980_v60 = vpop.f32.mrf.mxu0 }
 0x201   : > { %v8629_v33 = vadd.f32 %v2652_v53, %v2535_v36  ;;  %v3094_v29 = vpop.f32.mrf.mxu1  ;;  %v2993_v51 = vadd.f32 %v8546_v23, %v2822_v5  ;;  %v4257_v36 = vshll.u32 %v8608_v19, 16  ;;  %v4406_v5 = vpack.c.b16 %v4091_v45, %v4405_v61 }
 0x202   : > { %v3119_v21 = vadd.f32 %v3094_v29, %v8559_v16  ;;  %v4237_v19 = vshrl.u32 %v8553_v6, 16 }
 0x203   : > { %4015 = vmatmul.bf16.vlgmr.msra.gmra.mxu3 %v3945_v34  ;;  %4184 = vmatmul.bf16.gmra.mxu0 %v4111_v57  ;;  %v4259_v53 = vrot.slane %v4257_v36, 3  ;;  %v3948_v57 = vrot.slane %v8525_v27, 2 }
 0x204   : > { %3699 = vmatmul.bf16.gmra.mxu1 %v3622_v37 }
 0x205   : > { %3901 = vmatmul.bf16.gmra.mxu2 %v3819_v46  ;;  %v4260_v37 = vor.u32 %v4259_v53, %v4256_v0  ;;  %v4407_v46 = vrot.slane %v4406_v5, 3  ;;  %v3949_v45 = vsel %vm1168_vm3, %v3946_v63, %v3948_v57  ;;  %v4266_v63 = vshll.u32 %v8648_v50, 16 }
 0x206   : > { %v2804_v30 = vpop.f32.mrf.mxu3 }
 0x207   : > { %v2823_v47 = vadd.f32 %v2804_v30, %v8487_v10 }
 0x208   : > { %v3243_v15 = vpop.f32.mrf.mxu2  ;;  %v2982_v49 = vpop.f32.mrf.mxu0 }
 0x209   : > { %v8645_v8 = vadd.f32 %v3243_v15, %v3119_v21  ;;  %v3096_v23 = vpop.f32.mrf.mxu1  ;;  %v2994_v16 = vadd.f32 %v8571_v48, %v2823_v47  ;;  %v4113_v48 = vsel %vm1168_vm3, %v4110_v2, %v4112_v52  ;;  %v8673_v2 = vld [vmem:[%s7108_s14 + $0x28] sm:$0xff] }
 0x20a   : > { %v3120_v41 = vadd.f32 %v3096_v23, %v8592_v13  ;;  %v3824_v13 = vsel %vm1000_vm2, %v3818_v31, %v3823_v54  ;;  %v4250_v31 = vrot.slane %v4248_v56, 3  ;;  %v4409_v23 = vsel %vm1634_vm4, %v4407_v46, %v4408_v20 }
 0x20b   : > { %v4263_v54 = vshrl.u32 %v8648_v50, 16  ;;  %v4272_v0 = vshrl.u32 %v8673_v2, 16  ;;  %v4275_v53 = vshll.u32 %v8673_v2, 16 }
 0x20d   : > { %v4274_v20 = vrot.slane %v4272_v0, 2 }
 0x20e   : > { %v2806_v10 = vpop.f32.mrf.mxu3 }
 0x20f   : > { %v2824_v3 = vadd.f32 %v2806_v10, %v8514_v40  ;;  %v4245_v40 = vshrl.u32 %v8549_v38, 16 }
 0x210   : > { %v3245_v35 = vpop.f32.mrf.mxu2  ;;  %v8658_v43 = vpop.f32.mrf.mxu0 }
 0x211   : > { %v8656_v28 = vadd.f32 %v3245_v35, %v3120_v41  ;;  %v3099_v39 = vpop.f32.mrf.mxu1  ;;  %v2995_v32 = vadd.f32 %v8603_v55, %v2824_v3 }
 0x212   : > { %v3121_v7 = vadd.f32 %v3099_v39, %v2992_v62 }
 0x213   : > { %4020 = vmatmul.bf16.gmra.mxu3 %v3947_v25  ;;  %4189 = vmatmul.bf16.gmra.mxu0 %v4113_v48 }
 0x214   : > { %3704 = vmatmul.bf16.gmra.mxu1 %v3621_v44  ;;  %v4247_v44 = vrot.slane %v4245_v40, 2 }
 0x215   : > { %3906 = vmatmul.bf16.gmra.mxu2 %v3824_v13 }
 0x216   : > { %v2809_v42 = vpop.f32.mrf.mxu3  ;;  %v8679_v29 = vor.u32 %v4250_v31, %v4247_v44 }
 0x217   : > { %v2825_v11 = vadd.f32 %v2809_v42, %v8544_v12  ;;  %v4114_v12 = vrot.slane %v8673_v2, 2 }
 0x218   : > { %v3248_v55 = vpop.f32.mrf.mxu2  ;;  %v2987_v59 = vpop.f32.mrf.mxu0 }
 0x219   : > { %v8670_v62 = vadd.f32 %v3248_v55, %v3121_v7  ;;  %v3101_v14 = vpop.f32.mrf.mxu1  ;;  %v2996_v22 = vadd.f32 %v2980_v60, %v2825_v11  ;;  %v4115_v27 = vsel %vm1168_vm3, %v4112_v52, %v4114_v12  ;;  %v3951_v55 = vsel %vm1168_vm3, %v3948_v57, %v3950_v1 }
 0x21a   : > { %v3122_v34 = vadd.f32 %v3101_v14, %v2993_v51  ;;  %v4261_v51 = vsel %vm1462_vm5, %v8679_v29, %v4260_v37 }
 0x21e   : > { %v2811_v21 = vpop.f32.mrf.mxu3 }
 0x21f   : > { %v2826_v30 = vadd.f32 %v2811_v21, %v8569_v9  ;;  %v4100_v9 = vunpack.c.l.b16 %v4061_v4  ;;  %v4277_v21 = vrot.slane %v4275_v53, 3 }
 0x220   : > { %v3250_v47 = vpop.f32.mrf.mxu2  ;;  %v3527_v17 = vpop.f32.mrf.mxu0 }
 0x221   : > { %v8683_v15 = vadd.f32 %v3250_v47, %v3122_v34  ;;  %v3104_v60 = vpop.f32.mrf.mxu1  ;;  %v2997_v41 = vadd.f32 %v2982_v49, %v2826_v30  ;;  %v4106_v48 = vpack.c.b16 %v4100_v9, %v4100_v9  ;;  %v4265_v49 = vrot.slane %v4263_v54, 2 }
 0x222   : > { %v3123_v38 = vadd.f32 %v3104_v60, %v2994_v16  ;;  %v4268_v16 = vrot.slane %v4266_v63, 3  ;;  %v4278_v60 = vor.u32 %v4277_v21, %v4274_v20 }
 0x223   : > { %4025 = vmatmul.bf16.gmra.mxu3 %v3949_v45  ;;  %4194 = vmatmul.bf16.gmra.mxu0 %v4115_v27  ;;  %v4116_v40 = vrot.slane %v4106_v48, 2  ;;  %v4215_v45 = vld [vmem:[%s7108_s14 + $0x30] sm:$0x3] }
 0x224   : > { %4355 = vmatmul.bf16.vlgmr.msra.gmra.mxu1 %v4261_v51  ;;  %v4269_v56 = vor.u32 %v4268_v16, %v4265_v49  ;;  %v4412_v51 = vrot.slane %v8648_v50, 3 }
 0x225   : > { %4479 = vmatmul.bf16.vlgmr.msra.gmra.mxu2 %v4409_v23  ;;  %v4117_v44 = vsel %vm1168_vm3, %v4114_v12, %v4116_v40  ;;  %v4234_v23 = vunpack.c.l.b16 %v4215_v45 }
 0x226   : > { %v2814_v10 = vpop.f32.mrf.mxu3 }
 0x227   : > { %v2827_v52 = vadd.f32 %v2814_v10, %v8601_v26  ;;  %v4413_v10 = vsel %vm1634_vm4, %v4410_v58, %v4412_v51 }
 0x228   : > { %v3253_v3 = vpop.f32.mrf.mxu2  ;;  %v3529_v25 = vpop.f32.mrf.mxu0 }
 0x229   : > { %v8694_v35 = vadd.f32 %v3253_v3, %v3123_v38  ;;  %v3106_v39 = vpop.f32.mrf.mxu1  ;;  %v2998_v13 = vadd.f32 %v8658_v43, %v2827_v52  ;;  %v4270_v43 = vsel %vm1462_vm5, %v4260_v37, %v4269_v56  ;;  %v4235_v52 = vpack.c.b16 %v4234_v23, %v4234_v23 }
 0x22a   : > { %v3124_v7 = vadd.f32 %v3106_v39, %v2995_v32 }
 0x22b   : > { %v4284_v48 = vshll.u32 %v4235_v52, 16 }
 0x22e   : > { %v2816_v36 = vpop.f32.mrf.mxu3 }
 0x22f   : > { %v2828_v26 = vadd.f32 %v2816_v36, %v8629_v33  ;;  %v4240_v33 = vshll.u32 %v8553_v6, 16  ;;  %v3952_v6 = vrot.slane %v8642_v24, 2  ;;  %v4279_v24 = vsel %vm1462_vm5, %v4269_v56, %v4278_v60 }
 0x230   : > { %v3255_v61 = vpop.f32.mrf.mxu2  ;;  %v3532_v11 = vpop.f32.mrf.mxu0  ;;  %v4286_v56 = vrot.slane %v4284_v48, 3 }
 0x231   : > { %v8700_v42 = vadd.f32 %v3255_v61, %v3124_v7  ;;  %v3109_v31 = vpop.f32.mrf.mxu1  ;;  %v2999_v32 = vadd.f32 %v2987_v59, %v2828_v26  ;;  %v4242_v37 = vrot.slane %v4240_v33, 3  ;;  %v3953_v63 = vsel %vm1168_vm3, %v3950_v1, %v3952_v6 }
 0x232   : > { %v3125_v14 = vadd.f32 %v3109_v31, %v2996_v22  ;;  %v4239_v22 = vrot.slane %v4237_v19, 2 }
 0x233   : > { %4030 = vmatmul.bf16.gmra.mxu3 %v3951_v55  ;;  %4199 = vmatmul.bf16.gmra.mxu0 %v4117_v44 }
 0x234   : > { %4360 = vmatmul.bf16.gmra.mxu1 %v4270_v43  ;;  %v4243_v27 = vor.u32 %v4242_v37, %v4239_v22 }
 0x235   : > { %4484 = vmatmul.bf16.gmra.mxu2 %v4411_v18 }
 0x236   : > { %v3400_v5 = vpop.f32.mrf.mxu3 }
 0x237   : > { %v3425_v57 = vadd.f32 %v3400_v5, %v8645_v8 }
 0x238   : > { %v3258_v34 = vpop.f32.mrf.mxu2  ;;  %v3534_v59 = vpop.f32.mrf.mxu0 }
 0x239   : > { %v8711_v12 = vadd.f32 %v3258_v34, %v3125_v14  ;;  %v3111_v46 = vpop.f32.mrf.mxu1  ;;  %v3552_v30 = vadd.f32 %v3527_v17, %v3425_v57  ;;  %v4252_v17 = vsel %vm1462_vm5, %v4243_v27, %v8679_v29  ;;  %v4416_v34 = vrot.slane %v4235_v52, 3 }
 0x23a   : > { %v3126_v47 = vadd.f32 %v3111_v46, %v2997_v41 }
 0x23e   : > { %v3402_v4 = vpop.f32.mrf.mxu3 }
 0x23f   : > { %v3426_v38 = vadd.f32 %v3402_v4, %v8656_v28  ;;  %v4281_v28 = vshrl.u32 %v4235_v52, 16 }
 0x240   : > { %v3260_v8 = vpop.f32.mrf.mxu2  ;;  %v3537_v54 = vpop.f32.mrf.mxu0 }
 0x241   : > { %v8717_v9 = vadd.f32 %v3260_v8, %v3126_v47  ;;  %v3114_v41 = vpop.f32.mrf.mxu1  ;;  %v3553_v50 = vadd.f32 %v3529_v25, %v3426_v38  ;;  %v4283_v40 = vrot.slane %v4281_v28, 2  ;;  %v4414_v25 = vrot.slane %v8673_v2, 3 }
 0x242   : > { %v3127_v3 = vadd.f32 %v3114_v41, %v2998_v13 }
 0x243   : > { %4035 = vmatmul.bf16.gmra.mxu3 %v3953_v63  ;;  %4350 = vmatmul.bf16.vlgmr.msrb.gmra.mxu0 %v4252_v17  ;;  %v4287_v26 = vor.u32 %v4286_v56, %v4283_v40  ;;  %v4417_v21 = vsel %vm1634_vm4, %v4414_v25, %v4416_v34 }
 0x244   : > { %4365 = vmatmul.bf16.gmra.mxu1 %v4279_v24 }
 0x245   : > { %4489 = vmatmul.bf16.gmra.mxu2 %v4413_v10  ;;  %v4288_v18 = vsel %vm1462_vm5, %v4278_v60, %v4287_v26 }
 0x246   : > { %v3405_v39 = vpop.f32.mrf.mxu3 }
 0x247   : > { %v3427_v16 = vadd.f32 %v3405_v39, %v8670_v62  ;;  %v4415_v62 = vsel %vm1634_vm4, %v4412_v51, %v4414_v25  ;;  %v4515_v39 = vlaneseq }
 0x248   : > { %v3263_v49 = vpop.f32.mrf.mxu2  ;;  %v3539_v29 = vpop.f32.mrf.mxu0 }
 0x249   : > { %v3276_v7 = vadd.f32 %v3263_v49, %v3127_v3  ;;  %v3116_v1 = vpop.f32.mrf.mxu1  ;;  %v3554_v36 = vadd.f32 %v3532_v11, %v3427_v16  ;;  %v8748_v49 = vshrl.u32 %v4515_v39, 7 }
 0x24a   : > { %v3128_v58 = vadd.f32 %v3116_v1, %v2999_v32 }
 0x24e   : > { %v3407_v13 = vpop.f32.mrf.mxu3 }
 0x24f   : > { %v3428_v55 = vadd.f32 %v3407_v13, %v8683_v15 }
 0x250   : > { %v3265_v61 = vpop.f32.mrf.mxu2  ;;  %v3542_v31 = vpop.f32.mrf.mxu0 }
 0x251   : > { %v3277_v44 = vadd.f32 %v3265_v61, %v3128_v58  ;;  %v3685_v43 = vpop.f32.mrf.mxu1  ;;  %v3555_v14 = vadd.f32 %v3534_v59, %v3428_v55 }
 0x252   : > { %v3710_v19 = vadd.f32 %v3685_v43, %v3552_v30 }
 0x254   : > { %4370 = vmatmul.bf16.gmra.mxu1 %v4288_v18 }
 0x255   : > { %4494 = vmatmul.bf16.gmra.mxu2 %v4415_v62 }
 0x256   : > { %v3410_v11 = vpop.f32.mrf.mxu3 }
 0x257   : > { %v3429_v32 = vadd.f32 %v3410_v11, %v8694_v35 }
 0x258   : > { %v3887_v33 = vpop.f32.mrf.mxu2  ;;  %v3544_v0 = vpop.f32.mrf.mxu0 }
 0x259   : > { %v8730_v2 = vadd.f32 %v3887_v33, %v3710_v19  ;;  %v3687_v53 = vpop.f32.mrf.mxu1  ;;  %v3556_v15 = vadd.f32 %v3537_v54, %v3429_v32  ;;  %v8763_v32 = vadd.s32 24, %v8748_v49 }
 0x25a   : > { %v3711_v5 = vadd.f32 %v3687_v53, %v3553_v50 }
 0x25b   : > { %v4616_v34 = vand.u32 65535, %v8763_v32 }
 0x25e   : > { %v3412_v57 = vpop.f32.mrf.mxu3 }
 0x25f   : > { %v3430_v22 = vadd.f32 %v3412_v57, %v8700_v42 }
 0x260   : > { %v3889_v37 = vpop.f32.mrf.mxu2  ;;  %v3547_v59 = vpop.f32.mrf.mxu0 }
 0x261   : > { %v8733_v46 = vadd.f32 %v3889_v37, %v3711_v5  ;;  %v3690_v20 = vpop.f32.mrf.mxu1  ;;  %v3557_v30 = vadd.f32 %v3539_v29, %v3430_v22 }
 0x262   : > { %v3712_v35 = vadd.f32 %v3690_v20, %v3554_v36 }
 0x265   : > { %4499 = vmatmul.bf16.gmra.mxu2 %v4417_v21 }
 0x266   : > { %v3415_v47 = vpop.f32.mrf.mxu3 }
 0x267   : > { %v3431_v45 = vadd.f32 %v3415_v47, %v8711_v12 }
 0x268   : > { %v3892_v6 = vpop.f32.mrf.mxu2  ;;  %v3549_v60 = vpop.f32.mrf.mxu0 }
 0x269   : > { %v8737_v27 = vadd.f32 %v3892_v6, %v3712_v35  ;;  %v3692_v51 = vpop.f32.mrf.mxu1  ;;  %v3558_v23 = vadd.f32 %v3542_v31, %v3431_v45  ;;  %v4529_v45 = vand.u32 65535, %v8748_v49 }
 0x26a   : > { %v3713_v42 = vadd.f32 %v3692_v51, %v3555_v14  ;;  %v7014_v14 = vmov 0  }
 0x26e   : > { %v3417_v4 = vpop.f32.mrf.mxu3 }
 0x26f   : > { %v3432_v8 = vadd.f32 %v3417_v4, %v8717_v9  ;;  %v8751_v9 = vadd.s32 16, %v8748_v49  ;;  %v4533_v4 = vmul.u32 52428, %v4529_v45 }
 0x270   : > { %v3894_v38 = vpop.f32.mrf.mxu2  ;;  %v4180_v63 = vpop.f32.mrf.mxu0 }
 0x271   : > { %v8740_v54 = vadd.f32 %v3894_v38, %v3713_v42  ;;  %v3695_v17 = vpop.f32.mrf.mxu1  ;;  %v3559_v41 = vadd.f32 %v3544_v0, %v3432_v8  ;;  %v4588_v25 = vshrl.u32 %v8751_v9, 16  ;;  %v4530_v42 = vshrl.u32 %v8748_v49, 16 }
 0x272   : > { %v3714_v24 = vadd.f32 %v3695_v17, %v3556_v15 }
 0x273   : > { %v4592_v55 = vmul.u32 52429, %v4588_v25  ;;  %v4593_v43 = vmul.u32 52428, %v4588_v25  ;;  %v4536_v25 = vshll.u32 %v4533_v4, 16 }
 0x275   : > { %v4596_v18 = vshll.u32 %v4592_v55, 16  ;;  %v4597_v35 = vshrl.u32 %v4592_v55, 16 }
 0x276   : > { %v3420_v10 = vpop.f32.mrf.mxu3 }
 0x277   : > { %v3433_v52 = vadd.f32 %v3420_v10, %v3276_v7  ;;  %v4587_v7 = vand.u32 65535, %v8751_v9 }
 0x278   : > { %v3897_v12 = vpop.f32.mrf.mxu2  ;;  %v8744_v3 = vpop.f32.mrf.mxu0 }
 0x279   : > { %v8742_v50 = vadd.f32 %v3897_v12, %v3714_v24  ;;  %v3697_v28 = vpop.f32.mrf.mxu1  ;;  %v8746_v48 = vadd.f32 %v3547_v59, %v3433_v52  ;;  %v4591_v13 = vmul.u32 52428, %v4587_v7  ;;  %v4590_v61 = vmul.u32 52429, %v4587_v7 }
 0x27a   : > { %v3715_v16 = vadd.f32 %v3697_v28, %v3557_v30  ;;  %v4617_v59 = vshrl.u32 %v8763_v32, 16  ;;  %v4620_v30 = vmul.u32 52428, %v4616_v34  ;;  %v4532_v52 = vmul.u32 52429, %v4529_v45 }
 0x27b   : > { %v4594_v31 = vshll.u32 %v4591_v13, 16  ;;  %v4595_v22 = vshrl.u32 %v4591_v13, 16  ;;  %v4534_v12 = vmul.u32 52429, %v4530_v42  ;;  %v8779_v28 = vadd.s32 32, %v8748_v49 }
 0x27c   : > { %v4621_v47 = vmul.u32 52429, %v4617_v59  ;;  %v4622_v51 = vmul.u32 52428, %v4617_v59  ;;  %vm4540_vm10 = vc.u32 %v4532_v52, %v4536_v25 }
 0x27d   : > { %vm4598_vm6 = vc.u32 %v4590_v61, %v4594_v31  ;;  %v4600_v11 = vadd.s32 %v4594_v31, %v4590_v61  ;;  %v4538_v61 = vshll.u32 %v4534_v12, 16  ;;  %v4542_v31 = vadd.s32 %v4536_v25, %v4532_v52 }
 0x27e   : > { %v3422_v29 = vpop.f32.mrf.mxu3  ;;  %v4599_v19 = vsel %vm4598_vm6, 1, %v7014_v14  ;;  %v4626_v55 = vshrl.u32 %v4621_v47, 16 }
 0x27f   : > { %v3434_v1 = vadd.f32 %v3422_v29, %v3277_v44  ;;  %v4601_v53 = vadd.s32 %v4599_v19, %v4593_v43  ;;  %vm4602_vm7 = vc.u32 %v4600_v11, %v4596_v18  ;;  %v4645_v43 = vand.u32 65535, %v8779_v28 }
 0x280   : > { %v3899_v40 = vpop.f32.mrf.mxu2  ;;  %v8756_v36 = vpop.f32.mrf.mxu0  ;;  %v4603_v37 = vsel %vm4602_vm7, 1, %v7014_v14  ;;  %vm4544_vm11 = vc.u32 %v4542_v31, %v4538_v61  ;;  %v4646_v11 = vshrl.u32 %v8779_v28, 16 }
 0x281   : > { %v8754_v56 = vadd.f32 %v3899_v40, %v3715_v16  ;;  %v3700_v58 = vpop.f32.mrf.mxu1  ;;  %v8758_v26 = vadd.f32 %v3549_v60, %v3434_v1  ;;  %v4605_v21 = vadd.s32 %v4603_v37, %v4601_v53  ;;  %v4623_v60 = vshll.u32 %v4620_v30, 16 }
 0x282   : > { %v3716_v44 = vadd.f32 %v3700_v58, %v3558_v23  ;;  %v4625_v23 = vshll.u32 %v4621_v47, 16  ;;  %v4624_v40 = vshrl.u32 %v4620_v30, 16  ;;  %v4535_v58 = vmul.u32 52428, %v4530_v42 }
 0x283   : > { %v4606_v6 = vadd.s32 %v4605_v21, %v4595_v22  ;;  %v4545_v22 = vsel %vm4544_vm11, 1, %v7014_v14  ;;  %v4649_v37 = vmul.u32 52428, %v4645_v43  ;;  %v4539_v47 = vshrl.u32 %v4534_v12, 16 }
 0x285   : > { %v4607_v17 = vadd.s32 %v4606_v6, %v4597_v35  ;;  %v4648_v6 = vmul.u32 52429, %v4645_v43  ;;  %v4652_v42 = vshll.u32 %v4649_v37, 16 }
 0x286   : > { %v4016_v62 = vpop.f32.mrf.mxu3 }
 0x287   : > { %v4041_v0 = vadd.f32 %v4016_v62, %v8730_v2  ;;  %v4619_v2 = vmul.u32 52429, %v4616_v34  ;;  %v4608_v29 = vshrl.u32 %v4607_v17, 3  ;;  %v4541_v62 = vsel %vm4540_vm10, 1, %v7014_v14 }
 0x288   : > { %v3902_v33 = vpop.f32.mrf.mxu2  ;;  %v8768_v5 = vpop.f32.mrf.mxu0  ;;  %v4543_v19 = vadd.s32 %v4541_v62, %v4535_v58  ;;  %vm4656_vm14 = vc.u32 %v4648_v6, %v4652_v42 }
 0x289   : > { %v8766_v15 = vadd.f32 %v3902_v33, %v3716_v44  ;;  %v3702_v57 = vpop.f32.mrf.mxu1  ;;  %v8773_v20 = vadd.f32 %v4180_v63, %v4041_v0  ;;  %vm4627_vm8 = vc.u32 %v4619_v2, %v4623_v60  ;;  %v4629_v63 = vadd.s32 %v4623_v60, %v4619_v2 }
 0x28a   : > { %v3717_v8 = vadd.f32 %v3702_v57, %v3559_v41  ;;  %v4628_v10 = vsel %vm4627_vm8, 1, %v7014_v14  ;;  %v4609_v18 = vmul.u32 10, %v4608_v29  ;;  %v4537_v57 = vshrl.u32 %v4533_v4, 16 }
 0x28b   : > { %v4630_v1 = vadd.s32 %v4628_v10, %v4622_v51  ;;  %vm4631_vm9 = vc.u32 %v4629_v63, %v4625_v23  ;;  %v4547_v45 = vadd.s32 %v4545_v22, %v4543_v19  ;;  %v4651_v23 = vmul.u32 52428, %v4646_v11 }
 0x28c   : > { %v4632_v7 = vsel %vm4631_vm9, 1, %v7014_v14  ;;  %v4610_v35 = vsub.s32 %v8751_v9, %v4609_v18  ;;  %v4658_v9 = vadd.s32 %v4652_v42, %v4648_v6  ;;  %v4657_v52 = vsel %vm4656_vm14, 1, %v7014_v14 }
 0x28d   : > { %v4634_v13 = vadd.s32 %v4632_v7, %v4630_v1  ;;  %v4548_v51 = vadd.s32 %v4547_v45, %v4537_v57  ;;  %v4653_v1 = vshrl.u32 %v4649_v37, 16 }
 0x28e   : > { %v4018_v38 = vpop.f32.mrf.mxu3  ;;  %vm4818_vm12 = vcmp.ne.s32.totalorder %v4610_v35, 0  ;;  %vm4828_vm13 = vcmp.lt.s32.totalorder %v4610_v35, 0 }
 0x28f   : > { %v4635_v44 = vadd.s32 %v4634_v13, %v4624_v40  ;;  %v4042_v59 = vadd.f32 %v4018_v38, %v8733_v46  ;;  %v4549_v38 = vadd.s32 %v4548_v51, %v4539_v47  ;;  %vm8805_vm15 = vmand %vm4828_vm13, %vm4818_vm12 }
 0x290   : > { %v3904_v24 = vpop.f32.mrf.mxu2  ;;  %v8783_v16 = vpop.f32.mrf.mxu0 }
 0x291   : > { %v8781_v39 = vadd.f32 %v3904_v24, %v3717_v8  ;;  %v3705_v41 = vpop.f32.mrf.mxu1  ;;  %v4636_v53 = vadd.s32 %v4635_v44, %v4626_v55  ;;  %v8798_v46 = vadd.f32 %v8744_v3, %v4042_v59  ;;  %v8801_v8 = vadd.s32 8, %v8748_v49 }
 0x292   : > { %v3718_v33 = vadd.f32 %v3705_v41, %v8746_v48  ;;  %v4650_v48 = vmul.u32 52429, %v4646_v11  ;;  %v4848_v24 = vadd.s32 10, %v4610_v35  ;;  %v4550_v3 = vshrl.u32 %v4549_v38, 3 }
 0x293   : > { %v4637_v60 = vshrl.u32 %v4636_v53, 3  ;;  %v4659_v41 = vadd.s32 %v4657_v52, %v4651_v23  ;;  %v4558_v58 = vand.u32 65535, %v8801_v8  ;;  %v4559_v44 = vshrl.u32 %v8801_v8, 16 }
 0x294   : > { %v4654_v4 = vshll.u32 %v4650_v48, 16  ;;  %v4551_v61 = vmul.u32 10, %v4550_v3  ;;  %v4655_v55 = vshrl.u32 %v4650_v48, 16  ;;  %v4858_v43 = vsel %vm8805_vm15, %v4848_v24, %v4610_v35 }
 0x295   : > { %v4638_v10 = vmul.u32 10, %v4637_v60  ;;  %v4562_v19 = vmul.u32 52428, %v4558_v58  ;;  %v8825_v11 = vadd.s32 40, %v8748_v49  ;;  %vm8830_vm1 = vcmp.lt.s32.totalorder %v4858_v43, 8 }
 0x296   : > { %v4021_v0 = vpop.f32.mrf.mxu3  ;;  %vm4660_vm0 = vc.u32 %v4658_v9, %v4654_v4  ;;  %v7015_v52 = vmov 0.0  }
 0x297   : > { %v4043_v25 = vadd.f32 %v4021_v0, %v8737_v27  ;;  %v8821_v18 = vsub.s32 %v8763_v32, %v4638_v10  ;;  %v4563_v27 = vmul.u32 52429, %v4559_v44  ;;  %v4565_v57 = vshll.u32 %v4562_v19, 16 }
 0x298   : > { %v3907_v34 = vpop.f32.mrf.mxu2  ;;  %v8794_v30 = vpop.f32.mrf.mxu0  ;;  %v4674_v37 = vand.u32 65535, %v8825_v11  ;;  %v4675_v47 = vshrl.u32 %v8825_v11, 16  ;;  %v4566_v23 = vshrl.u32 %v4562_v19, 16 }
 0x299   : > { %v8792_v21 = vadd.f32 %v3907_v34, %v3718_v33  ;;  %v3707_v2 = vpop.f32.mrf.mxu1  ;;  %v4561_v33 = vmul.u32 52429, %v4558_v58  ;;  %v8828_v0 = vadd.f32 %v8756_v36, %v4043_v25  ;;  %v8835_v34 = vsub.s32 %v8748_v49, %v4551_v61 }
 0x29a   : > { %v3719_v17 = vadd.f32 %v3707_v2, %v8758_v26  ;;  %v4661_v26 = vsel %vm4660_vm0, 1, %v7014_v14  ;;  %vm4819_vm2 = vcmp.ne.s32.totalorder %v8821_v18, 0  ;;  %v4567_v22 = vshll.u32 %v4563_v27, 16 }
 0x29b   : > { %v4663_v31 = vadd.s32 %v4661_v26, %v4659_v41  ;;  %vm4829_vm4 = vcmp.lt.s32.totalorder %v8821_v18, 0  ;;  %v4564_v2 = vmul.u32 52428, %v4559_v44  ;;  %v4849_v48 = vadd.s32 10, %v8821_v18 }
 0x29c   : > { %vm4569_vm5 = vc.u32 %v4561_v33, %v4565_v57  ;;  %v4571_v60 = vadd.s32 %v4565_v57, %v4561_v33  ;;  %vm4816_vm6 = vcmp.ne.s32.totalorder %v8835_v34, 0  ;;  %vm4826_vm7 = vcmp.lt.s32.totalorder %v8835_v34, 0  ;;  %vm8853_vm8 = vmand %vm4829_vm4, %vm4819_vm2 }
 0x29d   : > { %v4664_v62 = vadd.s32 %v4663_v31, %v4653_v1  ;;  %v4677_v4 = vmul.u32 52429, %v4674_v37  ;;  %v4678_v38 = vmul.u32 52428, %v4674_v37  ;;  %v4679_v10 = vmul.u32 52429, %v4675_v47  ;;  %vm8881_vm10 = vmand %vm4826_vm7, %vm4816_vm6 }
 0x29e   : > { %v4023_v63 = vpop.f32.mrf.mxu3  ;;  %vm4573_vm9 = vc.u32 %v4571_v60, %v4567_v22  ;;  %v4680_v29 = vmul.u32 52428, %v4675_v47  ;;  %v8870_v1 = vadd.s32 48, %v8748_v49  ;;  %v4846_v41 = vadd.s32 10, %v8835_v34 }
 0x29f   : > { %v4665_v32 = vadd.s32 %v4664_v62, %v4655_v55  ;;  %v4044_v45 = vadd.f32 %v4023_v63, %v8740_v54  ;;  %v4570_v54 = vsel %vm4569_vm5, 1, %v7014_v14  ;;  %v4574_v24 = vsel %vm4573_vm9, 1, %v7014_v14 }
 0x2a0   : > { %v3909_v12 = vpop.f32.mrf.mxu2  ;;  %v8811_v7 = vpop.f32.mrf.mxu0  ;;  %v4572_v63 = vadd.s32 %v4570_v54, %v4564_v2  ;;  %v4681_v3 = vshll.u32 %v4678_v38, 16  ;;  %v4568_v26 = vshrl.u32 %v4563_v27, 16  ;;  %v4683_v55 = vshll.u32 %v4679_v10, 16 }
 0x2a1   : > { %v8809_v40 = vadd.f32 %v3909_v12, %v3719_v17  ;;  %v8816_v13 = vpop.f32.mrf.mxu1  ;;  %v4666_v36 = vshrl.u32 %v4665_v32, 3  ;;  %v8867_v12 = vsel %vm8830_vm1, 1.0, %v7015_v52  ;;  %v4208_v25 = vadd.f32 %v8768_v5, %v4044_v45 }
 0x2a2   : > { %v4576_v58 = vadd.s32 %v4574_v24, %v4572_v63  ;;  %vm4685_vm11 = vc.u32 %v4677_v4, %v4681_v3  ;;  %v4687_v31 = vadd.s32 %v4681_v3, %v4677_v4  ;;  %v4682_v44 = vshrl.u32 %v4678_v38, 16 }
 0x2a3   : > { %v4667_v51 = vmul.u32 10, %v4666_v36  ;;  %v4686_v62 = vsel %vm4685_vm11, 1, %v7014_v14  ;;  %v4703_v33 = vand.u32 65535, %v8870_v1  ;;  %v4856_v32 = vsel %vm8881_vm10, %v4846_v41, %v8835_v34 }
 0x2a4   : > { %v4688_v19 = vadd.s32 %v4686_v62, %v4680_v29  ;;  %vm4689_vm14 = vc.u32 %v4687_v31, %v4683_v55  ;;  %v4684_v36 = vshrl.u32 %v4679_v10, 16  ;;  %v4704_v47 = vshrl.u32 %v8870_v1, 16 }
 0x2a5   : > { %v8861_v17 = vsub.s32 %v8779_v28, %v4667_v51  ;;  %v4859_v28 = vsel %vm8853_vm8, %v4849_v48, %v8821_v18  ;;  %v4577_v18 = vadd.s32 %v4576_v58, %v4566_v23  ;;  %v4690_v22 = vsel %vm4689_vm14, 1, %v7014_v14 }
 0x2a6   : > { %v8839_v59 = vpop.f32.mrf.mxu3  ;;  %vm8893_vm15 = vcmp.lt.s32.totalorder %v4859_v28, 8  ;;  %v4692_v2 = vadd.s32 %v4690_v22, %v4688_v19  ;;  %v4706_v60 = vmul.u32 52429, %v4703_v33  ;;  %v4707_v51 = vmul.u32 52428, %v4703_v33 }
 0x2a7   : > { %vm4820_vm12 = vcmp.ne.s32.totalorder %v8861_v17, 0  ;;  %vm4830_vm13 = vcmp.lt.s32.totalorder %v8861_v17, 0  ;;  %v4578_v57 = vadd.s32 %v4577_v18, %v4568_v26  ;;  %v4850_v37 = vadd.s32 10, %v8861_v17 }
 0x2a8   : > { %v8841_v35 = vpop.f32.mrf.mxu2  ;;  %v8846_v6 = vpop.f32.mrf.mxu0  ;;  %vm8905_vm0 = vmand %vm4830_vm13, %vm4820_vm12  ;;  %v8910_v34 = vadd.s32 56, %v8748_v49  ;;  %v4378_v23 = vadd.f32 %v8816_v13, %v8828_v0  ;;  %v4045_v42 = vadd.f32 %v8839_v59, %v8742_v50  ;;  %v4693_v54 = vadd.s32 %v4692_v2, %v4682_v44 }
 0x2a9   : > { %v8858_v9 = vpop.f32.mrf.mxu1  ;;  %v4579_v48 = vshrl.u32 %v4578_v57, 3  ;;  %v8916_v4 = vmul.u32 52429, %v4704_v47  ;;  %v6599_v63 = vsel %vm8893_vm15, 1.0, %v7015_v52  ;;  %vm8921_vm1 = vcmp.lt.s32.totalorder %v4856_v32, 8 }
 0x2aa   : > { %v4710_v29 = vshll.u32 %v4707_v51, 16  ;;  %v4860_v13 = vsel %vm8905_vm0, %v4850_v37, %v8861_v17  ;;  %v4694_v0 = vadd.s32 %v4693_v54, %v4684_v36  ;;  %v4709_v50 = vmul.u32 52428, %v4704_v47 }
 0x2ab   : > { %v4580_v10 = vmul.u32 10, %v4579_v48  ;;  %v4732_v59 = vand.u32 65535, %v8910_v34  ;;  %v4712_v28 = vshll.u32 %v8916_v4, 16  ;;  %v4733_v26 = vshrl.u32 %v8910_v34, 16 }
 0x2ac   : > { %vm4714_vm2 = vc.u32 %v4706_v60, %v4710_v29  ;;  %v4716_v41 = vadd.s32 %v4710_v29, %v4706_v60  ;;  %v4209_v58 = vadd.f32 %v8783_v16, %v4045_v42  ;;  %v4695_v31 = vshrl.u32 %v4694_v0, 3 }
 0x2ad   : > { %v4715_v17 = vsel %vm4714_vm2, 1, %v7014_v14  ;;  %v4379_v18 = vadd.f32 %v8858_v9, %v4208_v25  ;;  %v6596_v62 = vsel %vm8921_vm1, 1.0, %v7015_v52  ;;  %v8941_v19 = vsub.s32 %v8801_v8, %v4580_v10 }
 0x2ae   : > { %v4028_v27 = vpop.f32.mrf.mxu3  ;;  %vm8946_vm4 = vcmp.lt.s32.totalorder %v4860_v13, 8  ;;  %v4696_v53 = vmul.u32 10, %v4695_v31  ;;  %v4717_v32 = vadd.s32 %v4715_v17, %v4709_v50  ;;  %v4711_v9 = vshrl.u32 %v4707_v51, 16 }
 0x2af   : > { %v4046_v44 = vadd.f32 %v4028_v27, %v8754_v56  ;;  %vm4718_vm5 = vc.u32 %v4716_v41, %v4712_v28  ;;  %v4736_v56 = vmul.u32 52428, %v4732_v59  ;;  %v8950_v25 = vmul.u32 52429, %v4733_v26 }
 0x2b0   : > { %v8885_v43 = vpop.f32.mrf.mxu2  ;;  %v8889_v5 = vpop.f32.mrf.mxu0  ;;  %v4697_v8 = vsub.s32 %v8825_v11, %v4696_v53  ;;  %v4713_v27 = vshrl.u32 %v8916_v4, 16  ;;  %v4735_v22 = vmul.u32 52429, %v4732_v59  ;;  %vm4817_vm6 = vcmp.ne.s32.totalorder %v8941_v19, 0 }
 0x2b1   : > { %v4361_v38 = vpop.f32.mrf.mxu1  ;;  %vm4827_vm7 = vcmp.lt.s32.totalorder %v8941_v19, 0  ;;  %v4739_v36 = vshll.u32 %v4736_v56, 16  ;;  %v4210_v47 = vadd.f32 %v8794_v30, %v4046_v44  ;;  %v4847_v11 = vadd.s32 10, %v8941_v19 }
 0x2b2   : > { %vm4821_vm8 = vcmp.ne.s32.totalorder %v4697_v8, 0  ;;  %vm4831_vm9 = vcmp.lt.s32.totalorder %v4697_v8, 0  ;;  %v4738_v51 = vmul.u32 52428, %v4733_v26  ;;  %vm8967_vm10 = vmand %vm4827_vm7, %vm4817_vm6  ;;  %v4851_v30 = vadd.s32 10, %v4697_v8 }
 0x2b3   : > { %vm4743_vm11 = vc.u32 %v4735_v22, %v4739_v36  ;;  %v4745_v4 = vadd.s32 %v4739_v36, %v4735_v22  ;;  %v4380_v24 = vadd.f32 %v4361_v38, %v4209_v58  ;;  %v6600_v29 = vsel %vm8946_vm4, 1.0, %v7015_v52  ;;  %vm8977_vm12 = vmand %vm4831_vm9, %vm4821_vm8 }
 0x2b4   : > { %v4744_v38 = vsel %vm4743_vm11, 1, %v7014_v14  ;;  %v4857_v26 = vsel %vm8967_vm10, %v4847_v11, %v8941_v19  ;;  %v8995_v58 = vadd.s32 64, %v8748_v49  ;;  %v4742_v44 = vshrl.u32 %v8950_v25, 16 }
 0x2b5   : > { %v4746_v41 = vadd.s32 %v4744_v38, %v4738_v51  ;;  %vm9003_vm14 = vcmp.lt.s32.totalorder %v4857_v26, 8  ;;  %v9015_v22 = vadd.s32 72, %v8748_v49 }
 0x2b6   : > { %v4031_v57 = vpop.f32.mrf.mxu3  ;;  %v4761_v33 = vand.u32 65535, %v8995_v58  ;;  %v4762_v19 = vshrl.u32 %v8995_v58, 16 }
 0x2b7   : > { %v4047_v2 = vadd.f32 %v4031_v57, %v8766_v15 }
 0x2b8   : > { %v4485_v3 = vpop.f32.mrf.mxu2  ;;  %v8932_v55 = vpop.f32.mrf.mxu0  ;;  %v4767_v49 = vmul.u32 52428, %v4762_v19 }
 0x2b9   : > { %v4507_v61 = vadd.f32 %v4485_v3, %v4378_v23  ;;  %v4363_v45 = vpop.f32.mrf.mxu1  ;;  %v4741_v23 = vshll.u32 %v8950_v25, 16  ;;  %v4211_v59 = vadd.f32 %v8811_v7, %v4047_v2  ;;  %v4740_v3 = vshrl.u32 %v4736_v56, 16 }
 0x2ba   : > { %v4764_v2 = vmul.u32 52429, %v4761_v33 }
 0x2bb   : > { %v8944_v16 = vmul.f32 %v8867_v12, %v4507_v61  ;;  %v4719_v12 = vsel %vm4718_vm5, 1, %v7014_v14  ;;  %vm4747_vm13 = vc.u32 %v4745_v4, %v4741_v23  ;;  %v4381_v61 = vadd.f32 %v4363_v45, %v4210_v47 }
 0x2bc   : > { %v4721_v37 = vadd.s32 %v4719_v12, %v4717_v32  ;;  %v4748_v7 = vsel %vm4747_vm13, 1, %v7014_v14  ;;  %v9012_v12 = vmul.u32 52429, %v4762_v19  ;;  %v6597_v45 = vsel %vm9003_vm14, 1.0, %v7015_v52 }
 0x2bd   : > { %4908 = vst [vmem:[%s7113_s19 + $0x10] sm:$0xff] %v8944_v16  ;;  %v4750_v17 = vadd.s32 %v4748_v7, %v4746_v41  ;;  %v4791_v41 = vshrl.u32 %v9015_v22, 16 }
 0x2be   : > { %v4722_v60 = vadd.s32 %v4721_v37, %v4711_v9  ;;  %v4033_v53 = vpop.f32.mrf.mxu3 }
 0x2bf   : > { %v4751_v56 = vadd.s32 %v4750_v17, %v4740_v3  ;;  %v9019_v47 = vadd.f32 %v4033_v53, %v8781_v39 }
 0x2c0   : > { %v4487_v48 = vpop.f32.mrf.mxu2  ;;  %v4351_v54 = vpop.f32.mrf.mxu0  ;;  %v4723_v0 = vadd.s32 %v4722_v60, %v4713_v27  ;;  %v4765_v27 = vmul.u32 52428, %v4761_v33 }
 0x2c1   : > { %v4508_v42 = vadd.f32 %v4487_v48, %v4379_v18  ;;  %v4376_v10 = vadd.f32 %v4351_v54, %v8773_v20  ;;  %v4939_v18 = vmul.f32 %v8944_v16, %v8944_v16  ;;  %v4366_v37 = vpop.f32.mrf.mxu1  ;;  %v4752_v48 = vadd.s32 %v4751_v56, %v4742_v44 }
 0x2c2   : > { %v4724_v28 = vshrl.u32 %v4723_v0, 3  ;;  %v4768_v51 = vshll.u32 %v4765_v27, 16  ;;  %v4382_v23 = vadd.f32 %v4366_v37, %v4211_v59  ;;  %v4770_v54 = vshll.u32 %v9012_v12, 16 }
 0x2c3   : > { %v8981_v50 = vmul.f32 %v6599_v63, %v4508_v42  ;;  %v4505_v20 = vadd.f32 %v8841_v35, %v4376_v10  ;;  %v4861_v63 = vsel %vm8977_vm12, %v4851_v30, %v4697_v8  ;;  %v4753_v42 = vshrl.u32 %v4752_v48, 3 }
 0x2c4   : > { %v4725_v31 = vmul.u32 10, %v4724_v28  ;;  %vm9007_vm15 = vcmp.lt.s32.totalorder %v4861_v63, 8  ;;  %vm4772_vm4 = vc.u32 %v4764_v2, %v4768_v51  ;;  %v4790_v30 = vand.u32 65535, %v9015_v22 }
 0x2c5   : > { %4909 = vst [vmem:[%s7113_s19 + $0x18] sm:$0xff] %v8981_v50  ;;  %v4896_v35 = vmul.f32 %v6596_v62, %v4505_v20  ;;  %v4773_v10 = vsel %vm4772_vm4, 1, %v7014_v14  ;;  %v4769_v7 = vshrl.u32 %v4765_v27, 16 }
 0x2c6   : > { %v4726_v9 = vsub.s32 %v8870_v1, %v4725_v31  ;;  %v4775_v38 = vadd.s32 %v4773_v10, %v4767_v49  ;;  %v4794_v53 = vmul.u32 52428, %v4790_v30  ;;  %v4036_v39 = vpop.f32.mrf.mxu3 }
 0x2c7   : > { %4906 = vst [vmem:[%s7113_s19] sm:$0xff] %v4896_v35  ;;  %v4937_v4 = vmul.f32 %v4896_v35, %v4896_v35 }
 0x2c8   : > { %v4490_v32 = vpop.f32.mrf.mxu2  ;;  %v4353_v25 = vpop.f32.mrf.mxu0  ;;  %vm4822_vm0 = vcmp.ne.s32.totalorder %v4726_v9, 0  ;;  %vm4832_vm1 = vcmp.lt.s32.totalorder %v4726_v9, 0  ;;  %v4852_v60 = vadd.s32 10, %v4726_v9 }
 0x2c9   : > { %v4509_v8 = vadd.f32 %v4490_v32, %v4380_v24  ;;  %v4377_v36 = vadd.f32 %v4353_v25, %v8798_v46  ;;  %v6601_v46 = vsel %vm9007_vm15, 1.0, %v7015_v52  ;;  %vm9029_vm2 = vmand %vm4832_vm1, %vm4822_vm0  ;;  %v4754_v24 = vmul.u32 10, %v4753_v42 }
 0x2ca   : > { %v4862_v3 = vsel %vm9029_vm2, %v4852_v60, %v4726_v9  ;;  %v4795_v32 = vmul.u32 52429, %v4791_v41  ;;  %v4797_v25 = vshll.u32 %v4794_v53, 16 }
 0x2cb   : > { %v4900_v1 = vmul.f32 %v6600_v29, %v4509_v8  ;;  %v4506_v11 = vadd.f32 %v8885_v43, %v4377_v36  ;;  %v4940_v43 = vmul.f32 %v8981_v50, %v8981_v50  ;;  %v4774_v29 = vadd.s32 %v4768_v51, %v4764_v2 }
 0x2cc   : > { %v4755_v28 = vsub.s32 %v8910_v34, %v4754_v24  ;;  %vm9045_vm6 = vcmp.lt.s32.totalorder %v4862_v3, 8  ;;  %v4771_v34 = vshrl.u32 %v9012_v12, 16  ;;  %v4799_v27 = vshll.u32 %v4795_v32, 16  ;;  %v4368_v12 = vpop.f32.mrf.mxu1 }
 0x2cd   : > { %4910 = vst [vmem:[%s7113_s19 + $0x20] sm:$0xff] %v4900_v1  ;;  %v4897_v15 = vmul.f32 %v6597_v45, %v4506_v11  ;;  %vm4776_vm5 = vc.u32 %v4774_v29, %v4770_v54  ;;  %v4941_v57 = vmul.f32 %v4900_v1, %v4900_v1  ;;  %v4798_v54 = vshrl.u32 %v4794_v53, 16 }
 0x2ce   : > { %v4777_v31 = vsel %vm4776_vm5, 1, %v7014_v14  ;;  %vm4823_vm7 = vcmp.ne.s32.totalorder %v4755_v28, 0  ;;  %vm4833_vm8 = vcmp.lt.s32.totalorder %v4755_v28, 0  ;;  %v4853_v19 = vadd.s32 10, %v4755_v28 }
 0x2cf   : > { %4907 = vst [vmem:[%s7113_s19 + $0x8] sm:$0xff] %v4897_v15  ;;  %v4917_v13 = vadd.f32 %v4897_v15, %v4896_v35  ;;  %v4938_v0 = vmul.f32 %v4897_v15, %v4897_v15  ;;  %v4779_v33 = vadd.s32 %v4777_v31, %v4775_v38  ;;  %vm9052_vm9 = vmand %vm4833_vm8, %vm4823_vm7  ;;  %v4212_v15 = vadd.f32 %v8846_v6, %v9019_v47 }
 0x2d0   : > { %v4492_v59 = vpop.f32.mrf.mxu2  ;;  %v4863_v11 = vsel %vm9052_vm9, %v4853_v19, %v4755_v28  ;;  %v4800_v10 = vshrl.u32 %v4795_v32, 16 }
 0x2d1   : > { %v4510_v20 = vadd.f32 %v4492_v59, %v4381_v61  ;;  %v4918_v26 = vadd.f32 %v4917_v13, %v8944_v16  ;;  %v4947_v63 = vadd.f32 %v4938_v0, %v4937_v4  ;;  %v4793_v16 = vmul.u32 52429, %v4790_v30 }
 0x2d2   : > { %v4780_v8 = vadd.s32 %v4779_v33, %v4769_v7  ;;  %vm4873_vm12 = vcmp.lt.s32.totalorder %v4863_v11, 8  ;;  %v4049_v0 = vadd.f32 %v4036_v39, %v8792_v21  ;;  %v4383_v59 = vadd.f32 %v4368_v12, %v4212_v15  ;;  %v4038_v21 = vpop.f32.mrf.mxu3 }
 0x2d3   : > { %v4901_v35 = vmul.f32 %v6601_v46, %v4510_v20  ;;  %v4948_v61 = vadd.f32 %v4947_v63, %v4939_v18  ;;  %v4919_v44 = vadd.f32 %v4918_v26, %v8981_v50  ;;  %v6602_v50 = vsel %vm9045_vm6, 1.0, %v7015_v52 }
 0x2d4   : > { %v4796_v18 = vmul.u32 52428, %v4791_v41  ;;  %v4781_v48 = vadd.s32 %v4780_v8, %v4771_v34  ;;  %vm4801_vm10 = vc.u32 %v4793_v16, %v4797_v25  ;;  %v4803_v60 = vadd.s32 %v4797_v25, %v4793_v16  ;;  %v4371_v41 = vpop.f32.mrf.mxu1 }
 0x2d5   : > { %4911 = vst [vmem:[%s7113_s19 + $0x28] sm:$0xff] %v4901_v35  ;;  %v4920_v62 = vadd.f32 %v4919_v44, %v4900_v1  ;;  %v4949_v9 = vadd.f32 %v4948_v61, %v4940_v43  ;;  %v4942_v36 = vmul.f32 %v4901_v35, %v4901_v35  ;;  %v4802_v46 = vsel %vm4801_vm10, 1, %v7014_v14 }
 0x2d6   : > { %v4782_v51 = vshrl.u32 %v4781_v48, 3  ;;  %v4804_v43 = vadd.s32 %v4802_v46, %v4796_v18  ;;  %vm4805_vm11 = vc.u32 %v4803_v60, %v4799_v27  ;;  %v6603_v6 = vsel %vm4873_vm12, 1.0, %v7015_v52 }
 0x2d7   : > { %v4921_v37 = vadd.f32 %v4920_v62, %v4901_v35  ;;  %v4950_v2 = vadd.f32 %v4949_v9, %v4941_v57  ;;  %v4806_v30 = vsel %vm4805_vm11, 1, %v7014_v14  ;;  %v4050_v33 = vadd.f32 %v4038_v21, %v8809_v40 }
 0x2d8   : > { %v4495_v45 = vpop.f32.mrf.mxu2  ;;  %v4808_v29 = vadd.s32 %v4806_v30, %v4804_v43  ;;  %v4936_v43 = vld [vmem:[%s9113_s6] sm:$0x1] }
 0x2d9   : > { %v4511_v1 = vadd.f32 %v4495_v45, %v4382_v23  ;;  %v4951_v49 = vadd.f32 %v4950_v2, %v4942_v36  ;;  %v4783_v23 = vmul.u32 10, %v4782_v51  ;;  %v4214_v9 = vadd.f32 %v8932_v55, %v4050_v33 }
 0x2da   : > { %v4809_v38 = vadd.s32 %v4808_v29, %v4798_v54 }
 0x2db   : > { %v4902_v42 = vmul.f32 %v6602_v50, %v4511_v1  ;;  %v4784_v13 = vsub.s32 %v8995_v58, %v4783_v23  ;;  %v4213_v58 = vadd.f32 %v8889_v5, %v4049_v0 }
 0x2dc   : > { %v4810_v28 = vadd.s32 %v4809_v38, %v4800_v10  ;;  %v4373_v62 = vpop.f32.mrf.mxu1 }
 0x2dd   : > { %4912 = vst [vmem:[%s7113_s19 + $0x30] sm:$0xff] %v4902_v42  ;;  %v4922_v4 = vadd.f32 %v4921_v37, %v4902_v42  ;;  %v4943_v24 = vmul.f32 %v4902_v42, %v4902_v42  ;;  %vm4824_vm13 = vcmp.ne.s32.totalorder %v4784_v13, 0  ;;  %vm4834_vm14 = vcmp.lt.s32.totalorder %v4784_v13, 0 }
 0x2de   : > { %v4854_v47 = vadd.s32 10, %v4784_v13  ;;  %vm4844_vm15 = vmand %vm4834_vm14, %vm4824_vm13  ;;  %v4811_v7 = vshrl.u32 %v4810_v28, 3  ;;  %v4384_v61 = vadd.f32 %v4371_v41, %v4213_v58 }
 0x2df   : > { %v4952_v3 = vadd.f32 %v4951_v49, %v4943_v24 }
 0x2e0   : > { %v4497_v20 = vpop.f32.mrf.mxu2  ;;  %v4864_v26 = vsel %vm4844_vm15, %v4854_v47, %v4784_v13  ;;  %v4812_v17 = vmul.u32 10, %v4811_v7 }
 0x2e1   : > { %v4512_v14 = vadd.f32 %v4497_v20, %v4383_v59  ;;  %vm4874_vm0 = vcmp.lt.s32.totalorder %v4864_v26, 8 }
 0x2e2   : > { %v4813_v34 = vsub.s32 %v9015_v22, %v4812_v17  ;;  %v6604_v16 = vsel %vm4874_vm0, 1.0, %v7015_v52  ;;  %v4385_v22 = vadd.f32 %v4373_v62, %v4214_v9 }
 0x2e3   : > { %v4903_v63 = vmul.f32 %v6603_v6, %v4512_v14 }
 0x2e4   : > { %vm4825_vm1 = vcmp.ne.s32.totalorder %v4813_v34, 0  ;;  %vm4835_vm2 = vcmp.lt.s32.totalorder %v4813_v34, 0  ;;  %v4855_v5 = vadd.s32 10, %v4813_v34 }
 0x2e5   : > { %4913 = vst [vmem:[%s7113_s19 + $0x38] sm:$0xff] %v4903_v63  ;;  %v4923_v31 = vadd.f32 %v4922_v4, %v4903_v63  ;;  %v4944_v35 = vmul.f32 %v4903_v63, %v4903_v63  ;;  %vm4845_vm4 = vmand %vm4835_vm2, %vm4825_vm1 }
 0x2e6   : > { %v4865_v57 = vsel %vm4845_vm4, %v4855_v5, %v4813_v34 }
 0x2e7   : > { %v4953_v44 = vadd.f32 %v4952_v3, %v4944_v35  ;;  %vm4875_vm5 = vcmp.lt.s32.totalorder %v4865_v57, 8 }
 0x2e8   : > { %v4500_v19 = vpop.f32.mrf.mxu2  ;;  %v6605_v18 = vsel %vm4875_vm5, 1.0, %v7015_v52  ;;  %v4916_v52 = vld [vmem:[%s9112_s5] sm:$0x1] }
 0x2e9   : > { %v4513_v53 = vadd.f32 %v4500_v19, %v4384_v61 }
 0x2eb   : > { %v4904_v32 = vmul.f32 %v6604_v16, %v4513_v53 }
 0x2ed   : > { %4914 = vst [vmem:[%s7113_s19 + $0x40] sm:$0xff] %v4904_v32  ;;  %v4924_v56 = vadd.f32 %v4923_v31, %v4904_v32  ;;  %v4945_v8 = vmul.f32 %v4904_v32, %v4904_v32 }
 0x2ef   : > { %v4954_v40 = vadd.f32 %v4953_v44, %v4945_v8 }
 0x2f0   : > { %v4502_v50 = vpop.f32.mrf.mxu2 }
 0x2f1   : > { %v4514_v25 = vadd.f32 %v4502_v50, %v4385_v22 }
 0x2f3   : > { %v4905_v27 = vmul.f32 %v6605_v18, %v4514_v25 }
 0x2f5   : > { %4915 = vst [vmem:[%s7113_s19 + $0x48] sm:$0x3f] %v4905_v27  ;;  %v4926_v12 = vsel %vm1168_vm3, %v4905_v27, 0.0  ;;  %v4946_v37 = vmul.f32 %v4905_v27, %v4905_v27 }
 0x2f6   : > { %v4927_v36 = vadd.f32 %v4926_v12, %v4924_v56 }
 0x2f7   : > { %v4955_v2 = vsel %vm1168_vm3, %v4946_v37, 0.0 }
 0x2f8   : > { %v4928_v45 = vrot.slane %v4927_v36, 4  ;;  %v4956_v55 = vadd.f32 %v4955_v2, %v4954_v40 }
 0x2fa   : > { %v4929_v48 = vadd.f32 %v4928_v45, %v4927_v36  ;;  %v4957_v1 = vrot.slane %v4956_v55, 4 }
 0x2fc   : > { %v4930_v11 = vrot.slane %v4929_v48, 2  ;;  %v4958_v60 = vadd.f32 %v4957_v1, %v4956_v55 }
 0x2fe   : > { %v4931_v49 = vadd.f32 %v4930_v11, %v4929_v48  ;;  %v4959_v51 = vrot.slane %v4958_v60, 2 }
 0x300   : > { %v4932_v46 = vrot.slane %v4931_v49, 1  ;;  %v4960_v39 = vadd.f32 %v4959_v51, %v4958_v60 }
 0x302   : > { %v4933_v42 = vadd.f32 %v4932_v46, %v4931_v49  ;;  %v4961_v54 = vrot.slane %v4960_v39, 1 }
 0x304   : > { %v4934_v15 = vadd.f32 %v4933_v42, %v4916_v52  ;;  %v4962_v23 = vadd.f32 %v4961_v54, %v4960_v39 }
 0x306   : > { %4935 = vst [vmem:[%s9112_s5] sm:$0x1] %v4934_v15  ;;  %v4963_v30 = vadd.f32 %v4962_v23, %v4936_v43 }
 0x308   : > { %4964 = vst [vmem:[%s9113_s6] sm:$0x1] %v4963_v30 }
 0x309 PF: > { %s17_s25 = sadd.s32 1, %s7011_s25   ;;  %s9148_s22 = sld [smem:[#allocation2_spill]] }
 0x30a   : > { %p14_p11 = scmp.ge.s32.totalorder %s17_s25, 18   ;;  %s9149_s10 = sld [smem:[#allocation3_spill]] }
 0x30b   : > { %s9150_s24 = sld [smem:[#allocation4_spill]]  ;;  %s9151_s21 = smov %s7003_s23 }
 0x30c   :  { %16 = sbr.rel (!%p14_p11) target bundleno = 3 (0x3), region = 118 }
 0x310   : > { %s9152_s23 = smov %s9149_s10 }

</bundles_post_ra>
